<compile_context>
chip_gen: v6e
topology: v6e:2x2x1
jax: 0.10.0
libtpu: 0.0.40
codegen_flags: <defaults>
</compile_context>

<pallas_src>
import functools

import jax
import jax.numpy as jnp
from jax.experimental import pallas as pl
from jax.experimental.pallas import tpu as pltpu

HIDDEN = 128
NUM_HEADS = 4
HEAD_DIM = HIDDEN // NUM_HEADS
NUM_ACTIONS = 3


# ------------------------------------------------------------------------
# Single fused forward kernel: LSTM1 -> LN1 -> LSTM2 -> LN2 -> MHA(last) ->
# out_proj -> fc1 -> fc2 -> dueling head.  Everything stays in VMEM / vregs.
# ------------------------------------------------------------------------
def _fused_forward_kernel(
    x_ref,                       # (S*Bp, D_in)  time-major, row = t*Bp + b   (f32)
    wih1_ref, whh1_ref, b1_ref,  # (D_in,4H) (H,4H) bf16, (1,4H) f32
    w2_ref, b2_ref,              # (2H,4H) bf16 = [W_ih2 ; W_hh2], (1,4H) f32
    ln1g_ref, ln1b_ref, ln2g_ref, ln2b_ref,   # (1,H) f32 each
    inpw_ref, inpb_ref,          # (H,3H) bf16, (1,3H) f32   q|k|v stacked cols
    outw_ref, outb_ref,          # (H,H) bf16, (1,H) f32
    fc1w_ref, fc1b_ref,          # (H,64) bf16, (1,64) f32
    fc2w_ref, fc2b_ref,          # (64,32) bf16, (1,32) f32
    headw_ref, headb_ref,        # (32,1+A) bf16, (1,1+A) f32 = [value | advantage]
    o_ref,                       # (B, A) f32
    gx1_ref,                     # scratch VMEM (S*Bp, 4H) f32
    h2n_ref,                     # scratch VMEM (S*Bp, H) f32
    *, seq_len, batch_pad, batch, hidden, num_heads, num_actions, eps):
    H = hidden
    Bp = batch_pad
    Dh = H // num_heads
    scale = 1.0 / float(Dh) ** 0.5
    f32 = jnp.float32
    bf16 = jnp.bfloat16

    # ---- hoist loop-invariant loads (not re-emitted per unrolled iteration) ----
    whh1 = whh1_ref[...]
    w2 = w2_ref[...]
    b1 = b1_ref[...]
    b2 = b2_ref[...]
    ln1g, ln1b = ln1g_ref[...], ln1b_ref[...]
    ln2g, ln2b = ln2g_ref[...], ln2b_ref[...]

    def layer_norm(v, g, b):
        m = jnp.mean(v, axis=-1, keepdims=True)
        c = v - m
        var = jnp.mean(c * c, axis=-1, keepdims=True)
        return c * jax.lax.rsqrt(var + eps) * g + b

    def lstm_step(gates, c_prev):
        # PyTorch gate order: i, f, g, o  (all elementwise math in f32)
        ig = jax.nn.sigmoid(gates[:, 0 * H:1 * H])
        fg = jax.nn.sigmoid(gates[:, 1 * H:2 * H])
        gg = jnp.tanh(gates[:, 2 * H:3 * H])
        og = jax.nn.sigmoid(gates[:, 3 * H:4 * H])
        c = fg * c_prev + ig * gg
        h = og * jnp.tanh(c)
        return h, c

    # ---- LSTM1 input projection hoisted out of the recurrence (one matmul),
    #      parked in VMEM scratch so it doesn't stay live in vregs for 8 steps.
    gx1_ref[...] = jnp.dot(x_ref[...].astype(bf16), wih1_ref[...],
                           preferred_element_type=f32) + b1          # (S*Bp, 4H)

    zeros = jnp.zeros((Bp, H), f32)
    h1, c1, h2, c2 = zeros, zeros, zeros, zeros
    # Both LSTM layers + LayerNorms in one statically unrolled time loop.
    for t in range(seq_len):
        g1 = gx1_ref[t * Bp:(t + 1) * Bp, :] + jnp.dot(
            h1.astype(bf16), whh1, preferred_element_type=f32)
        h1, c1 = lstm_step(g1, c1)
        h1n = layer_norm(h1, ln1g, ln1b)                 # dropout: identity (eval)
        x2 = jnp.concatenate([h1n, h2], axis=-1).astype(bf16)        # (Bp, 2H)
        g2 = jnp.dot(x2, w2, preferred_element_type=f32) + b2
        h2, c2 = lstm_step(g2, c2)
        # tile-aligned store of this step's LN2 output (dropout: identity)
        h2n_ref[t * Bp:(t + 1) * Bp, :] = layer_norm(h2, ln2g, ln2b)

    # ---- multi-head self-attention: one qkv matmul for the whole slab; only
    #      the LAST query position is consumed downstream (attn_out[-1]).
    qkv = jnp.dot(h2n_ref[...].astype(bf16), inpw_ref[...],
                  preferred_element_type=f32) + inpb_ref[...]        # (S*Bp, 3H)
    qkv3 = qkv.reshape(seq_len, Bp, 3 * H)        # sublane-tile-aligned split
    q_last = qkv3[seq_len - 1, :, 0:H] * scale                        # (Bp, H)
    k = qkv3[:, :, H:2 * H]                                           # (S, Bp, H)
    v = qkv3[:, :, 2 * H:3 * H]                                       # (S, Bp, H)

    prod = q_last[None, :, :] * k                                     # (S, Bp, H)
    s = jnp.concatenate(
        [jnp.sum(prod[:, :, hh * Dh:(hh + 1) * Dh], axis=-1, keepdims=True)
         for hh in range(num_heads)], axis=-1)                        # (S, Bp, nh)
    m = jnp.max(s, axis=0, keepdims=True)
    p = jnp.exp(s - m)
    p = p * pl.reciprocal(jnp.sum(p, axis=0, keepdims=True), approx=True)
    attn_last = jnp.concatenate(
        [jnp.sum(p[:, :, hh:hh + 1] * v[:, :, hh * Dh:(hh + 1) * Dh], axis=0)
         for hh in range(num_heads)], axis=-1)                        # (Bp, H)
    attn_last = jnp.dot(attn_last.astype(bf16), outw_ref[...],
                        preferred_element_type=f32) + outb_ref[...]

    # ---- fc1 -> fc2 -> fused dueling head (value | advantage in one matmul) ----
    f1 = jnp.maximum(
        jnp.dot(attn_last.astype(bf16), fc1w_ref[...],
                preferred_element_type=f32) + fc1b_ref[...], 0.0)     # dropout: id
    f2 = jnp.maximum(
        jnp.dot(f1.astype(bf16), fc2w_ref[...],
                preferred_element_type=f32) + fc2b_ref[...], 0.0)
    head = jnp.dot(f2.astype(bf16), headw_ref[...],
                   preferred_element_type=f32) + headb_ref[...]       # (Bp, 1+A)

    # keep only the real batch rows; padded rows never enter the mean/output
    value = head[0:batch, 0:1]
    adv = head[0:batch, 1:1 + num_actions]
    # matches PyTorch `advantages.mean()` (mean over the whole real (B, A) tensor)
    o_ref[...] = value + (adv - jnp.mean(adv))


# ------------------------------------------------------------------------
# Public wrapper: one pallas_call for the whole forward pass.  The only XLA
# ops in the jitted graph are the batch pad + time-major transpose/reshape.
# ------------------------------------------------------------------------
def trading_drl_forward(prepped, x):
    if x.ndim == 2:
        x = x[:, None, :]  # unsqueeze(1) -> seq len 1
    B, S, D_in = x.shape
    Bp = ((B + 7) // 8) * 8          # pad batch to one f32 sublane tile
    if Bp > B:
        x = jnp.concatenate([x, jnp.zeros((Bp - B, S, D_in), x.dtype)], axis=0)
    # time-major, flattened: row index = t*Bp + b
    x2d = jnp.transpose(x, (1, 0, 2)).reshape(S * Bp, D_in)

    kernel = functools.partial(
        _fused_forward_kernel, seq_len=S, batch_pad=Bp, batch=B, hidden=HIDDEN,
        num_heads=NUM_HEADS, num_actions=NUM_ACTIONS, eps=1e-5)

    return pl.pallas_call(
        kernel,
        out_shape=jax.ShapeDtypeStruct((B, NUM_ACTIONS), jnp.float32),
        # no grid, no BlockSpecs: every operand is a full array resident in VMEM
        scratch_shapes=[
            pltpu.VMEM((S * Bp, 4 * HIDDEN), jnp.float32),   # gx1 (hoisted proj)
            pltpu.VMEM((S * Bp, HIDDEN), jnp.float32),       # LN2 output slab
        ],
    )(x2d,
      prepped["lstm1_wih"], prepped["lstm1_whh"], prepped["lstm1_b"],
      prepped["lstm2_w"], prepped["lstm2_b"],
      prepped["ln1_g"], prepped["ln1_b"], prepped["ln2_g"], prepped["ln2_b"],
      prepped["in_proj_w"], prepped["in_proj_b"],
      prepped["out_proj_w"], prepped["out_proj_b"],
      prepped["fc1_w"], prepped["fc1_b"],
      prepped["fc2_w"], prepped["fc2_b"],
      prepped["head_w"], prepped["head_b"])


# ------------------------------------------------------------------------
# One-time parameter prep (hoisted out of the per-call forward path):
# weight concats, LayerNorm reshapes, and bf16 casts for all MXU operands.
# ------------------------------------------------------------------------
def prepare_params(p):
    bf16, f32 = jnp.bfloat16, jnp.float32
    return {
        "lstm1_wih": p["lstm1_wih"].astype(bf16),
        "lstm1_whh": p["lstm1_whh"].astype(bf16),
        "lstm1_b":   p["lstm1_b"].astype(f32),
        "lstm2_w":   jnp.concatenate([p["lstm2_wih"], p["lstm2_whh"]],
                                     axis=0).astype(bf16),
        "lstm2_b":   p["lstm2_b"].astype(f32),
        "ln1_g": p["ln1_g"].reshape(1, -1).astype(f32),
        "ln1_b": p["ln1_b"].reshape(1, -1).astype(f32),
        "ln2_g": p["ln2_g"].reshape(1, -1).astype(f32),
        "ln2_b": p["ln2_b"].reshape(1, -1).astype(f32),
        "in_proj_w":  p["in_proj_w"].astype(bf16),
        "in_proj_b":  p["in_proj_b"].astype(f32),
        "out_proj_w": p["out_proj_w"].astype(bf16),
        "out_proj_b": p["out_proj_b"].astype(f32),
        "fc1_w": p["fc1_w"].astype(bf16), "fc1_b": p["fc1_b"].astype(f32),
        "fc2_w": p["fc2_w"].astype(bf16), "fc2_b": p["fc2_b"].astype(f32),
        "head_w": jnp.concatenate([p["val_w"], p["adv_w"]], axis=1).astype(bf16),
        "head_b": jnp.concatenate([p["val_b"], p["adv_b"]], axis=1).astype(f32),
    }


# ------------------------------------------------------------------------
# Deterministic synthetic parameter init (shapes follow TradingDRL.__init__;
# all matmul weights are stored transposed: x @ W, W = PyTorch weight.T).
# ------------------------------------------------------------------------
def init_params(key, input_size=8, hidden=HIDDEN, num_actions=NUM_ACTIONS):
    ks = jax.random.split(key, 18)

    def w(k, shape, scale=0.1):
        return (scale * jax.random.normal(k, shape)).astype(jnp.float32)

    return {
        "lstm1_wih": w(ks[0], (input_size, 4 * hidden)),
        "lstm1_whh": w(ks[1], (hidden, 4 * hidden)),
        "lstm1_b":   w(ks[2], (1, 4 * hidden)),        # = bias_ih + bias_hh
        "lstm2_wih": w(ks[3], (hidden, 4 * hidden)),
        "lstm2_whh": w(ks[4], (hidden, 4 * hidden)),
        "lstm2_b":   w(ks[5], (1, 4 * hidden)),
        "ln1_g": jnp.ones((hidden,), jnp.float32),
        "ln1_b": jnp.zeros((hidden,), jnp.float32),
        "ln2_g": jnp.ones((hidden,), jnp.float32),
        "ln2_b": jnp.zeros((hidden,), jnp.float32),
        "in_proj_w":  w(ks[6], (hidden, 3 * hidden)),  # q|k|v stacked along cols
        "in_proj_b":  w(ks[7], (1, 3 * hidden)),
        "out_proj_w": w(ks[8], (hidden, hidden)),
        "out_proj_b": w(ks[9], (1, hidden)),
        "fc1_w": w(ks[10], (hidden, 64)), "fc1_b": w(ks[11], (1, 64)),
        "fc2_w": w(ks[12], (64, 32)),     "fc2_b": w(ks[13], (1, 32)),
        "val_w": w(ks[14], (32, 1)),      "val_b": w(ks[15], (1, 1)),
        "adv_w": w(ks[16], (32, num_actions)),
        "adv_b": w(ks[17], (1, num_actions)),
    }


# ------------------------------------------------------------------------
# Pure-JAX reference (same math, f32) for a correctness sanity check.
# ------------------------------------------------------------------------
def reference_forward(params, x):
    if x.ndim == 2:
        x = x[:, None, :]
    B, S, _ = x.shape

    def lstm(seq, wih, whh, b, hidden):
        def step(carry, x_t):
            h, c = carry
            g_all = x_t @ wih + h @ whh + b
            i = jax.nn.sigmoid(g_all[:, :hidden])
            f = jax.nn.sigmoid(g_all[:, hidden:2 * hidden])
            g = jnp.tanh(g_all[:, 2 * hidden:3 * hidden])
            o = jax.nn.sigmoid(g_all[:, 3 * hidden:])
            c = f * c + i * g
            h = o * jnp.tanh(c)
            return (h, c), h
        init = (jnp.zeros((B, hidden)), jnp.zeros((B, hidden)))
        _, hs = jax.lax.scan(step, init, seq)
        return hs

    def ln(t, g, b, eps=1e-5):
        m = t.mean(-1, keepdims=True)
        v = ((t - m) ** 2).mean(-1, keepdims=True)
        return (t - m) / jnp.sqrt(v + eps) * g + b

    x_tm = jnp.transpose(x, (1, 0, 2))
    h1 = ln(lstm(x_tm, params["lstm1_wih"], params["lstm1_whh"],
                 params["lstm1_b"], HIDDEN), params["ln1_g"], params["ln1_b"])
    h2 = ln(lstm(h1, params["lstm2_wih"], params["lstm2_whh"],
                 params["lstm2_b"], HIDDEN), params["ln2_g"], params["ln2_b"])
    x2 = h2.reshape(S * B, HIDDEN)
    qkv = x2 @ params["in_proj_w"] + params["in_proj_b"]
    q, k, v = jnp.split(qkv, 3, axis=-1)

    def heads(t):
        return jnp.transpose(t.reshape(S, B, NUM_HEADS, HEAD_DIM), (1, 2, 0, 3))

    qh, kh, vh = heads(q), heads(k), heads(v)
    s = jnp.einsum("bhqd,bhkd->bhqk", qh, kh) / (HEAD_DIM ** 0.5)
    p_att = jax.nn.softmax(s, axis=-1)
    oh = jnp.einsum("bhqk,bhkd->bhqd", p_att, vh)
    o = jnp.transpose(oh, (2, 0, 1, 3)).reshape(S * B, HIDDEN)
    attn = (o @ params["out_proj_w"] + params["out_proj_b"]).reshape(S, B, HIDDEN)
    a_last = attn[-1]
    f1 = jax.nn.relu(a_last @ params["fc1_w"] + params["fc1_b"])
    f2 = jax.nn.relu(f1 @ params["fc2_w"] + params["fc2_b"])
    value = f2 @ params["val_w"] + params["val_b"]
    adv = f2 @ params["adv_w"] + params["adv_b"]
    return value + (adv - adv.mean())


if __name__ == "__main__":
    key = jax.random.PRNGKey(0)
    pkey, xkey = jax.random.split(key)
    params = init_params(pkey, input_size=8)
    prepped = prepare_params(params)   # one-time prep, outside the forward path

    B, S, D_IN = 2, 8, 8
    x = jax.random.normal(xkey, (B, S, D_IN), dtype=jnp.float32)

    fwd = jax.jit(trading_drl_forward)
    out = jax.block_until_ready(fwd(prepped, x))
    ref = jax.block_until_ready(reference_forward(params, x))

    assert out.shape == (B, NUM_ACTIONS), out.shape
    assert bool(jnp.all(jnp.isfinite(out)))
    # Tolerance absorbs bf16 MXU operands in the kernel vs the f32 JAX reference
    # (and XLA's own default-precision f32 matmul path on TPU).
    max_diff = jnp.max(jnp.abs(out - ref))
    assert bool(max_diff < 1e-1), f"mismatch vs JAX reference: {max_diff}"
    print("KERNEL_OK")
</pallas_src>

<mosaic_0001>
module attributes {stable_mosaic.version = 11 : i64} {
  func.func @_fused_forward_kernel(%arg0: memref<64x8xf32, #tpu.memory_space<vmem>>, %arg1: memref<8x512xbf16, #tpu.memory_space<vmem>>, %arg2: memref<128x512xbf16, #tpu.memory_space<vmem>>, %arg3: memref<1x512xf32, #tpu.memory_space<vmem>>, %arg4: memref<256x512xbf16, #tpu.memory_space<vmem>>, %arg5: memref<1x512xf32, #tpu.memory_space<vmem>>, %arg6: memref<1x128xf32, #tpu.memory_space<vmem>>, %arg7: memref<1x128xf32, #tpu.memory_space<vmem>>, %arg8: memref<1x128xf32, #tpu.memory_space<vmem>>, %arg9: memref<1x128xf32, #tpu.memory_space<vmem>>, %arg10: memref<128x384xbf16, #tpu.memory_space<vmem>>, %arg11: memref<1x384xf32, #tpu.memory_space<vmem>>, %arg12: memref<128x128xbf16, #tpu.memory_space<vmem>>, %arg13: memref<1x128xf32, #tpu.memory_space<vmem>>, %arg14: memref<128x64xbf16, #tpu.memory_space<vmem>>, %arg15: memref<1x64xf32, #tpu.memory_space<vmem>>, %arg16: memref<64x32xbf16, #tpu.memory_space<vmem>>, %arg17: memref<1x32xf32, #tpu.memory_space<vmem>>, %arg18: memref<32x4xbf16, #tpu.memory_space<vmem>>, %arg19: memref<1x4xf32, #tpu.memory_space<vmem>>, %arg20: memref<2x3xf32, #tpu.memory_space<vmem>>, %arg21: memref<64x512xf32, #tpu.memory_space<vmem>>, %arg22: memref<64x128xf32, #tpu.memory_space<vmem>>) attributes {dimension_semantics = [], scalar_prefetch = 0 : i64, scratch_operands = 2 : i64, tpu.core_type = #tpu.core_type<tc>} {
    %c0 = arith.constant 0 : index
    %c0_0 = arith.constant 0 : index
    %0 = vector.load %arg2[%c0, %c0_0] : memref<128x512xbf16, #tpu.memory_space<vmem>>, vector<128x512xbf16>
    %c0_1 = arith.constant 0 : index
    %c0_2 = arith.constant 0 : index
    %1 = vector.load %arg4[%c0_1, %c0_2] : memref<256x512xbf16, #tpu.memory_space<vmem>>, vector<256x512xbf16>
    %c0_3 = arith.constant 0 : index
    %c0_4 = arith.constant 0 : index
    %2 = vector.load %arg3[%c0_3, %c0_4] : memref<1x512xf32, #tpu.memory_space<vmem>>, vector<1x512xf32>
    %c0_5 = arith.constant 0 : index
    %c0_6 = arith.constant 0 : index
    %3 = vector.load %arg5[%c0_5, %c0_6] : memref<1x512xf32, #tpu.memory_space<vmem>>, vector<1x512xf32>
    %c0_7 = arith.constant 0 : index
    %c0_8 = arith.constant 0 : index
    %4 = vector.load %arg6[%c0_7, %c0_8] : memref<1x128xf32, #tpu.memory_space<vmem>>, vector<1x128xf32>
    %c0_9 = arith.constant 0 : index
    %c0_10 = arith.constant 0 : index
    %5 = vector.load %arg7[%c0_9, %c0_10] : memref<1x128xf32, #tpu.memory_space<vmem>>, vector<1x128xf32>
    %c0_11 = arith.constant 0 : index
    %c0_12 = arith.constant 0 : index
    %6 = vector.load %arg8[%c0_11, %c0_12] : memref<1x128xf32, #tpu.memory_space<vmem>>, vector<1x128xf32>
    %c0_13 = arith.constant 0 : index
    %c0_14 = arith.constant 0 : index
    %7 = vector.load %arg9[%c0_13, %c0_14] : memref<1x128xf32, #tpu.memory_space<vmem>>, vector<1x128xf32>
    %c0_15 = arith.constant 0 : index
    %c0_16 = arith.constant 0 : index
    %8 = vector.load %arg0[%c0_15, %c0_16] : memref<64x8xf32, #tpu.memory_space<vmem>>, vector<64x8xf32>
    %9 = arith.truncf %8 : vector<64x8xf32> to vector<64x8xbf16>
    %c0_17 = arith.constant 0 : index
    %c0_18 = arith.constant 0 : index
    %10 = vector.load %arg1[%c0_17, %c0_18] : memref<8x512xbf16, #tpu.memory_space<vmem>>, vector<8x512xbf16>
    %cst = arith.constant dense<0.000000e+00> : vector<64x512xf32>
    %11 = tpu.matmul %9, %10, %cst {dimension_numbers = #tpu.dot_dimension_numbers<[1], [0], [0], [1], [0, 0, 1, 1], [], []>} : vector<64x8xbf16>, vector<8x512xbf16>, vector<64x512xf32> -> vector<64x512xf32>
    %12 = vector.broadcast %2 : vector<1x512xf32> to vector<64x512xf32>
    %13 = arith.addf %11, %12 : vector<64x512xf32>
    %c0_19 = arith.constant 0 : index
    %c0_20 = arith.constant 0 : index
    %14 = vector.load %arg21[%c0_19, %c0_20] : memref<64x512xf32, #tpu.memory_space<vmem>>, vector<64x512xf32>
    tpu.vector_store %arg21[%c0_19, %c0_20], %13 {strides = array<i32>} : memref<64x512xf32, #tpu.memory_space<vmem>>, vector<64x512xf32>,
    %cst_21 = arith.constant 0.000000e+00 : f32
    %15 = vector.broadcast %cst_21 : f32 to vector<8x128xf32>
    %c0_22 = arith.constant 0 : index
    %c0_23 = arith.constant 0 : index
    %16 = vector.load %arg21[%c0_22, %c0_23] : memref<64x512xf32, #tpu.memory_space<vmem>>, vector<8x512xf32>
    %17 = arith.truncf %15 : vector<8x128xf32> to vector<8x128xbf16>
    %cst_24 = arith.constant dense<0.000000e+00> : vector<8x512xf32>
    %18 = tpu.matmul %17, %0, %cst_24 {dimension_numbers = #tpu.dot_dimension_numbers<[1], [0], [0], [1], [0, 0, 1, 1], [], []>} : vector<8x128xbf16>, vector<128x512xbf16>, vector<8x512xf32> -> vector<8x512xf32>
    %19 = arith.addf %16, %18 : vector<8x512xf32>
    %20 = vector.extract_strided_slice %19 {offsets = [0, 0], sizes = [8, 128], strides = [1, 1]} : vector<8x512xf32> to vector<8x128xf32>
    %21 = arith.negf %20 : vector<8x128xf32>
    %22 = math.exp %21 : vector<8x128xf32>
    %cst_25 = arith.constant 1.000000e+00 : f32
    %23 = vector.broadcast %cst_25 : f32 to vector<8x128xf32>
    %24 = arith.addf %23, %22 : vector<8x128xf32>
    %25 = arith.divf %23, %24 : vector<8x128xf32>
    %26 = vector.extract_strided_slice %19 {offsets = [0, 128], sizes = [8, 128], strides = [1, 1]} : vector<8x512xf32> to vector<8x128xf32>
    %27 = arith.negf %26 : vector<8x128xf32>
    %28 = math.exp %27 : vector<8x128xf32>
    %cst_26 = arith.constant 1.000000e+00 : f32
    %29 = vector.broadcast %cst_26 : f32 to vector<8x128xf32>
    %30 = arith.addf %29, %28 : vector<8x128xf32>
    %31 = arith.divf %29, %30 : vector<8x128xf32>
    %32 = vector.extract_strided_slice %19 {offsets = [0, 256], sizes = [8, 128], strides = [1, 1]} : vector<8x512xf32> to vector<8x128xf32>
    %33 = math.tanh %32 : vector<8x128xf32>
    %34 = vector.extract_strided_slice %19 {offsets = [0, 384], sizes = [8, 128], strides = [1, 1]} : vector<8x512xf32> to vector<8x128xf32>
    %35 = arith.negf %34 : vector<8x128xf32>
    %36 = math.exp %35 : vector<8x128xf32>
    %cst_27 = arith.constant 1.000000e+00 : f32
    %37 = vector.broadcast %cst_27 : f32 to vector<8x128xf32>
    %38 = arith.addf %37, %36 : vector<8x128xf32>
    %39 = arith.divf %37, %38 : vector<8x128xf32>
    %40 = arith.mulf %31, %15 : vector<8x128xf32>
    %41 = arith.mulf %25, %33 : vector<8x128xf32>
    %42 = arith.addf %40, %41 : vector<8x128xf32>
    %43 = math.tanh %42 : vector<8x128xf32>
    %44 = arith.mulf %39, %43 : vector<8x128xf32>
    %cst_28 = arith.constant dense<0.000000e+00> : vector<8xf32>
    %45 = vector.multi_reduction <add>, %44, %cst_28 [1] : vector<8x128xf32> to vector<8xf32>
    %46 = vector.shape_cast %45 : vector<8xf32> to vector<8x1xf32>
    %cst_29 = arith.constant 1.280000e+02 : f32
    %47 = vector.broadcast %cst_29 : f32 to vector<8x1xf32>
    %48 = arith.divf %46, %47 : vector<8x1xf32>
    %49 = vector.broadcast %48 : vector<8x1xf32> to vector<8x128xf32>
    %50 = arith.subf %44, %49 : vector<8x128xf32>
    %51 = arith.mulf %50, %50 : vector<8x128xf32>
    %cst_30 = arith.constant dense<0.000000e+00> : vector<8xf32>
    %52 = vector.multi_reduction <add>, %51, %cst_30 [1] : vector<8x128xf32> to vector<8xf32>
    %53 = vector.shape_cast %52 : vector<8xf32> to vector<8x1xf32>
    %cst_31 = arith.constant 1.280000e+02 : f32
    %54 = vector.broadcast %cst_31 : f32 to vector<8x1xf32>
    %55 = arith.divf %53, %54 : vector<8x1xf32>
    %cst_32 = arith.constant 9.99999974E-6 : f32
    %56 = vector.broadcast %cst_32 : f32 to vector<8x1xf32>
    %57 = arith.addf %55, %56 : vector<8x1xf32>
    %58 = math.rsqrt %57 : vector<8x1xf32>
    %59 = vector.broadcast %58 : vector<8x1xf32> to vector<8x128xf32>
    %60 = arith.mulf %50, %59 : vector<8x128xf32>
    %61 = vector.broadcast %4 : vector<1x128xf32> to vector<8x128xf32>
    %62 = arith.mulf %60, %61 : vector<8x128xf32>
    %63 = vector.broadcast %5 : vector<1x128xf32> to vector<8x128xf32>
    %64 = arith.addf %62, %63 : vector<8x128xf32>
    %65 = tpu.concatenate %64, %15 in 1 : vector<8x128xf32>, vector<8x128xf32> -> vector<8x256xf32>
    %66 = arith.truncf %65 : vector<8x256xf32> to vector<8x256xbf16>
    %cst_33 = arith.constant dense<0.000000e+00> : vector<8x512xf32>
    %67 = tpu.matmul %66, %1, %cst_33 {dimension_numbers = #tpu.dot_dimension_numbers<[1], [0], [0], [1], [0, 0, 1, 1], [], []>} : vector<8x256xbf16>, vector<256x512xbf16>, vector<8x512xf32> -> vector<8x512xf32>
    %68 = vector.broadcast %3 : vector<1x512xf32> to vector<8x512xf32>
    %69 = arith.addf %67, %68 : vector<8x512xf32>
    %70 = vector.extract_strided_slice %69 {offsets = [0, 0], sizes = [8, 128], strides = [1, 1]} : vector<8x512xf32> to vector<8x128xf32>
    %71 = arith.negf %70 : vector<8x128xf32>
    %72 = math.exp %71 : vector<8x128xf32>
    %cst_34 = arith.constant 1.000000e+00 : f32
    %73 = vector.broadcast %cst_34 : f32 to vector<8x128xf32>
    %74 = arith.addf %73, %72 : vector<8x128xf32>
    %75 = arith.divf %73, %74 : vector<8x128xf32>
    %76 = vector.extract_strided_slice %69 {offsets = [0, 128], sizes = [8, 128], strides = [1, 1]} : vector<8x512xf32> to vector<8x128xf32>
    %77 = arith.negf %76 : vector<8x128xf32>
    %78 = math.exp %77 : vector<8x128xf32>
    %cst_35 = arith.constant 1.000000e+00 : f32
    %79 = vector.broadcast %cst_35 : f32 to vector<8x128xf32>
    %80 = arith.addf %79, %78 : vector<8x128xf32>
    %81 = arith.divf %79, %80 : vector<8x128xf32>
    %82 = vector.extract_strided_slice %69 {offsets = [0, 256], sizes = [8, 128], strides = [1, 1]} : vector<8x512xf32> to vector<8x128xf32>
    %83 = math.tanh %82 : vector<8x128xf32>
    %84 = vector.extract_strided_slice %69 {offsets = [0, 384], sizes = [8, 128], strides = [1, 1]} : vector<8x512xf32> to vector<8x128xf32>
    %85 = arith.negf %84 : vector<8x128xf32>
    %86 = math.exp %85 : vector<8x128xf32>
    %cst_36 = arith.constant 1.000000e+00 : f32
    %87 = vector.broadcast %cst_36 : f32 to vector<8x128xf32>
    %88 = arith.addf %87, %86 : vector<8x128xf32>
    %89 = arith.divf %87, %88 : vector<8x128xf32>
    %90 = arith.mulf %81, %15 : vector<8x128xf32>
    %91 = arith.mulf %75, %83 : vector<8x128xf32>
    %92 = arith.addf %90, %91 : vector<8x128xf32>
    %93 = math.tanh %92 : vector<8x128xf32>
    %94 = arith.mulf %89, %93 : vector<8x128xf32>
    %cst_37 = arith.constant dense<0.000000e+00> : vector<8xf32>
    %95 = vector.multi_reduction <add>, %94, %cst_37 [1] : vector<8x128xf32> to vector<8xf32>
    %96 = vector.shape_cast %95 : vector<8xf32> to vector<8x1xf32>
    %cst_38 = arith.constant 1.280000e+02 : f32
    %97 = vector.broadcast %cst_38 : f32 to vector<8x1xf32>
    %98 = arith.divf %96, %97 : vector<8x1xf32>
    %99 = vector.broadcast %98 : vector<8x1xf32> to vector<8x128xf32>
    %100 = arith.subf %94, %99 : vector<8x128xf32>
    %101 = arith.mulf %100, %100 : vector<8x128xf32>
    %cst_39 = arith.constant dense<0.000000e+00> : vector<8xf32>
    %102 = vector.multi_reduction <add>, %101, %cst_39 [1] : vector<8x128xf32> to vector<8xf32>
    %103 = vector.shape_cast %102 : vector<8xf32> to vector<8x1xf32>
    %cst_40 = arith.constant 1.280000e+02 : f32
    %104 = vector.broadcast %cst_40 : f32 to vector<8x1xf32>
    %105 = arith.divf %103, %104 : vector<8x1xf32>
    %cst_41 = arith.constant 9.99999974E-6 : f32
    %106 = vector.broadcast %cst_41 : f32 to vector<8x1xf32>
    %107 = arith.addf %105, %106 : vector<8x1xf32>
    %108 = math.rsqrt %107 : vector<8x1xf32>
    %109 = vector.broadcast %108 : vector<8x1xf32> to vector<8x128xf32>
    %110 = arith.mulf %100, %109 : vector<8x128xf32>
    %111 = vector.broadcast %6 : vector<1x128xf32> to vector<8x128xf32>
    %112 = arith.mulf %110, %111 : vector<8x128xf32>
    %113 = vector.broadcast %7 : vector<1x128xf32> to vector<8x128xf32>
    %114 = arith.addf %112, %113 : vector<8x128xf32>
    %c0_42 = arith.constant 0 : index
    %c0_43 = arith.constant 0 : index
    %115 = vector.load %arg22[%c0_42, %c0_43] : memref<64x128xf32, #tpu.memory_space<vmem>>, vector<8x128xf32>
    tpu.vector_store %arg22[%c0_42, %c0_43], %114 {strides = array<i32>} : memref<64x128xf32, #tpu.memory_space<vmem>>, vector<8x128xf32>,
    %c8 = arith.constant 8 : index
    %c0_44 = arith.constant 0 : index
    %116 = vector.load %arg21[%c8, %c0_44] : memref<64x512xf32, #tpu.memory_space<vmem>>, vector<8x512xf32>
    %117 = arith.truncf %44 : vector<8x128xf32> to vector<8x128xbf16>
    %cst_45 = arith.constant dense<0.000000e+00> : vector<8x512xf32>
    %118 = tpu.matmul %117, %0, %cst_45 {dimension_numbers = #tpu.dot_dimension_numbers<[1], [0], [0], [1], [0, 0, 1, 1], [], []>} : vector<8x128xbf16>, vector<128x512xbf16>, vector<8x512xf32> -> vector<8x512xf32>
    %119 = arith.addf %116, %118 : vector<8x512xf32>
    %120 = vector.extract_strided_slice %119 {offsets = [0, 0], sizes = [8, 128], strides = [1, 1]} : vector<8x512xf32> to vector<8x128xf32>
    %121 = arith.negf %120 : vector<8x128xf32>
    %122 = math.exp %121 : vector<8x128xf32>
    %cst_46 = arith.constant 1.000000e+00 : f32
    %123 = vector.broadcast %cst_46 : f32 to vector<8x128xf32>
    %124 = arith.addf %123, %122 : vector<8x128xf32>
    %125 = arith.divf %123, %124 : vector<8x128xf32>
    %126 = vector.extract_strided_slice %119 {offsets = [0, 128], sizes = [8, 128], strides = [1, 1]} : vector<8x512xf32> to vector<8x128xf32>
    %127 = arith.negf %126 : vector<8x128xf32>
    %128 = math.exp %127 : vector<8x128xf32>
    %cst_47 = arith.constant 1.000000e+00 : f32
    %129 = vector.broadcast %cst_47 : f32 to vector<8x128xf32>
    %130 = arith.addf %129, %128 : vector<8x128xf32>
    %131 = arith.divf %129, %130 : vector<8x128xf32>
    %132 = vector.extract_strided_slice %119 {offsets = [0, 256], sizes = [8, 128], strides = [1, 1]} : vector<8x512xf32> to vector<8x128xf32>
    %133 = math.tanh %132 : vector<8x128xf32>
    %134 = vector.extract_strided_slice %119 {offsets = [0, 384], sizes = [8, 128], strides = [1, 1]} : vector<8x512xf32> to vector<8x128xf32>
    %135 = arith.negf %134 : vector<8x128xf32>
    %136 = math.exp %135 : vector<8x128xf32>
    %cst_48 = arith.constant 1.000000e+00 : f32
    %137 = vector.broadcast %cst_48 : f32 to vector<8x128xf32>
    %138 = arith.addf %137, %136 : vector<8x128xf32>
    %139 = arith.divf %137, %138 : vector<8x128xf32>
    %140 = arith.mulf %131, %42 : vector<8x128xf32>
    %141 = arith.mulf %125, %133 : vector<8x128xf32>
    %142 = arith.addf %140, %141 : vector<8x128xf32>
    %143 = math.tanh %142 : vector<8x128xf32>
    %144 = arith.mulf %139, %143 : vector<8x128xf32>
    %cst_49 = arith.constant dense<0.000000e+00> : vector<8xf32>
    %145 = vector.multi_reduction <add>, %144, %cst_49 [1] : vector<8x128xf32> to vector<8xf32>
    %146 = vector.shape_cast %145 : vector<8xf32> to vector<8x1xf32>
    %cst_50 = arith.constant 1.280000e+02 : f32
    %147 = vector.broadcast %cst_50 : f32 to vector<8x1xf32>
    %148 = arith.divf %146, %147 : vector<8x1xf32>
    %149 = vector.broadcast %148 : vector<8x1xf32> to vector<8x128xf32>
    %150 = arith.subf %144, %149 : vector<8x128xf32>
    %151 = arith.mulf %150, %150 : vector<8x128xf32>
    %cst_51 = arith.constant dense<0.000000e+00> : vector<8xf32>
    %152 = vector.multi_reduction <add>, %151, %cst_51 [1] : vector<8x128xf32> to vector<8xf32>
    %153 = vector.shape_cast %152 : vector<8xf32> to vector<8x1xf32>
    %cst_52 = arith.constant 1.280000e+02 : f32
    %154 = vector.broadcast %cst_52 : f32 to vector<8x1xf32>
    %155 = arith.divf %153, %154 : vector<8x1xf32>
    %cst_53 = arith.constant 9.99999974E-6 : f32
    %156 = vector.broadcast %cst_53 : f32 to vector<8x1xf32>
    %157 = arith.addf %155, %156 : vector<8x1xf32>
    %158 = math.rsqrt %157 : vector<8x1xf32>
    %159 = vector.broadcast %158 : vector<8x1xf32> to vector<8x128xf32>
    %160 = arith.mulf %150, %159 : vector<8x128xf32>
    %161 = vector.broadcast %4 : vector<1x128xf32> to vector<8x128xf32>
    %162 = arith.mulf %160, %161 : vector<8x128xf32>
    %163 = vector.broadcast %5 : vector<1x128xf32> to vector<8x128xf32>
    %164 = arith.addf %162, %163 : vector<8x128xf32>
    %165 = tpu.concatenate %164, %94 in 1 : vector<8x128xf32>, vector<8x128xf32> -> vector<8x256xf32>
    %166 = arith.truncf %165 : vector<8x256xf32> to vector<8x256xbf16>
    %cst_54 = arith.constant dense<0.000000e+00> : vector<8x512xf32>
    %167 = tpu.matmul %166, %1, %cst_54 {dimension_numbers = #tpu.dot_dimension_numbers<[1], [0], [0], [1], [0, 0, 1, 1], [], []>} : vector<8x256xbf16>, vector<256x512xbf16>, vector<8x512xf32> -> vector<8x512xf32>
    %168 = vector.broadcast %3 : vector<1x512xf32> to vector<8x512xf32>
    %169 = arith.addf %167, %168 : vector<8x512xf32>
    %170 = vector.extract_strided_slice %169 {offsets = [0, 0], sizes = [8, 128], strides = [1, 1]} : vector<8x512xf32> to vector<8x128xf32>
    %171 = arith.negf %170 : vector<8x128xf32>
    %172 = math.exp %171 : vector<8x128xf32>
    %cst_55 = arith.constant 1.000000e+00 : f32
    %173 = vector.broadcast %cst_55 : f32 to vector<8x128xf32>
    %174 = arith.addf %173, %172 : vector<8x128xf32>
    %175 = arith.divf %173, %174 : vector<8x128xf32>
    %176 = vector.extract_strided_slice %169 {offsets = [0, 128], sizes = [8, 128], strides = [1, 1]} : vector<8x512xf32> to vector<8x128xf32>
    %177 = arith.negf %176 : vector<8x128xf32>
    %178 = math.exp %177 : vector<8x128xf32>
    %cst_56 = arith.constant 1.000000e+00 : f32
    %179 = vector.broadcast %cst_56 : f32 to vector<8x128xf32>
    %180 = arith.addf %179, %178 : vector<8x128xf32>
    %181 = arith.divf %179, %180 : vector<8x128xf32>
    %182 = vector.extract_strided_slice %169 {offsets = [0, 256], sizes = [8, 128], strides = [1, 1]} : vector<8x512xf32> to vector<8x128xf32>
    %183 = math.tanh %182 : vector<8x128xf32>
    %184 = vector.extract_strided_slice %169 {offsets = [0, 384], sizes = [8, 128], strides = [1, 1]} : vector<8x512xf32> to vector<8x128xf32>
    %185 = arith.negf %184 : vector<8x128xf32>
    %186 = math.exp %185 : vector<8x128xf32>
    %cst_57 = arith.constant 1.000000e+00 : f32
    %187 = vector.broadcast %cst_57 : f32 to vector<8x128xf32>
    %188 = arith.addf %187, %186 : vector<8x128xf32>
    %189 = arith.divf %187, %188 : vector<8x128xf32>
    %190 = arith.mulf %181, %92 : vector<8x128xf32>
    %191 = arith.mulf %175, %183 : vector<8x128xf32>
    %192 = arith.addf %190, %191 : vector<8x128xf32>
    %193 = math.tanh %192 : vector<8x128xf32>
    %194 = arith.mulf %189, %193 : vector<8x128xf32>
    %cst_58 = arith.constant dense<0.000000e+00> : vector<8xf32>
    %195 = vector.multi_reduction <add>, %194, %cst_58 [1] : vector<8x128xf32> to vector<8xf32>
    %196 = vector.shape_cast %195 : vector<8xf32> to vector<8x1xf32>
    %cst_59 = arith.constant 1.280000e+02 : f32
    %197 = vector.broadcast %cst_59 : f32 to vector<8x1xf32>
    %198 = arith.divf %196, %197 : vector<8x1xf32>
    %199 = vector.broadcast %198 : vector<8x1xf32> to vector<8x128xf32>
    %200 = arith.subf %194, %199 : vector<8x128xf32>
    %201 = arith.mulf %200, %200 : vector<8x128xf32>
    %cst_60 = arith.constant dense<0.000000e+00> : vector<8xf32>
    %202 = vector.multi_reduction <add>, %201, %cst_60 [1] : vector<8x128xf32> to vector<8xf32>
    %203 = vector.shape_cast %202 : vector<8xf32> to vector<8x1xf32>
    %cst_61 = arith.constant 1.280000e+02 : f32
    %204 = vector.broadcast %cst_61 : f32 to vector<8x1xf32>
    %205 = arith.divf %203, %204 : vector<8x1xf32>
    %cst_62 = arith.constant 9.99999974E-6 : f32
    %206 = vector.broadcast %cst_62 : f32 to vector<8x1xf32>
    %207 = arith.addf %205, %206 : vector<8x1xf32>
    %208 = math.rsqrt %207 : vector<8x1xf32>
    %209 = vector.broadcast %208 : vector<8x1xf32> to vector<8x128xf32>
    %210 = arith.mulf %200, %209 : vector<8x128xf32>
    %211 = vector.broadcast %6 : vector<1x128xf32> to vector<8x128xf32>
    %212 = arith.mulf %210, %211 : vector<8x128xf32>
    %213 = vector.broadcast %7 : vector<1x128xf32> to vector<8x128xf32>
    %214 = arith.addf %212, %213 : vector<8x128xf32>
    %c8_63 = arith.constant 8 : index
    %c0_64 = arith.constant 0 : index
    %215 = vector.load %arg22[%c8_63, %c0_64] : memref<64x128xf32, #tpu.memory_space<vmem>>, vector<8x128xf32>
    tpu.vector_store %arg22[%c8_63, %c0_64], %214 {strides = array<i32>} : memref<64x128xf32, #tpu.memory_space<vmem>>, vector<8x128xf32>,
    %c16 = arith.constant 16 : index
    %c0_65 = arith.constant 0 : index
    %216 = vector.load %arg21[%c16, %c0_65] : memref<64x512xf32, #tpu.memory_space<vmem>>, vector<8x512xf32>
    %217 = arith.truncf %144 : vector<8x128xf32> to vector<8x128xbf16>
    %cst_66 = arith.constant dense<0.000000e+00> : vector<8x512xf32>
    %218 = tpu.matmul %217, %0, %cst_66 {dimension_numbers = #tpu.dot_dimension_numbers<[1], [0], [0], [1], [0, 0, 1, 1], [], []>} : vector<8x128xbf16>, vector<128x512xbf16>, vector<8x512xf32> -> vector<8x512xf32>
    %219 = arith.addf %216, %218 : vector<8x512xf32>
    %220 = vector.extract_strided_slice %219 {offsets = [0, 0], sizes = [8, 128], strides = [1, 1]} : vector<8x512xf32> to vector<8x128xf32>
    %221 = arith.negf %220 : vector<8x128xf32>
    %222 = math.exp %221 : vector<8x128xf32>
    %cst_67 = arith.constant 1.000000e+00 : f32
    %223 = vector.broadcast %cst_67 : f32 to vector<8x128xf32>
    %224 = arith.addf %223, %222 : vector<8x128xf32>
    %225 = arith.divf %223, %224 : vector<8x128xf32>
    %226 = vector.extract_strided_slice %219 {offsets = [0, 128], sizes = [8, 128], strides = [1, 1]} : vector<8x512xf32> to vector<8x128xf32>
    %227 = arith.negf %226 : vector<8x128xf32>
    %228 = math.exp %227 : vector<8x128xf32>
    %cst_68 = arith.constant 1.000000e+00 : f32
    %229 = vector.broadcast %cst_68 : f32 to vector<8x128xf32>
    %230 = arith.addf %229, %228 : vector<8x128xf32>
    %231 = arith.divf %229, %230 : vector<8x128xf32>
    %232 = vector.extract_strided_slice %219 {offsets = [0, 256], sizes = [8, 128], strides = [1, 1]} : vector<8x512xf32> to vector<8x128xf32>
    %233 = math.tanh %232 : vector<8x128xf32>
    %234 = vector.extract_strided_slice %219 {offsets = [0, 384], sizes = [8, 128], strides = [1, 1]} : vector<8x512xf32> to vector<8x128xf32>
    %235 = arith.negf %234 : vector<8x128xf32>
    %236 = math.exp %235 : vector<8x128xf32>
    %cst_69 = arith.constant 1.000000e+00 : f32
    %237 = vector.broadcast %cst_69 : f32 to vector<8x128xf32>
    %238 = arith.addf %237, %236 : vector<8x128xf32>
    %239 = arith.divf %237, %238 : vector<8x128xf32>
    %240 = arith.mulf %231, %142 : vector<8x128xf32>
    %241 = arith.mulf %225, %233 : vector<8x128xf32>
    %242 = arith.addf %240, %241 : vector<8x128xf32>
    %243 = math.tanh %242 : vector<8x128xf32>
    %244 = arith.mulf %239, %243 : vector<8x128xf32>
    %cst_70 = arith.constant dense<0.000000e+00> : vector<8xf32>
    %245 = vector.multi_reduction <add>, %244, %cst_70 [1] : vector<8x128xf32> to vector<8xf32>
    %246 = vector.shape_cast %245 : vector<8xf32> to vector<8x1xf32>
    %cst_71 = arith.constant 1.280000e+02 : f32
    %247 = vector.broadcast %cst_71 : f32 to vector<8x1xf32>
    %248 = arith.divf %246, %247 : vector<8x1xf32>
    %249 = vector.broadcast %248 : vector<8x1xf32> to vector<8x128xf32>
    %250 = arith.subf %244, %249 : vector<8x128xf32>
    %251 = arith.mulf %250, %250 : vector<8x128xf32>
    %cst_72 = arith.constant dense<0.000000e+00> : vector<8xf32>
    %252 = vector.multi_reduction <add>, %251, %cst_72 [1] : vector<8x128xf32> to vector<8xf32>
    %253 = vector.shape_cast %252 : vector<8xf32> to vector<8x1xf32>
    %cst_73 = arith.constant 1.280000e+02 : f32
    %254 = vector.broadcast %cst_73 : f32 to vector<8x1xf32>
    %255 = arith.divf %253, %254 : vector<8x1xf32>
    %cst_74 = arith.constant 9.99999974E-6 : f32
    %256 = vector.broadcast %cst_74 : f32 to vector<8x1xf32>
    %257 = arith.addf %255, %256 : vector<8x1xf32>
    %258 = math.rsqrt %257 : vector<8x1xf32>
    %259 = vector.broadcast %258 : vector<8x1xf32> to vector<8x128xf32>
    %260 = arith.mulf %250, %259 : vector<8x128xf32>
    %261 = vector.broadcast %4 : vector<1x128xf32> to vector<8x128xf32>
    %262 = arith.mulf %260, %261 : vector<8x128xf32>
    %263 = vector.broadcast %5 : vector<1x128xf32> to vector<8x128xf32>
    %264 = arith.addf %262, %263 : vector<8x128xf32>
    %265 = tpu.concatenate %264, %194 in 1 : vector<8x128xf32>, vector<8x128xf32> -> vector<8x256xf32>
    %266 = arith.truncf %265 : vector<8x256xf32> to vector<8x256xbf16>
    %cst_75 = arith.constant dense<0.000000e+00> : vector<8x512xf32>
    %267 = tpu.matmul %266, %1, %cst_75 {dimension_numbers = #tpu.dot_dimension_numbers<[1], [0], [0], [1], [0, 0, 1, 1], [], []>} : vector<8x256xbf16>, vector<256x512xbf16>, vector<8x512xf32> -> vector<8x512xf32>
    %268 = vector.broadcast %3 : vector<1x512xf32> to vector<8x512xf32>
    %269 = arith.addf %267, %268 : vector<8x512xf32>
    %270 = vector.extract_strided_slice %269 {offsets = [0, 0], sizes = [8, 128], strides = [1, 1]} : vector<8x512xf32> to vector<8x128xf32>
    %271 = arith.negf %270 : vector<8x128xf32>
    %272 = math.exp %271 : vector<8x128xf32>
    %cst_76 = arith.constant 1.000000e+00 : f32
    %273 = vector.broadcast %cst_76 : f32 to vector<8x128xf32>
    %274 = arith.addf %273, %272 : vector<8x128xf32>
    %275 = arith.divf %273, %274 : vector<8x128xf32>
    %276 = vector.extract_strided_slice %269 {offsets = [0, 128], sizes = [8, 128], strides = [1, 1]} : vector<8x512xf32> to vector<8x128xf32>
    %277 = arith.negf %276 : vector<8x128xf32>
    %278 = math.exp %277 : vector<8x128xf32>
    %cst_77 = arith.constant 1.000000e+00 : f32
    %279 = vector.broadcast %cst_77 : f32 to vector<8x128xf32>
    %280 = arith.addf %279, %278 : vector<8x128xf32>
    %281 = arith.divf %279, %280 : vector<8x128xf32>
    %282 = vector.extract_strided_slice %269 {offsets = [0, 256], sizes = [8, 128], strides = [1, 1]} : vector<8x512xf32> to vector<8x128xf32>
    %283 = math.tanh %282 : vector<8x128xf32>
    %284 = vector.extract_strided_slice %269 {offsets = [0, 384], sizes = [8, 128], strides = [1, 1]} : vector<8x512xf32> to vector<8x128xf32>
    %285 = arith.negf %284 : vector<8x128xf32>
    %286 = math.exp %285 : vector<8x128xf32>
    %cst_78 = arith.constant 1.000000e+00 : f32
    %287 = vector.broadcast %cst_78 : f32 to vector<8x128xf32>
    %288 = arith.addf %287, %286 : vector<8x128xf32>
    %289 = arith.divf %287, %288 : vector<8x128xf32>
    %290 = arith.mulf %281, %192 : vector<8x128xf32>
    %291 = arith.mulf %275, %283 : vector<8x128xf32>
    %292 = arith.addf %290, %291 : vector<8x128xf32>
    %293 = math.tanh %292 : vector<8x128xf32>
    %294 = arith.mulf %289, %293 : vector<8x128xf32>
    %cst_79 = arith.constant dense<0.000000e+00> : vector<8xf32>
    %295 = vector.multi_reduction <add>, %294, %cst_79 [1] : vector<8x128xf32> to vector<8xf32>
    %296 = vector.shape_cast %295 : vector<8xf32> to vector<8x1xf32>
    %cst_80 = arith.constant 1.280000e+02 : f32
    %297 = vector.broadcast %cst_80 : f32 to vector<8x1xf32>
    %298 = arith.divf %296, %297 : vector<8x1xf32>
    %299 = vector.broadcast %298 : vector<8x1xf32> to vector<8x128xf32>
    %300 = arith.subf %294, %299 : vector<8x128xf32>
    %301 = arith.mulf %300, %300 : vector<8x128xf32>
    %cst_81 = arith.constant dense<0.000000e+00> : vector<8xf32>
    %302 = vector.multi_reduction <add>, %301, %cst_81 [1] : vector<8x128xf32> to vector<8xf32>
    %303 = vector.shape_cast %302 : vector<8xf32> to vector<8x1xf32>
    %cst_82 = arith.constant 1.280000e+02 : f32
    %304 = vector.broadcast %cst_82 : f32 to vector<8x1xf32>
    %305 = arith.divf %303, %304 : vector<8x1xf32>
    %cst_83 = arith.constant 9.99999974E-6 : f32
    %306 = vector.broadcast %cst_83 : f32 to vector<8x1xf32>
    %307 = arith.addf %305, %306 : vector<8x1xf32>
    %308 = math.rsqrt %307 : vector<8x1xf32>
    %309 = vector.broadcast %308 : vector<8x1xf32> to vector<8x128xf32>
    %310 = arith.mulf %300, %309 : vector<8x128xf32>
    %311 = vector.broadcast %6 : vector<1x128xf32> to vector<8x128xf32>
    %312 = arith.mulf %310, %311 : vector<8x128xf32>
    %313 = vector.broadcast %7 : vector<1x128xf32> to vector<8x128xf32>
    %314 = arith.addf %312, %313 : vector<8x128xf32>
    %c16_84 = arith.constant 16 : index
    %c0_85 = arith.constant 0 : index
    %315 = vector.load %arg22[%c16_84, %c0_85] : memref<64x128xf32, #tpu.memory_space<vmem>>, vector<8x128xf32>
    tpu.vector_store %arg22[%c16_84, %c0_85], %314 {strides = array<i32>} : memref<64x128xf32, #tpu.memory_space<vmem>>, vector<8x128xf32>,
    %c24 = arith.constant 24 : index
    %c0_86 = arith.constant 0 : index
    %316 = vector.load %arg21[%c24, %c0_86] : memref<64x512xf32, #tpu.memory_space<vmem>>, vector<8x512xf32>
    %317 = arith.truncf %244 : vector<8x128xf32> to vector<8x128xbf16>
    %cst_87 = arith.constant dense<0.000000e+00> : vector<8x512xf32>
    %318 = tpu.matmul %317, %0, %cst_87 {dimension_numbers = #tpu.dot_dimension_numbers<[1], [0], [0], [1], [0, 0, 1, 1], [], []>} : vector<8x128xbf16>, vector<128x512xbf16>, vector<8x512xf32> -> vector<8x512xf32>
    %319 = arith.addf %316, %318 : vector<8x512xf32>
    %320 = vector.extract_strided_slice %319 {offsets = [0, 0], sizes = [8, 128], strides = [1, 1]} : vector<8x512xf32> to vector<8x128xf32>
    %321 = arith.negf %320 : vector<8x128xf32>
    %322 = math.exp %321 : vector<8x128xf32>
    %cst_88 = arith.constant 1.000000e+00 : f32
    %323 = vector.broadcast %cst_88 : f32 to vector<8x128xf32>
    %324 = arith.addf %323, %322 : vector<8x128xf32>
    %325 = arith.divf %323, %324 : vector<8x128xf32>
    %326 = vector.extract_strided_slice %319 {offsets = [0, 128], sizes = [8, 128], strides = [1, 1]} : vector<8x512xf32> to vector<8x128xf32>
    %327 = arith.negf %326 : vector<8x128xf32>
    %328 = math.exp %327 : vector<8x128xf32>
    %cst_89 = arith.constant 1.000000e+00 : f32
    %329 = vector.broadcast %cst_89 : f32 to vector<8x128xf32>
    %330 = arith.addf %329, %328 : vector<8x128xf32>
    %331 = arith.divf %329, %330 : vector<8x128xf32>
    %332 = vector.extract_strided_slice %319 {offsets = [0, 256], sizes = [8, 128], strides = [1, 1]} : vector<8x512xf32> to vector<8x128xf32>
    %333 = math.tanh %332 : vector<8x128xf32>
    %334 = vector.extract_strided_slice %319 {offsets = [0, 384], sizes = [8, 128], strides = [1, 1]} : vector<8x512xf32> to vector<8x128xf32>
    %335 = arith.negf %334 : vector<8x128xf32>
    %336 = math.exp %335 : vector<8x128xf32>
    %cst_90 = arith.constant 1.000000e+00 : f32
    %337 = vector.broadcast %cst_90 : f32 to vector<8x128xf32>
    %338 = arith.addf %337, %336 : vector<8x128xf32>
    %339 = arith.divf %337, %338 : vector<8x128xf32>
    %340 = arith.mulf %331, %242 : vector<8x128xf32>
    %341 = arith.mulf %325, %333 : vector<8x128xf32>
    %342 = arith.addf %340, %341 : vector<8x128xf32>
    %343 = math.tanh %342 : vector<8x128xf32>
    %344 = arith.mulf %339, %343 : vector<8x128xf32>
    %cst_91 = arith.constant dense<0.000000e+00> : vector<8xf32>
    %345 = vector.multi_reduction <add>, %344, %cst_91 [1] : vector<8x128xf32> to vector<8xf32>
    %346 = vector.shape_cast %345 : vector<8xf32> to vector<8x1xf32>
    %cst_92 = arith.constant 1.280000e+02 : f32
    %347 = vector.broadcast %cst_92 : f32 to vector<8x1xf32>
    %348 = arith.divf %346, %347 : vector<8x1xf32>
    %349 = vector.broadcast %348 : vector<8x1xf32> to vector<8x128xf32>
    %350 = arith.subf %344, %349 : vector<8x128xf32>
    %351 = arith.mulf %350, %350 : vector<8x128xf32>
    %cst_93 = arith.constant dense<0.000000e+00> : vector<8xf32>
    %352 = vector.multi_reduction <add>, %351, %cst_93 [1] : vector<8x128xf32> to vector<8xf32>
    %353 = vector.shape_cast %352 : vector<8xf32> to vector<8x1xf32>
    %cst_94 = arith.constant 1.280000e+02 : f32
    %354 = vector.broadcast %cst_94 : f32 to vector<8x1xf32>
    %355 = arith.divf %353, %354 : vector<8x1xf32>
    %cst_95 = arith.constant 9.99999974E-6 : f32
    %356 = vector.broadcast %cst_95 : f32 to vector<8x1xf32>
    %357 = arith.addf %355, %356 : vector<8x1xf32>
    %358 = math.rsqrt %357 : vector<8x1xf32>
    %359 = vector.broadcast %358 : vector<8x1xf32> to vector<8x128xf32>
    %360 = arith.mulf %350, %359 : vector<8x128xf32>
    %361 = vector.broadcast %4 : vector<1x128xf32> to vector<8x128xf32>
    %362 = arith.mulf %360, %361 : vector<8x128xf32>
    %363 = vector.broadcast %5 : vector<1x128xf32> to vector<8x128xf32>
    %364 = arith.addf %362, %363 : vector<8x128xf32>
    %365 = tpu.concatenate %364, %294 in 1 : vector<8x128xf32>, vector<8x128xf32> -> vector<8x256xf32>
    %366 = arith.truncf %365 : vector<8x256xf32> to vector<8x256xbf16>
    %cst_96 = arith.constant dense<0.000000e+00> : vector<8x512xf32>
    %367 = tpu.matmul %366, %1, %cst_96 {dimension_numbers = #tpu.dot_dimension_numbers<[1], [0], [0], [1], [0, 0, 1, 1], [], []>} : vector<8x256xbf16>, vector<256x512xbf16>, vector<8x512xf32> -> vector<8x512xf32>
    %368 = vector.broadcast %3 : vector<1x512xf32> to vector<8x512xf32>
    %369 = arith.addf %367, %368 : vector<8x512xf32>
    %370 = vector.extract_strided_slice %369 {offsets = [0, 0], sizes = [8, 128], strides = [1, 1]} : vector<8x512xf32> to vector<8x128xf32>
    %371 = arith.negf %370 : vector<8x128xf32>
    %372 = math.exp %371 : vector<8x128xf32>
    %cst_97 = arith.constant 1.000000e+00 : f32
    %373 = vector.broadcast %cst_97 : f32 to vector<8x128xf32>
    %374 = arith.addf %373, %372 : vector<8x128xf32>
    %375 = arith.divf %373, %374 : vector<8x128xf32>
    %376 = vector.extract_strided_slice %369 {offsets = [0, 128], sizes = [8, 128], strides = [1, 1]} : vector<8x512xf32> to vector<8x128xf32>
    %377 = arith.negf %376 : vector<8x128xf32>
    %378 = math.exp %377 : vector<8x128xf32>
    %cst_98 = arith.constant 1.000000e+00 : f32
    %379 = vector.broadcast %cst_98 : f32 to vector<8x128xf32>
    %380 = arith.addf %379, %378 : vector<8x128xf32>
    %381 = arith.divf %379, %380 : vector<8x128xf32>
    %382 = vector.extract_strided_slice %369 {offsets = [0, 256], sizes = [8, 128], strides = [1, 1]} : vector<8x512xf32> to vector<8x128xf32>
    %383 = math.tanh %382 : vector<8x128xf32>
    %384 = vector.extract_strided_slice %369 {offsets = [0, 384], sizes = [8, 128], strides = [1, 1]} : vector<8x512xf32> to vector<8x128xf32>
    %385 = arith.negf %384 : vector<8x128xf32>
    %386 = math.exp %385 : vector<8x128xf32>
    %cst_99 = arith.constant 1.000000e+00 : f32
    %387 = vector.broadcast %cst_99 : f32 to vector<8x128xf32>
    %388 = arith.addf %387, %386 : vector<8x128xf32>
    %389 = arith.divf %387, %388 : vector<8x128xf32>
    %390 = arith.mulf %381, %292 : vector<8x128xf32>
    %391 = arith.mulf %375, %383 : vector<8x128xf32>
    %392 = arith.addf %390, %391 : vector<8x128xf32>
    %393 = math.tanh %392 : vector<8x128xf32>
    %394 = arith.mulf %389, %393 : vector<8x128xf32>
    %cst_100 = arith.constant dense<0.000000e+00> : vector<8xf32>
    %395 = vector.multi_reduction <add>, %394, %cst_100 [1] : vector<8x128xf32> to vector<8xf32>
    %396 = vector.shape_cast %395 : vector<8xf32> to vector<8x1xf32>
    %cst_101 = arith.constant 1.280000e+02 : f32
    %397 = vector.broadcast %cst_101 : f32 to vector<8x1xf32>
    %398 = arith.divf %396, %397 : vector<8x1xf32>
    %399 = vector.broadcast %398 : vector<8x1xf32> to vector<8x128xf32>
    %400 = arith.subf %394, %399 : vector<8x128xf32>
    %401 = arith.mulf %400, %400 : vector<8x128xf32>
    %cst_102 = arith.constant dense<0.000000e+00> : vector<8xf32>
    %402 = vector.multi_reduction <add>, %401, %cst_102 [1] : vector<8x128xf32> to vector<8xf32>
    %403 = vector.shape_cast %402 : vector<8xf32> to vector<8x1xf32>
    %cst_103 = arith.constant 1.280000e+02 : f32
    %404 = vector.broadcast %cst_103 : f32 to vector<8x1xf32>
    %405 = arith.divf %403, %404 : vector<8x1xf32>
    %cst_104 = arith.constant 9.99999974E-6 : f32
    %406 = vector.broadcast %cst_104 : f32 to vector<8x1xf32>
    %407 = arith.addf %405, %406 : vector<8x1xf32>
    %408 = math.rsqrt %407 : vector<8x1xf32>
    %409 = vector.broadcast %408 : vector<8x1xf32> to vector<8x128xf32>
    %410 = arith.mulf %400, %409 : vector<8x128xf32>
    %411 = vector.broadcast %6 : vector<1x128xf32> to vector<8x128xf32>
    %412 = arith.mulf %410, %411 : vector<8x128xf32>
    %413 = vector.broadcast %7 : vector<1x128xf32> to vector<8x128xf32>
    %414 = arith.addf %412, %413 : vector<8x128xf32>
    %c24_105 = arith.constant 24 : index
    %c0_106 = arith.constant 0 : index
    %415 = vector.load %arg22[%c24_105, %c0_106] : memref<64x128xf32, #tpu.memory_space<vmem>>, vector<8x128xf32>
    tpu.vector_store %arg22[%c24_105, %c0_106], %414 {strides = array<i32>} : memref<64x128xf32, #tpu.memory_space<vmem>>, vector<8x128xf32>,
    %c32 = arith.constant 32 : index
    %c0_107 = arith.constant 0 : index
    %416 = vector.load %arg21[%c32, %c0_107] : memref<64x512xf32, #tpu.memory_space<vmem>>, vector<8x512xf32>
    %417 = arith.truncf %344 : vector<8x128xf32> to vector<8x128xbf16>
    %cst_108 = arith.constant dense<0.000000e+00> : vector<8x512xf32>
    %418 = tpu.matmul %417, %0, %cst_108 {dimension_numbers = #tpu.dot_dimension_numbers<[1], [0], [0], [1], [0, 0, 1, 1], [], []>} : vector<8x128xbf16>, vector<128x512xbf16>, vector<8x512xf32> -> vector<8x512xf32>
    %419 = arith.addf %416, %418 : vector<8x512xf32>
    %420 = vector.extract_strided_slice %419 {offsets = [0, 0], sizes = [8, 128], strides = [1, 1]} : vector<8x512xf32> to vector<8x128xf32>
    %421 = arith.negf %420 : vector<8x128xf32>
    %422 = math.exp %421 : vector<8x128xf32>
    %cst_109 = arith.constant 1.000000e+00 : f32
    %423 = vector.broadcast %cst_109 : f32 to vector<8x128xf32>
    %424 = arith.addf %423, %422 : vector<8x128xf32>
    %425 = arith.divf %423, %424 : vector<8x128xf32>
    %426 = vector.extract_strided_slice %419 {offsets = [0, 128], sizes = [8, 128], strides = [1, 1]} : vector<8x512xf32> to vector<8x128xf32>
    %427 = arith.negf %426 : vector<8x128xf32>
    %428 = math.exp %427 : vector<8x128xf32>
    %cst_110 = arith.constant 1.000000e+00 : f32
    %429 = vector.broadcast %cst_110 : f32 to vector<8x128xf32>
    %430 = arith.addf %429, %428 : vector<8x128xf32>
    %431 = arith.divf %429, %430 : vector<8x128xf32>
    %432 = vector.extract_strided_slice %419 {offsets = [0, 256], sizes = [8, 128], strides = [1, 1]} : vector<8x512xf32> to vector<8x128xf32>
    %433 = math.tanh %432 : vector<8x128xf32>
    %434 = vector.extract_strided_slice %419 {offsets = [0, 384], sizes = [8, 128], strides = [1, 1]} : vector<8x512xf32> to vector<8x128xf32>
    %435 = arith.negf %434 : vector<8x128xf32>
    %436 = math.exp %435 : vector<8x128xf32>
    %cst_111 = arith.constant 1.000000e+00 : f32
    %437 = vector.broadcast %cst_111 : f32 to vector<8x128xf32>
    %438 = arith.addf %437, %436 : vector<8x128xf32>
    %439 = arith.divf %437, %438 : vector<8x128xf32>
    %440 = arith.mulf %431, %342 : vector<8x128xf32>
    %441 = arith.mulf %425, %433 : vector<8x128xf32>
    %442 = arith.addf %440, %441 : vector<8x128xf32>
    %443 = math.tanh %442 : vector<8x128xf32>
    %444 = arith.mulf %439, %443 : vector<8x128xf32>
    %cst_112 = arith.constant dense<0.000000e+00> : vector<8xf32>
    %445 = vector.multi_reduction <add>, %444, %cst_112 [1] : vector<8x128xf32> to vector<8xf32>
    %446 = vector.shape_cast %445 : vector<8xf32> to vector<8x1xf32>
    %cst_113 = arith.constant 1.280000e+02 : f32
    %447 = vector.broadcast %cst_113 : f32 to vector<8x1xf32>
    %448 = arith.divf %446, %447 : vector<8x1xf32>
    %449 = vector.broadcast %448 : vector<8x1xf32> to vector<8x128xf32>
    %450 = arith.subf %444, %449 : vector<8x128xf32>
    %451 = arith.mulf %450, %450 : vector<8x128xf32>
    %cst_114 = arith.constant dense<0.000000e+00> : vector<8xf32>
    %452 = vector.multi_reduction <add>, %451, %cst_114 [1] : vector<8x128xf32> to vector<8xf32>
    %453 = vector.shape_cast %452 : vector<8xf32> to vector<8x1xf32>
    %cst_115 = arith.constant 1.280000e+02 : f32
    %454 = vector.broadcast %cst_115 : f32 to vector<8x1xf32>
    %455 = arith.divf %453, %454 : vector<8x1xf32>
    %cst_116 = arith.constant 9.99999974E-6 : f32
    %456 = vector.broadcast %cst_116 : f32 to vector<8x1xf32>
    %457 = arith.addf %455, %456 : vector<8x1xf32>
    %458 = math.rsqrt %457 : vector<8x1xf32>
    %459 = vector.broadcast %458 : vector<8x1xf32> to vector<8x128xf32>
    %460 = arith.mulf %450, %459 : vector<8x128xf32>
    %461 = vector.broadcast %4 : vector<1x128xf32> to vector<8x128xf32>
    %462 = arith.mulf %460, %461 : vector<8x128xf32>
    %463 = vector.broadcast %5 : vector<1x128xf32> to vector<8x128xf32>
    %464 = arith.addf %462, %463 : vector<8x128xf32>
    %465 = tpu.concatenate %464, %394 in 1 : vector<8x128xf32>, vector<8x128xf32> -> vector<8x256xf32>
    %466 = arith.truncf %465 : vector<8x256xf32> to vector<8x256xbf16>
    %cst_117 = arith.constant dense<0.000000e+00> : vector<8x512xf32>
    %467 = tpu.matmul %466, %1, %cst_117 {dimension_numbers = #tpu.dot_dimension_numbers<[1], [0], [0], [1], [0, 0, 1, 1], [], []>} : vector<8x256xbf16>, vector<256x512xbf16>, vector<8x512xf32> -> vector<8x512xf32>
    %468 = vector.broadcast %3 : vector<1x512xf32> to vector<8x512xf32>
    %469 = arith.addf %467, %468 : vector<8x512xf32>
    %470 = vector.extract_strided_slice %469 {offsets = [0, 0], sizes = [8, 128], strides = [1, 1]} : vector<8x512xf32> to vector<8x128xf32>
    %471 = arith.negf %470 : vector<8x128xf32>
    %472 = math.exp %471 : vector<8x128xf32>
    %cst_118 = arith.constant 1.000000e+00 : f32
    %473 = vector.broadcast %cst_118 : f32 to vector<8x128xf32>
    %474 = arith.addf %473, %472 : vector<8x128xf32>
    %475 = arith.divf %473, %474 : vector<8x128xf32>
    %476 = vector.extract_strided_slice %469 {offsets = [0, 128], sizes = [8, 128], strides = [1, 1]} : vector<8x512xf32> to vector<8x128xf32>
    %477 = arith.negf %476 : vector<8x128xf32>
    %478 = math.exp %477 : vector<8x128xf32>
    %cst_119 = arith.constant 1.000000e+00 : f32
    %479 = vector.broadcast %cst_119 : f32 to vector<8x128xf32>
    %480 = arith.addf %479, %478 : vector<8x128xf32>
    %481 = arith.divf %479, %480 : vector<8x128xf32>
    %482 = vector.extract_strided_slice %469 {offsets = [0, 256], sizes = [8, 128], strides = [1, 1]} : vector<8x512xf32> to vector<8x128xf32>
    %483 = math.tanh %482 : vector<8x128xf32>
    %484 = vector.extract_strided_slice %469 {offsets = [0, 384], sizes = [8, 128], strides = [1, 1]} : vector<8x512xf32> to vector<8x128xf32>
    %485 = arith.negf %484 : vector<8x128xf32>
    %486 = math.exp %485 : vector<8x128xf32>
    %cst_120 = arith.constant 1.000000e+00 : f32
    %487 = vector.broadcast %cst_120 : f32 to vector<8x128xf32>
    %488 = arith.addf %487, %486 : vector<8x128xf32>
    %489 = arith.divf %487, %488 : vector<8x128xf32>
    %490 = arith.mulf %481, %392 : vector<8x128xf32>
    %491 = arith.mulf %475, %483 : vector<8x128xf32>
    %492 = arith.addf %490, %491 : vector<8x128xf32>
    %493 = math.tanh %492 : vector<8x128xf32>
    %494 = arith.mulf %489, %493 : vector<8x128xf32>
    %cst_121 = arith.constant dense<0.000000e+00> : vector<8xf32>
    %495 = vector.multi_reduction <add>, %494, %cst_121 [1] : vector<8x128xf32> to vector<8xf32>
    %496 = vector.shape_cast %495 : vector<8xf32> to vector<8x1xf32>
    %cst_122 = arith.constant 1.280000e+02 : f32
    %497 = vector.broadcast %cst_122 : f32 to vector<8x1xf32>
    %498 = arith.divf %496, %497 : vector<8x1xf32>
    %499 = vector.broadcast %498 : vector<8x1xf32> to vector<8x128xf32>
    %500 = arith.subf %494, %499 : vector<8x128xf32>
    %501 = arith.mulf %500, %500 : vector<8x128xf32>
    %cst_123 = arith.constant dense<0.000000e+00> : vector<8xf32>
    %502 = vector.multi_reduction <add>, %501, %cst_123 [1] : vector<8x128xf32> to vector<8xf32>
    %503 = vector.shape_cast %502 : vector<8xf32> to vector<8x1xf32>
    %cst_124 = arith.constant 1.280000e+02 : f32
    %504 = vector.broadcast %cst_124 : f32 to vector<8x1xf32>
    %505 = arith.divf %503, %504 : vector<8x1xf32>
    %cst_125 = arith.constant 9.99999974E-6 : f32
    %506 = vector.broadcast %cst_125 : f32 to vector<8x1xf32>
    %507 = arith.addf %505, %506 : vector<8x1xf32>
    %508 = math.rsqrt %507 : vector<8x1xf32>
    %509 = vector.broadcast %508 : vector<8x1xf32> to vector<8x128xf32>
    %510 = arith.mulf %500, %509 : vector<8x128xf32>
    %511 = vector.broadcast %6 : vector<1x128xf32> to vector<8x128xf32>
    %512 = arith.mulf %510, %511 : vector<8x128xf32>
    %513 = vector.broadcast %7 : vector<1x128xf32> to vector<8x128xf32>
    %514 = arith.addf %512, %513 : vector<8x128xf32>
    %c32_126 = arith.constant 32 : index
    %c0_127 = arith.constant 0 : index
    %515 = vector.load %arg22[%c32_126, %c0_127] : memref<64x128xf32, #tpu.memory_space<vmem>>, vector<8x128xf32>
    tpu.vector_store %arg22[%c32_126, %c0_127], %514 {strides = array<i32>} : memref<64x128xf32, #tpu.memory_space<vmem>>, vector<8x128xf32>,
    %c40 = arith.constant 40 : index
    %c0_128 = arith.constant 0 : index
    %516 = vector.load %arg21[%c40, %c0_128] : memref<64x512xf32, #tpu.memory_space<vmem>>, vector<8x512xf32>
    %517 = arith.truncf %444 : vector<8x128xf32> to vector<8x128xbf16>
    %cst_129 = arith.constant dense<0.000000e+00> : vector<8x512xf32>
    %518 = tpu.matmul %517, %0, %cst_129 {dimension_numbers = #tpu.dot_dimension_numbers<[1], [0], [0], [1], [0, 0, 1, 1], [], []>} : vector<8x128xbf16>, vector<128x512xbf16>, vector<8x512xf32> -> vector<8x512xf32>
    %519 = arith.addf %516, %518 : vector<8x512xf32>
    %520 = vector.extract_strided_slice %519 {offsets = [0, 0], sizes = [8, 128], strides = [1, 1]} : vector<8x512xf32> to vector<8x128xf32>
    %521 = arith.negf %520 : vector<8x128xf32>
    %522 = math.exp %521 : vector<8x128xf32>
    %cst_130 = arith.constant 1.000000e+00 : f32
    %523 = vector.broadcast %cst_130 : f32 to vector<8x128xf32>
    %524 = arith.addf %523, %522 : vector<8x128xf32>
    %525 = arith.divf %523, %524 : vector<8x128xf32>
    %526 = vector.extract_strided_slice %519 {offsets = [0, 128], sizes = [8, 128], strides = [1, 1]} : vector<8x512xf32> to vector<8x128xf32>
    %527 = arith.negf %526 : vector<8x128xf32>
    %528 = math.exp %527 : vector<8x128xf32>
    %cst_131 = arith.constant 1.000000e+00 : f32
    %529 = vector.broadcast %cst_131 : f32 to vector<8x128xf32>
    %530 = arith.addf %529, %528 : vector<8x128xf32>
    %531 = arith.divf %529, %530 : vector<8x128xf32>
    %532 = vector.extract_strided_slice %519 {offsets = [0, 256], sizes = [8, 128], strides = [1, 1]} : vector<8x512xf32> to vector<8x128xf32>
    %533 = math.tanh %532 : vector<8x128xf32>
    %534 = vector.extract_strided_slice %519 {offsets = [0, 384], sizes = [8, 128], strides = [1, 1]} : vector<8x512xf32> to vector<8x128xf32>
    %535 = arith.negf %534 : vector<8x128xf32>
    %536 = math.exp %535 : vector<8x128xf32>
    %cst_132 = arith.constant 1.000000e+00 : f32
    %537 = vector.broadcast %cst_132 : f32 to vector<8x128xf32>
    %538 = arith.addf %537, %536 : vector<8x128xf32>
    %539 = arith.divf %537, %538 : vector<8x128xf32>
    %540 = arith.mulf %531, %442 : vector<8x128xf32>
    %541 = arith.mulf %525, %533 : vector<8x128xf32>
    %542 = arith.addf %540, %541 : vector<8x128xf32>
    %543 = math.tanh %542 : vector<8x128xf32>
    %544 = arith.mulf %539, %543 : vector<8x128xf32>
    %cst_133 = arith.constant dense<0.000000e+00> : vector<8xf32>
    %545 = vector.multi_reduction <add>, %544, %cst_133 [1] : vector<8x128xf32> to vector<8xf32>
    %546 = vector.shape_cast %545 : vector<8xf32> to vector<8x1xf32>
    %cst_134 = arith.constant 1.280000e+02 : f32
    %547 = vector.broadcast %cst_134 : f32 to vector<8x1xf32>
    %548 = arith.divf %546, %547 : vector<8x1xf32>
    %549 = vector.broadcast %548 : vector<8x1xf32> to vector<8x128xf32>
    %550 = arith.subf %544, %549 : vector<8x128xf32>
    %551 = arith.mulf %550, %550 : vector<8x128xf32>
    %cst_135 = arith.constant dense<0.000000e+00> : vector<8xf32>
    %552 = vector.multi_reduction <add>, %551, %cst_135 [1] : vector<8x128xf32> to vector<8xf32>
    %553 = vector.shape_cast %552 : vector<8xf32> to vector<8x1xf32>
    %cst_136 = arith.constant 1.280000e+02 : f32
    %554 = vector.broadcast %cst_136 : f32 to vector<8x1xf32>
    %555 = arith.divf %553, %554 : vector<8x1xf32>
    %cst_137 = arith.constant 9.99999974E-6 : f32
    %556 = vector.broadcast %cst_137 : f32 to vector<8x1xf32>
    %557 = arith.addf %555, %556 : vector<8x1xf32>
    %558 = math.rsqrt %557 : vector<8x1xf32>
    %559 = vector.broadcast %558 : vector<8x1xf32> to vector<8x128xf32>
    %560 = arith.mulf %550, %559 : vector<8x128xf32>
    %561 = vector.broadcast %4 : vector<1x128xf32> to vector<8x128xf32>
    %562 = arith.mulf %560, %561 : vector<8x128xf32>
    %563 = vector.broadcast %5 : vector<1x128xf32> to vector<8x128xf32>
    %564 = arith.addf %562, %563 : vector<8x128xf32>
    %565 = tpu.concatenate %564, %494 in 1 : vector<8x128xf32>, vector<8x128xf32> -> vector<8x256xf32>
    %566 = arith.truncf %565 : vector<8x256xf32> to vector<8x256xbf16>
    %cst_138 = arith.constant dense<0.000000e+00> : vector<8x512xf32>
    %567 = tpu.matmul %566, %1, %cst_138 {dimension_numbers = #tpu.dot_dimension_numbers<[1], [0], [0], [1], [0, 0, 1, 1], [], []>} : vector<8x256xbf16>, vector<256x512xbf16>, vector<8x512xf32> -> vector<8x512xf32>
    %568 = vector.broadcast %3 : vector<1x512xf32> to vector<8x512xf32>
    %569 = arith.addf %567, %568 : vector<8x512xf32>
    %570 = vector.extract_strided_slice %569 {offsets = [0, 0], sizes = [8, 128], strides = [1, 1]} : vector<8x512xf32> to vector<8x128xf32>
    %571 = arith.negf %570 : vector<8x128xf32>
    %572 = math.exp %571 : vector<8x128xf32>
    %cst_139 = arith.constant 1.000000e+00 : f32
    %573 = vector.broadcast %cst_139 : f32 to vector<8x128xf32>
    %574 = arith.addf %573, %572 : vector<8x128xf32>
    %575 = arith.divf %573, %574 : vector<8x128xf32>
    %576 = vector.extract_strided_slice %569 {offsets = [0, 128], sizes = [8, 128], strides = [1, 1]} : vector<8x512xf32> to vector<8x128xf32>
    %577 = arith.negf %576 : vector<8x128xf32>
    %578 = math.exp %577 : vector<8x128xf32>
    %cst_140 = arith.constant 1.000000e+00 : f32
    %579 = vector.broadcast %cst_140 : f32 to vector<8x128xf32>
    %580 = arith.addf %579, %578 : vector<8x128xf32>
    %581 = arith.divf %579, %580 : vector<8x128xf32>
    %582 = vector.extract_strided_slice %569 {offsets = [0, 256], sizes = [8, 128], strides = [1, 1]} : vector<8x512xf32> to vector<8x128xf32>
    %583 = math.tanh %582 : vector<8x128xf32>
    %584 = vector.extract_strided_slice %569 {offsets = [0, 384], sizes = [8, 128], strides = [1, 1]} : vector<8x512xf32> to vector<8x128xf32>
    %585 = arith.negf %584 : vector<8x128xf32>
    %586 = math.exp %585 : vector<8x128xf32>
    %cst_141 = arith.constant 1.000000e+00 : f32
    %587 = vector.broadcast %cst_141 : f32 to vector<8x128xf32>
    %588 = arith.addf %587, %586 : vector<8x128xf32>
    %589 = arith.divf %587, %588 : vector<8x128xf32>
    %590 = arith.mulf %581, %492 : vector<8x128xf32>
    %591 = arith.mulf %575, %583 : vector<8x128xf32>
    %592 = arith.addf %590, %591 : vector<8x128xf32>
    %593 = math.tanh %592 : vector<8x128xf32>
    %594 = arith.mulf %589, %593 : vector<8x128xf32>
    %cst_142 = arith.constant dense<0.000000e+00> : vector<8xf32>
    %595 = vector.multi_reduction <add>, %594, %cst_142 [1] : vector<8x128xf32> to vector<8xf32>
    %596 = vector.shape_cast %595 : vector<8xf32> to vector<8x1xf32>
    %cst_143 = arith.constant 1.280000e+02 : f32
    %597 = vector.broadcast %cst_143 : f32 to vector<8x1xf32>
    %598 = arith.divf %596, %597 : vector<8x1xf32>
    %599 = vector.broadcast %598 : vector<8x1xf32> to vector<8x128xf32>
    %600 = arith.subf %594, %599 : vector<8x128xf32>
    %601 = arith.mulf %600, %600 : vector<8x128xf32>
    %cst_144 = arith.constant dense<0.000000e+00> : vector<8xf32>
    %602 = vector.multi_reduction <add>, %601, %cst_144 [1] : vector<8x128xf32> to vector<8xf32>
    %603 = vector.shape_cast %602 : vector<8xf32> to vector<8x1xf32>
    %cst_145 = arith.constant 1.280000e+02 : f32
    %604 = vector.broadcast %cst_145 : f32 to vector<8x1xf32>
    %605 = arith.divf %603, %604 : vector<8x1xf32>
    %cst_146 = arith.constant 9.99999974E-6 : f32
    %606 = vector.broadcast %cst_146 : f32 to vector<8x1xf32>
    %607 = arith.addf %605, %606 : vector<8x1xf32>
    %608 = math.rsqrt %607 : vector<8x1xf32>
    %609 = vector.broadcast %608 : vector<8x1xf32> to vector<8x128xf32>
    %610 = arith.mulf %600, %609 : vector<8x128xf32>
    %611 = vector.broadcast %6 : vector<1x128xf32> to vector<8x128xf32>
    %612 = arith.mulf %610, %611 : vector<8x128xf32>
    %613 = vector.broadcast %7 : vector<1x128xf32> to vector<8x128xf32>
    %614 = arith.addf %612, %613 : vector<8x128xf32>
    %c40_147 = arith.constant 40 : index
    %c0_148 = arith.constant 0 : index
    %615 = vector.load %arg22[%c40_147, %c0_148] : memref<64x128xf32, #tpu.memory_space<vmem>>, vector<8x128xf32>
    tpu.vector_store %arg22[%c40_147, %c0_148], %614 {strides = array<i32>} : memref<64x128xf32, #tpu.memory_space<vmem>>, vector<8x128xf32>,
    %c48 = arith.constant 48 : index
    %c0_149 = arith.constant 0 : index
    %616 = vector.load %arg21[%c48, %c0_149] : memref<64x512xf32, #tpu.memory_space<vmem>>, vector<8x512xf32>
    %617 = arith.truncf %544 : vector<8x128xf32> to vector<8x128xbf16>
    %cst_150 = arith.constant dense<0.000000e+00> : vector<8x512xf32>
    %618 = tpu.matmul %617, %0, %cst_150 {dimension_numbers = #tpu.dot_dimension_numbers<[1], [0], [0], [1], [0, 0, 1, 1], [], []>} : vector<8x128xbf16>, vector<128x512xbf16>, vector<8x512xf32> -> vector<8x512xf32>
    %619 = arith.addf %616, %618 : vector<8x512xf32>
    %620 = vector.extract_strided_slice %619 {offsets = [0, 0], sizes = [8, 128], strides = [1, 1]} : vector<8x512xf32> to vector<8x128xf32>
    %621 = arith.negf %620 : vector<8x128xf32>
    %622 = math.exp %621 : vector<8x128xf32>
    %cst_151 = arith.constant 1.000000e+00 : f32
    %623 = vector.broadcast %cst_151 : f32 to vector<8x128xf32>
    %624 = arith.addf %623, %622 : vector<8x128xf32>
    %625 = arith.divf %623, %624 : vector<8x128xf32>
    %626 = vector.extract_strided_slice %619 {offsets = [0, 128], sizes = [8, 128], strides = [1, 1]} : vector<8x512xf32> to vector<8x128xf32>
    %627 = arith.negf %626 : vector<8x128xf32>
    %628 = math.exp %627 : vector<8x128xf32>
    %cst_152 = arith.constant 1.000000e+00 : f32
    %629 = vector.broadcast %cst_152 : f32 to vector<8x128xf32>
    %630 = arith.addf %629, %628 : vector<8x128xf32>
    %631 = arith.divf %629, %630 : vector<8x128xf32>
    %632 = vector.extract_strided_slice %619 {offsets = [0, 256], sizes = [8, 128], strides = [1, 1]} : vector<8x512xf32> to vector<8x128xf32>
    %633 = math.tanh %632 : vector<8x128xf32>
    %634 = vector.extract_strided_slice %619 {offsets = [0, 384], sizes = [8, 128], strides = [1, 1]} : vector<8x512xf32> to vector<8x128xf32>
    %635 = arith.negf %634 : vector<8x128xf32>
    %636 = math.exp %635 : vector<8x128xf32>
    %cst_153 = arith.constant 1.000000e+00 : f32
    %637 = vector.broadcast %cst_153 : f32 to vector<8x128xf32>
    %638 = arith.addf %637, %636 : vector<8x128xf32>
    %639 = arith.divf %637, %638 : vector<8x128xf32>
    %640 = arith.mulf %631, %542 : vector<8x128xf32>
    %641 = arith.mulf %625, %633 : vector<8x128xf32>
    %642 = arith.addf %640, %641 : vector<8x128xf32>
    %643 = math.tanh %642 : vector<8x128xf32>
    %644 = arith.mulf %639, %643 : vector<8x128xf32>
    %cst_154 = arith.constant dense<0.000000e+00> : vector<8xf32>
    %645 = vector.multi_reduction <add>, %644, %cst_154 [1] : vector<8x128xf32> to vector<8xf32>
    %646 = vector.shape_cast %645 : vector<8xf32> to vector<8x1xf32>
    %cst_155 = arith.constant 1.280000e+02 : f32
    %647 = vector.broadcast %cst_155 : f32 to vector<8x1xf32>
    %648 = arith.divf %646, %647 : vector<8x1xf32>
    %649 = vector.broadcast %648 : vector<8x1xf32> to vector<8x128xf32>
    %650 = arith.subf %644, %649 : vector<8x128xf32>
    %651 = arith.mulf %650, %650 : vector<8x128xf32>
    %cst_156 = arith.constant dense<0.000000e+00> : vector<8xf32>
    %652 = vector.multi_reduction <add>, %651, %cst_156 [1] : vector<8x128xf32> to vector<8xf32>
    %653 = vector.shape_cast %652 : vector<8xf32> to vector<8x1xf32>
    %cst_157 = arith.constant 1.280000e+02 : f32
    %654 = vector.broadcast %cst_157 : f32 to vector<8x1xf32>
    %655 = arith.divf %653, %654 : vector<8x1xf32>
    %cst_158 = arith.constant 9.99999974E-6 : f32
    %656 = vector.broadcast %cst_158 : f32 to vector<8x1xf32>
    %657 = arith.addf %655, %656 : vector<8x1xf32>
    %658 = math.rsqrt %657 : vector<8x1xf32>
    %659 = vector.broadcast %658 : vector<8x1xf32> to vector<8x128xf32>
    %660 = arith.mulf %650, %659 : vector<8x128xf32>
    %661 = vector.broadcast %4 : vector<1x128xf32> to vector<8x128xf32>
    %662 = arith.mulf %660, %661 : vector<8x128xf32>
    %663 = vector.broadcast %5 : vector<1x128xf32> to vector<8x128xf32>
    %664 = arith.addf %662, %663 : vector<8x128xf32>
    %665 = tpu.concatenate %664, %594 in 1 : vector<8x128xf32>, vector<8x128xf32> -> vector<8x256xf32>
    %666 = arith.truncf %665 : vector<8x256xf32> to vector<8x256xbf16>
    %cst_159 = arith.constant dense<0.000000e+00> : vector<8x512xf32>
    %667 = tpu.matmul %666, %1, %cst_159 {dimension_numbers = #tpu.dot_dimension_numbers<[1], [0], [0], [1], [0, 0, 1, 1], [], []>} : vector<8x256xbf16>, vector<256x512xbf16>, vector<8x512xf32> -> vector<8x512xf32>
    %668 = vector.broadcast %3 : vector<1x512xf32> to vector<8x512xf32>
    %669 = arith.addf %667, %668 : vector<8x512xf32>
    %670 = vector.extract_strided_slice %669 {offsets = [0, 0], sizes = [8, 128], strides = [1, 1]} : vector<8x512xf32> to vector<8x128xf32>
    %671 = arith.negf %670 : vector<8x128xf32>
    %672 = math.exp %671 : vector<8x128xf32>
    %cst_160 = arith.constant 1.000000e+00 : f32
    %673 = vector.broadcast %cst_160 : f32 to vector<8x128xf32>
    %674 = arith.addf %673, %672 : vector<8x128xf32>
    %675 = arith.divf %673, %674 : vector<8x128xf32>
    %676 = vector.extract_strided_slice %669 {offsets = [0, 128], sizes = [8, 128], strides = [1, 1]} : vector<8x512xf32> to vector<8x128xf32>
    %677 = arith.negf %676 : vector<8x128xf32>
    %678 = math.exp %677 : vector<8x128xf32>
    %cst_161 = arith.constant 1.000000e+00 : f32
    %679 = vector.broadcast %cst_161 : f32 to vector<8x128xf32>
    %680 = arith.addf %679, %678 : vector<8x128xf32>
    %681 = arith.divf %679, %680 : vector<8x128xf32>
    %682 = vector.extract_strided_slice %669 {offsets = [0, 256], sizes = [8, 128], strides = [1, 1]} : vector<8x512xf32> to vector<8x128xf32>
    %683 = math.tanh %682 : vector<8x128xf32>
    %684 = vector.extract_strided_slice %669 {offsets = [0, 384], sizes = [8, 128], strides = [1, 1]} : vector<8x512xf32> to vector<8x128xf32>
    %685 = arith.negf %684 : vector<8x128xf32>
    %686 = math.exp %685 : vector<8x128xf32>
    %cst_162 = arith.constant 1.000000e+00 : f32
    %687 = vector.broadcast %cst_162 : f32 to vector<8x128xf32>
    %688 = arith.addf %687, %686 : vector<8x128xf32>
    %689 = arith.divf %687, %688 : vector<8x128xf32>
    %690 = arith.mulf %681, %592 : vector<8x128xf32>
    %691 = arith.mulf %675, %683 : vector<8x128xf32>
    %692 = arith.addf %690, %691 : vector<8x128xf32>
    %693 = math.tanh %692 : vector<8x128xf32>
    %694 = arith.mulf %689, %693 : vector<8x128xf32>
    %cst_163 = arith.constant dense<0.000000e+00> : vector<8xf32>
    %695 = vector.multi_reduction <add>, %694, %cst_163 [1] : vector<8x128xf32> to vector<8xf32>
    %696 = vector.shape_cast %695 : vector<8xf32> to vector<8x1xf32>
    %cst_164 = arith.constant 1.280000e+02 : f32
    %697 = vector.broadcast %cst_164 : f32 to vector<8x1xf32>
    %698 = arith.divf %696, %697 : vector<8x1xf32>
    %699 = vector.broadcast %698 : vector<8x1xf32> to vector<8x128xf32>
    %700 = arith.subf %694, %699 : vector<8x128xf32>
    %701 = arith.mulf %700, %700 : vector<8x128xf32>
    %cst_165 = arith.constant dense<0.000000e+00> : vector<8xf32>
    %702 = vector.multi_reduction <add>, %701, %cst_165 [1] : vector<8x128xf32> to vector<8xf32>
    %703 = vector.shape_cast %702 : vector<8xf32> to vector<8x1xf32>
    %cst_166 = arith.constant 1.280000e+02 : f32
    %704 = vector.broadcast %cst_166 : f32 to vector<8x1xf32>
    %705 = arith.divf %703, %704 : vector<8x1xf32>
    %cst_167 = arith.constant 9.99999974E-6 : f32
    %706 = vector.broadcast %cst_167 : f32 to vector<8x1xf32>
    %707 = arith.addf %705, %706 : vector<8x1xf32>
    %708 = math.rsqrt %707 : vector<8x1xf32>
    %709 = vector.broadcast %708 : vector<8x1xf32> to vector<8x128xf32>
    %710 = arith.mulf %700, %709 : vector<8x128xf32>
    %711 = vector.broadcast %6 : vector<1x128xf32> to vector<8x128xf32>
    %712 = arith.mulf %710, %711 : vector<8x128xf32>
    %713 = vector.broadcast %7 : vector<1x128xf32> to vector<8x128xf32>
    %714 = arith.addf %712, %713 : vector<8x128xf32>
    %c48_168 = arith.constant 48 : index
    %c0_169 = arith.constant 0 : index
    %715 = vector.load %arg22[%c48_168, %c0_169] : memref<64x128xf32, #tpu.memory_space<vmem>>, vector<8x128xf32>
    tpu.vector_store %arg22[%c48_168, %c0_169], %714 {strides = array<i32>} : memref<64x128xf32, #tpu.memory_space<vmem>>, vector<8x128xf32>,
    %c56 = arith.constant 56 : index
    %c0_170 = arith.constant 0 : index
    %716 = vector.load %arg21[%c56, %c0_170] : memref<64x512xf32, #tpu.memory_space<vmem>>, vector<8x512xf32>
    %717 = arith.truncf %644 : vector<8x128xf32> to vector<8x128xbf16>
    %cst_171 = arith.constant dense<0.000000e+00> : vector<8x512xf32>
    %718 = tpu.matmul %717, %0, %cst_171 {dimension_numbers = #tpu.dot_dimension_numbers<[1], [0], [0], [1], [0, 0, 1, 1], [], []>} : vector<8x128xbf16>, vector<128x512xbf16>, vector<8x512xf32> -> vector<8x512xf32>
    %719 = arith.addf %716, %718 : vector<8x512xf32>
    %720 = vector.extract_strided_slice %719 {offsets = [0, 0], sizes = [8, 128], strides = [1, 1]} : vector<8x512xf32> to vector<8x128xf32>
    %721 = arith.negf %720 : vector<8x128xf32>
    %722 = math.exp %721 : vector<8x128xf32>
    %cst_172 = arith.constant 1.000000e+00 : f32
    %723 = vector.broadcast %cst_172 : f32 to vector<8x128xf32>
    %724 = arith.addf %723, %722 : vector<8x128xf32>
    %725 = arith.divf %723, %724 : vector<8x128xf32>
    %726 = vector.extract_strided_slice %719 {offsets = [0, 128], sizes = [8, 128], strides = [1, 1]} : vector<8x512xf32> to vector<8x128xf32>
    %727 = arith.negf %726 : vector<8x128xf32>
    %728 = math.exp %727 : vector<8x128xf32>
    %cst_173 = arith.constant 1.000000e+00 : f32
    %729 = vector.broadcast %cst_173 : f32 to vector<8x128xf32>
    %730 = arith.addf %729, %728 : vector<8x128xf32>
    %731 = arith.divf %729, %730 : vector<8x128xf32>
    %732 = vector.extract_strided_slice %719 {offsets = [0, 256], sizes = [8, 128], strides = [1, 1]} : vector<8x512xf32> to vector<8x128xf32>
    %733 = math.tanh %732 : vector<8x128xf32>
    %734 = vector.extract_strided_slice %719 {offsets = [0, 384], sizes = [8, 128], strides = [1, 1]} : vector<8x512xf32> to vector<8x128xf32>
    %735 = arith.negf %734 : vector<8x128xf32>
    %736 = math.exp %735 : vector<8x128xf32>
    %cst_174 = arith.constant 1.000000e+00 : f32
    %737 = vector.broadcast %cst_174 : f32 to vector<8x128xf32>
    %738 = arith.addf %737, %736 : vector<8x128xf32>
    %739 = arith.divf %737, %738 : vector<8x128xf32>
    %740 = arith.mulf %731, %642 : vector<8x128xf32>
    %741 = arith.mulf %725, %733 : vector<8x128xf32>
    %742 = arith.addf %740, %741 : vector<8x128xf32>
    %743 = math.tanh %742 : vector<8x128xf32>
    %744 = arith.mulf %739, %743 : vector<8x128xf32>
    %cst_175 = arith.constant dense<0.000000e+00> : vector<8xf32>
    %745 = vector.multi_reduction <add>, %744, %cst_175 [1] : vector<8x128xf32> to vector<8xf32>
    %746 = vector.shape_cast %745 : vector<8xf32> to vector<8x1xf32>
    %cst_176 = arith.constant 1.280000e+02 : f32
    %747 = vector.broadcast %cst_176 : f32 to vector<8x1xf32>
    %748 = arith.divf %746, %747 : vector<8x1xf32>
    %749 = vector.broadcast %748 : vector<8x1xf32> to vector<8x128xf32>
    %750 = arith.subf %744, %749 : vector<8x128xf32>
    %751 = arith.mulf %750, %750 : vector<8x128xf32>
    %cst_177 = arith.constant dense<0.000000e+00> : vector<8xf32>
    %752 = vector.multi_reduction <add>, %751, %cst_177 [1] : vector<8x128xf32> to vector<8xf32>
    %753 = vector.shape_cast %752 : vector<8xf32> to vector<8x1xf32>
    %cst_178 = arith.constant 1.280000e+02 : f32
    %754 = vector.broadcast %cst_178 : f32 to vector<8x1xf32>
    %755 = arith.divf %753, %754 : vector<8x1xf32>
    %cst_179 = arith.constant 9.99999974E-6 : f32
    %756 = vector.broadcast %cst_179 : f32 to vector<8x1xf32>
    %757 = arith.addf %755, %756 : vector<8x1xf32>
    %758 = math.rsqrt %757 : vector<8x1xf32>
    %759 = vector.broadcast %758 : vector<8x1xf32> to vector<8x128xf32>
    %760 = arith.mulf %750, %759 : vector<8x128xf32>
    %761 = vector.broadcast %4 : vector<1x128xf32> to vector<8x128xf32>
    %762 = arith.mulf %760, %761 : vector<8x128xf32>
    %763 = vector.broadcast %5 : vector<1x128xf32> to vector<8x128xf32>
    %764 = arith.addf %762, %763 : vector<8x128xf32>
    %765 = tpu.concatenate %764, %694 in 1 : vector<8x128xf32>, vector<8x128xf32> -> vector<8x256xf32>
    %766 = arith.truncf %765 : vector<8x256xf32> to vector<8x256xbf16>
    %cst_180 = arith.constant dense<0.000000e+00> : vector<8x512xf32>
    %767 = tpu.matmul %766, %1, %cst_180 {dimension_numbers = #tpu.dot_dimension_numbers<[1], [0], [0], [1], [0, 0, 1, 1], [], []>} : vector<8x256xbf16>, vector<256x512xbf16>, vector<8x512xf32> -> vector<8x512xf32>
    %768 = vector.broadcast %3 : vector<1x512xf32> to vector<8x512xf32>
    %769 = arith.addf %767, %768 : vector<8x512xf32>
    %770 = vector.extract_strided_slice %769 {offsets = [0, 0], sizes = [8, 128], strides = [1, 1]} : vector<8x512xf32> to vector<8x128xf32>
    %771 = arith.negf %770 : vector<8x128xf32>
    %772 = math.exp %771 : vector<8x128xf32>
    %cst_181 = arith.constant 1.000000e+00 : f32
    %773 = vector.broadcast %cst_181 : f32 to vector<8x128xf32>
    %774 = arith.addf %773, %772 : vector<8x128xf32>
    %775 = arith.divf %773, %774 : vector<8x128xf32>
    %776 = vector.extract_strided_slice %769 {offsets = [0, 128], sizes = [8, 128], strides = [1, 1]} : vector<8x512xf32> to vector<8x128xf32>
    %777 = arith.negf %776 : vector<8x128xf32>
    %778 = math.exp %777 : vector<8x128xf32>
    %cst_182 = arith.constant 1.000000e+00 : f32
    %779 = vector.broadcast %cst_182 : f32 to vector<8x128xf32>
    %780 = arith.addf %779, %778 : vector<8x128xf32>
    %781 = arith.divf %779, %780 : vector<8x128xf32>
    %782 = vector.extract_strided_slice %769 {offsets = [0, 256], sizes = [8, 128], strides = [1, 1]} : vector<8x512xf32> to vector<8x128xf32>
    %783 = math.tanh %782 : vector<8x128xf32>
    %784 = vector.extract_strided_slice %769 {offsets = [0, 384], sizes = [8, 128], strides = [1, 1]} : vector<8x512xf32> to vector<8x128xf32>
    %785 = arith.negf %784 : vector<8x128xf32>
    %786 = math.exp %785 : vector<8x128xf32>
    %cst_183 = arith.constant 1.000000e+00 : f32
    %787 = vector.broadcast %cst_183 : f32 to vector<8x128xf32>
    %788 = arith.addf %787, %786 : vector<8x128xf32>
    %789 = arith.divf %787, %788 : vector<8x128xf32>
    %790 = arith.mulf %781, %692 : vector<8x128xf32>
    %791 = arith.mulf %775, %783 : vector<8x128xf32>
    %792 = arith.addf %790, %791 : vector<8x128xf32>
    %793 = math.tanh %792 : vector<8x128xf32>
    %794 = arith.mulf %789, %793 : vector<8x128xf32>
    %cst_184 = arith.constant dense<0.000000e+00> : vector<8xf32>
    %795 = vector.multi_reduction <add>, %794, %cst_184 [1] : vector<8x128xf32> to vector<8xf32>
    %796 = vector.shape_cast %795 : vector<8xf32> to vector<8x1xf32>
    %cst_185 = arith.constant 1.280000e+02 : f32
    %797 = vector.broadcast %cst_185 : f32 to vector<8x1xf32>
    %798 = arith.divf %796, %797 : vector<8x1xf32>
    %799 = vector.broadcast %798 : vector<8x1xf32> to vector<8x128xf32>
    %800 = arith.subf %794, %799 : vector<8x128xf32>
    %801 = arith.mulf %800, %800 : vector<8x128xf32>
    %cst_186 = arith.constant dense<0.000000e+00> : vector<8xf32>
    %802 = vector.multi_reduction <add>, %801, %cst_186 [1] : vector<8x128xf32> to vector<8xf32>
    %803 = vector.shape_cast %802 : vector<8xf32> to vector<8x1xf32>
    %cst_187 = arith.constant 1.280000e+02 : f32
    %804 = vector.broadcast %cst_187 : f32 to vector<8x1xf32>
    %805 = arith.divf %803, %804 : vector<8x1xf32>
    %cst_188 = arith.constant 9.99999974E-6 : f32
    %806 = vector.broadcast %cst_188 : f32 to vector<8x1xf32>
    %807 = arith.addf %805, %806 : vector<8x1xf32>
    %808 = math.rsqrt %807 : vector<8x1xf32>
    %809 = vector.broadcast %808 : vector<8x1xf32> to vector<8x128xf32>
    %810 = arith.mulf %800, %809 : vector<8x128xf32>
    %811 = vector.broadcast %6 : vector<1x128xf32> to vector<8x128xf32>
    %812 = arith.mulf %810, %811 : vector<8x128xf32>
    %813 = vector.broadcast %7 : vector<1x128xf32> to vector<8x128xf32>
    %814 = arith.addf %812, %813 : vector<8x128xf32>
    %c56_189 = arith.constant 56 : index
    %c0_190 = arith.constant 0 : index
    %815 = vector.load %arg22[%c56_189, %c0_190] : memref<64x128xf32, #tpu.memory_space<vmem>>, vector<8x128xf32>
    tpu.vector_store %arg22[%c56_189, %c0_190], %814 {strides = array<i32>} : memref<64x128xf32, #tpu.memory_space<vmem>>, vector<8x128xf32>,
    %c0_191 = arith.constant 0 : index
    %c0_192 = arith.constant 0 : index
    %816 = vector.load %arg22[%c0_191, %c0_192] : memref<64x128xf32, #tpu.memory_space<vmem>>, vector<64x128xf32>
    %817 = arith.truncf %816 : vector<64x128xf32> to vector<64x128xbf16>
    %c0_193 = arith.constant 0 : index
    %c0_194 = arith.constant 0 : index
    %818 = vector.load %arg10[%c0_193, %c0_194] : memref<128x384xbf16, #tpu.memory_space<vmem>>, vector<128x384xbf16>
    %cst_195 = arith.constant dense<0.000000e+00> : vector<64x384xf32>
    %819 = tpu.matmul %817, %818, %cst_195 {dimension_numbers = #tpu.dot_dimension_numbers<[1], [0], [0], [1], [0, 0, 1, 1], [], []>} : vector<64x128xbf16>, vector<128x384xbf16>, vector<64x384xf32> -> vector<64x384xf32>
    %c0_196 = arith.constant 0 : index
    %c0_197 = arith.constant 0 : index
    %820 = vector.load %arg11[%c0_196, %c0_197] : memref<1x384xf32, #tpu.memory_space<vmem>>, vector<1x384xf32>
    %821 = vector.broadcast %820 : vector<1x384xf32> to vector<64x384xf32>
    %822 = arith.addf %819, %821 : vector<64x384xf32>
    %823 = vector.shape_cast %822 : vector<64x384xf32> to vector<8x8x384xf32>
    %824 = vector.extract_strided_slice %823 {offsets = [7, 0, 0], sizes = [1, 8, 128], strides = [1, 1, 1]} : vector<8x8x384xf32> to vector<1x8x128xf32>
    %825 = vector.shape_cast %824 : vector<1x8x128xf32> to vector<8x128xf32>
    %cst_198 = arith.constant 0.176776692 : f32
    %826 = vector.broadcast %cst_198 : f32 to vector<8x128xf32>
    %827 = arith.mulf %825, %826 : vector<8x128xf32>
    %828 = vector.extract_strided_slice %823 {offsets = [0, 0, 128], sizes = [8, 8, 128], strides = [1, 1, 1]} : vector<8x8x384xf32> to vector<8x8x128xf32>
    %829 = vector.extract_strided_slice %823 {offsets = [0, 0, 256], sizes = [8, 8, 128], strides = [1, 1, 1]} : vector<8x8x384xf32> to vector<8x8x128xf32>
    %830 = vector.shape_cast %827 : vector<8x128xf32> to vector<1x8x128xf32>
    %831 = vector.broadcast %830 : vector<1x8x128xf32> to vector<8x8x128xf32>
    %832 = arith.mulf %831, %828 : vector<8x8x128xf32>
    %833 = vector.extract_strided_slice %832 {offsets = [0, 0, 0], sizes = [8, 8, 32], strides = [1, 1, 1]} : vector<8x8x128xf32> to vector<8x8x32xf32>
    %cst_199 = arith.constant dense<0.000000e+00> : vector<8x8xf32>
    %834 = vector.multi_reduction <add>, %833, %cst_199 [2] : vector<8x8x32xf32> to vector<8x8xf32>
    %835 = vector.shape_cast %834 : vector<8x8xf32> to vector<8x8x1xf32>
    %836 = vector.extract_strided_slice %832 {offsets = [0, 0, 32], sizes = [8, 8, 32], strides = [1, 1, 1]} : vector<8x8x128xf32> to vector<8x8x32xf32>
    %cst_200 = arith.constant dense<0.000000e+00> : vector<8x8xf32>
    %837 = vector.multi_reduction <add>, %836, %cst_200 [2] : vector<8x8x32xf32> to vector<8x8xf32>
    %838 = vector.shape_cast %837 : vector<8x8xf32> to vector<8x8x1xf32>
    %839 = vector.extract_strided_slice %832 {offsets = [0, 0, 64], sizes = [8, 8, 32], strides = [1, 1, 1]} : vector<8x8x128xf32> to vector<8x8x32xf32>
    %cst_201 = arith.constant dense<0.000000e+00> : vector<8x8xf32>
    %840 = vector.multi_reduction <add>, %839, %cst_201 [2] : vector<8x8x32xf32> to vector<8x8xf32>
    %841 = vector.shape_cast %840 : vector<8x8xf32> to vector<8x8x1xf32>
    %842 = vector.extract_strided_slice %832 {offsets = [0, 0, 96], sizes = [8, 8, 32], strides = [1, 1, 1]} : vector<8x8x128xf32> to vector<8x8x32xf32>
    %cst_202 = arith.constant dense<0.000000e+00> : vector<8x8xf32>
    %843 = vector.multi_reduction <add>, %842, %cst_202 [2] : vector<8x8x32xf32> to vector<8x8xf32>
    %844 = vector.shape_cast %843 : vector<8x8xf32> to vector<8x8x1xf32>
    %845 = tpu.concatenate %835, %838, %841, %844 in 2 : vector<8x8x1xf32>, vector<8x8x1xf32>, vector<8x8x1xf32>, vector<8x8x1xf32> -> vector<8x8x4xf32>
    %cst_203 = arith.constant dense<0xFF800000> : vector<8x4xf32>
    %846 = vector.multi_reduction <maximumf>, %845, %cst_203 [0] : vector<8x8x4xf32> to vector<8x4xf32>
    %847 = vector.shape_cast %846 : vector<8x4xf32> to vector<1x8x4xf32>
    %848 = vector.broadcast %847 : vector<1x8x4xf32> to vector<8x8x4xf32>
    %849 = arith.subf %845, %848 : vector<8x8x4xf32>
    %850 = math.exp %849 : vector<8x8x4xf32>
    %cst_204 = arith.constant dense<0.000000e+00> : vector<8x4xf32>
    %851 = vector.multi_reduction <add>, %850, %cst_204 [0] : vector<8x8x4xf32> to vector<8x4xf32>
    %852 = vector.shape_cast %851 : vector<8x4xf32> to vector<1x8x4xf32>
    %853 = tpu.reciprocal %852 {approx = true} : vector<1x8x4xf32> -> vector<1x8x4xf32>
    %854 = vector.broadcast %853 : vector<1x8x4xf32> to vector<8x8x4xf32>
    %855 = arith.mulf %850, %854 : vector<8x8x4xf32>
    %856 = vector.extract_strided_slice %855 {offsets = [0, 0, 0], sizes = [8, 8, 1], strides = [1, 1, 1]} : vector<8x8x4xf32> to vector<8x8x1xf32>
    %857 = vector.extract_strided_slice %829 {offsets = [0, 0, 0], sizes = [8, 8, 32], strides = [1, 1, 1]} : vector<8x8x128xf32> to vector<8x8x32xf32>
    %858 = vector.broadcast %856 : vector<8x8x1xf32> to vector<8x8x32xf32>
    %859 = arith.mulf %858, %857 : vector<8x8x32xf32>
    %cst_205 = arith.constant dense<0.000000e+00> : vector<8x32xf32>
    %860 = vector.multi_reduction <add>, %859, %cst_205 [0] : vector<8x8x32xf32> to vector<8x32xf32>
    %861 = vector.extract_strided_slice %855 {offsets = [0, 0, 1], sizes = [8, 8, 1], strides = [1, 1, 1]} : vector<8x8x4xf32> to vector<8x8x1xf32>
    %862 = vector.extract_strided_slice %829 {offsets = [0, 0, 32], sizes = [8, 8, 32], strides = [1, 1, 1]} : vector<8x8x128xf32> to vector<8x8x32xf32>
    %863 = vector.broadcast %861 : vector<8x8x1xf32> to vector<8x8x32xf32>
    %864 = arith.mulf %863, %862 : vector<8x8x32xf32>
    %cst_206 = arith.constant dense<0.000000e+00> : vector<8x32xf32>
    %865 = vector.multi_reduction <add>, %864, %cst_206 [0] : vector<8x8x32xf32> to vector<8x32xf32>
    %866 = vector.extract_strided_slice %855 {offsets = [0, 0, 2], sizes = [8, 8, 1], strides = [1, 1, 1]} : vector<8x8x4xf32> to vector<8x8x1xf32>
    %867 = vector.extract_strided_slice %829 {offsets = [0, 0, 64], sizes = [8, 8, 32], strides = [1, 1, 1]} : vector<8x8x128xf32> to vector<8x8x32xf32>
    %868 = vector.broadcast %866 : vector<8x8x1xf32> to vector<8x8x32xf32>
    %869 = arith.mulf %868, %867 : vector<8x8x32xf32>
    %cst_207 = arith.constant dense<0.000000e+00> : vector<8x32xf32>
    %870 = vector.multi_reduction <add>, %869, %cst_207 [0] : vector<8x8x32xf32> to vector<8x32xf32>
    %871 = vector.extract_strided_slice %855 {offsets = [0, 0, 3], sizes = [8, 8, 1], strides = [1, 1, 1]} : vector<8x8x4xf32> to vector<8x8x1xf32>
    %872 = vector.extract_strided_slice %829 {offsets = [0, 0, 96], sizes = [8, 8, 32], strides = [1, 1, 1]} : vector<8x8x128xf32> to vector<8x8x32xf32>
    %873 = vector.broadcast %871 : vector<8x8x1xf32> to vector<8x8x32xf32>
    %874 = arith.mulf %873, %872 : vector<8x8x32xf32>
    %cst_208 = arith.constant dense<0.000000e+00> : vector<8x32xf32>
    %875 = vector.multi_reduction <add>, %874, %cst_208 [0] : vector<8x8x32xf32> to vector<8x32xf32>
    %876 = tpu.concatenate %860, %865, %870, %875 in 1 : vector<8x32xf32>, vector<8x32xf32>, vector<8x32xf32>, vector<8x32xf32> -> vector<8x128xf32>
    %877 = arith.truncf %876 : vector<8x128xf32> to vector<8x128xbf16>
    %c0_209 = arith.constant 0 : index
    %c0_210 = arith.constant 0 : index
    %878 = vector.load %arg12[%c0_209, %c0_210] : memref<128x128xbf16, #tpu.memory_space<vmem>>, vector<128x128xbf16>
    %cst_211 = arith.constant dense<0.000000e+00> : vector<8x128xf32>
    %879 = tpu.matmul %877, %878, %cst_211 {dimension_numbers = #tpu.dot_dimension_numbers<[1], [0], [0], [1], [0, 0, 1, 1], [], []>} : vector<8x128xbf16>, vector<128x128xbf16>, vector<8x128xf32> -> vector<8x128xf32>
    %c0_212 = arith.constant 0 : index
    %c0_213 = arith.constant 0 : index
    %880 = vector.load %arg13[%c0_212, %c0_213] : memref<1x128xf32, #tpu.memory_space<vmem>>, vector<1x128xf32>
    %881 = vector.broadcast %880 : vector<1x128xf32> to vector<8x128xf32>
    %882 = arith.addf %879, %881 : vector<8x128xf32>
    %883 = arith.truncf %882 : vector<8x128xf32> to vector<8x128xbf16>
    %c0_214 = arith.constant 0 : index
    %c0_215 = arith.constant 0 : index
    %884 = vector.load %arg14[%c0_214, %c0_215] : memref<128x64xbf16, #tpu.memory_space<vmem>>, vector<128x64xbf16>
    %cst_216 = arith.constant dense<0.000000e+00> : vector<8x64xf32>
    %885 = tpu.matmul %883, %884, %cst_216 {dimension_numbers = #tpu.dot_dimension_numbers<[1], [0], [0], [1], [0, 0, 1, 1], [], []>} : vector<8x128xbf16>, vector<128x64xbf16>, vector<8x64xf32> -> vector<8x64xf32>
    %c0_217 = arith.constant 0 : index
    %c0_218 = arith.constant 0 : index
    %886 = vector.load %arg15[%c0_217, %c0_218] : memref<1x64xf32, #tpu.memory_space<vmem>>, vector<1x64xf32>
    %887 = vector.broadcast %886 : vector<1x64xf32> to vector<8x64xf32>
    %888 = arith.addf %885, %887 : vector<8x64xf32>
    %cst_219 = arith.constant 0.000000e+00 : f32
    %889 = vector.broadcast %cst_219 : f32 to vector<8x64xf32>
    %890 = arith.maximumf %888, %889 : vector<8x64xf32>
    %891 = arith.truncf %890 : vector<8x64xf32> to vector<8x64xbf16>
    %c0_220 = arith.constant 0 : index
    %c0_221 = arith.constant 0 : index
    %892 = vector.load %arg16[%c0_220, %c0_221] : memref<64x32xbf16, #tpu.memory_space<vmem>>, vector<64x32xbf16>
    %cst_222 = arith.constant dense<0.000000e+00> : vector<8x32xf32>
    %893 = tpu.matmul %891, %892, %cst_222 {dimension_numbers = #tpu.dot_dimension_numbers<[1], [0], [0], [1], [0, 0, 1, 1], [], []>} : vector<8x64xbf16>, vector<64x32xbf16>, vector<8x32xf32> -> vector<8x32xf32>
    %c0_223 = arith.constant 0 : index
    %c0_224 = arith.constant 0 : index
    %894 = vector.load %arg17[%c0_223, %c0_224] : memref<1x32xf32, #tpu.memory_space<vmem>>, vector<1x32xf32>
    %895 = vector.broadcast %894 : vector<1x32xf32> to vector<8x32xf32>
    %896 = arith.addf %893, %895 : vector<8x32xf32>
    %cst_225 = arith.constant 0.000000e+00 : f32
    %897 = vector.broadcast %cst_225 : f32 to vector<8x32xf32>
    %898 = arith.maximumf %896, %897 : vector<8x32xf32>
    %899 = arith.truncf %898 : vector<8x32xf32> to vector<8x32xbf16>
    %c0_226 = arith.constant 0 : index
    %c0_227 = arith.constant 0 : index
    %900 = vector.load %arg18[%c0_226, %c0_227] : memref<32x4xbf16, #tpu.memory_space<vmem>>, vector<32x4xbf16>
    %cst_228 = arith.constant dense<0.000000e+00> : vector<8x4xf32>
    %901 = tpu.matmul %899, %900, %cst_228 {dimension_numbers = #tpu.dot_dimension_numbers<[1], [0], [0], [1], [0, 0, 1, 1], [], []>} : vector<8x32xbf16>, vector<32x4xbf16>, vector<8x4xf32> -> vector<8x4xf32>
    %c0_229 = arith.constant 0 : index
    %c0_230 = arith.constant 0 : index
    %902 = vector.load %arg19[%c0_229, %c0_230] : memref<1x4xf32, #tpu.memory_space<vmem>>, vector<1x4xf32>
    %903 = vector.broadcast %902 : vector<1x4xf32> to vector<8x4xf32>
    %904 = arith.addf %901, %903 : vector<8x4xf32>
    %905 = vector.extract_strided_slice %904 {offsets = [0, 0], sizes = [2, 1], strides = [1, 1]} : vector<8x4xf32> to vector<2x1xf32>
    %906 = vector.extract_strided_slice %904 {offsets = [0, 1], sizes = [2, 3], strides = [1, 1]} : vector<8x4xf32> to vector<2x3xf32>
    %907 = vector.shape_cast %906 : vector<2x3xf32> to vector<1x2x3xf32>
    %cst_231 = arith.constant dense<0.000000e+00> : vector<1xf32>
    %908 = vector.multi_reduction <add>, %907, %cst_231 [1, 2] : vector<1x2x3xf32> to vector<1xf32>
    %909 = vector.shape_cast %908 : vector<1xf32> to vector<1x1x1xf32>
    %910 = vector.extract %909[0, 0, 0] : f32 from vector<1x1x1xf32>
    %cst_232 = arith.constant 6.000000e+00 : f32
    %911 = arith.divf %910, %cst_232 : f32
    %912 = vector.broadcast %911 : f32 to vector<2x3xf32>
    %913 = arith.subf %906, %912 : vector<2x3xf32>
    %914 = vector.broadcast %905 : vector<2x1xf32> to vector<2x3xf32>
    %915 = arith.addf %914, %913 : vector<2x3xf32>
    %c0_233 = arith.constant 0 : index
    %c0_234 = arith.constant 0 : index
    %916 = vector.load %arg20[%c0_233, %c0_234] : memref<2x3xf32, #tpu.memory_space<vmem>>, vector<2x3xf32>
    tpu.vector_store %arg20[%c0_233, %c0_234], %915 {strides = array<i32>} : memref<2x3xf32, #tpu.memory_space<vmem>>, vector<2x3xf32>,
    return
  }
}

</mosaic_0001>

<bundles_post_ra>
// kernel: trading_drl_forward.1
= control target key start
LH: loop header
LB: loop body
LE: loop exit
PB: predicated region body
PF: predicated region fallthrough
CT: control target
= control target key end

     0   :  { %s8030_s0 = inlined_call_operand.vmem [shape: f32[64,8], index: 0, kind: input, shape index: {}]   ;;  %s8031_s1 = inlined_call_operand.hbm [shape: bf16[8,512], index: 1, kind: input, shape index: {}]   ;;  %s8032_s2 = inlined_call_operand.vmem [shape: bf16[128,512], index: 2, kind: input, shape index: {}]   ;;  %s8033_s3 = inlined_call_operand.vmem [shape: f32[1,512], index: 3, kind: input, shape index: {}]   ;;  %s8034_s4 = inlined_call_operand.hbm [shape: bf16[256,512], index: 4, kind: input, shape index: {}]   ;;  %s8035_s5 = inlined_call_operand.vmem [shape: f32[1,512], index: 5, kind: input, shape index: {}]   ;;  %s8036_s6 = inlined_call_operand.vmem [shape: f32[1,128], index: 6, kind: input, shape index: {}]   ;;  %s8037_s7 = inlined_call_operand.vmem [shape: f32[1,128], index: 7, kind: input, shape index: {}]   ;;  %s8038_s8 = inlined_call_operand.hbm [shape: f32[1,128], index: 8, kind: input, shape index: {}]   ;;  %s8039_s9 = inlined_call_operand.hbm [shape: f32[1,128], index: 9, kind: input, shape index: {}]   ;;  %s8040_s10 = inlined_call_operand.hbm [shape: bf16[128,384], index: 10, kind: input, shape index: {}]   ;;  %s8041_s11 = inlined_call_operand.vmem [shape: f32[1,384], index: 11, kind: input, shape index: {}]   ;;  %s8042_s12 = inlined_call_operand.vmem [shape: bf16[128,128], index: 12, kind: input, shape index: {}]   ;;  %s8043_s13 = inlined_call_operand.hbm [shape: f32[1,128], index: 13, kind: input, shape index: {}]   ;;  %s8044_s14 = inlined_call_operand.vmem [shape: bf16[128,64], index: 14, kind: input, shape index: {}]   ;;  %s8045_s15 = inlined_call_operand.vmem [shape: f32[1,64], index: 15, kind: input, shape index: {}]   ;;  %s8046_s16 = inlined_call_operand.vmem [shape: bf16[64,32], index: 16, kind: input, shape index: {}]   ;;  %s8047_s17 = inlined_call_operand.vmem [shape: f32[1,32], index: 17, kind: input, shape index: {}]   ;;  %s8048_s18 = inlined_call_operand.vmem [shape: bf16[32,4], index: 18, kind: input, shape index: {}]   ;;  %s8049_s19 = inlined_call_operand.vmem [shape: f32[1,4], index: 19, kind: input, shape index: {}]   ;;  %s8050_s20 = inlined_call_operand.hbm [shape: f32[2,3], index: 20, kind: output, shape index: {}]  }
   0x1   :  { %8336 = sst [smem:[#allocation101_spill]] %s8030_s0 }
   0x2   :  { %8337 = sst [smem:[#allocation102_spill]] %s8031_s1 }
   0x3   :  { %8338 = sst [smem:[#allocation103_spill]] %s8032_s2 }
   0x4   :  { %8339 = sst [smem:[#allocation104_spill]] %s8033_s3 }
   0x5   :  { %8340 = sst [smem:[#allocation105_spill]] %s8034_s4 }
   0x6   :  { %25 = vsyncpa [#allocation5], 0 }
   0x7   :  { %26 = vsyncpa [#allocation8], 0 }
   0x8   :  { %27 = vsyncpa [#allocation11], 0 }
   0x9   :  { %28 = vsyncpa [#allocation14], 0 }
   0xa   :  { %29 = vsyncpa [#allocation6], 0  ;;  %s5527_s1 = smov [#allocation7]  }
   0xb   :  { %s51_s22 = sshll.u32 %s5527_s1, 4  ;;  %s52_s22 = int_to_ptr.vmem [resolvable:$true] %s51_s22 }
   0xc   :  { %s5385_s23 = scalar_lea.vmem %s52_s22, 8192  ;;  %p5390_p1 = scmp.lt.s32.totalorder %s52_s22, %s52_s22 }
   0xd   :  { %p5386_p0 = scmp.ne.s32.totalorder %s52_s22, %s5385_s23  ;;  %p5391_p2 = scmp.lt.s32.totalorder %s5385_s23, %s5385_s23 }
   0xf   :  { %p5392_p3 = por %p5391_p2, %p5390_p1 }
  0x11   :  { %p5393_p4 = pnand %p5392_p3, %p5386_p0 }
  0x13   :  { %5396 = shalt.err (!%p5393_p4)
}
  0x14   :  { %s5528_s24 = smov 256   ;;  %s5529_s2 = smov 16  }
  0x15   :  { %s8341_s26 = sld [smem:[#allocation105_spill]]  ;;  %s5530_s27 = smov [#allocation10]  }
  0x16   :  { %s80_s28 = sshll.u32 %s5530_s27, 4  ;;  %s5531_s4 = smov [#allocation4]   ;;  %s81_s28 = int_to_ptr.vmem [resolvable:$true] %s80_s28 }
  0x17   :  { %s38_s29 = sshll.u32 %s5531_s4, 4  ;;  %s5405_s30 = scalar_lea.vmem %s81_s28, 16  ;;  %s39_s29 = int_to_ptr.vmem [resolvable:$true] %s38_s29 }
  0x18   :  { %p5406_p5 = scmp.ne.s32.totalorder %s81_s28, %s5405_s30  ;;  %s5409_s0 = scalar_lea.vmem %s81_s28, 32 }
  0x19   :  { %p5410_p6 = scmp.lt.s32.totalorder %s81_s28, %s81_s28  ;;  %p5411_p7 = scmp.lt.s32.totalorder %s5409_s0, %s5405_s30 }
  0x1b   :  { %57 = dma.hbm_to_vmem [thread:$0]  %s8341_s26, 8192, %s52_s22, [#allocation8], %s5528_s24, %s5528_s24, %s5529_s2  }
  0x1c   :  { %p5412_p8 = por %p5411_p7, %p5410_p6 }
  0x1e   :  { %p5413_p9 = pnand %p5412_p8, %p5406_p5 }
  0x20   :  { %5416 = shalt.err (!%p5413_p9)
}
  0x21   :  { %83 = dma.hbm_to_vmem [thread:$0]  %s8039_s9, 16, %s81_s28, [#allocation11]  }
  0x22   :  { %s5425_s23 = scalar_lea.vmem %s39_s29, 256  ;;  %p5430_p11 = scmp.lt.s32.totalorder %s39_s29, %s39_s29 }
  0x23   :  { %p5426_p10 = scmp.ne.s32.totalorder %s39_s29, %s5425_s23  ;;  %p5431_p12 = scmp.lt.s32.totalorder %s5425_s23, %s5425_s23 }
  0x25   :  { %p5432_p13 = por %p5431_p12, %p5430_p11 }
  0x27   :  { %p5433_p0 = pnand %p5432_p13, %p5426_p10 }
  0x29   :  { %5436 = shalt.err (!%p5433_p0)
}
  0x2a   :  { %s8342_s2 = sld [smem:[#allocation102_spill]]  ;;  %s5532_s25 = smov [#allocation9]  }
  0x2b   :  { %s70_s3 = sshll.u32 %s5532_s25, 4  ;;  %s5533_s26 = smov [#allocation12]   ;;  %s71_s3 = int_to_ptr.vmem [resolvable:$true] %s70_s3 }
  0x2c   :  { %s89_s27 = sshll.u32 %s5533_s26, 4  ;;  %s5445_s4 = scalar_lea.vmem %s71_s3, 16  ;;  %s90_s27 = int_to_ptr.vmem [resolvable:$true] %s89_s27 }
  0x2d   :  { %p5446_p1 = scmp.ne.s32.totalorder %s71_s3, %s5445_s4  ;;  %s5449_s9 = scalar_lea.vmem %s71_s3, 32 }
  0x2e   :  { %p5450_p2 = scmp.lt.s32.totalorder %s71_s3, %s71_s3  ;;  %p5451_p3 = scmp.lt.s32.totalorder %s5449_s9, %s5445_s4 }
  0x30   :  { %41 = dma.hbm_to_vmem [thread:$0]  %s8342_s2, 256, %s39_s29, [#allocation5]  }
  0x31   :  { %p5452_p4 = por %p5451_p3, %p5450_p2 }
  0x33   :  { %p5453_p5 = pnand %p5452_p4, %p5446_p1 }
  0x35   :  { %5456 = shalt.err (!%p5453_p5)
}
  0x36   :  { %73 = dma.hbm_to_vmem [thread:$0]  %s8038_s8, 16, %s71_s3, [#allocation8]  }
  0x37   :  { %s5465_s0 = scalar_lea.vmem %s90_s27, 3072  ;;  %p5470_p7 = scmp.lt.s32.totalorder %s90_s27, %s90_s27 }
  0x38   :  { %p5466_p6 = scmp.ne.s32.totalorder %s90_s27, %s5465_s0  ;;  %p5471_p8 = scmp.lt.s32.totalorder %s5465_s0, %s5465_s0 }
  0x3a   :  { %p5472_p9 = por %p5471_p8, %p5470_p7 }
  0x3c   :  { %p5473_p10 = pnand %p5472_p9, %p5466_p6 }
  0x3e   :  { %5476 = shalt.err (!%p5473_p10)
}
  0x3f   :  { %s5534_s29 = smov 192   ;;  %s5535_s21 = smov 12  }
  0x40   :  { %95 = dma.hbm_to_vmem [thread:$0]  %s8040_s10, 3072, %s90_s27, [#allocation11], %s5534_s29, %s5534_s29, %s5535_s21  }
  0x41   :  { %s5536_s22 = smov [#allocation13]  }
  0x42   :  { %s106_s24 = sshll.u32 %s5536_s22, 4  ;;  %s107_s24 = int_to_ptr.vmem [resolvable:$true] %s106_s24 }
  0x43   :  { %s5485_s2 = scalar_lea.vmem %s107_s24, 16  ;;  %s5489_s8 = scalar_lea.vmem %s107_s24, 32 }
  0x44   :  { %p5486_p11 = scmp.ne.s32.totalorder %s107_s24, %s5485_s2  ;;  %p5490_p12 = scmp.lt.s32.totalorder %s107_s24, %s107_s24 }
  0x45   :  { %p5491_p13 = scmp.lt.s32.totalorder %s5489_s8, %s5485_s2 }
  0x47   :  { %p5492_p0 = por %p5491_p13, %p5490_p12 }
  0x49   :  { %p5493_p1 = pnand %p5492_p0, %p5486_p11 }
  0x4b   :  { %5496 = shalt.err (!%p5493_p1)
}
  0x4c   :  { %109 = dma.hbm_to_vmem [thread:$0]  %s8043_s13, 16, %s107_s24, [#allocation14]  }
  0x4d   :  { %5517 = dma.done.wait [#allocation5], 256  }
  0x4e   :  { %5518 = vsyncadd [#allocation5], 4294967040 }
  0x4f   :  { %5519 = dma.done.wait [#allocation8], 8208  }
  0x50   :  { %5520 = vsyncadd [#allocation8], 4294959088 }
  0x51   :  { %5521 = dma.done.wait [#allocation11], 3088  }
  0x52   :  { %5522 = vsyncadd [#allocation11], 4294964208 }
  0x53   :  { %5523 = dma.done.wait [#allocation14], 16  }
  0x54   :  { %5524 = vsyncadd [#allocation14], 4294967280  ;;  %v8054_v0 = vmov 0   ;;  %v255_v1 = vld [vmem:[#allocation4] sm:$0xff]  ;;  %vm301_vm0 = vcmask 1043456   ;;  %v256_v2 = vld [vmem:[#allocation4 + $0x8] sm:$0xff]  ;;  %v258_v53 = vlaneseq }
  0x55   :  { %346 = vmatprep.mubr.bf16.mxu0 %v8054_v0  ;;  %419 = vmatprep.mubr.bf16.mxu1 %v8054_v0  ;;  %s8343_s26 = sld [smem:[#allocation101_spill]]  ;;  %v4275_v4 = vcombine.high %v255_v1, %v255_v1  ;;  %v4277_v5 = vcombine.high %v256_v2, %v256_v2  ;;  %v4274_v6 = vcombine.low %v255_v1, %v255_v1  ;;  %vm288_vm1 = vcmask 64512   ;;  %s5539_s13 = smov 96  }
  0x56   :  { %4635 = vset.pattern.permute.xlu1 %v8054_v0  ;;  %4634 = vset.pattern.permute.xlu0 %v8054_v0  ;;  %v4276_v7 = vcombine.low %v256_v2, %v256_v2  ;;  %s8344_s30 = sld [smem:[#allocation103_spill]]  ;;  %v5886_v54 = vshrl.u32 %v258_v53, 7  ;;  %s5541_s27 = smov 32   ;;  %vm3346_vm2 = vcmask 261120   ;;  %vm3523_vm3 = vcmask 7168  }
  0x57   :  { %4278 = vmatprep.subr.msk.bf16.mxu0 %vm301_vm0, %v4275_v4  ;;  %4283 = vmatprep.subr.msk.bf16.mxu1 %vm301_vm0, %v4277_v5  ;;  %v303_v10 = vsel %vm301_vm0, %v4274_v6, 0  ;;  %s8348_s2 = sld [smem:[#allocation104_spill]]  ;;  %vm3532_vm4 = vcmask 15360   ;;  %vm3541_vm5 = vcmask 23552   ;;  %vm3550_vm6 = vcmask 31744  }
  0x58   :  { %v309_v11 = vsel %vm301_vm0, %v4276_v7, 0  ;;  %329 = vmatpush1.bf16.msra.mxu0 %v303_v10  ;;  %8345 = vst [vmem:[#allocation21_spill] sm:$0xff] %v5886_v54  ;;  %v5889_v55 = vsub.s32 2, %v5886_v54  ;;  %v5892_v56 = vsub.s32 0, %v5886_v54  ;;  %v8053_v57 = vsub.s32 3, %v5886_v54 }
  0x59   :  { %402 = vmatpush1.bf16.msra.mxu1 %v309_v11  ;;  %v5906_v62 = vsub.s32 1, %v5886_v54  ;;  %v6106_v54 = vld [vmem:[#allocation7 + $0x1c4] ss:$16 sps:$4 sm:$0xff]   ;;  %vm5546_vm7 = vmmov 0   ;;  %vm3717_vm8 = vcmask 523520   ;;  %vm3829_vm9 = vcmask 1048320  }
  0x5a   :  { %8346 = vst [vmem:[#allocation22_spill] sm:$0xff] %v5889_v55  ;;  %8347 = vst [vmem:[#allocation23_spill] sm:$0xff] %v5892_v56  ;;  %vm3773_vm10 = vcmask 785920   ;;  %vm3846_vm11 = vcmask 523264   ;;  %vm3848_vm12 = vcmask 785408   ;;  %vm4230_vm13 = vcmask 17408  }
  0x5b   :  { %v243_v3 = vld [vmem:[%s8343_s26] sm:$0xff]  ;;  %v244_v8 = vld [vmem:[%s8343_s26 + $0x8] sm:$0xff]  ;;  %v245_v20 = vld [vmem:[%s8343_s26 + $0x10] sm:$0xff]  ;;  %8349 = vst [vmem:[#allocation24_spill] sm:$0xff] %v5906_v62 }
  0x5c   :  { %v4669_v9 = vld [vmem:[%s8344_s30 + $0xe4] ss:$16 sps:$4 sm:$0xff]   ;;  %v251_v12 = vpack.c.bf16 %v244_v8, %v243_v3  ;;  %v4671_v13 = vld [vmem:[%s8344_s30 + $0xec] ss:$16 sps:$4 sm:$0xff]   ;;  %v4673_v14 = vld [vmem:[%s8344_s30 + $0xe0] ss:$16 sps:$4 sm:$0xff]  }
  0x5d   :  { %v4674_v15 = vld [vmem:[%s8344_s30 + $0xe8] ss:$16 sps:$4 sm:$0xff]   ;;  %656 = vmatprep.subr.bf16.mxu0 %v4669_v9  ;;  %697 = vmatprep.subr.bf16.mxu1 %v4671_v13  ;;  %v4675_v16 = vld [vmem:[%s8344_s30 + $0xc4] ss:$16 sps:$4 sm:$0xff]   ;;  %v4677_v17 = vld [vmem:[%s8344_s30 + $0xcc] ss:$16 sps:$4 sm:$0xff]  }
  0x5e   :  { %v4679_v18 = vld [vmem:[%s8344_s30 + $0xc0] ss:$16 sps:$4 sm:$0xff]   ;;  %4279 = vmatmul.mubr.msk.bf16.vlgmr.msra.gmra.mxu0 %vm288_vm1, %v251_v12  ;;  %4284 = vmatmul.mubr.msk.bf16.vlgmr.msra.gmra.mxu1 %vm288_vm1, %v251_v12  ;;  %v4680_v19 = vld [vmem:[%s8344_s30 + $0xc8] ss:$16 sps:$4 sm:$0xff]   ;;  %v5717_v22 = vld [vmem:[%s8344_s30 + $0xa4] ss:$16 sps:$4 sm:$0xff]  }
  0x5f   :  { %657 = vmatpush1.bf16.msra.mxu0 %v4673_v14  ;;  %698 = vmatpush1.bf16.msra.mxu1 %v4674_v15  ;;  %v246_v21 = vld [vmem:[%s8343_s26 + $0x18] sm:$0xff]  ;;  %v5729_v25 = vld [vmem:[%s8344_s30 + $0xa0] ss:$16 sps:$4 sm:$0xff]   ;;  %v5741_v27 = vld [vmem:[%s8344_s30 + $0x84] ss:$16 sps:$4 sm:$0xff]   ;;  %8387 = vst [vmem:[#allocation62_spill] sm:$0xff] %v6106_v54 }
  0x60   :  { %658 = vmatprep.subr.bf16.mxu0 %v4675_v16  ;;  %699 = vmatprep.subr.bf16.mxu1 %v4677_v17  ;;  %v5722_v23 = vld [vmem:[%s8344_s30 + $0xac] ss:$16 sps:$4 sm:$0xff]   ;;  %v252_v24 = vpack.c.bf16 %v246_v21, %v245_v20  ;;  %v5734_v26 = vld [vmem:[%s8344_s30 + $0xa8] ss:$16 sps:$4 sm:$0xff]   ;;  %v5751_v29 = vld [vmem:[%s8344_s30 + $0x80] ss:$16 sps:$4 sm:$0xff]  }
  0x61   :  { %356 = vmatprep.mubr.bf16.mxu0 %v8054_v0  ;;  %429 = vmatprep.mubr.bf16.mxu1 %v8054_v0  ;;  %v5746_v28 = vld [vmem:[%s8344_s30 + $0x8c] ss:$16 sps:$4 sm:$0xff]   ;;  %v5756_v30 = vld [vmem:[%s8344_s30 + $0x88] ss:$16 sps:$4 sm:$0xff]   ;;  %v247_v31 = vld [vmem:[%s8343_s26 + $0x20] sm:$0xff] }
  0x62   :  { %v248_v32 = vld [vmem:[%s8343_s26 + $0x28] sm:$0xff]  ;;  %v5771_v33 = vld [vmem:[%s8344_s30 + $0x64] ss:$16 sps:$4 sm:$0xff]   ;;  %v5785_v36 = vld [vmem:[%s8344_s30 + $0x60] ss:$16 sps:$4 sm:$0xff]  }
  0x63   :  { %659 = vmatpush1.bf16.msra.mxu0 %v4679_v18  ;;  %700 = vmatpush1.bf16.msra.mxu1 %v4680_v19  ;;  %v5778_v34 = vld [vmem:[%s8344_s30 + $0x6c] ss:$16 sps:$4 sm:$0xff]   ;;  %v253_v35 = vpack.c.bf16 %v248_v32, %v247_v31  ;;  %v5792_v37 = vld [vmem:[%s8344_s30 + $0x68] ss:$16 sps:$4 sm:$0xff]   ;;  %v5799_v38 = vld [vmem:[%s8344_s30 + $0x44] ss:$16 sps:$4 sm:$0xff]  }
  0x64   :  { %660 = vmatprep.subr.bf16.mxu0 %v5717_v22  ;;  %701 = vmatprep.subr.bf16.mxu1 %v5722_v23  ;;  %v5804_v39 = vld [vmem:[%s8344_s30 + $0x4c] ss:$16 sps:$4 sm:$0xff]   ;;  %v5809_v40 = vld [vmem:[%s8344_s30 + $0x40] ss:$16 sps:$4 sm:$0xff]   ;;  %v5816_v41 = vld [vmem:[%s8344_s30 + $0x48] ss:$16 sps:$4 sm:$0xff]  }
  0x65   :  { %v249_v42 = vld [vmem:[%s8343_s26 + $0x30] sm:$0xff]  ;;  %v250_v43 = vld [vmem:[%s8343_s26 + $0x38] sm:$0xff]  ;;  %v237_v58 = vld [vmem:[%s8348_s2] sm:$0xf] }
  0x66   :  { %4280 = vmatmul.mubr.msk.bf16.gmra.mxu0 %vm288_vm1, %v252_v24  ;;  %4285 = vmatmul.mubr.msk.bf16.gmra.mxu1 %vm288_vm1, %v252_v24  ;;  %v5829_v44 = vld [vmem:[%s8344_s30 + $0x24] ss:$16 sps:$4 sm:$0xff]   ;;  %v5836_v45 = vld [vmem:[%s8344_s30 + $0x2c] ss:$16 sps:$4 sm:$0xff]   ;;  %v5843_v46 = vld [vmem:[%s8344_s30 + $0x20] ss:$16 sps:$4 sm:$0xff]   ;;  %v254_v48 = vpack.c.bf16 %v250_v43, %v249_v42  ;;  %v5903_v61 = vrot.slane %v237_v58, %v5889_v55  ;;  %v261_v2 = vrot.slane %v237_v58, %v5892_v56 }
  0x67   :  { %661 = vmatpush1.bf16.msra.mxu0 %v5729_v25  ;;  %702 = vmatpush1.bf16.msra.mxu1 %v5734_v26  ;;  %v5848_v47 = vld [vmem:[%s8344_s30 + $0x28] ss:$16 sps:$4 sm:$0xff]   ;;  %v5853_v49 = vld [vmem:[%s8344_s30 + $0x4] ss:$16 sps:$4 sm:$0xff]   ;;  %v5858_v50 = vld [vmem:[%s8344_s30 + $0xc] ss:$16 sps:$4 sm:$0xff]   ;;  %v5915_v3 = vrot.slane %v237_v58, %v8053_v57  ;;  %v265_v6 = vrot.slane %v237_v58, %v5906_v62 }
  0x68   :  { %662 = vmatprep.subr.bf16.mxu0 %v5741_v27  ;;  %703 = vmatprep.subr.bf16.mxu1 %v5746_v28  ;;  %v5867_v51 = vld [vmem:[%s8344_s30] ss:$16 sps:$4 sm:$0xff]   ;;  %v5872_v52 = vld [vmem:[%s8344_s30 + $0x8] ss:$16 sps:$4 sm:$0xff]   ;;  %v6108_v62 = vld [vmem:[#allocation7 + $0x1cc] ss:$16 sps:$4 sm:$0xff]  }
  0x69   :  { %366 = vmatprep.mubr.bf16.mxu0 %v8054_v0  ;;  %439 = vmatprep.mubr.bf16.mxu1 %v8054_v0  ;;  %v6102_v55 = vld [vmem:[#allocation7 + $0x1e8] ss:$16 sps:$4 sm:$0xff]   ;;  %8388 = vst [vmem:[#allocation63_spill] sm:$0xff] %v6108_v62  ;;  %v6112_v56 = vld [vmem:[#allocation7 + $0x1c0] ss:$16 sps:$4 sm:$0xff]  }
  0x6a   :  { %8386 = vst [vmem:[#allocation61_spill] sm:$0xff] %v6102_v55  ;;  %8389 = vst [vmem:[#allocation64_spill] sm:$0xff] %v6112_v56 }
  0x6b   :  { %663 = vmatpush1.bf16.msra.mxu0 %v5751_v29  ;;  %704 = vmatpush1.bf16.msra.mxu1 %v5756_v30 }
  0x6c   :  { %664 = vmatprep.subr.bf16.mxu0 %v5771_v33  ;;  %705 = vmatprep.subr.bf16.mxu1 %v5778_v34 }
  0x6e   :  { %4281 = vmatmul.mubr.msk.bf16.gmra.mxu0 %vm288_vm1, %v253_v35  ;;  %4286 = vmatmul.mubr.msk.bf16.gmra.mxu1 %vm288_vm1, %v253_v35 }
  0x6f   :  { %665 = vmatpush1.bf16.msra.mxu0 %v5785_v36  ;;  %706 = vmatpush1.bf16.msra.mxu1 %v5792_v37 }
  0x70   :  { %666 = vmatprep.subr.bf16.mxu0 %v5799_v38  ;;  %707 = vmatprep.subr.bf16.mxu1 %v5804_v39 }
  0x71   :  { %376 = vmatprep.mubr.bf16.mxu0 %v8054_v0  ;;  %449 = vmatprep.mubr.bf16.mxu1 %v8054_v0 }
  0x73   :  { %667 = vmatpush1.bf16.msra.mxu0 %v5809_v40  ;;  %708 = vmatpush1.bf16.msra.mxu1 %v5816_v41 }
  0x74   :  { %668 = vmatprep.subr.bf16.mxu0 %v5829_v44  ;;  %709 = vmatprep.subr.bf16.mxu1 %v5836_v45 }
  0x76   :  { %4282 = vmatmul.mubr.msk.bf16.gmra.mxu0 %vm288_vm1, %v254_v48  ;;  %4287 = vmatmul.mubr.msk.bf16.gmra.mxu1 %vm288_vm1, %v254_v48 }
  0x77   :  { %669 = vmatpush1.bf16.msra.mxu0 %v5843_v46  ;;  %710 = vmatpush1.bf16.msra.mxu1 %v5848_v47 }
  0x78   :  { %670 = vmatprep.subr.bf16.mxu0 %v5853_v49  ;;  %711 = vmatprep.subr.bf16.mxu1 %v5858_v50 }
  0x79   :  { %688 = vmatprep.mubr.bf16.mxu0 %v8054_v0  ;;  %729 = vmatprep.mubr.bf16.mxu1 %v8054_v0 }
  0x7b   :  { %671 = vmatpush1.bf16.msra.mxu0 %v5867_v51  ;;  %712 = vmatpush1.bf16.msra.mxu1 %v5872_v52 }
  0x7e   :  { %689 = vmatmul.mubr.bf16.vlgmr.msra.gmra.mxu0 %v8054_v0  ;;  %730 = vmatmul.mubr.bf16.vlgmr.msra.gmra.mxu1 %v8054_v0 }
 0x11e   :  { %v5898_v59 = vpop.f32.mrf.mxu0  ;;  %v5900_v60 = vpop.f32.mrf.mxu1 }
 0x120   :  { %v5908_v63 = vpop.f32.mrf.mxu0  ;;  %v5910_v1 = vpop.f32.mrf.mxu1 }
 0x122   :  { %v352_v4 = vpop.f32.mrf.mxu0  ;;  %v425_v5 = vpop.f32.mrf.mxu1 }
 0x123   :  { %v5918_v7 = vadd.f32 %v352_v4, %v261_v2  ;;  %v5921_v8 = vadd.f32 %v425_v5, %v5903_v61 }
 0x124   :  { %v354_v9 = vpop.f32.mrf.mxu0  ;;  %v427_v10 = vpop.f32.mrf.mxu1 }
 0x125   :  { %8350 = vst [vmem:[#allocation25_spill] sm:$0xff] %v5918_v7  ;;  %8351 = vst [vmem:[#allocation26_spill] sm:$0xff] %v5921_v8  ;;  %v5923_v11 = vadd.f32 %v354_v9, %v265_v6  ;;  %v5926_v12 = vadd.f32 %v427_v10, %v5915_v3  ;;  %v6090_v8 = vld [vmem:[#allocation7 + $0x8] ss:$16 sps:$4 sm:$0xff]   ;;  %v6100_v7 = vld [vmem:[#allocation7 + $0x1e0] ss:$16 sps:$4 sm:$0xff]  }
 0x126   :  { %v358_v13 = vpop.f32.mrf.mxu0  ;;  %v431_v14 = vpop.f32.mrf.mxu1  ;;  %8382 = vst [vmem:[#allocation57_spill] sm:$0xff] %v6090_v8  ;;  %8385 = vst [vmem:[#allocation60_spill] sm:$0xff] %v6100_v7 }
 0x127   :  { %8352 = vst [vmem:[#allocation27_spill] sm:$0xff] %v5923_v11  ;;  %8353 = vst [vmem:[#allocation28_spill] sm:$0xff] %v5926_v12  ;;  %v5928_v15 = vadd.f32 %v358_v13, %v261_v2  ;;  %v5931_v16 = vadd.f32 %v431_v14, %v5903_v61  ;;  %v6094_v12 = vld [vmem:[#allocation7 + $0x1e4] ss:$16 sps:$4 sm:$0xff]   ;;  %v6096_v11 = vld [vmem:[#allocation7 + $0x1ec] ss:$16 sps:$4 sm:$0xff]  }
 0x128   :  { %v360_v17 = vpop.f32.mrf.mxu0  ;;  %v433_v18 = vpop.f32.mrf.mxu1  ;;  %8383 = vst [vmem:[#allocation58_spill] sm:$0xff] %v6094_v12  ;;  %8384 = vst [vmem:[#allocation59_spill] sm:$0xff] %v6096_v11 }
 0x129   :  { %8354 = vst [vmem:[#allocation29_spill] sm:$0xff] %v5928_v15  ;;  %8355 = vst [vmem:[#allocation30_spill] sm:$0xff] %v5931_v16  ;;  %v5933_v19 = vadd.f32 %v360_v17, %v265_v6  ;;  %v5936_v20 = vadd.f32 %v433_v18, %v5915_v3  ;;  %v6076_v16 = vld [vmem:[#allocation7 + $0x20] ss:$16 sps:$4 sm:$0xff]   ;;  %v6084_v15 = vld [vmem:[#allocation7 + $0xc] ss:$16 sps:$4 sm:$0xff]  }
 0x12a   :  { %v362_v21 = vpop.f32.mrf.mxu0  ;;  %v435_v24 = vpop.f32.mrf.mxu1  ;;  %8380 = vst [vmem:[#allocation55_spill] sm:$0xff] %v6084_v15 }
 0x12b   :  { %8356 = vst [vmem:[#allocation31_spill] sm:$0xff] %v5933_v19  ;;  %8357 = vst [vmem:[#allocation32_spill] sm:$0xff] %v5936_v20  ;;  %v5938_v31 = vadd.f32 %v362_v21, %v261_v2  ;;  %v5941_v32 = vadd.f32 %v435_v24, %v5903_v61  ;;  %v6078_v20 = vld [vmem:[#allocation7 + $0x28] ss:$16 sps:$4 sm:$0xff]   ;;  %v6082_v19 = vld [vmem:[#allocation7 + $0x4] ss:$16 sps:$4 sm:$0xff]  }
 0x12c   :  { %v364_v35 = vpop.f32.mrf.mxu0  ;;  %v437_v42 = vpop.f32.mrf.mxu1  ;;  %8379 = vst [vmem:[#allocation54_spill] sm:$0xff] %v6082_v19 }
 0x12d   :  { %8358 = vst [vmem:[#allocation33_spill] sm:$0xff] %v5938_v31  ;;  %8359 = vst [vmem:[#allocation34_spill] sm:$0xff] %v5941_v32  ;;  %v5943_v43 = vadd.f32 %v364_v35, %v265_v6  ;;  %v5946_v48 = vadd.f32 %v437_v42, %v5915_v3  ;;  %v6072_v31 = vld [vmem:[#allocation7 + $0x2c] ss:$16 sps:$4 sm:$0xff]  }
 0x12e   :  { %v368_v53 = vpop.f32.mrf.mxu0  ;;  %v441_v58 = vpop.f32.mrf.mxu1 }
 0x12f   :  { %8360 = vst [vmem:[#allocation35_spill] sm:$0xff] %v5943_v43  ;;  %8361 = vst [vmem:[#allocation36_spill] sm:$0xff] %v5946_v48  ;;  %v5948_v4 = vadd.f32 %v368_v53, %v261_v2  ;;  %v5951_v5 = vadd.f32 %v441_v58, %v5903_v61  ;;  %v6066_v48 = vld [vmem:[#allocation7 + $0x48] ss:$16 sps:$4 sm:$0xff]   ;;  %v6070_v43 = vld [vmem:[#allocation7 + $0x24] ss:$16 sps:$4 sm:$0xff]  }
 0x130   :  { %v370_v9 = vpop.f32.mrf.mxu0  ;;  %v443_v10 = vpop.f32.mrf.mxu1 }
 0x131   :  { %8362 = vst [vmem:[#allocation37_spill] sm:$0xff] %v5948_v4  ;;  %8363 = vst [vmem:[#allocation38_spill] sm:$0xff] %v5951_v5  ;;  %v5953_v13 = vadd.f32 %v370_v9, %v265_v6  ;;  %v5956_v14 = vadd.f32 %v443_v10, %v5915_v3 }
 0x132   :  { %v372_v17 = vpop.f32.mrf.mxu0  ;;  %v445_v18 = vpop.f32.mrf.mxu1 }
 0x133   :  { %8364 = vst [vmem:[#allocation39_spill] sm:$0xff] %v5953_v13  ;;  %8365 = vst [vmem:[#allocation40_spill] sm:$0xff] %v5956_v14  ;;  %v5958_v21 = vadd.f32 %v372_v17, %v261_v2  ;;  %v5961_v24 = vadd.f32 %v445_v18, %v5903_v61 }
 0x134   :  { %v374_v35 = vpop.f32.mrf.mxu0  ;;  %v447_v42 = vpop.f32.mrf.mxu1 }
 0x135   :  { %8366 = vst [vmem:[#allocation41_spill] sm:$0xff] %v5958_v21  ;;  %8367 = vst [vmem:[#allocation42_spill] sm:$0xff] %v5961_v24  ;;  %v5963_v53 = vadd.f32 %v374_v35, %v265_v6  ;;  %v5966_v58 = vadd.f32 %v447_v42, %v5915_v3 }
 0x136   :  { %v378_v57 = vpop.f32.mrf.mxu0  ;;  %v451_v9 = vpop.f32.mrf.mxu1 }
 0x137   :  { %8368 = vst [vmem:[#allocation43_spill] sm:$0xff] %v5963_v53  ;;  %8369 = vst [vmem:[#allocation44_spill] sm:$0xff] %v5966_v58  ;;  %v5968_v0 = vadd.f32 %v378_v57, %v261_v2  ;;  %v5971_v10 = vadd.f32 %v451_v9, %v5903_v61 }
 0x138   :  { %v380_v5 = vpop.f32.mrf.mxu0  ;;  %v453_v17 = vpop.f32.mrf.mxu1 }
 0x139   :  { %8370 = vst [vmem:[#allocation45_spill] sm:$0xff] %v5968_v0  ;;  %8371 = vst [vmem:[#allocation46_spill] sm:$0xff] %v5971_v10  ;;  %v5973_v21 = vadd.f32 %v380_v5, %v265_v6  ;;  %v5976_v18 = vadd.f32 %v453_v17, %v5915_v3  ;;  %v349_v0 = vadd.f32 %v5898_v59, %v261_v2 }
 0x13a   :  { %v382_v24 = vpop.f32.mrf.mxu0  ;;  %v455_v35 = vpop.f32.mrf.mxu1  ;;  %v351_v17 = vadd.f32 %v5908_v63, %v265_v6 }
 0x13b   :  { %8372 = vst [vmem:[#allocation47_spill] sm:$0xff] %v5973_v21  ;;  %8373 = vst [vmem:[#allocation48_spill] sm:$0xff] %v5976_v18  ;;  %v5978_v53 = vadd.f32 %v382_v24, %v261_v2  ;;  %v5981_v42 = vadd.f32 %v455_v35, %v5903_v61  ;;  %v424_v2 = vadd.f32 %v5910_v1, %v5915_v3 }
 0x13c   :  { %v384_v58 = vpop.f32.mrf.mxu0  ;;  %v457_v57 = vpop.f32.mrf.mxu1 }
 0x13d   :  { %8374 = vst [vmem:[#allocation49_spill] sm:$0xff] %v5978_v53  ;;  %8375 = vst [vmem:[#allocation50_spill] sm:$0xff] %v5981_v42  ;;  %v5984_v9 = vadd.f32 %v384_v58, %v265_v6  ;;  %v5987_v10 = vadd.f32 %v457_v57, %v5915_v3  ;;  %v422_v57 = vadd.f32 %v5900_v60, %v5903_v61 }
 0x13e   :  { %v690_v5 = vpop.f32.mrf.mxu0  ;;  %v731_v21 = vpop.f32.mrf.mxu1 }
 0x13f   :  { %8376 = vst [vmem:[#allocation51_spill] sm:$0xff] %v5984_v9  ;;  %8377 = vst [vmem:[#allocation52_spill] sm:$0xff] %v5987_v10  ;;  %v738_v18 = vadd.f32 %v690_v5, %v349_v0  ;;  %v740_v6 = vadd.f32 %v731_v21, %v422_v57  ;;  %v6010_v57 = vld [vmem:[#allocation7 + $0xcc] ss:$16 sps:$4 sm:$0xff]   ;;  %v6064_v9 = vld [vmem:[#allocation7 + $0x40] ss:$16 sps:$4 sm:$0xff]  }
 0x140   :  { %v692_v14 = vpop.f32.mrf.mxu0  ;;  %v733_v24 = vpop.f32.mrf.mxu1  ;;  %v6060_v10 = vld [vmem:[#allocation7 + $0x4c] ss:$16 sps:$4 sm:$0xff]  }
 0x141   :  { %v4320_v53 = vmul.f32 -1.442695, %v738_v18  ;;  %v739_v13 = vadd.f32 %v692_v14, %v351_v17  ;;  %v741_v58 = vadd.f32 %v733_v24, %v424_v2  ;;  %v6000_v24 = vld [vmem:[#allocation7 + $0xe4] ss:$16 sps:$4 sm:$0xff]   ;;  %v6006_v2 = vld [vmem:[#allocation7 + $0xe8] ss:$16 sps:$4 sm:$0xff]  }
 0x142   :  { %v694_v35 = vpop.f32.mrf.mxu0  ;;  %v735_v42 = vpop.f32.mrf.mxu1  ;;  %1135 = vmatprep.subr.bf16.mxu0 %v6000_v24 }
 0x143   :  { %4867 = vpow2.f32 %v4320_v53  ;;  %v4321_v4 = vmul.f32 -1.442695, %v739_v13  ;;  %v4322_v63 = vmul.f32 -1.442695, %v741_v58  ;;  %v6002_v35 = vld [vmem:[#allocation7 + $0xec] ss:$16 sps:$4 sm:$0xff]  }
 0x144   :  { %v695_v32 = vpop.f32.mrf.mxu0  ;;  %v736_v59 = vpop.f32.mrf.mxu1  ;;  %v6008_v58 = vld [vmem:[#allocation7 + $0xc4] ss:$16 sps:$4 sm:$0xff]   ;;  %1176 = vmatprep.subr.bf16.mxu1 %v6002_v35 }
 0x145   :  { %4869 = vpow2.f32 %v4321_v4  ;;  %v6004_v59 = vld [vmem:[#allocation7 + $0xe0] ss:$16 sps:$4 sm:$0xff]   ;;  %1177 = vmatpush1.bf16.msra.mxu1 %v6006_v2 }
 0x146   :  { %4871 = vpow2.f32 %v4322_v63  ;;  %1136 = vmatpush1.bf16.msra.mxu0 %v6004_v59  ;;  %v6016_v63 = vld [vmem:[#allocation7 + $0xc0] ss:$16 sps:$4 sm:$0xff]   ;;  %1178 = vmatprep.subr.bf16.mxu1 %v6010_v57 }
 0x147   :  { %1137 = vmatprep.subr.bf16.mxu0 %v6008_v58 }
 0x14a   :  { %1138 = vmatpush1.bf16.msra.mxu0 %v6016_v63 }
 0x150   :  { %v4868_v0 = vpop.eup %4867 }
 0x151   :  { %v745_v5 = vadd.f32 1.0, %v4868_v0  ;;  %v6018_v0 = vld [vmem:[#allocation7 + $0xc8] ss:$16 sps:$4 sm:$0xff]  }
 0x152   :  { %v4870_v18 = vpop.eup %4869  ;;  %1179 = vmatpush1.bf16.msra.mxu1 %v6018_v0 }
 0x153   :  { %4873 = vrcp.f32 %v745_v5  ;;  %v751_v14 = vadd.f32 1.0, %v4870_v18  ;;  %v4872_v32 = vpop.eup %4871  ;;  %v6024_v5 = vld [vmem:[#allocation7 + $0xac] ss:$16 sps:$4 sm:$0xff]   ;;  %v6028_v18 = vld [vmem:[#allocation7 + $0xa0] ss:$16 sps:$4 sm:$0xff]  }
 0x154   :  { %4875 = vtanh.f32 %v740_v6  ;;  %v758_v42 = vadd.f32 1.0, %v4872_v32  ;;  %v6022_v6 = vld [vmem:[#allocation7 + $0xa4] ss:$16 sps:$4 sm:$0xff]   ;;  %1180 = vmatprep.subr.bf16.mxu1 %v6024_v5 }
 0x155   :  { %4877 = vrcp.f32 %v751_v14  ;;  %v6030_v14 = vld [vmem:[#allocation7 + $0xa8] ss:$16 sps:$4 sm:$0xff]   ;;  %1139 = vmatprep.subr.bf16.mxu0 %v6022_v6  ;;  %v6034_v32 = vld [vmem:[#allocation7 + $0x84] ss:$16 sps:$4 sm:$0xff]  }
 0x156   :  { %4879 = vrcp.f32 %v758_v42  ;;  %1140 = vmatpush1.bf16.msra.mxu0 %v6028_v18  ;;  %1181 = vmatpush1.bf16.msra.mxu1 %v6030_v14  ;;  %v6046_v42 = vld [vmem:[#allocation7 + $0x64] ss:$16 sps:$4 sm:$0xff]  }
 0x157   :  { %1141 = vmatprep.subr.bf16.mxu0 %v6034_v32 }
 0x160   :  { %v4874_v13 = vpop.eup %4873 }
 0x161   :  { %v4876_v4 = vpop.eup %4875 }
 0x162   :  { %v4878_v53 = vpop.eup %4877  ;;  %v762_v3 = vmul.f32 %v4876_v4, %v4874_v13  ;;  %v6036_v13 = vld [vmem:[#allocation7 + $0x8c] ss:$16 sps:$4 sm:$0xff]   ;;  %v6040_v4 = vld [vmem:[#allocation7 + $0x80] ss:$16 sps:$4 sm:$0xff]  }
 0x163   :  { %v761_v1 = vmul.f32 0.0, %v4878_v53  ;;  %v4880_v60 = vpop.eup %4879  ;;  %v6042_v53 = vld [vmem:[#allocation7 + $0x88] ss:$16 sps:$4 sm:$0xff]   ;;  %1182 = vmatprep.subr.bf16.mxu1 %v6036_v13  ;;  %1142 = vmatpush1.bf16.msra.mxu0 %v6040_v4 }
 0x164   :  { %1183 = vmatpush1.bf16.msra.mxu1 %v6042_v53  ;;  %1143 = vmatprep.subr.bf16.mxu0 %v6046_v42 }
 0x165   :  { %v5994_v17 = vadd.f32 %v762_v3, %v761_v1  ;;  %v6048_v1 = vld [vmem:[#allocation7 + $0x6c] ss:$16 sps:$4 sm:$0xff]   ;;  %v6052_v3 = vld [vmem:[#allocation7 + $0x60] ss:$16 sps:$4 sm:$0xff]  }
 0x166   :  { %1184 = vmatprep.subr.bf16.mxu1 %v6048_v1 }
 0x167   :  { %8378 = vst [vmem:[#allocation53_spill] sm:$0xff] %v5994_v17  ;;  %4881 = vtanh.f32 %v5994_v17  ;;  %1144 = vmatpush1.bf16.msra.mxu0 %v6052_v3  ;;  %v6088_v17 = vld [vmem:[#allocation7] ss:$16 sps:$4 sm:$0xff]  }
 0x168   :  { %8381 = vst [vmem:[#allocation56_spill] sm:$0xff] %v6088_v17 }
 0x174   :  { %v4882_v61 = vpop.eup %4881 }
 0x175   :  { %v5997_v21 = vmul.f32 %v4882_v61, %v4880_v60  ;;  %v6054_v60 = vld [vmem:[#allocation7 + $0x68] ss:$16 sps:$4 sm:$0xff]   ;;  %v6058_v61 = vld [vmem:[#allocation7 + $0x44] ss:$16 sps:$4 sm:$0xff]  }
 0x176   :  { %1185 = vmatpush1.bf16.msra.mxu1 %v6054_v60  ;;  %1145 = vmatprep.subr.bf16.mxu0 %v6058_v61 }
 0x177   :  { %766 = vadd.xlane.f32.xlu0 %v5997_v21  ;;  %1186 = vmatprep.subr.bf16.mxu1 %v6060_v10 }
 0x178   :  { %1146 = vmatpush1.bf16.msra.mxu0 %v6064_v9 }
 0x179   :  { %1147 = vmatprep.subr.bf16.mxu0 %v6070_v43 }
 0x17a   :  { %1187 = vmatpush1.bf16.msra.mxu1 %v6066_v48 }
 0x17b   :  { %1188 = vmatprep.subr.bf16.mxu1 %v6072_v31 }
 0x17c   :  { %1148 = vmatpush1.bf16.msra.mxu0 %v6076_v16 }
 0x17d   :  { %1149 = vmatprep.subr.bf16.mxu0 %v6082_v19  ;;  %v6147_v19 = vld [vmem:[#allocation7 + $0x16c] ss:$16 sps:$4 sm:$0xff]  }
 0x17e   :  { %1189 = vmatpush1.bf16.msra.mxu1 %v6078_v20  ;;  %8400 = vst [vmem:[#allocation75_spill] sm:$0xff] %v6147_v19 }
 0x17f   :  { %1190 = vmatprep.subr.bf16.mxu1 %v6084_v15  ;;  %v6127_v15 = vld [vmem:[#allocation7 + $0x1ac] ss:$16 sps:$4 sm:$0xff]  }
 0x180   :  { %1150 = vmatpush1.bf16.msra.mxu0 %v6088_v17  ;;  %v6114_v17 = vld [vmem:[#allocation7 + $0x1c8] ss:$16 sps:$4 sm:$0xff]   ;;  %8392 = vst [vmem:[#allocation67_spill] sm:$0xff] %v6127_v15 }
 0x181   :  { %1151 = vmatprep.subr.bf16.mxu0 %v6094_v12  ;;  %8390 = vst [vmem:[#allocation65_spill] sm:$0xff] %v6114_v17 }
 0x182   :  { %1191 = vmatpush1.bf16.msra.mxu1 %v6090_v8 }
 0x183   :  { %1192 = vmatprep.subr.bf16.mxu1 %v6096_v11 }
 0x184   :  { %1152 = vmatpush2.bf16.msra.mxu0 %v6100_v7  ;;  %v6125_v7 = vld [vmem:[#allocation7 + $0x1a4] ss:$16 sps:$4 sm:$0xff]  }
 0x185   :  { %1153 = vmatprep.subr.bf16.mxu0 %v6106_v54  ;;  %8391 = vst [vmem:[#allocation66_spill] sm:$0xff] %v6125_v7  ;;  %v6129_v54 = vld [vmem:[#allocation7 + $0x1a0] ss:$16 sps:$4 sm:$0xff]  }
 0x186   :  { %1193 = vmatpush2.bf16.msra.mxu1 %v6102_v55  ;;  %8393 = vst [vmem:[#allocation68_spill] sm:$0xff] %v6129_v54 }
 0x187   :  { %1194 = vmatprep.subr.bf16.mxu1 %v6108_v62  ;;  %v6131_v62 = vld [vmem:[#allocation7 + $0x1a8] ss:$16 sps:$4 sm:$0xff]  }
 0x188   :  { %1154 = vmatpush2.bf16.msra.mxu0 %v6112_v56  ;;  %8394 = vst [vmem:[#allocation69_spill] sm:$0xff] %v6131_v62  ;;  %v6145_v56 = vld [vmem:[#allocation7 + $0x164] ss:$16 sps:$4 sm:$0xff]  }
 0x189   :  { %1155 = vmatprep.subr.bf16.mxu0 %v6125_v7  ;;  %8399 = vst [vmem:[#allocation74_spill] sm:$0xff] %v6145_v56  ;;  %v6161_v7 = vld [vmem:[#allocation7 + $0x14c] ss:$16 sps:$4 sm:$0xff]  }
 0x18a   :  { %1195 = vmatpush2.bf16.msra.mxu1 %v6114_v17  ;;  %v6143_v17 = vld [vmem:[#allocation7 + $0x188] ss:$16 sps:$4 sm:$0xff]   ;;  %8404 = vst [vmem:[#allocation79_spill] sm:$0xff] %v6161_v7 }
 0x18b   :  { %1196 = vmatprep.subr.bf16.mxu1 %v6127_v15  ;;  %8398 = vst [vmem:[#allocation73_spill] sm:$0xff] %v6143_v17  ;;  %v6159_v15 = vld [vmem:[#allocation7 + $0x144] ss:$16 sps:$4 sm:$0xff]  }
 0x18c   :  { %1156 = vmatpush2.bf16.msra.mxu0 %v6129_v54  ;;  %v6155_v54 = vld [vmem:[#allocation7 + $0x168] ss:$16 sps:$4 sm:$0xff]   ;;  %8403 = vst [vmem:[#allocation78_spill] sm:$0xff] %v6159_v15 }
 0x18d   :  { %8402 = vst [vmem:[#allocation77_spill] sm:$0xff] %v6155_v54 }
 0x18e   :  { %1197 = vmatpush2.bf16.msra.mxu1 %v6131_v62  ;;  %v6153_v62 = vld [vmem:[#allocation7 + $0x160] ss:$16 sps:$4 sm:$0xff]  }
 0x18f   :  { %8401 = vst [vmem:[#allocation76_spill] sm:$0xff] %v6153_v62 }
 0x200   :  { %v767_v11 = vpop.xlane.xlu0 %766 }
 0x201   :  { %v769_v12 = vmul.f32 0.0078125, %v767_v11  ;;  %v6137_v11 = vld [vmem:[#allocation7 + $0x184] ss:$16 sps:$4 sm:$0xff]  }
 0x202   :  { %8395 = vst [vmem:[#allocation70_spill] sm:$0xff] %v6137_v11  ;;  %1157 = vmatprep.subr.bf16.mxu0 %v6137_v11 }
 0x203   :  { %v6121_v8 = vsub.f32 %v5997_v21, %v769_v12  ;;  %v6139_v12 = vld [vmem:[#allocation7 + $0x18c] ss:$16 sps:$4 sm:$0xff]  }
 0x204   :  { %8396 = vst [vmem:[#allocation71_spill] sm:$0xff] %v6139_v12  ;;  %1198 = vmatprep.subr.bf16.mxu1 %v6139_v12  ;;  %v6165_v12 = vld [vmem:[#allocation7 + $0x140] ss:$16 sps:$4 sm:$0xff]  }
 0x205   :  { %v771_v55 = vmul.f32 %v6121_v8, %v6121_v8  ;;  %1199 = vmatpush2.bf16.msra.mxu1 %v6143_v17  ;;  %8405 = vst [vmem:[#allocation80_spill] sm:$0xff] %v6165_v12  ;;  %v6171_v17 = vld [vmem:[#allocation7 + $0x124] ss:$16 sps:$4 sm:$0xff]  }
 0x206   :  { %1200 = vmatprep.subr.bf16.mxu1 %v6147_v19  ;;  %8407 = vst [vmem:[#allocation82_spill] sm:$0xff] %v6171_v17  ;;  %v5538_v19 = vmov 0.0|0.0  }
 0x207   :  { %772 = vadd.xlane.f32.xlu0 %v771_v55  ;;  %v6141_v55 = vld [vmem:[#allocation7 + $0x180] ss:$16 sps:$4 sm:$0xff]   ;;  %1167 = vmatprep.mubr.bf16.mxu0 %v5538_v19 }
 0x208   :  { %8397 = vst [vmem:[#allocation72_spill] sm:$0xff] %v6141_v55  ;;  %1158 = vmatpush2.bf16.msra.mxu0 %v6141_v55  ;;  %v6167_v55 = vld [vmem:[#allocation7 + $0x148] ss:$16 sps:$4 sm:$0xff]   ;;  %1208 = vmatprep.mubr.bf16.mxu1 %v5538_v19  ;;  %v6189_v19 = vld [vmem:[#allocation7 + $0x100] ss:$16 sps:$4 sm:$0xff]  }
 0x209   :  { %1159 = vmatprep.subr.bf16.mxu0 %v6145_v56  ;;  %1201 = vmatpush2.bf16.msra.mxu1 %v6155_v54  ;;  %8406 = vst [vmem:[#allocation81_spill] sm:$0xff] %v6167_v55  ;;  %v6173_v56 = vld [vmem:[#allocation7 + $0x12c] ss:$16 sps:$4 sm:$0xff]   ;;  %v6177_v54 = vld [vmem:[#allocation7 + $0x120] ss:$16 sps:$4 sm:$0xff]   ;;  %8413 = vst [vmem:[#allocation88_spill] sm:$0xff] %v6189_v19 }
 0x20a   :  { %1202 = vmatprep.subr.bf16.mxu1 %v6161_v7  ;;  %8408 = vst [vmem:[#allocation83_spill] sm:$0xff] %v6173_v56  ;;  %8409 = vst [vmem:[#allocation84_spill] sm:$0xff] %v6177_v54  ;;  %v6183_v7 = vld [vmem:[#allocation7 + $0x104] ss:$16 sps:$4 sm:$0xff]  }
 0x20b   :  { %8411 = vst [vmem:[#allocation86_spill] sm:$0xff] %v6183_v7 }
 0x20c   :  { %1160 = vmatpush2.bf16.msra.mxu0 %v6153_v62  ;;  %v6179_v62 = vld [vmem:[#allocation7 + $0x128] ss:$16 sps:$4 sm:$0xff]  }
 0x20d   :  { %1161 = vmatprep.subr.bf16.mxu0 %v6159_v15  ;;  %1203 = vmatpush2.bf16.msra.mxu1 %v6167_v55  ;;  %8410 = vst [vmem:[#allocation85_spill] sm:$0xff] %v6179_v62  ;;  %v6185_v15 = vld [vmem:[#allocation7 + $0x10c] ss:$16 sps:$4 sm:$0xff]  }
 0x20e   :  { %1204 = vmatprep.subr.bf16.mxu1 %v6173_v56  ;;  %8412 = vst [vmem:[#allocation87_spill] sm:$0xff] %v6185_v15  ;;  %v6200_v56 = vld [vmem:[%s8344_s30 + $0xe4] ss:$16 sps:$4 sm:$0xff]  }
 0x20f   :  { %8415 = vst [vmem:[#allocation90_spill] sm:$0xff] %v6200_v56 }
 0x210   :  { %1162 = vmatpush2.bf16.msra.mxu0 %v6165_v12  ;;  %v6191_v12 = vld [vmem:[#allocation7 + $0x108] ss:$16 sps:$4 sm:$0xff]  }
 0x211   :  { %1163 = vmatprep.subr.bf16.mxu0 %v6171_v17  ;;  %1205 = vmatpush2.bf16.msra.mxu1 %v6179_v62  ;;  %8414 = vst [vmem:[#allocation89_spill] sm:$0xff] %v6191_v12  ;;  %v6206_v62 = vld [vmem:[%s8344_s30 + $0xec] ss:$16 sps:$4 sm:$0xff]  }
 0x212   :  { %1206 = vmatprep.subr.bf16.mxu1 %v6185_v15  ;;  %8416 = vst [vmem:[#allocation91_spill] sm:$0xff] %v6206_v62 }
 0x214   :  { %1164 = vmatpush2.bf16.msra.mxu0 %v6177_v54 }
 0x215   :  { %1165 = vmatprep.subr.bf16.mxu0 %v6183_v7  ;;  %1207 = vmatpush2.bf16.msra.mxu1 %v6191_v12  ;;  %v6212_v12 = vld [vmem:[%s8036_s6] ss:$0 sm:$0xff] }
 0x216   :  { %1313 = vmatprep.subr.bf16.mxu1 %v6206_v62 }
 0x218   :  { %1166 = vmatpush2.bf16.msra.mxu0 %v6189_v19 }
 0x219   :  { %1272 = vmatprep.subr.bf16.mxu0 %v6200_v56  ;;  %v6218_v56 = vld [vmem:[%s8037_s7] ss:$0 sm:$0xff] }
 0x290   :  { %v773_v7 = vpop.xlane.xlu0 %772 }
 0x291   :  { %v774_v15 = vmul.f32 0.0078125, %v773_v7 }
 0x293   :  { %v775_v54 = vadd.f32 1e-05, %v774_v15  ;;  %v6243_v15 = vld [vmem:[%s8344_s30 + $0xcc] ss:$16 sps:$4 sm:$0xff]  }
 0x295   :  { %4883 = vrsqrt.f32 %v775_v54  ;;  %v6225_v54 = vld [vmem:[%s8344_s30 + $0xe0] ss:$16 sps:$4 sm:$0xff]  }
 0x2a2   :  { %v4884_v19 = vpop.eup %4883 }
 0x2a3   :  { %v777_v17 = vmul.f32 %v4884_v19, %v6121_v8  ;;  %v6231_v8 = vld [vmem:[%s8344_s30 + $0xe8] ss:$16 sps:$4 sm:$0xff]  }
 0x2a4   :  { %v6257_v19 = vld [vmem:[%s8344_s30 + $0xc8] ss:$16 sps:$4 sm:$0xff]  }
 0x2a5   :  { %v784_v55 = vmul.f32 %v6212_v12, %v777_v17  ;;  %v8417_v17 = vmov 0  }
 0x2a7   :  { %v791_v62 = vadd.f32 %v6218_v56, %v784_v55  ;;  %v6251_v55 = vld [vmem:[%s8344_s30 + $0xc0] ss:$16 sps:$4 sm:$0xff]  }
 0x2a9   :  { %v792_v7 = vpack.c.bf16 %v791_v62, %v791_v62  ;;  %v6237_v62 = vld [vmem:[%s8344_s30 + $0xc4] ss:$16 sps:$4 sm:$0xff]  }
 0x2ab   :  { %1168 = vmatmul.mubr.bf16.vlgmr.msra.gmra.mxu0 %v792_v7  ;;  %1209 = vmatmul.mubr.bf16.vlgmr.msra.gmra.mxu1 %v792_v7  ;;  %v8442_v7 = vld [vmem:[#allocation79_spill] sm:$0xff] }
 0x2ac   :  { %1273 = vmatpush1.bf16.msra.mxu0 %v6225_v54  ;;  %1314 = vmatpush1.bf16.msra.mxu1 %v6231_v8 }
 0x2ad   :  { %1274 = vmatprep.subr.bf16.mxu0 %v6237_v62  ;;  %1315 = vmatprep.subr.bf16.mxu1 %v6243_v15 }
 0x2ae   :  { %1304 = vmatprep.mubr.bf16.mxu0 %v8417_v17  ;;  %1345 = vmatprep.mubr.bf16.mxu1 %v8417_v17 }
 0x2b0   :  { %1275 = vmatpush1.bf16.msra.mxu0 %v6251_v55  ;;  %1316 = vmatpush1.bf16.msra.mxu1 %v6257_v19 }
 0x2b1   :  { %1276 = vmatprep.subr.bf16.mxu0 %v5717_v22  ;;  %1317 = vmatprep.subr.bf16.mxu1 %v5722_v23  ;;  %v1271_v22 = vpack.c.bf16 %v5997_v21, %v5997_v21  ;;  %v8418_v23 = vld [vmem:[#allocation54_spill] sm:$0xff] }
 0x2b2   :  { %v8441_v21 = vld [vmem:[#allocation78_spill] sm:$0xff] }
 0x2b4   :  { %1277 = vmatpush1.bf16.msra.mxu0 %v5729_v25  ;;  %1318 = vmatpush1.bf16.msra.mxu1 %v5734_v26  ;;  %v8419_v25 = vld [vmem:[#allocation55_spill] sm:$0xff]  ;;  %v8420_v26 = vld [vmem:[#allocation56_spill] sm:$0xff] }
 0x2b5   :  { %1278 = vmatprep.subr.bf16.mxu0 %v5741_v27  ;;  %1319 = vmatprep.subr.bf16.mxu1 %v5746_v28  ;;  %v8421_v27 = vld [vmem:[#allocation57_spill] sm:$0xff]  ;;  %v8422_v28 = vld [vmem:[#allocation58_spill] sm:$0xff] }
 0x2b8   :  { %1279 = vmatpush1.bf16.msra.mxu0 %v5751_v29  ;;  %1320 = vmatpush1.bf16.msra.mxu1 %v5756_v30  ;;  %v8423_v29 = vld [vmem:[#allocation59_spill] sm:$0xff]  ;;  %v8424_v30 = vld [vmem:[#allocation60_spill] sm:$0xff] }
 0x2b9   :  { %1280 = vmatprep.subr.bf16.mxu0 %v5771_v33  ;;  %1321 = vmatprep.subr.bf16.mxu1 %v5778_v34  ;;  %v8425_v33 = vld [vmem:[#allocation61_spill] sm:$0xff]  ;;  %v8426_v34 = vld [vmem:[#allocation62_spill] sm:$0xff] }
 0x2bc   :  { %1281 = vmatpush1.bf16.msra.mxu0 %v5785_v36  ;;  %1322 = vmatpush1.bf16.msra.mxu1 %v5792_v37  ;;  %v8427_v36 = vld [vmem:[#allocation63_spill] sm:$0xff]  ;;  %v8428_v37 = vld [vmem:[#allocation64_spill] sm:$0xff] }
 0x2bd   :  { %1282 = vmatprep.subr.bf16.mxu0 %v5799_v38  ;;  %1323 = vmatprep.subr.bf16.mxu1 %v5804_v39  ;;  %v8429_v38 = vld [vmem:[#allocation65_spill] sm:$0xff]  ;;  %v8430_v39 = vld [vmem:[#allocation66_spill] sm:$0xff] }
 0x2c0   :  { %1283 = vmatpush1.bf16.msra.mxu0 %v5809_v40  ;;  %1324 = vmatpush1.bf16.msra.mxu1 %v5816_v41  ;;  %v8431_v40 = vld [vmem:[#allocation67_spill] sm:$0xff]  ;;  %v8432_v41 = vld [vmem:[#allocation68_spill] sm:$0xff] }
 0x2c1   :  { %1284 = vmatprep.subr.bf16.mxu0 %v5829_v44  ;;  %1325 = vmatprep.subr.bf16.mxu1 %v5836_v45  ;;  %v8433_v44 = vld [vmem:[#allocation69_spill] sm:$0xff]  ;;  %v8434_v45 = vld [vmem:[#allocation71_spill] sm:$0xff] }
 0x2c4   :  { %1285 = vmatpush1.bf16.msra.mxu0 %v5843_v46  ;;  %1326 = vmatpush1.bf16.msra.mxu1 %v5848_v47  ;;  %v8435_v46 = vld [vmem:[#allocation72_spill] sm:$0xff]  ;;  %v8436_v47 = vld [vmem:[#allocation73_spill] sm:$0xff] }
 0x2c5   :  { %1286 = vmatprep.subr.bf16.mxu0 %v5853_v49  ;;  %1327 = vmatprep.subr.bf16.mxu1 %v5858_v50  ;;  %v8437_v49 = vld [vmem:[#allocation74_spill] sm:$0xff]  ;;  %v8438_v50 = vld [vmem:[#allocation75_spill] sm:$0xff] }
 0x2c8   :  { %1287 = vmatpush1.bf16.msra.mxu0 %v5867_v51  ;;  %1328 = vmatpush1.bf16.msra.mxu1 %v5872_v52  ;;  %v8439_v51 = vld [vmem:[#allocation76_spill] sm:$0xff]  ;;  %v8440_v52 = vld [vmem:[#allocation77_spill] sm:$0xff] }
 0x2c9   :  { %1397 = vmatprep.subr.bf16.mxu0 %v6000_v24  ;;  %1438 = vmatprep.subr.bf16.mxu1 %v6002_v35 }
 0x2cb   :  { %1305 = vmatmul.mubr.bf16.vlgmr.msra.gmra.mxu0 %v1271_v22  ;;  %1346 = vmatmul.mubr.bf16.vlgmr.msra.gmra.mxu1 %v1271_v22  ;;  %v8443_v22 = vld [vmem:[#allocation80_spill] sm:$0xff] }
 0x2cc   :  { %1398 = vmatpush1.bf16.msra.mxu0 %v6004_v59  ;;  %1439 = vmatpush1.bf16.msra.mxu1 %v6006_v2 }
 0x2cd   :  { %1399 = vmatprep.subr.bf16.mxu0 %v6008_v58  ;;  %1440 = vmatprep.subr.bf16.mxu1 %v6010_v57 }
 0x2d0   :  { %1400 = vmatpush1.bf16.msra.mxu0 %v6016_v63  ;;  %1441 = vmatpush1.bf16.msra.mxu1 %v6018_v0 }
 0x2d1   :  { %1401 = vmatprep.subr.bf16.mxu0 %v6022_v6  ;;  %1442 = vmatprep.subr.bf16.mxu1 %v6024_v5 }
 0x2d4   :  { %1402 = vmatpush1.bf16.msra.mxu0 %v6028_v18  ;;  %1443 = vmatpush1.bf16.msra.mxu1 %v6030_v14 }
 0x2d5   :  { %1403 = vmatprep.subr.bf16.mxu0 %v6034_v32  ;;  %1444 = vmatprep.subr.bf16.mxu1 %v6036_v13 }
 0x2d8   :  { %1404 = vmatpush1.bf16.msra.mxu0 %v6040_v4  ;;  %1445 = vmatpush1.bf16.msra.mxu1 %v6042_v53 }
 0x2d9   :  { %1405 = vmatprep.subr.bf16.mxu0 %v6046_v42  ;;  %1446 = vmatprep.subr.bf16.mxu1 %v6048_v1 }
 0x2dc   :  { %1406 = vmatpush1.bf16.msra.mxu0 %v6052_v3  ;;  %1447 = vmatpush1.bf16.msra.mxu1 %v6054_v60 }
 0x2dd   :  { %1407 = vmatprep.subr.bf16.mxu0 %v6058_v61  ;;  %1448 = vmatprep.subr.bf16.mxu1 %v6060_v10 }
 0x2e0   :  { %1408 = vmatpush1.bf16.msra.mxu0 %v6064_v9  ;;  %1449 = vmatpush1.bf16.msra.mxu1 %v6066_v48 }
 0x2e1   :  { %1409 = vmatprep.subr.bf16.mxu0 %v6070_v43  ;;  %1450 = vmatprep.subr.bf16.mxu1 %v6072_v31 }
 0x2e4   :  { %1410 = vmatpush1.bf16.msra.mxu0 %v6076_v16  ;;  %1451 = vmatpush1.bf16.msra.mxu1 %v6078_v20 }
 0x2e5   :  { %1411 = vmatprep.subr.bf16.mxu0 %v8418_v23  ;;  %1452 = vmatprep.subr.bf16.mxu1 %v8419_v25 }
 0x2e8   :  { %1412 = vmatpush1.bf16.msra.mxu0 %v8420_v26  ;;  %1453 = vmatpush1.bf16.msra.mxu1 %v8421_v27 }
 0x2e9   :  { %1413 = vmatprep.subr.bf16.mxu0 %v8422_v28  ;;  %1454 = vmatprep.subr.bf16.mxu1 %v8423_v29 }
 0x2ec   :  { %1414 = vmatpush2.bf16.msra.mxu0 %v8424_v30  ;;  %1455 = vmatpush2.bf16.msra.mxu1 %v8425_v33  ;;  %v8462_v33 = vld [vmem:[#allocation22_spill] sm:$0xff] }
 0x2ed   :  { %1415 = vmatprep.subr.bf16.mxu0 %v8426_v34  ;;  %1456 = vmatprep.subr.bf16.mxu1 %v8427_v36 }
 0x2f0   :  { %1416 = vmatpush2.bf16.msra.mxu0 %v8428_v37  ;;  %1457 = vmatpush2.bf16.msra.mxu1 %v8429_v38 }
 0x2f1   :  { %1417 = vmatprep.subr.bf16.mxu0 %v8430_v39  ;;  %1458 = vmatprep.subr.bf16.mxu1 %v8431_v40 }
 0x2f4   :  { %1418 = vmatpush2.bf16.msra.mxu0 %v8432_v41  ;;  %1459 = vmatpush2.bf16.msra.mxu1 %v8433_v44 }
 0x2f5   :  { %1419 = vmatprep.subr.bf16.mxu0 %v6137_v11  ;;  %1460 = vmatprep.subr.bf16.mxu1 %v8434_v45  ;;  %v8444_v11 = vld [vmem:[#allocation81_spill] sm:$0xff]  ;;  %v8445_v45 = vld [vmem:[#allocation82_spill] sm:$0xff] }
 0x2f8   :  { %1420 = vmatpush2.bf16.msra.mxu0 %v8435_v46  ;;  %1461 = vmatpush2.bf16.msra.mxu1 %v8436_v47  ;;  %v8446_v46 = vld [vmem:[#allocation83_spill] sm:$0xff]  ;;  %v8447_v47 = vld [vmem:[#allocation84_spill] sm:$0xff] }
 0x2f9   :  { %1421 = vmatprep.subr.bf16.mxu0 %v8437_v49  ;;  %1462 = vmatprep.subr.bf16.mxu1 %v8438_v50  ;;  %v8448_v49 = vld [vmem:[#allocation85_spill] sm:$0xff]  ;;  %v8449_v50 = vld [vmem:[#allocation86_spill] sm:$0xff] }
 0x2fc   :  { %1422 = vmatpush2.bf16.msra.mxu0 %v8439_v51  ;;  %1463 = vmatpush2.bf16.msra.mxu1 %v8440_v52  ;;  %v8450_v51 = vld [vmem:[#allocation87_spill] sm:$0xff]  ;;  %v8451_v52 = vld [vmem:[#allocation88_spill] sm:$0xff] }
 0x2fd   :  { %1423 = vmatprep.subr.bf16.mxu0 %v8441_v21  ;;  %1464 = vmatprep.subr.bf16.mxu1 %v8442_v7  ;;  %v8452_v21 = vld [vmem:[#allocation89_spill] sm:$0xff]  ;;  %v8453_v7 = vld [vmem:[#allocation90_spill] sm:$0xff] }
 0x300   :  { %1424 = vmatpush2.bf16.msra.mxu0 %v8443_v22  ;;  %1465 = vmatpush2.bf16.msra.mxu1 %v8444_v11  ;;  %v8454_v22 = vld [vmem:[#allocation91_spill] sm:$0xff] }
 0x301   :  { %1425 = vmatprep.subr.bf16.mxu0 %v8445_v45  ;;  %1466 = vmatprep.subr.bf16.mxu1 %v8446_v46  ;;  %v238_v46 = vld [vmem:[%s8035_s5] sm:$0xf]  ;;  %v8455_v45 = vld [vmem:[#allocation23_spill] sm:$0xff] }
 0x304   :  { %1426 = vmatpush2.bf16.msra.mxu0 %v8447_v47  ;;  %1467 = vmatpush2.bf16.msra.mxu1 %v8448_v49  ;;  %v6356_v47 = vrot.slane %v238_v46, %v8455_v45  ;;  %v8457_v49 = vld [vmem:[#allocation24_spill] sm:$0xff]  ;;  %v8459_v45 = vld [vmem:[#allocation21_spill] sm:$0xff] }
 0x305   :  { %1427 = vmatprep.subr.bf16.mxu0 %v8449_v50  ;;  %1468 = vmatprep.subr.bf16.mxu1 %v8450_v51  ;;  %v6359_v11 = vrot.slane %v238_v46, %v8457_v49  ;;  %v8460_v36 = vsub.s32 3, %v8459_v45 }
 0x306   :  { %8456 = vst [vmem:[#allocation54_spill] sm:$0xff] %v6356_v47 }
 0x307   :  { %8458 = vst [vmem:[#allocation55_spill] sm:$0xff] %v6359_v11  ;;  %v6365_v49 = vrot.slane %v238_v46, %v8460_v36 }
 0x308   :  { %1428 = vmatpush2.bf16.msra.mxu0 %v8451_v52  ;;  %1469 = vmatpush2.bf16.msra.mxu1 %v8452_v21 }
 0x309   :  { %1522 = vmatprep.subr.bf16.mxu0 %v8453_v7  ;;  %1563 = vmatprep.subr.bf16.mxu1 %v8454_v22  ;;  %8461 = vst [vmem:[#allocation56_spill] sm:$0xff] %v6365_v49 }
 0x36b   :  { %v1169_v50 = vpop.f32.mrf.mxu0  ;;  %v1210_v51 = vpop.f32.mrf.mxu1 }
 0x36c   :  { %v1170_v52 = vadd.f32 %v1169_v50, %v6356_v47  ;;  %v6369_v50 = vrot.slane %v238_v46, %v8462_v33 }
 0x36d   :  { %v1171_v44 = vpop.f32.mrf.mxu0  ;;  %v1212_v21 = vpop.f32.mrf.mxu1 }
 0x36e   :  { %v4389_v41 = vmul.f32 -1.442695, %v1170_v52  ;;  %v1172_v7 = vadd.f32 %v1171_v44, %v6359_v11  ;;  %v1213_v34 = vadd.f32 %v1212_v21, %v6365_v49  ;;  %8463 = vst [vmem:[#allocation57_spill] sm:$0xff] %v6369_v50  ;;  %v1211_v44 = vadd.f32 %v1210_v51, %v6369_v50  ;;  %v8465_v49 = vld [vmem:[#allocation27_spill] sm:$0xff] }
 0x36f   :  { %v1173_v22 = vpop.f32.mrf.mxu0  ;;  %v1214_v40 = vpop.f32.mrf.mxu1 }
 0x370   :  { %4885 = vpow2.f32 %v4389_v41  ;;  %v4390_v39 = vmul.f32 -1.442695, %v1172_v7  ;;  %v4391_v47 = vmul.f32 -1.442695, %v1213_v34  ;;  %v8464_v41 = vld [vmem:[#allocation25_spill] sm:$0xff] }
 0x371   :  { %v1174_v38 = vpop.f32.mrf.mxu0  ;;  %v1215_v37 = vpop.f32.mrf.mxu1 }
 0x372   :  { %4887 = vpow2.f32 %v4390_v39 }
 0x373   :  { %4889 = vpow2.f32 %v4391_v47 }
 0x37d   :  { %v4886_v52 = vpop.eup %4885 }
 0x37e   :  { %v1220_v22 = vadd.f32 1.0, %v4886_v52 }
 0x37f   :  { %v4888_v40 = vpop.eup %4887 }
 0x380   :  { %4891 = vrcp.f32 %v1220_v22  ;;  %v1226_v38 = vadd.f32 1.0, %v4888_v40  ;;  %v4890_v36 = vpop.eup %4889 }
 0x381   :  { %4893 = vtanh.f32 %v1211_v44  ;;  %v1233_v52 = vadd.f32 1.0, %v4890_v36 }
 0x382   :  { %4895 = vrcp.f32 %v1226_v38 }
 0x38b   :  { %v1306_v37 = vpop.f32.mrf.mxu0  ;;  %v1347_v39 = vpop.f32.mrf.mxu1 }
 0x38c   :  { %v1354_v45 = vadd.f32 %v1306_v37, %v8464_v41  ;;  %v8466_v37 = vld [vmem:[#allocation28_spill] sm:$0xff] }
 0x38d   :  { %v4892_v21 = vpop.eup %4891  ;;  %v1308_v7 = vpop.f32.mrf.mxu0 }
 0x38e   :  { %v1349_v46 = vpop.f32.mrf.mxu1  ;;  %v4894_v33 = vpop.eup %4893  ;;  %v4394_v34 = vmul.f32 -1.442695, %v1354_v45  ;;  %v1355_v11 = vadd.f32 %v1308_v7, %v8465_v49  ;;  %v8467_v45 = vld [vmem:[#allocation26_spill] sm:$0xff] }
 0x38f   :  { %v4896_v51 = vpop.eup %4895  ;;  %v1310_v50 = vpop.f32.mrf.mxu0  ;;  %v1237_v40 = vmul.f32 %v4894_v33, %v4892_v21  ;;  %v1357_v41 = vadd.f32 %v1349_v46, %v8466_v37  ;;  %v1356_v49 = vadd.f32 %v1347_v39, %v8467_v45 }
 0x390   :  { %v1351_v47 = vpop.f32.mrf.mxu1  ;;  %v1236_v22 = vmul.f32 0.0, %v4896_v51  ;;  %4897 = vpow2.f32 %v4394_v34  ;;  %v4395_v44 = vmul.f32 -1.442695, %v1355_v11 }
 0x391   :  { %v1311_v38 = vpop.f32.mrf.mxu0  ;;  %v4396_v7 = vmul.f32 -1.442695, %v1357_v41 }
 0x392   :  { %v1352_v30 = vpop.f32.mrf.mxu1  ;;  %v6374_v29 = vadd.f32 %v1237_v40, %v1236_v22  ;;  %4899 = vpow2.f32 %v4395_v44  ;;  %v8469_v44 = vld [vmem:[#allocation53_spill] sm:$0xff] }
 0x393   :  { %4901 = vrcp.f32 %v1233_v52 }
 0x394   :  { %4903 = vtanh.f32 %v6374_v29 }
 0x395   :  { %4905 = vtanh.f32 %v1356_v49 }
 0x396   :  { %4907 = vpow2.f32 %v4396_v7 }
 0x39d   :  { %v4898_v36 = vpop.eup %4897 }
 0x39e   :  { %v1361_v50 = vadd.f32 1.0, %v4898_v36 }
 0x39f   :  { %v4900_v51 = vpop.eup %4899 }
 0x3a0   :  { %v4902_v33 = vpop.eup %4901  ;;  %4909 = vrcp.f32 %v1361_v50  ;;  %v1367_v11 = vadd.f32 1.0, %v4900_v51 }
 0x3a1   :  { %v4904_v30 = vpop.eup %4903 }
 0x3a2   :  { %4911 = vrcp.f32 %v1367_v11  ;;  %v6379_v21 = vmul.f32 %v4904_v30, %v4902_v33  ;;  %v4906_v46 = vpop.eup %4905 }
 0x3a3   :  { %v4908_v39 = vpop.eup %4907 }
 0x3a4   :  { %8468 = vst [vmem:[#allocation58_spill] sm:$0xff] %v6379_v21  ;;  %v1396_v34 = vpack.c.bf16 %v6379_v21, %v6379_v21  ;;  %v1374_v40 = vadd.f32 1.0, %v4908_v39  ;;  %v6512_v21 = vld [vmem:[%s8344_s30 + $0x20] ss:$16 sps:$4 sm:$0xff]  }
 0x3a5   :  { %8473 = vst [vmem:[#allocation28_spill] sm:$0xff] %v6512_v21 }
 0x3a6   :  { %1429 = vmatprep.mubr.bf16.mxu0 %v1396_v34  ;;  %1470 = vmatprep.mubr.bf16.mxu1 %v1396_v34  ;;  %4913 = vrcp.f32 %v1374_v40  ;;  %v6410_v40 = vld [vmem:[%s8344_s30 + $0xac] ss:$16 sps:$4 sm:$0xff]  }
 0x3ad   :  { %v4910_v52 = vpop.eup %4909 }
 0x3ae   :  { %v1378_v47 = vmul.f32 %v4910_v52, %v4906_v46 }
 0x3af   :  { %v4912_v22 = vpop.eup %4911 }
 0x3b0   :  { %v1377_v38 = vmul.f32 %v4912_v22, %v8469_v44  ;;  %v6404_v22 = vld [vmem:[%s8344_s30 + $0xa4] ss:$16 sps:$4 sm:$0xff]   ;;  %v6416_v44 = vld [vmem:[%s8344_s30 + $0xa0] ss:$16 sps:$4 sm:$0xff]  }
 0x3b2   :  { %v6384_v37 = vadd.f32 %v1378_v47, %v1377_v38  ;;  %v6422_v38 = vld [vmem:[%s8344_s30 + $0xa8] ss:$16 sps:$4 sm:$0xff]  }
 0x3b3   :  { %v4914_v41 = vpop.eup %4913 }
 0x3b4   :  { %4915 = vtanh.f32 %v6384_v37 }
 0x3c1   :  { %v4916_v45 = vpop.eup %4915 }
 0x3c2   :  { %v6387_v49 = vmul.f32 %v4916_v45, %v4914_v41  ;;  %v6428_v41 = vld [vmem:[%s8344_s30 + $0x84] ss:$16 sps:$4 sm:$0xff]   ;;  %v6434_v45 = vld [vmem:[%s8344_s30 + $0x8c] ss:$16 sps:$4 sm:$0xff]  }
 0x3c4   :  { %1382 = vadd.xlane.f32.xlu1 %v6387_v49 }
 0x44d   :  { %v1383_v7 = vpop.xlane.xlu1 %1382 }
 0x44e   :  { %v1384_v36 = vmul.f32 0.0078125, %v1383_v7  ;;  %v6440_v7 = vld [vmem:[%s8344_s30 + $0x80] ss:$16 sps:$4 sm:$0xff]  }
 0x450   :  { %v1385_v50 = vsub.f32 %v6387_v49, %v1384_v36  ;;  %v6446_v36 = vld [vmem:[%s8344_s30 + $0x88] ss:$16 sps:$4 sm:$0xff]  }
 0x452   :  { %v1386_v51 = vmul.f32 %v1385_v50, %v1385_v50 }
 0x454   :  { %1387 = vadd.xlane.f32.xlu1 %v1386_v51  ;;  %v6458_v51 = vld [vmem:[%s8344_s30 + $0x6c] ss:$16 sps:$4 sm:$0xff]  }
 0x4dd   :  { %v1388_v33 = vpop.xlane.xlu1 %1387 }
 0x4de   :  { %v1389_v11 = vmul.f32 0.0078125, %v1388_v33  ;;  %v6464_v33 = vld [vmem:[%s8344_s30 + $0x60] ss:$16 sps:$4 sm:$0xff]  }
 0x4e0   :  { %v1390_v30 = vadd.f32 1e-05, %v1389_v11  ;;  %v6470_v11 = vld [vmem:[%s8344_s30 + $0x68] ss:$16 sps:$4 sm:$0xff]  }
 0x4e2   :  { %4917 = vrsqrt.f32 %v1390_v30  ;;  %v6476_v30 = vld [vmem:[%s8344_s30 + $0x44] ss:$16 sps:$4 sm:$0xff]  }
 0x4ef   :  { %v4918_v34 = vpop.eup %4917 }
 0x4f0   :  { %v1392_v46 = vmul.f32 %v4918_v34, %v1385_v50  ;;  %v6452_v50 = vld [vmem:[%s8344_s30 + $0x64] ss:$16 sps:$4 sm:$0xff]   ;;  %v6482_v34 = vld [vmem:[%s8344_s30 + $0x4c] ss:$16 sps:$4 sm:$0xff]  }
 0x4f2   :  { %v1393_v39 = vmul.f32 %v6212_v12, %v1392_v46  ;;  %v6488_v46 = vld [vmem:[%s8344_s30 + $0x40] ss:$16 sps:$4 sm:$0xff]  }
 0x4f4   :  { %v1394_v52 = vadd.f32 %v6218_v56, %v1393_v39  ;;  %v6494_v39 = vld [vmem:[%s8344_s30 + $0x48] ss:$16 sps:$4 sm:$0xff]  }
 0x4f5   :  { %8470 = vst [vmem:[#allocation21_spill] sm:$0xff] %v6494_v39 }
 0x4f6   :  { %v1395_v47 = vpack.c.bf16 %v1394_v52, %v1394_v52  ;;  %v6500_v52 = vld [vmem:[%s8344_s30 + $0x24] ss:$16 sps:$4 sm:$0xff]  }
 0x4f7   :  { %8471 = vst [vmem:[#allocation25_spill] sm:$0xff] %v6500_v52 }
 0x4f8   :  { %1430 = vmatmul.mubr.bf16.vlgmr.msra.gmra.mxu0 %v1395_v47  ;;  %1471 = vmatmul.mubr.bf16.vlgmr.msra.gmra.mxu1 %v1395_v47  ;;  %v6506_v47 = vld [vmem:[%s8344_s30 + $0x2c] ss:$16 sps:$4 sm:$0xff]  }
 0x4f9   :  { %1523 = vmatpush1.bf16.msra.mxu0 %v6225_v54  ;;  %1564 = vmatpush1.bf16.msra.mxu1 %v6231_v8  ;;  %8472 = vst [vmem:[#allocation27_spill] sm:$0xff] %v6506_v47 }
 0x4fa   :  { %1524 = vmatprep.subr.bf16.mxu0 %v6237_v62  ;;  %1565 = vmatprep.subr.bf16.mxu1 %v6243_v15 }
 0x4fb   :  { %1554 = vmatprep.mubr.bf16.mxu0 %v8417_v17  ;;  %1595 = vmatprep.mubr.bf16.mxu1 %v8417_v17 }
 0x4fd   :  { %1525 = vmatpush1.bf16.msra.mxu0 %v6251_v55  ;;  %1566 = vmatpush1.bf16.msra.mxu1 %v6257_v19 }
 0x4fe   :  { %1526 = vmatprep.subr.bf16.mxu0 %v6404_v22  ;;  %1567 = vmatprep.subr.bf16.mxu1 %v6410_v40 }
 0x501   :  { %1527 = vmatpush1.bf16.msra.mxu0 %v6416_v44  ;;  %1568 = vmatpush1.bf16.msra.mxu1 %v6422_v38 }
 0x502   :  { %1528 = vmatprep.subr.bf16.mxu0 %v6428_v41  ;;  %1569 = vmatprep.subr.bf16.mxu1 %v6434_v45 }
 0x505   :  { %1529 = vmatpush1.bf16.msra.mxu0 %v6440_v7  ;;  %1570 = vmatpush1.bf16.msra.mxu1 %v6446_v36 }
 0x506   :  { %1530 = vmatprep.subr.bf16.mxu0 %v6452_v50  ;;  %1571 = vmatprep.subr.bf16.mxu1 %v6458_v51 }
 0x509   :  { %1531 = vmatpush1.bf16.msra.mxu0 %v6464_v33  ;;  %1572 = vmatpush1.bf16.msra.mxu1 %v6470_v11 }
 0x50a   :  { %1532 = vmatprep.subr.bf16.mxu0 %v6476_v30  ;;  %1573 = vmatprep.subr.bf16.mxu1 %v6482_v34 }
 0x50d   :  { %1533 = vmatpush1.bf16.msra.mxu0 %v6488_v46  ;;  %1574 = vmatpush1.bf16.msra.mxu1 %v6494_v39  ;;  %v6518_v39 = vld [vmem:[%s8344_s30 + $0x28] ss:$16 sps:$4 sm:$0xff]  }
 0x50e   :  { %1534 = vmatprep.subr.bf16.mxu0 %v6500_v52  ;;  %1575 = vmatprep.subr.bf16.mxu1 %v6506_v47  ;;  %8474 = vst [vmem:[#allocation26_spill] sm:$0xff] %v6518_v39  ;;  %v6524_v52 = vld [vmem:[%s8344_s30 + $0x4] ss:$16 sps:$4 sm:$0xff]   ;;  %v6530_v47 = vld [vmem:[%s8344_s30 + $0xc] ss:$16 sps:$4 sm:$0xff]  }
 0x50f   :  { %8475 = vst [vmem:[#allocation53_spill] sm:$0xff] %v6524_v52 }
 0x511   :  { %1535 = vmatpush1.bf16.msra.mxu0 %v6512_v21  ;;  %1576 = vmatpush1.bf16.msra.mxu1 %v6518_v39  ;;  %v6536_v21 = vld [vmem:[%s8344_s30] ss:$16 sps:$4 sm:$0xff]   ;;  %v6542_v39 = vld [vmem:[%s8344_s30 + $0x8] ss:$16 sps:$4 sm:$0xff]  }
 0x512   :  { %1536 = vmatprep.subr.bf16.mxu0 %v6524_v52  ;;  %1577 = vmatprep.subr.bf16.mxu1 %v6530_v47  ;;  %v1521_v52 = vpack.c.bf16 %v6387_v49, %v6387_v49 }
 0x515   :  { %1537 = vmatpush1.bf16.msra.mxu0 %v6536_v21  ;;  %1578 = vmatpush1.bf16.msra.mxu1 %v6542_v39 }
 0x516   :  { %1647 = vmatprep.subr.bf16.mxu0 %v6000_v24  ;;  %1688 = vmatprep.subr.bf16.mxu1 %v6002_v35  ;;  %v8483_v24 = vld [vmem:[#allocation66_spill] sm:$0xff]  ;;  %v8484_v35 = vld [vmem:[#allocation67_spill] sm:$0xff] }
 0x518   :  { %1555 = vmatmul.mubr.bf16.vlgmr.msra.gmra.mxu0 %v1521_v52  ;;  %1596 = vmatmul.mubr.bf16.vlgmr.msra.gmra.mxu1 %v1521_v52 }
 0x519   :  { %1648 = vmatpush1.bf16.msra.mxu0 %v6004_v59  ;;  %1689 = vmatpush1.bf16.msra.mxu1 %v6006_v2  ;;  %v8485_v59 = vld [vmem:[#allocation68_spill] sm:$0xff]  ;;  %v8486_v2 = vld [vmem:[#allocation69_spill] sm:$0xff] }
 0x51a   :  { %1649 = vmatprep.subr.bf16.mxu0 %v6008_v58  ;;  %1690 = vmatprep.subr.bf16.mxu1 %v6010_v57  ;;  %v8487_v58 = vld [vmem:[#allocation70_spill] sm:$0xff]  ;;  %v8488_v57 = vld [vmem:[#allocation71_spill] sm:$0xff] }
 0x51d   :  { %1650 = vmatpush1.bf16.msra.mxu0 %v6016_v63  ;;  %1691 = vmatpush1.bf16.msra.mxu1 %v6018_v0  ;;  %v8489_v63 = vld [vmem:[#allocation72_spill] sm:$0xff]  ;;  %v8490_v0 = vld [vmem:[#allocation73_spill] sm:$0xff] }
 0x51e   :  { %1651 = vmatprep.subr.bf16.mxu0 %v6022_v6  ;;  %1692 = vmatprep.subr.bf16.mxu1 %v6024_v5  ;;  %v8491_v6 = vld [vmem:[#allocation74_spill] sm:$0xff]  ;;  %v8492_v5 = vld [vmem:[#allocation75_spill] sm:$0xff] }
 0x521   :  { %1652 = vmatpush1.bf16.msra.mxu0 %v6028_v18  ;;  %1693 = vmatpush1.bf16.msra.mxu1 %v6030_v14  ;;  %v8493_v18 = vld [vmem:[#allocation76_spill] sm:$0xff]  ;;  %v8494_v14 = vld [vmem:[#allocation77_spill] sm:$0xff] }
 0x522   :  { %1653 = vmatprep.subr.bf16.mxu0 %v6034_v32  ;;  %1694 = vmatprep.subr.bf16.mxu1 %v6036_v13  ;;  %v8495_v32 = vld [vmem:[#allocation78_spill] sm:$0xff]  ;;  %v8496_v13 = vld [vmem:[#allocation79_spill] sm:$0xff] }
 0x525   :  { %1654 = vmatpush1.bf16.msra.mxu0 %v6040_v4  ;;  %1695 = vmatpush1.bf16.msra.mxu1 %v6042_v53  ;;  %v8497_v4 = vld [vmem:[#allocation80_spill] sm:$0xff]  ;;  %v8498_v53 = vld [vmem:[#allocation81_spill] sm:$0xff] }
 0x526   :  { %1655 = vmatprep.subr.bf16.mxu0 %v6046_v42  ;;  %1696 = vmatprep.subr.bf16.mxu1 %v6048_v1  ;;  %v8499_v42 = vld [vmem:[#allocation82_spill] sm:$0xff]  ;;  %v8500_v1 = vld [vmem:[#allocation83_spill] sm:$0xff] }
 0x529   :  { %1656 = vmatpush1.bf16.msra.mxu0 %v6052_v3  ;;  %1697 = vmatpush1.bf16.msra.mxu1 %v6054_v60  ;;  %v8501_v3 = vld [vmem:[#allocation84_spill] sm:$0xff]  ;;  %v8502_v60 = vld [vmem:[#allocation85_spill] sm:$0xff] }
 0x52a   :  { %1657 = vmatprep.subr.bf16.mxu0 %v6058_v61  ;;  %1698 = vmatprep.subr.bf16.mxu1 %v6060_v10  ;;  %v8476_v10 = vld [vmem:[#allocation59_spill] sm:$0xff]  ;;  %v8503_v61 = vld [vmem:[#allocation86_spill] sm:$0xff] }
 0x52d   :  { %1658 = vmatpush1.bf16.msra.mxu0 %v6064_v9  ;;  %1699 = vmatpush1.bf16.msra.mxu1 %v6066_v48  ;;  %v8477_v48 = vld [vmem:[#allocation60_spill] sm:$0xff]  ;;  %v8482_v9 = vld [vmem:[#allocation65_spill] sm:$0xff] }
 0x52e   :  { %1659 = vmatprep.subr.bf16.mxu0 %v6070_v43  ;;  %1700 = vmatprep.subr.bf16.mxu1 %v6072_v31  ;;  %v8478_v43 = vld [vmem:[#allocation61_spill] sm:$0xff]  ;;  %v8479_v31 = vld [vmem:[#allocation62_spill] sm:$0xff] }
 0x531   :  { %1660 = vmatpush1.bf16.msra.mxu0 %v6076_v16  ;;  %1701 = vmatpush1.bf16.msra.mxu1 %v6078_v20  ;;  %v8480_v16 = vld [vmem:[#allocation63_spill] sm:$0xff]  ;;  %v8481_v20 = vld [vmem:[#allocation64_spill] sm:$0xff] }
 0x532   :  { %1661 = vmatprep.subr.bf16.mxu0 %v8418_v23  ;;  %1702 = vmatprep.subr.bf16.mxu1 %v8419_v25  ;;  %v8504_v23 = vld [vmem:[#allocation87_spill] sm:$0xff]  ;;  %v8505_v25 = vld [vmem:[#allocation88_spill] sm:$0xff] }
 0x535   :  { %1662 = vmatpush1.bf16.msra.mxu0 %v8420_v26  ;;  %1703 = vmatpush1.bf16.msra.mxu1 %v8421_v27  ;;  %v8506_v26 = vld [vmem:[#allocation89_spill] sm:$0xff]  ;;  %v8507_v27 = vld [vmem:[#allocation90_spill] sm:$0xff] }
 0x536   :  { %1663 = vmatprep.subr.bf16.mxu0 %v8422_v28  ;;  %1704 = vmatprep.subr.bf16.mxu1 %v8476_v10  ;;  %v8508_v28 = vld [vmem:[#allocation91_spill] sm:$0xff]  ;;  %v8509_v10 = vld [vmem:[#allocation54_spill] sm:$0xff] }
 0x539   :  { %1664 = vmatpush2.bf16.msra.mxu0 %v8477_v48  ;;  %1705 = vmatpush2.bf16.msra.mxu1 %v8478_v43 }
 0x53a   :  { %1665 = vmatprep.subr.bf16.mxu0 %v8479_v31  ;;  %1706 = vmatprep.subr.bf16.mxu1 %v8480_v16 }
 0x53d   :  { %1666 = vmatpush2.bf16.msra.mxu0 %v8481_v20  ;;  %1707 = vmatpush2.bf16.msra.mxu1 %v8482_v9  ;;  %v8510_v20 = vld [vmem:[#allocation55_spill] sm:$0xff] }
 0x53e   :  { %1667 = vmatprep.subr.bf16.mxu0 %v8483_v24  ;;  %1708 = vmatprep.subr.bf16.mxu1 %v8484_v35 }
 0x541   :  { %1668 = vmatpush2.bf16.msra.mxu0 %v8485_v59  ;;  %1709 = vmatpush2.bf16.msra.mxu1 %v8486_v2 }
 0x542   :  { %1669 = vmatprep.subr.bf16.mxu0 %v8487_v58  ;;  %1710 = vmatprep.subr.bf16.mxu1 %v8488_v57  ;;  %v8511_v57 = vld [vmem:[#allocation56_spill] sm:$0xff] }
 0x545   :  { %1670 = vmatpush2.bf16.msra.mxu0 %v8489_v63  ;;  %1711 = vmatpush2.bf16.msra.mxu1 %v8490_v0 }
 0x546   :  { %1671 = vmatprep.subr.bf16.mxu0 %v8491_v6  ;;  %1712 = vmatprep.subr.bf16.mxu1 %v8492_v5  ;;  %v8512_v5 = vld [vmem:[#allocation57_spill] sm:$0xff] }
 0x549   :  { %1672 = vmatpush2.bf16.msra.mxu0 %v8493_v18  ;;  %1713 = vmatpush2.bf16.msra.mxu1 %v8494_v14 }
 0x54a   :  { %1673 = vmatprep.subr.bf16.mxu0 %v8495_v32  ;;  %1714 = vmatprep.subr.bf16.mxu1 %v8496_v13 }
 0x54d   :  { %1674 = vmatpush2.bf16.msra.mxu0 %v8497_v4  ;;  %1715 = vmatpush2.bf16.msra.mxu1 %v8498_v53 }
 0x54e   :  { %1675 = vmatprep.subr.bf16.mxu0 %v8499_v42  ;;  %1716 = vmatprep.subr.bf16.mxu1 %v8500_v1  ;;  %v8513_v1 = vld [vmem:[#allocation29_spill] sm:$0xff] }
 0x551   :  { %1676 = vmatpush2.bf16.msra.mxu0 %v8501_v3  ;;  %1717 = vmatpush2.bf16.msra.mxu1 %v8502_v60 }
 0x552   :  { %1677 = vmatprep.subr.bf16.mxu0 %v8503_v61  ;;  %1718 = vmatprep.subr.bf16.mxu1 %v8504_v23 }
 0x555   :  { %1678 = vmatpush2.bf16.msra.mxu0 %v8505_v25  ;;  %1719 = vmatpush2.bf16.msra.mxu1 %v8506_v26 }
 0x556   :  { %1772 = vmatprep.subr.bf16.mxu0 %v8507_v27  ;;  %1813 = vmatprep.subr.bf16.mxu1 %v8508_v28  ;;  %v8514_v27 = vld [vmem:[#allocation31_spill] sm:$0xff] }
 0x5b8   :  { %v1431_v49 = vpop.f32.mrf.mxu0  ;;  %v1472_v52 = vpop.f32.mrf.mxu1 }
 0x5b9   :  { %v1432_v48 = vadd.f32 %v1431_v49, %v8509_v10  ;;  %v1473_v18 = vadd.f32 %v1472_v52, %v8512_v5 }
 0x5ba   :  { %v1433_v43 = vpop.f32.mrf.mxu0  ;;  %v1474_v31 = vpop.f32.mrf.mxu1 }
 0x5bb   :  { %v4397_v16 = vmul.f32 -1.442695, %v1432_v48  ;;  %v1434_v9 = vadd.f32 %v1433_v43, %v8510_v20  ;;  %v1475_v63 = vadd.f32 %v1474_v31, %v8511_v57 }
 0x5bc   :  { %v1435_v24 = vpop.f32.mrf.mxu0  ;;  %v1476_v35 = vpop.f32.mrf.mxu1 }
 0x5bd   :  { %4919 = vpow2.f32 %v4397_v16  ;;  %v4398_v59 = vmul.f32 -1.442695, %v1434_v9  ;;  %v4399_v0 = vmul.f32 -1.442695, %v1475_v63  ;;  %v8516_v63 = vld [vmem:[#allocation30_spill] sm:$0xff] }
 0x5be   :  { %v1436_v2 = vpop.f32.mrf.mxu0  ;;  %v1477_v58 = vpop.f32.mrf.mxu1 }
 0x5bf   :  { %4921 = vpow2.f32 %v4398_v59  ;;  %v8515_v2 = vld [vmem:[#allocation32_spill] sm:$0xff] }
 0x5c0   :  { %4923 = vpow2.f32 %v4399_v0 }
 0x5ca   :  { %v4920_v6 = vpop.eup %4919 }
 0x5cb   :  { %v1482_v14 = vadd.f32 1.0, %v4920_v6 }
 0x5cc   :  { %v4922_v32 = vpop.eup %4921 }
 0x5cd   :  { %4925 = vrcp.f32 %v1482_v14  ;;  %v1488_v13 = vadd.f32 1.0, %v4922_v32  ;;  %v4924_v42 = vpop.eup %4923 }
 0x5ce   :  { %4927 = vtanh.f32 %v1473_v18  ;;  %v1495_v52 = vadd.f32 1.0, %v4924_v42 }
 0x5cf   :  { %4929 = vrcp.f32 %v1488_v13 }
 0x5d8   :  { %v1556_v4 = vpop.f32.mrf.mxu0  ;;  %v1597_v53 = vpop.f32.mrf.mxu1 }
 0x5d9   :  { %v1604_v3 = vadd.f32 %v1556_v4, %v8513_v1  ;;  %v1606_v0 = vadd.f32 %v1597_v53, %v8516_v63 }
 0x5da   :  { %v4926_v60 = vpop.eup %4925  ;;  %v1558_v61 = vpop.f32.mrf.mxu0 }
 0x5db   :  { %v1599_v23 = vpop.f32.mrf.mxu1  ;;  %v4928_v25 = vpop.eup %4927  ;;  %v4400_v26 = vmul.f32 -1.442695, %v1604_v3  ;;  %v1605_v28 = vadd.f32 %v1558_v61, %v8514_v27 }
 0x5dc   :  { %v4930_v49 = vpop.eup %4929  ;;  %v1560_v48 = vpop.f32.mrf.mxu0  ;;  %v1499_v31 = vmul.f32 %v4928_v25, %v4926_v60  ;;  %v1607_v58 = vadd.f32 %v1599_v23, %v8515_v2 }
 0x5dd   :  { %v1601_v43 = vpop.f32.mrf.mxu1  ;;  %v1498_v16 = vmul.f32 %v4930_v49, %v6374_v29  ;;  %4931 = vpow2.f32 %v4400_v26  ;;  %v4401_v9 = vmul.f32 -1.442695, %v1605_v28 }
 0x5de   :  { %v1561_v24 = vpop.f32.mrf.mxu0  ;;  %v4402_v6 = vmul.f32 -1.442695, %v1607_v58 }
 0x5df   :  { %v1602_v35 = vpop.f32.mrf.mxu1  ;;  %v6620_v59 = vadd.f32 %v1499_v31, %v1498_v16  ;;  %4933 = vpow2.f32 %v4401_v9 }
 0x5e0   :  { %4935 = vrcp.f32 %v1495_v52 }
 0x5e1   :  { %4937 = vtanh.f32 %v6620_v59 }
 0x5e2   :  { %4939 = vtanh.f32 %v1606_v0 }
 0x5e3   :  { %4941 = vpow2.f32 %v4402_v6  ;;  %v6670_v6 = vld [vmem:[#allocation7 + $0xec] ss:$16 sps:$4 sm:$0xff]  }
 0x5ea   :  { %v4932_v18 = vpop.eup %4931 }
 0x5eb   :  { %v1611_v14 = vadd.f32 1.0, %v4932_v18  ;;  %v6673_v18 = vld [vmem:[#allocation7 + $0xe0] ss:$16 sps:$4 sm:$0xff]  }
 0x5ec   :  { %v4934_v32 = vpop.eup %4933 }
 0x5ed   :  { %v4936_v29 = vpop.eup %4935  ;;  %4943 = vrcp.f32 %v1611_v14  ;;  %v1617_v13 = vadd.f32 1.0, %v4934_v32  ;;  %v6676_v14 = vld [vmem:[#allocation7 + $0xe8] ss:$16 sps:$4 sm:$0xff]   ;;  %v6679_v32 = vld [vmem:[#allocation7 + $0xc4] ss:$16 sps:$4 sm:$0xff]  }
 0x5ee   :  { %v4938_v4 = vpop.eup %4937 }
 0x5ef   :  { %4945 = vrcp.f32 %v1617_v13  ;;  %v6625_v42 = vmul.f32 %v4938_v4, %v4936_v29  ;;  %v4940_v3 = vpop.eup %4939  ;;  %v6682_v29 = vld [vmem:[#allocation7 + $0xcc] ss:$16 sps:$4 sm:$0xff]   ;;  %v6685_v13 = vld [vmem:[#allocation7 + $0xc0] ss:$16 sps:$4 sm:$0xff]   ;;  %v6688_v4 = vld [vmem:[#allocation7 + $0xc8] ss:$16 sps:$4 sm:$0xff]  }
 0x5f0   :  { %v4942_v53 = vpop.eup %4941 }
 0x5f1   :  { %8517 = vst [vmem:[#allocation59_spill] sm:$0xff] %v6625_v42  ;;  %v1646_v1 = vpack.c.bf16 %v6625_v42, %v6625_v42  ;;  %v1624_v25 = vadd.f32 1.0, %v4942_v53  ;;  %v6697_v53 = vld [vmem:[#allocation7 + $0xa0] ss:$16 sps:$4 sm:$0xff]   ;;  %v6763_v42 = vld [vmem:[#allocation7 + $0x1e4] ss:$16 sps:$4 sm:$0xff]  }
 0x5f2   :  { %8541 = vst [vmem:[#allocation77_spill] sm:$0xff] %v6763_v42 }
 0x5f3   :  { %1679 = vmatprep.mubr.bf16.mxu0 %v1646_v1  ;;  %1720 = vmatprep.mubr.bf16.mxu1 %v1646_v1  ;;  %4947 = vrcp.f32 %v1624_v25  ;;  %v6691_v1 = vld [vmem:[#allocation7 + $0xa4] ss:$16 sps:$4 sm:$0xff]   ;;  %v6709_v25 = vld [vmem:[#allocation7 + $0x80] ss:$16 sps:$4 sm:$0xff]  }
 0x5fa   :  { %v4944_v60 = vpop.eup %4943 }
 0x5fb   :  { %v1628_v61 = vmul.f32 %v4944_v60, %v4940_v3  ;;  %v6694_v3 = vld [vmem:[#allocation7 + $0xac] ss:$16 sps:$4 sm:$0xff]   ;;  %v6700_v60 = vld [vmem:[#allocation7 + $0xa8] ss:$16 sps:$4 sm:$0xff]  }
 0x5fc   :  { %v4946_v23 = vpop.eup %4945 }
 0x5fd   :  { %v1627_v26 = vmul.f32 %v4946_v23, %v6384_v37  ;;  %v6706_v23 = vld [vmem:[#allocation7 + $0x8c] ss:$16 sps:$4 sm:$0xff]  }
 0x5ff   :  { %v6630_v27 = vadd.f32 %v1628_v61, %v1627_v26  ;;  %v6703_v61 = vld [vmem:[#allocation7 + $0x84] ss:$16 sps:$4 sm:$0xff]   ;;  %v6712_v26 = vld [vmem:[#allocation7 + $0x88] ss:$16 sps:$4 sm:$0xff]  }
 0x600   :  { %v4948_v28 = vpop.eup %4947  ;;  %8524 = vst [vmem:[#allocation60_spill] sm:$0xff] %v6712_v26 }
 0x601   :  { %4949 = vtanh.f32 %v6630_v27 }
 0x60e   :  { %v4950_v49 = vpop.eup %4949 }
 0x60f   :  { %v1631_v52 = vmul.f32 %v4950_v49, %v4948_v28  ;;  %v6715_v28 = vld [vmem:[#allocation7 + $0x64] ss:$16 sps:$4 sm:$0xff]   ;;  %v6718_v49 = vld [vmem:[#allocation7 + $0x6c] ss:$16 sps:$4 sm:$0xff]  }
 0x610   :  { %8525 = vst [vmem:[#allocation61_spill] sm:$0xff] %v6715_v28  ;;  %8526 = vst [vmem:[#allocation62_spill] sm:$0xff] %v6718_v49 }
 0x611   :  { %1632 = vadd.xlane.f32.xlu0 %v1631_v52 }
 0x69a   :  { %v1633_v48 = vpop.xlane.xlu0 %1632 }
 0x69b   :  { %v1634_v43 = vmul.f32 0.0078125, %v1633_v48  ;;  %v6724_v48 = vld [vmem:[#allocation7 + $0x68] ss:$16 sps:$4 sm:$0xff]  }
 0x69c   :  { %8528 = vst [vmem:[#allocation64_spill] sm:$0xff] %v6724_v48 }
 0x69d   :  { %v1635_v31 = vsub.f32 %v1631_v52, %v1634_v43  ;;  %v6727_v43 = vld [vmem:[#allocation7 + $0x44] ss:$16 sps:$4 sm:$0xff]  }
 0x69e   :  { %8529 = vst [vmem:[#allocation65_spill] sm:$0xff] %v6727_v43 }
 0x69f   :  { %v1636_v16 = vmul.f32 %v1635_v31, %v1635_v31 }
 0x6a1   :  { %1637 = vadd.xlane.f32.xlu1 %v1636_v16  ;;  %v6733_v16 = vld [vmem:[#allocation7 + $0x40] ss:$16 sps:$4 sm:$0xff]  }
 0x6a2   :  { %8531 = vst [vmem:[#allocation67_spill] sm:$0xff] %v6733_v16 }
 0x72a   :  { %v1638_v9 = vpop.xlane.xlu1 %1637 }
 0x72b   :  { %v1639_v24 = vmul.f32 0.0078125, %v1638_v9  ;;  %v6736_v9 = vld [vmem:[#allocation7 + $0x48] ss:$16 sps:$4 sm:$0xff]  }
 0x72c   :  { %8532 = vst [vmem:[#allocation68_spill] sm:$0xff] %v6736_v9 }
 0x72d   :  { %v1640_v35 = vadd.f32 1e-05, %v1639_v24  ;;  %v6739_v24 = vld [vmem:[#allocation7 + $0x24] ss:$16 sps:$4 sm:$0xff]  }
 0x72e   :  { %8533 = vst [vmem:[#allocation69_spill] sm:$0xff] %v6739_v24 }
 0x72f   :  { %4951 = vrsqrt.f32 %v1640_v35  ;;  %v6742_v35 = vld [vmem:[#allocation7 + $0x2c] ss:$16 sps:$4 sm:$0xff]  }
 0x730   :  { %8534 = vst [vmem:[#allocation70_spill] sm:$0xff] %v6742_v35 }
 0x73c   :  { %v4952_v2 = vpop.eup %4951 }
 0x73d   :  { %v1642_v37 = vmul.f32 %v4952_v2, %v1635_v31  ;;  %v6730_v31 = vld [vmem:[#allocation7 + $0x4c] ss:$16 sps:$4 sm:$0xff]   ;;  %v6745_v2 = vld [vmem:[#allocation7 + $0x20] ss:$16 sps:$4 sm:$0xff]  }
 0x73e   :  { %8530 = vst [vmem:[#allocation66_spill] sm:$0xff] %v6730_v31  ;;  %8535 = vst [vmem:[#allocation71_spill] sm:$0xff] %v6745_v2 }
 0x73f   :  { %v1643_v58 = vmul.f32 %v6212_v12, %v1642_v37  ;;  %v8519_v12 = vld [vmem:[#allocation25_spill] sm:$0xff] }
 0x740   :  { %v6748_v37 = vld [vmem:[#allocation7 + $0x28] ss:$16 sps:$4 sm:$0xff]  }
 0x741   :  { %v1644_v63 = vadd.f32 %v6218_v56, %v1643_v58  ;;  %v8518_v56 = vld [vmem:[#allocation21_spill] sm:$0xff]  ;;  %8536 = vst [vmem:[#allocation72_spill] sm:$0xff] %v6748_v37  ;;  %v6751_v58 = vld [vmem:[#allocation7 + $0x4] ss:$16 sps:$4 sm:$0xff]  }
 0x742   :  { %8537 = vst [vmem:[#allocation73_spill] sm:$0xff] %v6751_v58 }
 0x743   :  { %v1645_v0 = vpack.c.bf16 %v1644_v63, %v1644_v63  ;;  %v6754_v63 = vld [vmem:[#allocation7 + $0xc] ss:$16 sps:$4 sm:$0xff]  }
 0x744   :  { %8538 = vst [vmem:[#allocation74_spill] sm:$0xff] %v6754_v63 }
 0x745   :  { %1680 = vmatmul.mubr.bf16.vlgmr.msra.gmra.mxu0 %v1645_v0  ;;  %1721 = vmatmul.mubr.bf16.vlgmr.msra.gmra.mxu1 %v1645_v0  ;;  %v6757_v0 = vld [vmem:[#allocation7] ss:$16 sps:$4 sm:$0xff]  }
 0x746   :  { %1773 = vmatpush1.bf16.msra.mxu0 %v6225_v54  ;;  %1814 = vmatpush1.bf16.msra.mxu1 %v6231_v8  ;;  %v8520_v54 = vld [vmem:[#allocation27_spill] sm:$0xff]  ;;  %v8521_v8 = vld [vmem:[#allocation28_spill] sm:$0xff]  ;;  %8539 = vst [vmem:[#allocation75_spill] sm:$0xff] %v6757_v0 }
 0x747   :  { %1774 = vmatprep.subr.bf16.mxu0 %v6237_v62  ;;  %1815 = vmatprep.subr.bf16.mxu1 %v6243_v15  ;;  %v8522_v62 = vld [vmem:[#allocation26_spill] sm:$0xff]  ;;  %v8523_v15 = vld [vmem:[#allocation53_spill] sm:$0xff] }
 0x748   :  { %1804 = vmatprep.mubr.bf16.mxu0 %v8417_v17  ;;  %1845 = vmatprep.mubr.bf16.mxu1 %v8417_v17 }
 0x74a   :  { %1775 = vmatpush1.bf16.msra.mxu0 %v6251_v55  ;;  %1816 = vmatpush1.bf16.msra.mxu1 %v6257_v19  ;;  %v1771_v55 = vpack.c.bf16 %v1631_v52, %v1631_v52  ;;  %v6667_v19 = vld [vmem:[#allocation7 + $0xe4] ss:$16 sps:$4 sm:$0xff]   ;;  %v6721_v52 = vld [vmem:[#allocation7 + $0x60] ss:$16 sps:$4 sm:$0xff]  }
 0x74b   :  { %1776 = vmatprep.subr.bf16.mxu0 %v6404_v22  ;;  %1817 = vmatprep.subr.bf16.mxu1 %v6410_v40  ;;  %8527 = vst [vmem:[#allocation63_spill] sm:$0xff] %v6721_v52 }
 0x74e   :  { %1777 = vmatpush1.bf16.msra.mxu0 %v6416_v44  ;;  %1818 = vmatpush1.bf16.msra.mxu1 %v6422_v38 }
 0x74f   :  { %1778 = vmatprep.subr.bf16.mxu0 %v6428_v41  ;;  %1819 = vmatprep.subr.bf16.mxu1 %v6434_v45 }
 0x752   :  { %1779 = vmatpush1.bf16.msra.mxu0 %v6440_v7  ;;  %1820 = vmatpush1.bf16.msra.mxu1 %v6446_v36 }
 0x753   :  { %1780 = vmatprep.subr.bf16.mxu0 %v6452_v50  ;;  %1821 = vmatprep.subr.bf16.mxu1 %v6458_v51 }
 0x756   :  { %1781 = vmatpush1.bf16.msra.mxu0 %v6464_v33  ;;  %1822 = vmatpush1.bf16.msra.mxu1 %v6470_v11 }
 0x757   :  { %1782 = vmatprep.subr.bf16.mxu0 %v6476_v30  ;;  %1823 = vmatprep.subr.bf16.mxu1 %v6482_v34 }
 0x75a   :  { %1783 = vmatpush1.bf16.msra.mxu0 %v6488_v46  ;;  %1824 = vmatpush1.bf16.msra.mxu1 %v8518_v56 }
 0x75b   :  { %1784 = vmatprep.subr.bf16.mxu0 %v8519_v12  ;;  %1825 = vmatprep.subr.bf16.mxu1 %v8520_v54 }
 0x75e   :  { %1785 = vmatpush1.bf16.msra.mxu0 %v8521_v8  ;;  %1826 = vmatpush1.bf16.msra.mxu1 %v8522_v62 }
 0x75f   :  { %1786 = vmatprep.subr.bf16.mxu0 %v8523_v15  ;;  %1827 = vmatprep.subr.bf16.mxu1 %v6530_v47 }
 0x762   :  { %1787 = vmatpush1.bf16.msra.mxu0 %v6536_v21  ;;  %1828 = vmatpush1.bf16.msra.mxu1 %v6542_v39 }
 0x763   :  { %1897 = vmatprep.subr.bf16.mxu0 %v6667_v19  ;;  %1938 = vmatprep.subr.bf16.mxu1 %v6670_v6 }
 0x765   :  { %1805 = vmatmul.mubr.bf16.vlgmr.msra.gmra.mxu0 %v1771_v55  ;;  %1846 = vmatmul.mubr.bf16.vlgmr.msra.gmra.mxu1 %v1771_v55  ;;  %v6760_v55 = vld [vmem:[#allocation7 + $0x8] ss:$16 sps:$4 sm:$0xff]  }
 0x766   :  { %1898 = vmatpush1.bf16.msra.mxu0 %v6673_v18  ;;  %1939 = vmatpush1.bf16.msra.mxu1 %v6676_v14  ;;  %8540 = vst [vmem:[#allocation76_spill] sm:$0xff] %v6760_v55 }
 0x767   :  { %1899 = vmatprep.subr.bf16.mxu0 %v6679_v32  ;;  %1940 = vmatprep.subr.bf16.mxu1 %v6682_v29 }
 0x76a   :  { %1900 = vmatpush1.bf16.msra.mxu0 %v6685_v13  ;;  %1941 = vmatpush1.bf16.msra.mxu1 %v6688_v4 }
 0x76b   :  { %1901 = vmatprep.subr.bf16.mxu0 %v6691_v1  ;;  %1942 = vmatprep.subr.bf16.mxu1 %v6694_v3 }
 0x76e   :  { %1902 = vmatpush1.bf16.msra.mxu0 %v6697_v53  ;;  %1943 = vmatpush1.bf16.msra.mxu1 %v6700_v60 }
 0x76f   :  { %1903 = vmatprep.subr.bf16.mxu0 %v6703_v61  ;;  %1944 = vmatprep.subr.bf16.mxu1 %v6706_v23 }
 0x772   :  { %1904 = vmatpush1.bf16.msra.mxu0 %v6709_v25  ;;  %1945 = vmatpush1.bf16.msra.mxu1 %v6712_v26 }
 0x773   :  { %1905 = vmatprep.subr.bf16.mxu0 %v6715_v28  ;;  %1946 = vmatprep.subr.bf16.mxu1 %v6718_v49 }
 0x776   :  { %1906 = vmatpush1.bf16.msra.mxu0 %v6721_v52  ;;  %1947 = vmatpush1.bf16.msra.mxu1 %v6724_v48 }
 0x777   :  { %1907 = vmatprep.subr.bf16.mxu0 %v6727_v43  ;;  %1948 = vmatprep.subr.bf16.mxu1 %v6730_v31 }
 0x77a   :  { %1908 = vmatpush1.bf16.msra.mxu0 %v6733_v16  ;;  %1949 = vmatpush1.bf16.msra.mxu1 %v6736_v9 }
 0x77b   :  { %1909 = vmatprep.subr.bf16.mxu0 %v6739_v24  ;;  %1950 = vmatprep.subr.bf16.mxu1 %v6742_v35 }
 0x77e   :  { %1910 = vmatpush1.bf16.msra.mxu0 %v6745_v2  ;;  %1951 = vmatpush1.bf16.msra.mxu1 %v6748_v37  ;;  %v6766_v37 = vld [vmem:[#allocation7 + $0x1ec] ss:$16 sps:$4 sm:$0xff]  }
 0x77f   :  { %1911 = vmatprep.subr.bf16.mxu0 %v6751_v58  ;;  %1952 = vmatprep.subr.bf16.mxu1 %v6754_v63  ;;  %8542 = vst [vmem:[#allocation78_spill] sm:$0xff] %v6766_v37  ;;  %v6769_v58 = vld [vmem:[#allocation7 + $0x1e0] ss:$16 sps:$4 sm:$0xff]   ;;  %v6772_v63 = vld [vmem:[#allocation7 + $0x1e8] ss:$16 sps:$4 sm:$0xff]  }
 0x780   :  { %8543 = vst [vmem:[#allocation79_spill] sm:$0xff] %v6769_v58  ;;  %8544 = vst [vmem:[#allocation80_spill] sm:$0xff] %v6772_v63 }
 0x782   :  { %1912 = vmatpush1.bf16.msra.mxu0 %v6757_v0  ;;  %1953 = vmatpush1.bf16.msra.mxu1 %v6760_v55  ;;  %v6775_v0 = vld [vmem:[#allocation7 + $0x1c4] ss:$16 sps:$4 sm:$0xff]   ;;  %v6778_v55 = vld [vmem:[#allocation7 + $0x1cc] ss:$16 sps:$4 sm:$0xff]  }
 0x783   :  { %1913 = vmatprep.subr.bf16.mxu0 %v6763_v42  ;;  %1954 = vmatprep.subr.bf16.mxu1 %v6766_v37  ;;  %8545 = vst [vmem:[#allocation81_spill] sm:$0xff] %v6775_v0  ;;  %8546 = vst [vmem:[#allocation82_spill] sm:$0xff] %v6778_v55  ;;  %v6781_v42 = vld [vmem:[#allocation7 + $0x1c0] ss:$16 sps:$4 sm:$0xff]   ;;  %v6784_v37 = vld [vmem:[#allocation7 + $0x1c8] ss:$16 sps:$4 sm:$0xff]  }
 0x784   :  { %8547 = vst [vmem:[#allocation83_spill] sm:$0xff] %v6781_v42  ;;  %8548 = vst [vmem:[#allocation84_spill] sm:$0xff] %v6784_v37 }
 0x786   :  { %1914 = vmatpush2.bf16.msra.mxu0 %v6769_v58  ;;  %1955 = vmatpush2.bf16.msra.mxu1 %v6772_v63  ;;  %v6787_v58 = vld [vmem:[#allocation7 + $0x1a4] ss:$16 sps:$4 sm:$0xff]   ;;  %v6790_v63 = vld [vmem:[#allocation7 + $0x1ac] ss:$16 sps:$4 sm:$0xff]  }
 0x787   :  { %1915 = vmatprep.subr.bf16.mxu0 %v6775_v0  ;;  %1956 = vmatprep.subr.bf16.mxu1 %v6778_v55  ;;  %8549 = vst [vmem:[#allocation85_spill] sm:$0xff] %v6787_v58  ;;  %8550 = vst [vmem:[#allocation86_spill] sm:$0xff] %v6790_v63  ;;  %v6793_v0 = vld [vmem:[#allocation7 + $0x1a0] ss:$16 sps:$4 sm:$0xff]   ;;  %v6796_v55 = vld [vmem:[#allocation7 + $0x1a8] ss:$16 sps:$4 sm:$0xff]  }
 0x788   :  { %8551 = vst [vmem:[#allocation87_spill] sm:$0xff] %v6793_v0  ;;  %8552 = vst [vmem:[#allocation88_spill] sm:$0xff] %v6796_v55 }
 0x78a   :  { %1916 = vmatpush2.bf16.msra.mxu0 %v6781_v42  ;;  %1957 = vmatpush2.bf16.msra.mxu1 %v6784_v37  ;;  %v6799_v42 = vld [vmem:[#allocation7 + $0x184] ss:$16 sps:$4 sm:$0xff]   ;;  %v6802_v37 = vld [vmem:[#allocation7 + $0x18c] ss:$16 sps:$4 sm:$0xff]  }
 0x78b   :  { %1917 = vmatprep.subr.bf16.mxu0 %v6787_v58  ;;  %1958 = vmatprep.subr.bf16.mxu1 %v6790_v63  ;;  %8553 = vst [vmem:[#allocation89_spill] sm:$0xff] %v6799_v42  ;;  %8554 = vst [vmem:[#allocation90_spill] sm:$0xff] %v6802_v37  ;;  %v6805_v58 = vld [vmem:[#allocation7 + $0x180] ss:$16 sps:$4 sm:$0xff]   ;;  %v6808_v63 = vld [vmem:[#allocation7 + $0x188] ss:$16 sps:$4 sm:$0xff]  }
 0x78c   :  { %8555 = vst [vmem:[#allocation91_spill] sm:$0xff] %v6805_v58  ;;  %8556 = vst [vmem:[#allocation29_spill] sm:$0xff] %v6808_v63 }
 0x78e   :  { %1918 = vmatpush2.bf16.msra.mxu0 %v6793_v0  ;;  %1959 = vmatpush2.bf16.msra.mxu1 %v6796_v55  ;;  %v6811_v0 = vld [vmem:[#allocation7 + $0x164] ss:$16 sps:$4 sm:$0xff]   ;;  %v6814_v55 = vld [vmem:[#allocation7 + $0x16c] ss:$16 sps:$4 sm:$0xff]  }
 0x78f   :  { %1919 = vmatprep.subr.bf16.mxu0 %v6799_v42  ;;  %1960 = vmatprep.subr.bf16.mxu1 %v6802_v37  ;;  %8557 = vst [vmem:[#allocation31_spill] sm:$0xff] %v6811_v0  ;;  %8558 = vst [vmem:[#allocation32_spill] sm:$0xff] %v6814_v55  ;;  %v6817_v42 = vld [vmem:[#allocation7 + $0x160] ss:$16 sps:$4 sm:$0xff]   ;;  %v6820_v37 = vld [vmem:[#allocation7 + $0x168] ss:$16 sps:$4 sm:$0xff]  }
 0x790   :  { %8559 = vst [vmem:[#allocation30_spill] sm:$0xff] %v6817_v42  ;;  %8560 = vst [vmem:[#allocation21_spill] sm:$0xff] %v6820_v37 }
 0x792   :  { %1920 = vmatpush2.bf16.msra.mxu0 %v6805_v58  ;;  %1961 = vmatpush2.bf16.msra.mxu1 %v6808_v63  ;;  %v6823_v58 = vld [vmem:[#allocation7 + $0x144] ss:$16 sps:$4 sm:$0xff]   ;;  %v6826_v63 = vld [vmem:[#allocation7 + $0x14c] ss:$16 sps:$4 sm:$0xff]  }
 0x793   :  { %1921 = vmatprep.subr.bf16.mxu0 %v6811_v0  ;;  %1962 = vmatprep.subr.bf16.mxu1 %v6814_v55  ;;  %8561 = vst [vmem:[#allocation25_spill] sm:$0xff] %v6823_v58  ;;  %8562 = vst [vmem:[#allocation27_spill] sm:$0xff] %v6826_v63  ;;  %v6829_v0 = vld [vmem:[#allocation7 + $0x140] ss:$16 sps:$4 sm:$0xff]   ;;  %v6832_v55 = vld [vmem:[#allocation7 + $0x148] ss:$16 sps:$4 sm:$0xff]  }
 0x794   :  { %8563 = vst [vmem:[#allocation28_spill] sm:$0xff] %v6829_v0  ;;  %8564 = vst [vmem:[#allocation26_spill] sm:$0xff] %v6832_v55 }
 0x796   :  { %1922 = vmatpush2.bf16.msra.mxu0 %v6817_v42  ;;  %1963 = vmatpush2.bf16.msra.mxu1 %v6820_v37  ;;  %v6835_v42 = vld [vmem:[#allocation7 + $0x124] ss:$16 sps:$4 sm:$0xff]   ;;  %v6838_v37 = vld [vmem:[#allocation7 + $0x12c] ss:$16 sps:$4 sm:$0xff]  }
 0x797   :  { %1923 = vmatprep.subr.bf16.mxu0 %v6823_v58  ;;  %1964 = vmatprep.subr.bf16.mxu1 %v6826_v63  ;;  %8565 = vst [vmem:[#allocation53_spill] sm:$0xff] %v6835_v42  ;;  %8566 = vst [vmem:[#allocation92_spill] sm:$0xff] %v6838_v37  ;;  %v6841_v58 = vld [vmem:[#allocation7 + $0x120] ss:$16 sps:$4 sm:$0xff]   ;;  %v6844_v63 = vld [vmem:[#allocation7 + $0x128] ss:$16 sps:$4 sm:$0xff]  }
 0x798   :  { %8567 = vst [vmem:[#allocation93_spill] sm:$0xff] %v6841_v58  ;;  %8568 = vst [vmem:[#allocation94_spill] sm:$0xff] %v6844_v63 }
 0x79a   :  { %1924 = vmatpush2.bf16.msra.mxu0 %v6829_v0  ;;  %1965 = vmatpush2.bf16.msra.mxu1 %v6832_v55  ;;  %v6847_v0 = vld [vmem:[#allocation7 + $0x104] ss:$16 sps:$4 sm:$0xff]   ;;  %v6850_v55 = vld [vmem:[#allocation7 + $0x10c] ss:$16 sps:$4 sm:$0xff]  }
 0x79b   :  { %1925 = vmatprep.subr.bf16.mxu0 %v6835_v42  ;;  %1966 = vmatprep.subr.bf16.mxu1 %v6838_v37  ;;  %8569 = vst [vmem:[#allocation95_spill] sm:$0xff] %v6847_v0  ;;  %8570 = vst [vmem:[#allocation96_spill] sm:$0xff] %v6850_v55  ;;  %v6853_v42 = vld [vmem:[#allocation7 + $0x100] ss:$16 sps:$4 sm:$0xff]   ;;  %v6856_v37 = vld [vmem:[#allocation7 + $0x108] ss:$16 sps:$4 sm:$0xff]  }
 0x79c   :  { %8571 = vst [vmem:[#allocation97_spill] sm:$0xff] %v6853_v42  ;;  %8572 = vst [vmem:[#allocation98_spill] sm:$0xff] %v6856_v37 }
 0x79e   :  { %1926 = vmatpush2.bf16.msra.mxu0 %v6841_v58  ;;  %1967 = vmatpush2.bf16.msra.mxu1 %v6844_v63  ;;  %v6862_v63 = vld [vmem:[%s8344_s30 + $0xe4] ss:$16 sps:$4 sm:$0xff]  }
 0x79f   :  { %1927 = vmatprep.subr.bf16.mxu0 %v6847_v0  ;;  %1968 = vmatprep.subr.bf16.mxu1 %v6850_v55  ;;  %8573 = vst [vmem:[#allocation99_spill] sm:$0xff] %v6862_v63  ;;  %v6868_v0 = vld [vmem:[%s8344_s30 + $0xec] ss:$16 sps:$4 sm:$0xff]  }
 0x7a0   :  { %8574 = vst [vmem:[#allocation100_spill] sm:$0xff] %v6868_v0 }
 0x7a2   :  { %1928 = vmatpush2.bf16.msra.mxu0 %v6853_v42  ;;  %1969 = vmatpush2.bf16.msra.mxu1 %v6856_v37 }
 0x7a3   :  { %2022 = vmatprep.subr.bf16.mxu0 %v6862_v63  ;;  %2063 = vmatprep.subr.bf16.mxu1 %v6868_v0 }
 0x805   :  { %v1681_v55 = vpop.f32.mrf.mxu0  ;;  %v1722_v42 = vpop.f32.mrf.mxu1 }
 0x806   :  { %v1682_v58 = vadd.f32 %v1681_v55, %v8509_v10  ;;  %v1723_v49 = vadd.f32 %v1722_v42, %v8512_v5 }
 0x807   :  { %v1683_v2 = vpop.f32.mrf.mxu0  ;;  %v1724_v37 = vpop.f32.mrf.mxu1 }
 0x808   :  { %v4403_v35 = vmul.f32 -1.442695, %v1682_v58  ;;  %v1684_v24 = vadd.f32 %v1683_v2, %v8510_v20  ;;  %v1725_v48 = vadd.f32 %v1724_v37, %v8511_v57  ;;  %v8576_v57 = vld [vmem:[#allocation35_spill] sm:$0xff] }
 0x809   :  { %v1685_v9 = vpop.f32.mrf.mxu0  ;;  %v1726_v16 = vpop.f32.mrf.mxu1 }
 0x80a   :  { %4953 = vpow2.f32 %v4403_v35  ;;  %v4404_v63 = vmul.f32 -1.442695, %v1684_v24  ;;  %v4405_v52 = vmul.f32 -1.442695, %v1725_v48  ;;  %v8575_v24 = vld [vmem:[#allocation33_spill] sm:$0xff] }
 0x80b   :  { %v1686_v31 = vpop.f32.mrf.mxu0  ;;  %v1727_v43 = vpop.f32.mrf.mxu1 }
 0x80c   :  { %4955 = vpow2.f32 %v4404_v63 }
 0x80d   :  { %4957 = vpow2.f32 %v4405_v52 }
 0x817   :  { %v4954_v0 = vpop.eup %4953 }
 0x818   :  { %v1732_v28 = vadd.f32 1.0, %v4954_v0 }
 0x819   :  { %v4956_v55 = vpop.eup %4955 }
 0x81a   :  { %4959 = vrcp.f32 %v1732_v28  ;;  %v1738_v58 = vadd.f32 1.0, %v4956_v55  ;;  %v4958_v35 = vpop.eup %4957 }
 0x81b   :  { %4961 = vtanh.f32 %v1723_v49  ;;  %v1745_v0 = vadd.f32 1.0, %v4958_v35 }
 0x81c   :  { %4963 = vrcp.f32 %v1738_v58 }
 0x825   :  { %v1806_v9 = vpop.f32.mrf.mxu0  ;;  %v1847_v16 = vpop.f32.mrf.mxu1 }
 0x826   :  { %v1854_v31 = vadd.f32 %v1806_v9, %v8575_v24  ;;  %v8577_v9 = vld [vmem:[#allocation36_spill] sm:$0xff] }
 0x827   :  { %v4960_v43 = vpop.eup %4959  ;;  %v1808_v2 = vpop.f32.mrf.mxu0 }
 0x828   :  { %v1849_v63 = vpop.f32.mrf.mxu1  ;;  %v4962_v37 = vpop.eup %4961  ;;  %v4406_v48 = vmul.f32 -1.442695, %v1854_v31  ;;  %v1855_v20 = vadd.f32 %v1808_v2, %v8576_v57  ;;  %v8578_v57 = vld [vmem:[#allocation34_spill] sm:$0xff] }
 0x829   :  { %v4964_v42 = vpop.eup %4963  ;;  %v1810_v5 = vpop.f32.mrf.mxu0  ;;  %v1749_v28 = vmul.f32 %v4962_v37, %v4960_v43  ;;  %v1857_v24 = vadd.f32 %v1849_v63, %v8577_v9  ;;  %v1856_v31 = vadd.f32 %v1847_v16, %v8578_v57 }
 0x82a   :  { %v1851_v52 = vpop.f32.mrf.mxu1  ;;  %v1748_v49 = vmul.f32 %v4964_v42, %v6620_v59  ;;  %4965 = vpow2.f32 %v4406_v48  ;;  %v4407_v55 = vmul.f32 -1.442695, %v1855_v20 }
 0x82b   :  { %v1811_v58 = vpop.f32.mrf.mxu0  ;;  %v4408_v35 = vmul.f32 -1.442695, %v1857_v24 }
 0x82c   :  { %v1852_v10 = vpop.f32.mrf.mxu1  ;;  %v6878_v26 = vadd.f32 %v1749_v28, %v1748_v49  ;;  %4967 = vpow2.f32 %v4407_v55 }
 0x82d   :  { %4969 = vrcp.f32 %v1745_v0 }
 0x82e   :  { %4971 = vtanh.f32 %v6878_v26 }
 0x82f   :  { %4973 = vtanh.f32 %v1856_v31 }
 0x830   :  { %4975 = vpow2.f32 %v4408_v35 }
 0x837   :  { %v4966_v5 = vpop.eup %4965 }
 0x838   :  { %v1861_v2 = vadd.f32 1.0, %v4966_v5 }
 0x839   :  { %v4968_v43 = vpop.eup %4967 }
 0x83a   :  { %v4970_v59 = vpop.eup %4969  ;;  %4977 = vrcp.f32 %v1861_v2  ;;  %v1867_v20 = vadd.f32 1.0, %v4968_v43 }
 0x83b   :  { %v4972_v10 = vpop.eup %4971 }
 0x83c   :  { %4979 = vrcp.f32 %v1867_v20  ;;  %v6883_v37 = vmul.f32 %v4972_v10, %v4970_v59  ;;  %v4974_v63 = vpop.eup %4973  ;;  %v6894_v10 = vld [vmem:[%s8036_s6] ss:$0 sm:$0xff] }
 0x83d   :  { %v4976_v16 = vpop.eup %4975 }
 0x83e   :  { %8579 = vst [vmem:[#allocation33_spill] sm:$0xff] %v6883_v37  ;;  %v1896_v48 = vpack.c.bf16 %v6883_v37, %v6883_v37  ;;  %v1874_v28 = vadd.f32 1.0, %v4976_v16  ;;  %v8617_v37 = vld [vmem:[#allocation25_spill] sm:$0xff] }
 0x840   :  { %1929 = vmatprep.mubr.bf16.mxu0 %v1896_v48  ;;  %1970 = vmatprep.mubr.bf16.mxu1 %v1896_v48  ;;  %4981 = vrcp.f32 %v1874_v28  ;;  %v6918_v28 = vld [vmem:[%s8344_s30 + $0xc4] ss:$16 sps:$4 sm:$0xff]  }
 0x847   :  { %v4978_v42 = vpop.eup %4977 }
 0x848   :  { %v1878_v0 = vmul.f32 %v4978_v42, %v4974_v63  ;;  %v6900_v63 = vld [vmem:[%s8037_s7] ss:$0 sm:$0xff] }
 0x849   :  { %v4980_v52 = vpop.eup %4979 }
 0x84a   :  { %v1877_v49 = vmul.f32 %v4980_v52, %v6630_v27  ;;  %v6912_v52 = vld [vmem:[%s8344_s30 + $0xe8] ss:$16 sps:$4 sm:$0xff]  }
 0x84c   :  { %v6888_v55 = vadd.f32 %v1878_v0, %v1877_v49  ;;  %v6906_v0 = vld [vmem:[%s8344_s30 + $0xe0] ss:$16 sps:$4 sm:$0xff]   ;;  %v6924_v49 = vld [vmem:[%s8344_s30 + $0xcc] ss:$16 sps:$4 sm:$0xff]  }
 0x84d   :  { %v4982_v58 = vpop.eup %4981 }
 0x84e   :  { %4983 = vtanh.f32 %v6888_v55 }
 0x85b   :  { %v4984_v9 = vpop.eup %4983 }
 0x85c   :  { %v1881_v24 = vmul.f32 %v4984_v9, %v4982_v58  ;;  %v6932_v58 = vld [vmem:[%s8344_s30 + $0xc0] ss:$16 sps:$4 sm:$0xff]   ;;  %v6938_v9 = vld [vmem:[%s8344_s30 + $0xc8] ss:$16 sps:$4 sm:$0xff]  }
 0x85e   :  { %1882 = vadd.xlane.f32.xlu0 %v1881_v24 }
 0x8e7   :  { %v1883_v57 = vpop.xlane.xlu0 %1882 }
 0x8e8   :  { %v1884_v31 = vmul.f32 0.0078125, %v1883_v57  ;;  %v8604_v57 = vld [vmem:[#allocation84_spill] sm:$0xff] }
 0x8ea   :  { %v1885_v35 = vsub.f32 %v1881_v24, %v1884_v31  ;;  %v8605_v31 = vld [vmem:[#allocation85_spill] sm:$0xff] }
 0x8ec   :  { %v1886_v5 = vmul.f32 %v1885_v35, %v1885_v35 }
 0x8ee   :  { %1887 = vadd.xlane.f32.xlu1 %v1886_v5  ;;  %v8607_v5 = vld [vmem:[#allocation87_spill] sm:$0xff] }
 0x977   :  { %v1888_v2 = vpop.xlane.xlu1 %1887 }
 0x978   :  { %v1889_v43 = vmul.f32 0.0078125, %v1888_v2  ;;  %v8608_v2 = vld [vmem:[#allocation88_spill] sm:$0xff] }
 0x97a   :  { %v1890_v59 = vadd.f32 1e-05, %v1889_v43  ;;  %v8609_v43 = vld [vmem:[#allocation89_spill] sm:$0xff] }
 0x97c   :  { %4985 = vrsqrt.f32 %v1890_v59  ;;  %v8610_v59 = vld [vmem:[#allocation90_spill] sm:$0xff] }
 0x989   :  { %v4986_v20 = vpop.eup %4985 }
 0x98a   :  { %v1892_v27 = vmul.f32 %v4986_v20, %v1885_v35  ;;  %v8606_v35 = vld [vmem:[#allocation86_spill] sm:$0xff]  ;;  %v8611_v20 = vld [vmem:[#allocation91_spill] sm:$0xff] }
 0x98c   :  { %v1893_v48 = vmul.f32 %v6894_v10, %v1892_v27  ;;  %v8612_v27 = vld [vmem:[#allocation29_spill] sm:$0xff] }
 0x98e   :  { %v1894_v16 = vadd.f32 %v6900_v63, %v1893_v48  ;;  %v8613_v48 = vld [vmem:[#allocation31_spill] sm:$0xff] }
 0x990   :  { %v1895_v42 = vpack.c.bf16 %v1894_v16, %v1894_v16  ;;  %v8614_v16 = vld [vmem:[#allocation32_spill] sm:$0xff] }
 0x992   :  { %1930 = vmatmul.mubr.bf16.vlgmr.msra.gmra.mxu0 %v1895_v42  ;;  %1971 = vmatmul.mubr.bf16.vlgmr.msra.gmra.mxu1 %v1895_v42  ;;  %v8615_v42 = vld [vmem:[#allocation30_spill] sm:$0xff] }
 0x993   :  { %2023 = vmatpush1.bf16.msra.mxu0 %v6906_v0  ;;  %2064 = vmatpush1.bf16.msra.mxu1 %v6912_v52 }
 0x994   :  { %2024 = vmatprep.subr.bf16.mxu0 %v6918_v28  ;;  %2065 = vmatprep.subr.bf16.mxu1 %v6924_v49 }
 0x995   :  { %2054 = vmatprep.mubr.bf16.mxu0 %v8417_v17  ;;  %2095 = vmatprep.mubr.bf16.mxu1 %v8417_v17 }
 0x997   :  { %2025 = vmatpush1.bf16.msra.mxu0 %v6932_v58  ;;  %2066 = vmatpush1.bf16.msra.mxu1 %v6938_v9 }
 0x998   :  { %2026 = vmatprep.subr.bf16.mxu0 %v6404_v22  ;;  %2067 = vmatprep.subr.bf16.mxu1 %v6410_v40  ;;  %v2021_v22 = vpack.c.bf16 %v1881_v24, %v1881_v24  ;;  %v8581_v40 = vld [vmem:[#allocation61_spill] sm:$0xff]  ;;  %v8603_v24 = vld [vmem:[#allocation83_spill] sm:$0xff] }
 0x99b   :  { %2027 = vmatpush1.bf16.msra.mxu0 %v6416_v44  ;;  %2068 = vmatpush1.bf16.msra.mxu1 %v6422_v38  ;;  %v8582_v44 = vld [vmem:[#allocation62_spill] sm:$0xff]  ;;  %v8583_v38 = vld [vmem:[#allocation63_spill] sm:$0xff] }
 0x99c   :  { %2028 = vmatprep.subr.bf16.mxu0 %v6428_v41  ;;  %2069 = vmatprep.subr.bf16.mxu1 %v6434_v45  ;;  %v8584_v41 = vld [vmem:[#allocation64_spill] sm:$0xff]  ;;  %v8585_v45 = vld [vmem:[#allocation65_spill] sm:$0xff] }
 0x99f   :  { %2029 = vmatpush1.bf16.msra.mxu0 %v6440_v7  ;;  %2070 = vmatpush1.bf16.msra.mxu1 %v6446_v36  ;;  %v8586_v7 = vld [vmem:[#allocation66_spill] sm:$0xff]  ;;  %v8587_v36 = vld [vmem:[#allocation67_spill] sm:$0xff] }
 0x9a0   :  { %2030 = vmatprep.subr.bf16.mxu0 %v6452_v50  ;;  %2071 = vmatprep.subr.bf16.mxu1 %v6458_v51  ;;  %v8588_v50 = vld [vmem:[#allocation68_spill] sm:$0xff]  ;;  %v8589_v51 = vld [vmem:[#allocation69_spill] sm:$0xff] }
 0x9a3   :  { %2031 = vmatpush1.bf16.msra.mxu0 %v6464_v33  ;;  %2072 = vmatpush1.bf16.msra.mxu1 %v6470_v11  ;;  %v8590_v33 = vld [vmem:[#allocation70_spill] sm:$0xff]  ;;  %v8591_v11 = vld [vmem:[#allocation71_spill] sm:$0xff] }
 0x9a4   :  { %2032 = vmatprep.subr.bf16.mxu0 %v6476_v30  ;;  %2073 = vmatprep.subr.bf16.mxu1 %v6482_v34  ;;  %v8592_v30 = vld [vmem:[#allocation72_spill] sm:$0xff]  ;;  %v8593_v34 = vld [vmem:[#allocation73_spill] sm:$0xff] }
 0x9a7   :  { %2033 = vmatpush1.bf16.msra.mxu0 %v6488_v46  ;;  %2074 = vmatpush1.bf16.msra.mxu1 %v8518_v56  ;;  %v8594_v46 = vld [vmem:[#allocation74_spill] sm:$0xff]  ;;  %v8597_v56 = vld [vmem:[#allocation77_spill] sm:$0xff] }
 0x9a8   :  { %2034 = vmatprep.subr.bf16.mxu0 %v8519_v12  ;;  %2075 = vmatprep.subr.bf16.mxu1 %v8520_v54  ;;  %v8598_v12 = vld [vmem:[#allocation78_spill] sm:$0xff]  ;;  %v8599_v54 = vld [vmem:[#allocation79_spill] sm:$0xff] }
 0x9ab   :  { %2035 = vmatpush1.bf16.msra.mxu0 %v8521_v8  ;;  %2076 = vmatpush1.bf16.msra.mxu1 %v8522_v62  ;;  %v8600_v8 = vld [vmem:[#allocation80_spill] sm:$0xff]  ;;  %v8601_v62 = vld [vmem:[#allocation81_spill] sm:$0xff] }
 0x9ac   :  { %2036 = vmatprep.subr.bf16.mxu0 %v8523_v15  ;;  %2077 = vmatprep.subr.bf16.mxu1 %v6530_v47  ;;  %v8596_v47 = vld [vmem:[#allocation76_spill] sm:$0xff]  ;;  %v8602_v15 = vld [vmem:[#allocation82_spill] sm:$0xff] }
 0x9af   :  { %2037 = vmatpush1.bf16.msra.mxu0 %v6536_v21  ;;  %2078 = vmatpush1.bf16.msra.mxu1 %v6542_v39  ;;  %v8580_v21 = vld [vmem:[#allocation60_spill] sm:$0xff]  ;;  %v8595_v39 = vld [vmem:[#allocation75_spill] sm:$0xff] }
 0x9b0   :  { %2147 = vmatprep.subr.bf16.mxu0 %v6667_v19  ;;  %2188 = vmatprep.subr.bf16.mxu1 %v6670_v6 }
 0x9b2   :  { %2055 = vmatmul.mubr.bf16.vlgmr.msra.gmra.mxu0 %v2021_v22  ;;  %2096 = vmatmul.mubr.bf16.vlgmr.msra.gmra.mxu1 %v2021_v22  ;;  %v8616_v22 = vld [vmem:[#allocation21_spill] sm:$0xff] }
 0x9b3   :  { %2148 = vmatpush1.bf16.msra.mxu0 %v6673_v18  ;;  %2189 = vmatpush1.bf16.msra.mxu1 %v6676_v14 }
 0x9b4   :  { %2149 = vmatprep.subr.bf16.mxu0 %v6679_v32  ;;  %2190 = vmatprep.subr.bf16.mxu1 %v6682_v29 }
 0x9b7   :  { %2150 = vmatpush1.bf16.msra.mxu0 %v6685_v13  ;;  %2191 = vmatpush1.bf16.msra.mxu1 %v6688_v4 }
 0x9b8   :  { %2151 = vmatprep.subr.bf16.mxu0 %v6691_v1  ;;  %2192 = vmatprep.subr.bf16.mxu1 %v6694_v3 }
 0x9bb   :  { %2152 = vmatpush1.bf16.msra.mxu0 %v6697_v53  ;;  %2193 = vmatpush1.bf16.msra.mxu1 %v6700_v60 }
 0x9bc   :  { %2153 = vmatprep.subr.bf16.mxu0 %v6703_v61  ;;  %2194 = vmatprep.subr.bf16.mxu1 %v6706_v23 }
 0x9bf   :  { %2154 = vmatpush1.bf16.msra.mxu0 %v6709_v25  ;;  %2195 = vmatpush1.bf16.msra.mxu1 %v8580_v21 }
 0x9c0   :  { %2155 = vmatprep.subr.bf16.mxu0 %v8581_v40  ;;  %2196 = vmatprep.subr.bf16.mxu1 %v8582_v44 }
 0x9c3   :  { %2156 = vmatpush1.bf16.msra.mxu0 %v8583_v38  ;;  %2197 = vmatpush1.bf16.msra.mxu1 %v8584_v41 }
 0x9c4   :  { %2157 = vmatprep.subr.bf16.mxu0 %v8585_v45  ;;  %2198 = vmatprep.subr.bf16.mxu1 %v8586_v7 }
 0x9c7   :  { %2158 = vmatpush1.bf16.msra.mxu0 %v8587_v36  ;;  %2199 = vmatpush1.bf16.msra.mxu1 %v8588_v50 }
 0x9c8   :  { %2159 = vmatprep.subr.bf16.mxu0 %v8589_v51  ;;  %2200 = vmatprep.subr.bf16.mxu1 %v8590_v33 }
 0x9cb   :  { %2160 = vmatpush1.bf16.msra.mxu0 %v8591_v11  ;;  %2201 = vmatpush1.bf16.msra.mxu1 %v8592_v30 }
 0x9cc   :  { %2161 = vmatprep.subr.bf16.mxu0 %v8593_v34  ;;  %2202 = vmatprep.subr.bf16.mxu1 %v8594_v46 }
 0x9cf   :  { %2162 = vmatpush1.bf16.msra.mxu0 %v8595_v39  ;;  %2203 = vmatpush1.bf16.msra.mxu1 %v8596_v47 }
 0x9d0   :  { %2163 = vmatprep.subr.bf16.mxu0 %v8597_v56  ;;  %2204 = vmatprep.subr.bf16.mxu1 %v8598_v12 }
 0x9d3   :  { %2164 = vmatpush2.bf16.msra.mxu0 %v8599_v54  ;;  %2205 = vmatpush2.bf16.msra.mxu1 %v8600_v8  ;;  %v8634_v54 = vld [vmem:[#allocation57_spill] sm:$0xff] }
 0x9d4   :  { %2165 = vmatprep.subr.bf16.mxu0 %v8601_v62  ;;  %2206 = vmatprep.subr.bf16.mxu1 %v8602_v15 }
 0x9d7   :  { %2166 = vmatpush2.bf16.msra.mxu0 %v8603_v24  ;;  %2207 = vmatpush2.bf16.msra.mxu1 %v8604_v57 }
 0x9d8   :  { %2167 = vmatprep.subr.bf16.mxu0 %v8605_v31  ;;  %2208 = vmatprep.subr.bf16.mxu1 %v8606_v35  ;;  %v8631_v35 = vld [vmem:[#allocation54_spill] sm:$0xff] }
 0x9db   :  { %2168 = vmatpush2.bf16.msra.mxu0 %v8607_v5  ;;  %2209 = vmatpush2.bf16.msra.mxu1 %v8608_v2  ;;  %v8618_v5 = vld [vmem:[#allocation27_spill] sm:$0xff]  ;;  %v8619_v2 = vld [vmem:[#allocation28_spill] sm:$0xff] }
 0x9dc   :  { %2169 = vmatprep.subr.bf16.mxu0 %v8609_v43  ;;  %2210 = vmatprep.subr.bf16.mxu1 %v8610_v59  ;;  %v8620_v43 = vld [vmem:[#allocation26_spill] sm:$0xff]  ;;  %v8621_v59 = vld [vmem:[#allocation53_spill] sm:$0xff] }
 0x9df   :  { %2170 = vmatpush2.bf16.msra.mxu0 %v8611_v20  ;;  %2211 = vmatpush2.bf16.msra.mxu1 %v8612_v27  ;;  %v8622_v20 = vld [vmem:[#allocation92_spill] sm:$0xff]  ;;  %v8623_v27 = vld [vmem:[#allocation93_spill] sm:$0xff] }
 0x9e0   :  { %2171 = vmatprep.subr.bf16.mxu0 %v8613_v48  ;;  %2212 = vmatprep.subr.bf16.mxu1 %v8614_v16  ;;  %v8624_v48 = vld [vmem:[#allocation94_spill] sm:$0xff]  ;;  %v8625_v16 = vld [vmem:[#allocation95_spill] sm:$0xff] }
 0x9e3   :  { %2172 = vmatpush2.bf16.msra.mxu0 %v8615_v42  ;;  %2213 = vmatpush2.bf16.msra.mxu1 %v8616_v22  ;;  %v8626_v42 = vld [vmem:[#allocation96_spill] sm:$0xff]  ;;  %v8627_v22 = vld [vmem:[#allocation97_spill] sm:$0xff] }
 0x9e4   :  { %2173 = vmatprep.subr.bf16.mxu0 %v8617_v37  ;;  %2214 = vmatprep.subr.bf16.mxu1 %v8618_v5  ;;  %v8628_v37 = vld [vmem:[#allocation98_spill] sm:$0xff]  ;;  %v8629_v5 = vld [vmem:[#allocation99_spill] sm:$0xff] }
 0x9e7   :  { %2174 = vmatpush2.bf16.msra.mxu0 %v8619_v2  ;;  %2215 = vmatpush2.bf16.msra.mxu1 %v8620_v43  ;;  %v8630_v2 = vld [vmem:[#allocation100_spill] sm:$0xff] }
 0x9e8   :  { %2175 = vmatprep.subr.bf16.mxu0 %v8621_v59  ;;  %2216 = vmatprep.subr.bf16.mxu1 %v8622_v20 }
 0x9eb   :  { %2176 = vmatpush2.bf16.msra.mxu0 %v8623_v27  ;;  %2217 = vmatpush2.bf16.msra.mxu1 %v8624_v48  ;;  %v8632_v48 = vld [vmem:[#allocation55_spill] sm:$0xff] }
 0x9ec   :  { %2177 = vmatprep.subr.bf16.mxu0 %v8625_v16  ;;  %2218 = vmatprep.subr.bf16.mxu1 %v8626_v42 }
 0x9ef   :  { %2178 = vmatpush2.bf16.msra.mxu0 %v8627_v22  ;;  %2219 = vmatpush2.bf16.msra.mxu1 %v8628_v37  ;;  %v8633_v37 = vld [vmem:[#allocation56_spill] sm:$0xff] }
 0x9f0   :  { %2272 = vmatprep.subr.bf16.mxu0 %v8629_v5  ;;  %2313 = vmatprep.subr.bf16.mxu1 %v8630_v2 }
 0xa52   :  { %v1931_v43 = vpop.f32.mrf.mxu0  ;;  %v1972_v59 = vpop.f32.mrf.mxu1 }
 0xa53   :  { %v1932_v20 = vadd.f32 %v1931_v43, %v8631_v35  ;;  %v1973_v12 = vadd.f32 %v1972_v59, %v8634_v54 }
 0xa54   :  { %v1933_v31 = vpop.f32.mrf.mxu0  ;;  %v1974_v27 = vpop.f32.mrf.mxu1 }
 0xa55   :  { %v4409_v57 = vmul.f32 -1.442695, %v1932_v20  ;;  %v1934_v24 = vadd.f32 %v1933_v31, %v8632_v48  ;;  %v1975_v5 = vadd.f32 %v1974_v27, %v8633_v37  ;;  %v8636_v37 = vld [vmem:[#allocation39_spill] sm:$0xff] }
 0xa56   :  { %v1935_v16 = vpop.f32.mrf.mxu0  ;;  %v1976_v15 = vpop.f32.mrf.mxu1 }
 0xa57   :  { %4987 = vpow2.f32 %v4409_v57  ;;  %v4410_v42 = vmul.f32 -1.442695, %v1934_v24  ;;  %v4411_v8 = vmul.f32 -1.442695, %v1975_v5  ;;  %v8635_v24 = vld [vmem:[#allocation37_spill] sm:$0xff] }
 0xa58   :  { %v1936_v22 = vpop.f32.mrf.mxu0  ;;  %v1977_v62 = vpop.f32.mrf.mxu1 }
 0xa59   :  { %4989 = vpow2.f32 %v4410_v42 }
 0xa5a   :  { %4991 = vpow2.f32 %v4411_v8 }
 0xa64   :  { %v4988_v2 = vpop.eup %4987 }
 0xa65   :  { %v1982_v56 = vadd.f32 1.0, %v4988_v2 }
 0xa66   :  { %v4990_v43 = vpop.eup %4989 }
 0xa67   :  { %4993 = vrcp.f32 %v1982_v56  ;;  %v1988_v20 = vadd.f32 1.0, %v4990_v43  ;;  %v4992_v57 = vpop.eup %4991 }
 0xa68   :  { %4995 = vtanh.f32 %v1973_v12  ;;  %v1995_v2 = vadd.f32 1.0, %v4992_v57 }
 0xa69   :  { %4997 = vrcp.f32 %v1988_v20 }
 0xa72   :  { %v2056_v31 = vpop.f32.mrf.mxu0  ;;  %v2097_v15 = vpop.f32.mrf.mxu1 }
 0xa73   :  { %v2104_v16 = vadd.f32 %v2056_v31, %v8635_v24  ;;  %v8637_v31 = vld [vmem:[#allocation40_spill] sm:$0xff] }
 0xa74   :  { %v4994_v62 = vpop.eup %4993  ;;  %v2058_v42 = vpop.f32.mrf.mxu0 }
 0xa75   :  { %v2099_v22 = vpop.f32.mrf.mxu1  ;;  %v4996_v27 = vpop.eup %4995  ;;  %v4412_v5 = vmul.f32 -1.442695, %v2104_v16  ;;  %v2105_v48 = vadd.f32 %v2058_v42, %v8636_v37  ;;  %v8638_v37 = vld [vmem:[#allocation38_spill] sm:$0xff] }
 0xa76   :  { %v4998_v59 = vpop.eup %4997  ;;  %v2060_v54 = vpop.f32.mrf.mxu0  ;;  %v1999_v56 = vmul.f32 %v4996_v27, %v4994_v62  ;;  %v2107_v24 = vadd.f32 %v2099_v22, %v8637_v31  ;;  %v2106_v16 = vadd.f32 %v2097_v15, %v8638_v37 }
 0xa77   :  { %v2101_v8 = vpop.f32.mrf.mxu1  ;;  %v1998_v12 = vmul.f32 %v4998_v59, %v6878_v26  ;;  %4999 = vpow2.f32 %v4412_v5  ;;  %v4413_v43 = vmul.f32 -1.442695, %v2105_v48 }
 0xa78   :  { %v2061_v20 = vpop.f32.mrf.mxu0  ;;  %v4414_v57 = vmul.f32 -1.442695, %v2107_v24 }
 0xa79   :  { %v2102_v35 = vpop.f32.mrf.mxu1  ;;  %v7038_v47 = vadd.f32 %v1999_v56, %v1998_v12  ;;  %5001 = vpow2.f32 %v4413_v43 }
 0xa7a   :  { %5003 = vrcp.f32 %v1995_v2 }
 0xa7b   :  { %5005 = vtanh.f32 %v7038_v47 }
 0xa7c   :  { %5007 = vtanh.f32 %v2106_v16 }
 0xa7d   :  { %5009 = vpow2.f32 %v4414_v57 }
 0xa84   :  { %v5000_v54 = vpop.eup %4999 }
 0xa85   :  { %v2111_v42 = vadd.f32 1.0, %v5000_v54 }
 0xa86   :  { %v5002_v62 = vpop.eup %5001 }
 0xa87   :  { %v5004_v26 = vpop.eup %5003  ;;  %5011 = vrcp.f32 %v2111_v42  ;;  %v2117_v48 = vadd.f32 1.0, %v5002_v62 }
 0xa88   :  { %v5006_v35 = vpop.eup %5005 }
 0xa89   :  { %5013 = vrcp.f32 %v2117_v48  ;;  %v7043_v27 = vmul.f32 %v5006_v35, %v5004_v26  ;;  %v5008_v22 = vpop.eup %5007 }
 0xa8a   :  { %v5010_v15 = vpop.eup %5009 }
 0xa8b   :  { %8639 = vst [vmem:[#allocation35_spill] sm:$0xff] %v7043_v27  ;;  %v2146_v5 = vpack.c.bf16 %v7043_v27, %v7043_v27  ;;  %v2124_v56 = vadd.f32 1.0, %v5010_v15  ;;  %v7068_v15 = vld [vmem:[%s8344_s30 + $0xa4] ss:$16 sps:$4 sm:$0xff]  }
 0xa8c   :  { %v7188_v27 = vld [vmem:[%s8344_s30 + $0x4] ss:$16 sps:$4 sm:$0xff]  }
 0xa8d   :  { %2179 = vmatprep.mubr.bf16.mxu0 %v2146_v5  ;;  %2220 = vmatprep.mubr.bf16.mxu1 %v2146_v5  ;;  %5015 = vrcp.f32 %v2124_v56  ;;  %v7092_v56 = vld [vmem:[%s8344_s30 + $0x84] ss:$16 sps:$4 sm:$0xff]   ;;  %8643 = vst [vmem:[#allocation61_spill] sm:$0xff] %v7188_v27 }
 0xa94   :  { %v5012_v59 = vpop.eup %5011 }
 0xa95   :  { %v2128_v2 = vmul.f32 %v5012_v59, %v5008_v22  ;;  %v7074_v59 = vld [vmem:[%s8344_s30 + $0xac] ss:$16 sps:$4 sm:$0xff]  }
 0xa96   :  { %v5014_v8 = vpop.eup %5013 }
 0xa97   :  { %v2127_v12 = vmul.f32 %v5014_v8, %v6888_v55  ;;  %v7086_v8 = vld [vmem:[%s8344_s30 + $0xa8] ss:$16 sps:$4 sm:$0xff]  }
 0xa99   :  { %v7048_v43 = vadd.f32 %v2128_v2, %v2127_v12  ;;  %v7080_v2 = vld [vmem:[%s8344_s30 + $0xa0] ss:$16 sps:$4 sm:$0xff]   ;;  %v7098_v12 = vld [vmem:[%s8344_s30 + $0x8c] ss:$16 sps:$4 sm:$0xff]  }
 0xa9a   :  { %v5016_v20 = vpop.eup %5015 }
 0xa9b   :  { %5017 = vtanh.f32 %v7048_v43 }
 0xaa8   :  { %v5018_v31 = vpop.eup %5017 }
 0xaa9   :  { %v7051_v24 = vmul.f32 %v5018_v31, %v5016_v20  ;;  %v7104_v20 = vld [vmem:[%s8344_s30 + $0x80] ss:$16 sps:$4 sm:$0xff]   ;;  %v7110_v31 = vld [vmem:[%s8344_s30 + $0x88] ss:$16 sps:$4 sm:$0xff]  }
 0xaab   :  { %2132 = vadd.xlane.f32.xlu0 %v7051_v24 }
 0xb34   :  { %v2133_v37 = vpop.xlane.xlu0 %2132 }
 0xb35   :  { %v2134_v16 = vmul.f32 0.0078125, %v2133_v37  ;;  %v7116_v37 = vld [vmem:[%s8344_s30 + $0x64] ss:$16 sps:$4 sm:$0xff]  }
 0xb37   :  { %v2135_v57 = vsub.f32 %v7051_v24, %v2134_v16  ;;  %v7122_v16 = vld [vmem:[%s8344_s30 + $0x6c] ss:$16 sps:$4 sm:$0xff]  }
 0xb39   :  { %v2136_v54 = vmul.f32 %v2135_v57, %v2135_v57 }
 0xb3b   :  { %2137 = vadd.xlane.f32.xlu1 %v2136_v54  ;;  %v7134_v54 = vld [vmem:[%s8344_s30 + $0x68] ss:$16 sps:$4 sm:$0xff]  }
 0xbc4   :  { %v2138_v42 = vpop.xlane.xlu1 %2137 }
 0xbc5   :  { %v2139_v62 = vmul.f32 0.0078125, %v2138_v42  ;;  %v7140_v42 = vld [vmem:[%s8344_s30 + $0x44] ss:$16 sps:$4 sm:$0xff]  }
 0xbc7   :  { %v2140_v55 = vadd.f32 1e-05, %v2139_v62  ;;  %v7146_v62 = vld [vmem:[%s8344_s30 + $0x4c] ss:$16 sps:$4 sm:$0xff]  }
 0xbc9   :  { %5019 = vrsqrt.f32 %v2140_v55  ;;  %v7152_v55 = vld [vmem:[%s8344_s30 + $0x40] ss:$16 sps:$4 sm:$0xff]  }
 0xbd6   :  { %v5020_v26 = vpop.eup %5019 }
 0xbd7   :  { %v2142_v48 = vmul.f32 %v5020_v26, %v2135_v57  ;;  %v7128_v57 = vld [vmem:[%s8344_s30 + $0x60] ss:$16 sps:$4 sm:$0xff]   ;;  %v7158_v26 = vld [vmem:[%s8344_s30 + $0x48] ss:$16 sps:$4 sm:$0xff]  }
 0xbd9   :  { %v2143_v35 = vmul.f32 %v6894_v10, %v2142_v48  ;;  %v7164_v48 = vld [vmem:[%s8344_s30 + $0x24] ss:$16 sps:$4 sm:$0xff]  }
 0xbdb   :  { %v2144_v5 = vadd.f32 %v6900_v63, %v2143_v35  ;;  %v7170_v35 = vld [vmem:[%s8344_s30 + $0x2c] ss:$16 sps:$4 sm:$0xff]  }
 0xbdc   :  { %8640 = vst [vmem:[#allocation36_spill] sm:$0xff] %v7170_v35 }
 0xbdd   :  { %v2145_v22 = vpack.c.bf16 %v2144_v5, %v2144_v5  ;;  %v7176_v5 = vld [vmem:[%s8344_s30 + $0x20] ss:$16 sps:$4 sm:$0xff]  }
 0xbde   :  { %8641 = vst [vmem:[#allocation34_spill] sm:$0xff] %v7176_v5 }
 0xbdf   :  { %2180 = vmatmul.mubr.bf16.vlgmr.msra.gmra.mxu0 %v2145_v22  ;;  %2221 = vmatmul.mubr.bf16.vlgmr.msra.gmra.mxu1 %v2145_v22  ;;  %v7182_v22 = vld [vmem:[%s8344_s30 + $0x28] ss:$16 sps:$4 sm:$0xff]  }
 0xbe0   :  { %2273 = vmatpush1.bf16.msra.mxu0 %v6906_v0  ;;  %2314 = vmatpush1.bf16.msra.mxu1 %v6912_v52  ;;  %8642 = vst [vmem:[#allocation60_spill] sm:$0xff] %v7182_v22 }
 0xbe1   :  { %2274 = vmatprep.subr.bf16.mxu0 %v6918_v28  ;;  %2315 = vmatprep.subr.bf16.mxu1 %v6924_v49 }
 0xbe2   :  { %2304 = vmatprep.mubr.bf16.mxu0 %v8417_v17  ;;  %2345 = vmatprep.mubr.bf16.mxu1 %v8417_v17 }
 0xbe4   :  { %2275 = vmatpush1.bf16.msra.mxu0 %v6932_v58  ;;  %2316 = vmatpush1.bf16.msra.mxu1 %v6938_v9 }
 0xbe5   :  { %2276 = vmatprep.subr.bf16.mxu0 %v7068_v15  ;;  %2317 = vmatprep.subr.bf16.mxu1 %v7074_v59 }
 0xbe8   :  { %2277 = vmatpush1.bf16.msra.mxu0 %v7080_v2  ;;  %2318 = vmatpush1.bf16.msra.mxu1 %v7086_v8 }
 0xbe9   :  { %2278 = vmatprep.subr.bf16.mxu0 %v7092_v56  ;;  %2319 = vmatprep.subr.bf16.mxu1 %v7098_v12 }
 0xbec   :  { %2279 = vmatpush1.bf16.msra.mxu0 %v7104_v20  ;;  %2320 = vmatpush1.bf16.msra.mxu1 %v7110_v31 }
 0xbed   :  { %2280 = vmatprep.subr.bf16.mxu0 %v7116_v37  ;;  %2321 = vmatprep.subr.bf16.mxu1 %v7122_v16 }
 0xbf0   :  { %2281 = vmatpush1.bf16.msra.mxu0 %v7128_v57  ;;  %2322 = vmatpush1.bf16.msra.mxu1 %v7134_v54 }
 0xbf1   :  { %2282 = vmatprep.subr.bf16.mxu0 %v7140_v42  ;;  %2323 = vmatprep.subr.bf16.mxu1 %v7146_v62 }
 0xbf4   :  { %2283 = vmatpush1.bf16.msra.mxu0 %v7152_v55  ;;  %2324 = vmatpush1.bf16.msra.mxu1 %v7158_v26 }
 0xbf5   :  { %2284 = vmatprep.subr.bf16.mxu0 %v7164_v48  ;;  %2325 = vmatprep.subr.bf16.mxu1 %v7170_v35  ;;  %v7194_v35 = vld [vmem:[%s8344_s30 + $0xc] ss:$16 sps:$4 sm:$0xff]  }
 0xbf8   :  { %2285 = vmatpush1.bf16.msra.mxu0 %v7176_v5  ;;  %2326 = vmatpush1.bf16.msra.mxu1 %v7182_v22  ;;  %v7200_v5 = vld [vmem:[%s8344_s30] ss:$16 sps:$4 sm:$0xff]   ;;  %v7206_v22 = vld [vmem:[%s8344_s30 + $0x8] ss:$16 sps:$4 sm:$0xff]  }
 0xbf9   :  { %2286 = vmatprep.subr.bf16.mxu0 %v7188_v27  ;;  %2327 = vmatprep.subr.bf16.mxu1 %v7194_v35  ;;  %v2271_v27 = vpack.c.bf16 %v7051_v24, %v7051_v24  ;;  %v8676_v24 = vld [vmem:[#allocation98_spill] sm:$0xff] }
 0xbfc   :  { %2287 = vmatpush1.bf16.msra.mxu0 %v7200_v5  ;;  %2328 = vmatpush1.bf16.msra.mxu1 %v7206_v22 }
 0xbfd   :  { %2397 = vmatprep.subr.bf16.mxu0 %v6667_v19  ;;  %2438 = vmatprep.subr.bf16.mxu1 %v6670_v6  ;;  %v8644_v19 = vld [vmem:[#allocation76_spill] sm:$0xff]  ;;  %v8645_v6 = vld [vmem:[#allocation77_spill] sm:$0xff] }
 0xbff   :  { %2305 = vmatmul.mubr.bf16.vlgmr.msra.gmra.mxu0 %v2271_v27  ;;  %2346 = vmatmul.mubr.bf16.vlgmr.msra.gmra.mxu1 %v2271_v27  ;;  %v8675_v27 = vld [vmem:[#allocation97_spill] sm:$0xff] }
 0xc00   :  { %2398 = vmatpush1.bf16.msra.mxu0 %v6673_v18  ;;  %2439 = vmatpush1.bf16.msra.mxu1 %v6676_v14  ;;  %v8646_v18 = vld [vmem:[#allocation78_spill] sm:$0xff]  ;;  %v8647_v14 = vld [vmem:[#allocation79_spill] sm:$0xff] }
 0xc01   :  { %2399 = vmatprep.subr.bf16.mxu0 %v6679_v32  ;;  %2440 = vmatprep.subr.bf16.mxu1 %v6682_v29  ;;  %v8648_v32 = vld [vmem:[#allocation80_spill] sm:$0xff]  ;;  %v8649_v29 = vld [vmem:[#allocation81_spill] sm:$0xff] }
 0xc04   :  { %2400 = vmatpush1.bf16.msra.mxu0 %v6685_v13  ;;  %2441 = vmatpush1.bf16.msra.mxu1 %v6688_v4  ;;  %v8650_v13 = vld [vmem:[#allocation82_spill] sm:$0xff]  ;;  %v8651_v4 = vld [vmem:[#allocation83_spill] sm:$0xff] }
 0xc05   :  { %2401 = vmatprep.subr.bf16.mxu0 %v6691_v1  ;;  %2442 = vmatprep.subr.bf16.mxu1 %v6694_v3  ;;  %v8652_v1 = vld [vmem:[#allocation84_spill] sm:$0xff]  ;;  %v8653_v3 = vld [vmem:[#allocation85_spill] sm:$0xff] }
 0xc08   :  { %2402 = vmatpush1.bf16.msra.mxu0 %v6697_v53  ;;  %2443 = vmatpush1.bf16.msra.mxu1 %v6700_v60  ;;  %v8654_v53 = vld [vmem:[#allocation86_spill] sm:$0xff]  ;;  %v8655_v60 = vld [vmem:[#allocation87_spill] sm:$0xff] }
 0xc09   :  { %2403 = vmatprep.subr.bf16.mxu0 %v6703_v61  ;;  %2444 = vmatprep.subr.bf16.mxu1 %v6706_v23  ;;  %v8656_v61 = vld [vmem:[#allocation88_spill] sm:$0xff]  ;;  %v8657_v23 = vld [vmem:[#allocation89_spill] sm:$0xff] }
 0xc0c   :  { %2404 = vmatpush1.bf16.msra.mxu0 %v6709_v25  ;;  %2445 = vmatpush1.bf16.msra.mxu1 %v8580_v21  ;;  %v8658_v25 = vld [vmem:[#allocation90_spill] sm:$0xff]  ;;  %v8659_v21 = vld [vmem:[#allocation91_spill] sm:$0xff] }
 0xc0d   :  { %2405 = vmatprep.subr.bf16.mxu0 %v8581_v40  ;;  %2446 = vmatprep.subr.bf16.mxu1 %v8582_v44  ;;  %v8660_v40 = vld [vmem:[#allocation29_spill] sm:$0xff]  ;;  %v8661_v44 = vld [vmem:[#allocation31_spill] sm:$0xff] }
 0xc10   :  { %2406 = vmatpush1.bf16.msra.mxu0 %v8583_v38  ;;  %2447 = vmatpush1.bf16.msra.mxu1 %v8584_v41  ;;  %v8662_v38 = vld [vmem:[#allocation32_spill] sm:$0xff]  ;;  %v8663_v41 = vld [vmem:[#allocation30_spill] sm:$0xff] }
 0xc11   :  { %2407 = vmatprep.subr.bf16.mxu0 %v8585_v45  ;;  %2448 = vmatprep.subr.bf16.mxu1 %v8586_v7  ;;  %v8664_v45 = vld [vmem:[#allocation21_spill] sm:$0xff] }
 0xc12   :  { %v8665_v7 = vld [vmem:[#allocation25_spill] sm:$0xff] }
 0xc14   :  { %2408 = vmatpush1.bf16.msra.mxu0 %v8587_v36  ;;  %2449 = vmatpush1.bf16.msra.mxu1 %v8588_v50  ;;  %v8666_v36 = vld [vmem:[#allocation27_spill] sm:$0xff]  ;;  %v8667_v50 = vld [vmem:[#allocation28_spill] sm:$0xff] }
 0xc15   :  { %2409 = vmatprep.subr.bf16.mxu0 %v8589_v51  ;;  %2450 = vmatprep.subr.bf16.mxu1 %v8590_v33  ;;  %v8668_v51 = vld [vmem:[#allocation26_spill] sm:$0xff]  ;;  %v8669_v33 = vld [vmem:[#allocation53_spill] sm:$0xff] }
 0xc18   :  { %2410 = vmatpush1.bf16.msra.mxu0 %v8591_v11  ;;  %2451 = vmatpush1.bf16.msra.mxu1 %v8592_v30  ;;  %v8670_v11 = vld [vmem:[#allocation92_spill] sm:$0xff]  ;;  %v8671_v30 = vld [vmem:[#allocation93_spill] sm:$0xff] }
 0xc19   :  { %2411 = vmatprep.subr.bf16.mxu0 %v8593_v34  ;;  %2452 = vmatprep.subr.bf16.mxu1 %v8594_v46  ;;  %v8672_v34 = vld [vmem:[#allocation94_spill] sm:$0xff]  ;;  %v8673_v46 = vld [vmem:[#allocation95_spill] sm:$0xff] }
 0xc1c   :  { %2412 = vmatpush1.bf16.msra.mxu0 %v8595_v39  ;;  %2453 = vmatpush1.bf16.msra.mxu1 %v8644_v19  ;;  %v8674_v39 = vld [vmem:[#allocation96_spill] sm:$0xff]  ;;  %v8677_v19 = vld [vmem:[#allocation99_spill] sm:$0xff] }
 0xc1d   :  { %2413 = vmatprep.subr.bf16.mxu0 %v8645_v6  ;;  %2454 = vmatprep.subr.bf16.mxu1 %v8646_v18  ;;  %v8678_v6 = vld [vmem:[#allocation100_spill] sm:$0xff] }
 0xc20   :  { %2414 = vmatpush2.bf16.msra.mxu0 %v8647_v14  ;;  %2455 = vmatpush2.bf16.msra.mxu1 %v8648_v32  ;;  %v8679_v32 = vld [vmem:[#allocation54_spill] sm:$0xff] }
 0xc21   :  { %2415 = vmatprep.subr.bf16.mxu0 %v8649_v29  ;;  %2456 = vmatprep.subr.bf16.mxu1 %v8650_v13 }
 0xc24   :  { %2416 = vmatpush2.bf16.msra.mxu0 %v8651_v4  ;;  %2457 = vmatpush2.bf16.msra.mxu1 %v8652_v1 }
 0xc25   :  { %2417 = vmatprep.subr.bf16.mxu0 %v8653_v3  ;;  %2458 = vmatprep.subr.bf16.mxu1 %v8654_v53  ;;  %v8680_v3 = vld [vmem:[#allocation55_spill] sm:$0xff] }
 0xc28   :  { %2418 = vmatpush2.bf16.msra.mxu0 %v8655_v60  ;;  %2459 = vmatpush2.bf16.msra.mxu1 %v8656_v61 }
 0xc29   :  { %2419 = vmatprep.subr.bf16.mxu0 %v8657_v23  ;;  %2460 = vmatprep.subr.bf16.mxu1 %v8658_v25 }
 0xc2c   :  { %2420 = vmatpush2.bf16.msra.mxu0 %v8659_v21  ;;  %2461 = vmatpush2.bf16.msra.mxu1 %v8660_v40  ;;  %v8681_v40 = vld [vmem:[#allocation56_spill] sm:$0xff] }
 0xc2d   :  { %2421 = vmatprep.subr.bf16.mxu0 %v8661_v44  ;;  %2462 = vmatprep.subr.bf16.mxu1 %v8662_v38 }
 0xc30   :  { %2422 = vmatpush2.bf16.msra.mxu0 %v8663_v41  ;;  %2463 = vmatpush2.bf16.msra.mxu1 %v8664_v45  ;;  %v8682_v45 = vld [vmem:[#allocation57_spill] sm:$0xff] }
 0xc31   :  { %2423 = vmatprep.subr.bf16.mxu0 %v8665_v7  ;;  %2464 = vmatprep.subr.bf16.mxu1 %v8666_v36 }
 0xc34   :  { %2424 = vmatpush2.bf16.msra.mxu0 %v8667_v50  ;;  %2465 = vmatpush2.bf16.msra.mxu1 %v8668_v51 }
 0xc35   :  { %2425 = vmatprep.subr.bf16.mxu0 %v8669_v33  ;;  %2466 = vmatprep.subr.bf16.mxu1 %v8670_v11 }
 0xc38   :  { %2426 = vmatpush2.bf16.msra.mxu0 %v8671_v30  ;;  %2467 = vmatpush2.bf16.msra.mxu1 %v8672_v34  ;;  %v8683_v34 = vld [vmem:[#allocation41_spill] sm:$0xff] }
 0xc39   :  { %2427 = vmatprep.subr.bf16.mxu0 %v8673_v46  ;;  %2468 = vmatprep.subr.bf16.mxu1 %v8674_v39 }
 0xc3c   :  { %2428 = vmatpush2.bf16.msra.mxu0 %v8675_v27  ;;  %2469 = vmatpush2.bf16.msra.mxu1 %v8676_v24 }
 0xc3d   :  { %2522 = vmatprep.subr.bf16.mxu0 %v8677_v19  ;;  %2563 = vmatprep.subr.bf16.mxu1 %v8678_v6 }
 0xc9f   :  { %v2181_v18 = vpop.f32.mrf.mxu0  ;;  %v2222_v14 = vpop.f32.mrf.mxu1 }
 0xca0   :  { %v2182_v29 = vadd.f32 %v2181_v18, %v8679_v32  ;;  %v2223_v7 = vadd.f32 %v2222_v14, %v8682_v45  ;;  %v8684_v18 = vld [vmem:[#allocation43_spill] sm:$0xff] }
 0xca1   :  { %v2183_v13 = vpop.f32.mrf.mxu0  ;;  %v2224_v4 = vpop.f32.mrf.mxu1 }
 0xca2   :  { %v4415_v1 = vmul.f32 -1.442695, %v2182_v29  ;;  %v2184_v53 = vadd.f32 %v2183_v13, %v8680_v3  ;;  %v2225_v44 = vadd.f32 %v2224_v4, %v8681_v40 }
 0xca3   :  { %v2185_v60 = vpop.f32.mrf.mxu0  ;;  %v2226_v61 = vpop.f32.mrf.mxu1 }
 0xca4   :  { %5021 = vpow2.f32 %v4415_v1  ;;  %v4416_v23 = vmul.f32 -1.442695, %v2184_v53  ;;  %v4417_v38 = vmul.f32 -1.442695, %v2225_v44  ;;  %v8685_v44 = vld [vmem:[#allocation44_spill] sm:$0xff] }
 0xca5   :  { %v2186_v25 = vpop.f32.mrf.mxu0  ;;  %v2227_v21 = vpop.f32.mrf.mxu1 }
 0xca6   :  { %5023 = vpow2.f32 %v4416_v23 }
 0xca7   :  { %5025 = vpow2.f32 %v4417_v38 }
 0xcb1   :  { %v5022_v41 = vpop.eup %5021 }
 0xcb2   :  { %v2232_v36 = vadd.f32 1.0, %v5022_v41  ;;  %v8686_v41 = vld [vmem:[#allocation42_spill] sm:$0xff] }
 0xcb3   :  { %v5024_v50 = vpop.eup %5023 }
 0xcb4   :  { %5027 = vrcp.f32 %v2232_v36  ;;  %v2238_v51 = vadd.f32 1.0, %v5024_v50  ;;  %v5026_v30 = vpop.eup %5025 }
 0xcb5   :  { %5029 = vtanh.f32 %v2223_v7  ;;  %v2245_v13 = vadd.f32 1.0, %v5026_v30 }
 0xcb6   :  { %5031 = vrcp.f32 %v2238_v51 }
 0xcbf   :  { %v2306_v33 = vpop.f32.mrf.mxu0  ;;  %v2347_v11 = vpop.f32.mrf.mxu1 }
 0xcc0   :  { %v2354_v46 = vadd.f32 %v2306_v33, %v8683_v34  ;;  %v2356_v7 = vadd.f32 %v2347_v11, %v8686_v41 }
 0xcc1   :  { %v5028_v39 = vpop.eup %5027  ;;  %v2308_v27 = vpop.f32.mrf.mxu0 }
 0xcc2   :  { %v2349_v24 = vpop.f32.mrf.mxu1  ;;  %v5030_v19 = vpop.eup %5029  ;;  %v4418_v6 = vmul.f32 -1.442695, %v2354_v46  ;;  %v2355_v29 = vadd.f32 %v2308_v27, %v8684_v18 }
 0xcc3   :  { %v5032_v14 = vpop.eup %5031  ;;  %v2310_v4 = vpop.f32.mrf.mxu0  ;;  %v2249_v53 = vmul.f32 %v5030_v19, %v5028_v39  ;;  %v2357_v38 = vadd.f32 %v2349_v24, %v8685_v44 }
 0xcc4   :  { %v2351_v1 = vpop.f32.mrf.mxu1  ;;  %v2248_v60 = vmul.f32 %v5032_v14, %v7038_v47  ;;  %5033 = vpow2.f32 %v4418_v6  ;;  %v4419_v61 = vmul.f32 -1.442695, %v2355_v29 }
 0xcc5   :  { %v2311_v23 = vpop.f32.mrf.mxu0  ;;  %v4420_v36 = vmul.f32 -1.442695, %v2357_v38 }
 0xcc6   :  { %v2352_v25 = vpop.f32.mrf.mxu1  ;;  %v7284_v21 = vadd.f32 %v2249_v53, %v2248_v60  ;;  %5035 = vpow2.f32 %v4419_v61 }
 0xcc7   :  { %5037 = vrcp.f32 %v2245_v13 }
 0xcc8   :  { %5039 = vtanh.f32 %v7284_v21 }
 0xcc9   :  { %5041 = vtanh.f32 %v2356_v7 }
 0xcca   :  { %5043 = vpow2.f32 %v4420_v36 }
 0xcd1   :  { %v5034_v50 = vpop.eup %5033 }
 0xcd2   :  { %v2361_v51 = vadd.f32 1.0, %v5034_v50 }
 0xcd3   :  { %v5036_v33 = vpop.eup %5035 }
 0xcd4   :  { %v5038_v47 = vpop.eup %5037  ;;  %5045 = vrcp.f32 %v2361_v51  ;;  %v2367_v30 = vadd.f32 1.0, %v5036_v33  ;;  %v7340_v51 = vld [vmem:[#allocation7 + $0xe8] ss:$16 sps:$4 sm:$0xff]   ;;  %v7343_v33 = vld [vmem:[#allocation7 + $0xc4] ss:$16 sps:$4 sm:$0xff]  }
 0xcd5   :  { %v5040_v34 = vpop.eup %5039 }
 0xcd6   :  { %5047 = vrcp.f32 %v2367_v30  ;;  %v7289_v46 = vmul.f32 %v5040_v34, %v5038_v47  ;;  %v5042_v27 = vpop.eup %5041  ;;  %v7346_v47 = vld [vmem:[#allocation7 + $0xcc] ss:$16 sps:$4 sm:$0xff]   ;;  %v7349_v30 = vld [vmem:[#allocation7 + $0xc0] ss:$16 sps:$4 sm:$0xff]   ;;  %v7352_v34 = vld [vmem:[#allocation7 + $0xc8] ss:$16 sps:$4 sm:$0xff]  }
 0xcd7   :  { %v5044_v11 = vpop.eup %5043 }
 0xcd8   :  { %8687 = vst [vmem:[#allocation62_spill] sm:$0xff] %v7289_v46  ;;  %v2396_v39 = vpack.c.bf16 %v7289_v46, %v7289_v46  ;;  %v2374_v18 = vadd.f32 1.0, %v5044_v11  ;;  %v7361_v11 = vld [vmem:[#allocation7 + $0xa0] ss:$16 sps:$4 sm:$0xff]   ;;  %v7427_v46 = vld [vmem:[#allocation7 + $0x1e4] ss:$16 sps:$4 sm:$0xff]  }
 0xcd9   :  { %8709 = vst [vmem:[#allocation76_spill] sm:$0xff] %v7427_v46 }
 0xcda   :  { %2429 = vmatprep.mubr.bf16.mxu0 %v2396_v39  ;;  %2470 = vmatprep.mubr.bf16.mxu1 %v2396_v39  ;;  %5049 = vrcp.f32 %v2374_v18  ;;  %v7355_v39 = vld [vmem:[#allocation7 + $0xa4] ss:$16 sps:$4 sm:$0xff]   ;;  %v7373_v18 = vld [vmem:[#allocation7 + $0x80] ss:$16 sps:$4 sm:$0xff]  }
 0xce1   :  { %v5046_v24 = vpop.eup %5045 }
 0xce2   :  { %v2378_v19 = vmul.f32 %v5046_v24, %v5042_v27  ;;  %v7358_v27 = vld [vmem:[#allocation7 + $0xac] ss:$16 sps:$4 sm:$0xff]   ;;  %v7364_v24 = vld [vmem:[#allocation7 + $0xa8] ss:$16 sps:$4 sm:$0xff]  }
 0xce3   :  { %v5048_v6 = vpop.eup %5047 }
 0xce4   :  { %v2377_v29 = vmul.f32 %v5048_v6, %v7048_v43  ;;  %v7370_v6 = vld [vmem:[#allocation7 + $0x8c] ss:$16 sps:$4 sm:$0xff]  }
 0xce6   :  { %v7294_v14 = vadd.f32 %v2378_v19, %v2377_v29  ;;  %v7367_v19 = vld [vmem:[#allocation7 + $0x84] ss:$16 sps:$4 sm:$0xff]   ;;  %v7376_v29 = vld [vmem:[#allocation7 + $0x88] ss:$16 sps:$4 sm:$0xff]  }
 0xce7   :  { %v5050_v13 = vpop.eup %5049  ;;  %8692 = vst [vmem:[#allocation63_spill] sm:$0xff] %v7376_v29 }
 0xce8   :  { %5051 = vtanh.f32 %v7294_v14 }
 0xcf5   :  { %v5052_v4 = vpop.eup %5051 }
 0xcf6   :  { %v2381_v1 = vmul.f32 %v5052_v4, %v5050_v13  ;;  %v7379_v13 = vld [vmem:[#allocation7 + $0x64] ss:$16 sps:$4 sm:$0xff]   ;;  %v7382_v4 = vld [vmem:[#allocation7 + $0x6c] ss:$16 sps:$4 sm:$0xff]  }
 0xcf7   :  { %8693 = vst [vmem:[#allocation64_spill] sm:$0xff] %v7379_v13  ;;  %8694 = vst [vmem:[#allocation65_spill] sm:$0xff] %v7382_v4 }
 0xcf8   :  { %2382 = vadd.xlane.f32.xlu0 %v2381_v1 }
 0xd81   :  { %v2383_v53 = vpop.xlane.xlu0 %2382 }
 0xd82   :  { %v2384_v60 = vmul.f32 0.0078125, %v2383_v53  ;;  %v7388_v53 = vld [vmem:[#allocation7 + $0x68] ss:$16 sps:$4 sm:$0xff]  }
 0xd83   :  { %8696 = vst [vmem:[#allocation67_spill] sm:$0xff] %v7388_v53 }
 0xd84   :  { %v2385_v61 = vsub.f32 %v2381_v1, %v2384_v60  ;;  %v7391_v60 = vld [vmem:[#allocation7 + $0x44] ss:$16 sps:$4 sm:$0xff]  }
 0xd85   :  { %8697 = vst [vmem:[#allocation68_spill] sm:$0xff] %v7391_v60 }
 0xd86   :  { %v2386_v23 = vmul.f32 %v2385_v61, %v2385_v61 }
 0xd88   :  { %2387 = vadd.xlane.f32.xlu1 %v2386_v23  ;;  %v7397_v23 = vld [vmem:[#allocation7 + $0x40] ss:$16 sps:$4 sm:$0xff]  }
 0xd89   :  { %8699 = vst [vmem:[#allocation70_spill] sm:$0xff] %v7397_v23 }
 0xe11   :  { %v2388_v25 = vpop.xlane.xlu1 %2387 }
 0xe12   :  { %v2389_v44 = vmul.f32 0.0078125, %v2388_v25  ;;  %v7400_v25 = vld [vmem:[#allocation7 + $0x48] ss:$16 sps:$4 sm:$0xff]  }
 0xe13   :  { %8700 = vst [vmem:[#allocation71_spill] sm:$0xff] %v7400_v25 }
 0xe14   :  { %v2390_v38 = vadd.f32 1e-05, %v2389_v44  ;;  %v7403_v44 = vld [vmem:[#allocation7 + $0x24] ss:$16 sps:$4 sm:$0xff]  }
 0xe15   :  { %8701 = vst [vmem:[#allocation72_spill] sm:$0xff] %v7403_v44 }
 0xe16   :  { %5053 = vrsqrt.f32 %v2390_v38  ;;  %v7406_v38 = vld [vmem:[#allocation7 + $0x2c] ss:$16 sps:$4 sm:$0xff]  }
 0xe17   :  { %8702 = vst [vmem:[#allocation73_spill] sm:$0xff] %v7406_v38 }
 0xe23   :  { %v5054_v41 = vpop.eup %5053 }
 0xe24   :  { %v2392_v43 = vmul.f32 %v5054_v41, %v2385_v61  ;;  %v7394_v61 = vld [vmem:[#allocation7 + $0x4c] ss:$16 sps:$4 sm:$0xff]   ;;  %v7409_v41 = vld [vmem:[#allocation7 + $0x20] ss:$16 sps:$4 sm:$0xff]  }
 0xe25   :  { %8698 = vst [vmem:[#allocation69_spill] sm:$0xff] %v7394_v61  ;;  %8703 = vst [vmem:[#allocation74_spill] sm:$0xff] %v7409_v41 }
 0xe26   :  { %v2393_v7 = vmul.f32 %v6894_v10, %v2392_v43  ;;  %v8688_v10 = vld [vmem:[#allocation36_spill] sm:$0xff]  ;;  %v7412_v43 = vld [vmem:[#allocation7 + $0x28] ss:$16 sps:$4 sm:$0xff]  }
 0xe27   :  { %8704 = vst [vmem:[#allocation75_spill] sm:$0xff] %v7412_v43 }
 0xe28   :  { %v2394_v36 = vadd.f32 %v6900_v63, %v2393_v7  ;;  %v8689_v63 = vld [vmem:[#allocation34_spill] sm:$0xff] }
 0xe29   :  { %v7415_v7 = vld [vmem:[#allocation7 + $0x4] ss:$16 sps:$4 sm:$0xff]  }
 0xe2a   :  { %v2395_v50 = vpack.c.bf16 %v2394_v36, %v2394_v36  ;;  %8705 = vst [vmem:[#allocation37_spill] sm:$0xff] %v7415_v7  ;;  %v7418_v36 = vld [vmem:[#allocation7 + $0xc] ss:$16 sps:$4 sm:$0xff]  }
 0xe2b   :  { %8706 = vst [vmem:[#allocation39_spill] sm:$0xff] %v7418_v36 }
 0xe2c   :  { %2430 = vmatmul.mubr.bf16.vlgmr.msra.gmra.mxu0 %v2395_v50  ;;  %2471 = vmatmul.mubr.bf16.vlgmr.msra.gmra.mxu1 %v2395_v50  ;;  %v7421_v50 = vld [vmem:[#allocation7] ss:$16 sps:$4 sm:$0xff]  }
 0xe2d   :  { %2523 = vmatpush1.bf16.msra.mxu0 %v6906_v0  ;;  %2564 = vmatpush1.bf16.msra.mxu1 %v6912_v52  ;;  %v8690_v0 = vld [vmem:[#allocation60_spill] sm:$0xff]  ;;  %v8691_v52 = vld [vmem:[#allocation61_spill] sm:$0xff]  ;;  %8707 = vst [vmem:[#allocation40_spill] sm:$0xff] %v7421_v50 }
 0xe2e   :  { %2524 = vmatprep.subr.bf16.mxu0 %v6918_v28  ;;  %2565 = vmatprep.subr.bf16.mxu1 %v6924_v49  ;;  %v2521_v28 = vpack.c.bf16 %v2381_v1, %v2381_v1  ;;  %v7331_v49 = vld [vmem:[#allocation7 + $0xe4] ss:$16 sps:$4 sm:$0xff]   ;;  %v7385_v1 = vld [vmem:[#allocation7 + $0x60] ss:$16 sps:$4 sm:$0xff]  }
 0xe2f   :  { %2554 = vmatprep.mubr.bf16.mxu0 %v8417_v17  ;;  %2595 = vmatprep.mubr.bf16.mxu1 %v8417_v17  ;;  %8695 = vst [vmem:[#allocation66_spill] sm:$0xff] %v7385_v1 }
 0xe31   :  { %2525 = vmatpush1.bf16.msra.mxu0 %v6932_v58  ;;  %2566 = vmatpush1.bf16.msra.mxu1 %v6938_v9  ;;  %v7334_v58 = vld [vmem:[#allocation7 + $0xec] ss:$16 sps:$4 sm:$0xff]   ;;  %v7337_v9 = vld [vmem:[#allocation7 + $0xe0] ss:$16 sps:$4 sm:$0xff]  }
 0xe32   :  { %2526 = vmatprep.subr.bf16.mxu0 %v7068_v15  ;;  %2567 = vmatprep.subr.bf16.mxu1 %v7074_v59 }
 0xe35   :  { %2527 = vmatpush1.bf16.msra.mxu0 %v7080_v2  ;;  %2568 = vmatpush1.bf16.msra.mxu1 %v7086_v8 }
 0xe36   :  { %2528 = vmatprep.subr.bf16.mxu0 %v7092_v56  ;;  %2569 = vmatprep.subr.bf16.mxu1 %v7098_v12 }
 0xe39   :  { %2529 = vmatpush1.bf16.msra.mxu0 %v7104_v20  ;;  %2570 = vmatpush1.bf16.msra.mxu1 %v7110_v31 }
 0xe3a   :  { %2530 = vmatprep.subr.bf16.mxu0 %v7116_v37  ;;  %2571 = vmatprep.subr.bf16.mxu1 %v7122_v16 }
 0xe3d   :  { %2531 = vmatpush1.bf16.msra.mxu0 %v7128_v57  ;;  %2572 = vmatpush1.bf16.msra.mxu1 %v7134_v54 }
 0xe3e   :  { %2532 = vmatprep.subr.bf16.mxu0 %v7140_v42  ;;  %2573 = vmatprep.subr.bf16.mxu1 %v7146_v62 }
 0xe41   :  { %2533 = vmatpush1.bf16.msra.mxu0 %v7152_v55  ;;  %2574 = vmatpush1.bf16.msra.mxu1 %v7158_v26 }
 0xe42   :  { %2534 = vmatprep.subr.bf16.mxu0 %v7164_v48  ;;  %2575 = vmatprep.subr.bf16.mxu1 %v8688_v10 }
 0xe45   :  { %2535 = vmatpush1.bf16.msra.mxu0 %v8689_v63  ;;  %2576 = vmatpush1.bf16.msra.mxu1 %v8690_v0 }
 0xe46   :  { %2536 = vmatprep.subr.bf16.mxu0 %v8691_v52  ;;  %2577 = vmatprep.subr.bf16.mxu1 %v7194_v35 }
 0xe49   :  { %2537 = vmatpush1.bf16.msra.mxu0 %v7200_v5  ;;  %2578 = vmatpush1.bf16.msra.mxu1 %v7206_v22 }
 0xe4a   :  { %2647 = vmatprep.subr.bf16.mxu0 %v7331_v49  ;;  %2688 = vmatprep.subr.bf16.mxu1 %v7334_v58 }
 0xe4c   :  { %2555 = vmatmul.mubr.bf16.vlgmr.msra.gmra.mxu0 %v2521_v28  ;;  %2596 = vmatmul.mubr.bf16.vlgmr.msra.gmra.mxu1 %v2521_v28  ;;  %v7424_v28 = vld [vmem:[#allocation7 + $0x8] ss:$16 sps:$4 sm:$0xff]  }
 0xe4d   :  { %2648 = vmatpush1.bf16.msra.mxu0 %v7337_v9  ;;  %2689 = vmatpush1.bf16.msra.mxu1 %v7340_v51  ;;  %8708 = vst [vmem:[#allocation38_spill] sm:$0xff] %v7424_v28 }
 0xe4e   :  { %2649 = vmatprep.subr.bf16.mxu0 %v7343_v33  ;;  %2690 = vmatprep.subr.bf16.mxu1 %v7346_v47 }
 0xe51   :  { %2650 = vmatpush1.bf16.msra.mxu0 %v7349_v30  ;;  %2691 = vmatpush1.bf16.msra.mxu1 %v7352_v34 }
 0xe52   :  { %2651 = vmatprep.subr.bf16.mxu0 %v7355_v39  ;;  %2692 = vmatprep.subr.bf16.mxu1 %v7358_v27 }
 0xe55   :  { %2652 = vmatpush1.bf16.msra.mxu0 %v7361_v11  ;;  %2693 = vmatpush1.bf16.msra.mxu1 %v7364_v24 }
 0xe56   :  { %2653 = vmatprep.subr.bf16.mxu0 %v7367_v19  ;;  %2694 = vmatprep.subr.bf16.mxu1 %v7370_v6 }
 0xe59   :  { %2654 = vmatpush1.bf16.msra.mxu0 %v7373_v18  ;;  %2695 = vmatpush1.bf16.msra.mxu1 %v7376_v29 }
 0xe5a   :  { %2655 = vmatprep.subr.bf16.mxu0 %v7379_v13  ;;  %2696 = vmatprep.subr.bf16.mxu1 %v7382_v4 }
 0xe5d   :  { %2656 = vmatpush1.bf16.msra.mxu0 %v7385_v1  ;;  %2697 = vmatpush1.bf16.msra.mxu1 %v7388_v53 }
 0xe5e   :  { %2657 = vmatprep.subr.bf16.mxu0 %v7391_v60  ;;  %2698 = vmatprep.subr.bf16.mxu1 %v7394_v61 }
 0xe61   :  { %2658 = vmatpush1.bf16.msra.mxu0 %v7397_v23  ;;  %2699 = vmatpush1.bf16.msra.mxu1 %v7400_v25 }
 0xe62   :  { %2659 = vmatprep.subr.bf16.mxu0 %v7403_v44  ;;  %2700 = vmatprep.subr.bf16.mxu1 %v7406_v38 }
 0xe65   :  { %2660 = vmatpush1.bf16.msra.mxu0 %v7409_v41  ;;  %2701 = vmatpush1.bf16.msra.mxu1 %v7412_v43  ;;  %v7430_v43 = vld [vmem:[#allocation7 + $0x1ec] ss:$16 sps:$4 sm:$0xff]  }
 0xe66   :  { %2661 = vmatprep.subr.bf16.mxu0 %v7415_v7  ;;  %2702 = vmatprep.subr.bf16.mxu1 %v7418_v36  ;;  %8710 = vst [vmem:[#allocation77_spill] sm:$0xff] %v7430_v43  ;;  %v7433_v7 = vld [vmem:[#allocation7 + $0x1e0] ss:$16 sps:$4 sm:$0xff]   ;;  %v7436_v36 = vld [vmem:[#allocation7 + $0x1e8] ss:$16 sps:$4 sm:$0xff]  }
 0xe67   :  { %8711 = vst [vmem:[#allocation78_spill] sm:$0xff] %v7433_v7  ;;  %8712 = vst [vmem:[#allocation79_spill] sm:$0xff] %v7436_v36 }
 0xe69   :  { %2662 = vmatpush1.bf16.msra.mxu0 %v7421_v50  ;;  %2703 = vmatpush1.bf16.msra.mxu1 %v7424_v28  ;;  %v7439_v50 = vld [vmem:[#allocation7 + $0x1c4] ss:$16 sps:$4 sm:$0xff]   ;;  %v7442_v28 = vld [vmem:[#allocation7 + $0x1cc] ss:$16 sps:$4 sm:$0xff]  }
 0xe6a   :  { %2663 = vmatprep.subr.bf16.mxu0 %v7427_v46  ;;  %2704 = vmatprep.subr.bf16.mxu1 %v7430_v43  ;;  %8713 = vst [vmem:[#allocation80_spill] sm:$0xff] %v7439_v50  ;;  %8714 = vst [vmem:[#allocation81_spill] sm:$0xff] %v7442_v28  ;;  %v7445_v46 = vld [vmem:[#allocation7 + $0x1c0] ss:$16 sps:$4 sm:$0xff]   ;;  %v7448_v43 = vld [vmem:[#allocation7 + $0x1c8] ss:$16 sps:$4 sm:$0xff]  }
 0xe6b   :  { %8715 = vst [vmem:[#allocation82_spill] sm:$0xff] %v7445_v46  ;;  %8716 = vst [vmem:[#allocation83_spill] sm:$0xff] %v7448_v43 }
 0xe6d   :  { %2664 = vmatpush2.bf16.msra.mxu0 %v7433_v7  ;;  %2705 = vmatpush2.bf16.msra.mxu1 %v7436_v36  ;;  %v7451_v7 = vld [vmem:[#allocation7 + $0x1a4] ss:$16 sps:$4 sm:$0xff]   ;;  %v7454_v36 = vld [vmem:[#allocation7 + $0x1ac] ss:$16 sps:$4 sm:$0xff]  }
 0xe6e   :  { %2665 = vmatprep.subr.bf16.mxu0 %v7439_v50  ;;  %2706 = vmatprep.subr.bf16.mxu1 %v7442_v28  ;;  %8717 = vst [vmem:[#allocation84_spill] sm:$0xff] %v7451_v7  ;;  %8718 = vst [vmem:[#allocation85_spill] sm:$0xff] %v7454_v36  ;;  %v7457_v50 = vld [vmem:[#allocation7 + $0x1a0] ss:$16 sps:$4 sm:$0xff]   ;;  %v7460_v28 = vld [vmem:[#allocation7 + $0x1a8] ss:$16 sps:$4 sm:$0xff]  }
 0xe6f   :  { %8719 = vst [vmem:[#allocation86_spill] sm:$0xff] %v7457_v50  ;;  %8720 = vst [vmem:[#allocation87_spill] sm:$0xff] %v7460_v28 }
 0xe71   :  { %2666 = vmatpush2.bf16.msra.mxu0 %v7445_v46  ;;  %2707 = vmatpush2.bf16.msra.mxu1 %v7448_v43  ;;  %v7463_v46 = vld [vmem:[#allocation7 + $0x184] ss:$16 sps:$4 sm:$0xff]   ;;  %v7466_v43 = vld [vmem:[#allocation7 + $0x18c] ss:$16 sps:$4 sm:$0xff]  }
 0xe72   :  { %2667 = vmatprep.subr.bf16.mxu0 %v7451_v7  ;;  %2708 = vmatprep.subr.bf16.mxu1 %v7454_v36  ;;  %8721 = vst [vmem:[#allocation88_spill] sm:$0xff] %v7463_v46  ;;  %8722 = vst [vmem:[#allocation89_spill] sm:$0xff] %v7466_v43  ;;  %v7469_v7 = vld [vmem:[#allocation7 + $0x180] ss:$16 sps:$4 sm:$0xff]   ;;  %v7472_v36 = vld [vmem:[#allocation7 + $0x188] ss:$16 sps:$4 sm:$0xff]  }
 0xe73   :  { %8723 = vst [vmem:[#allocation90_spill] sm:$0xff] %v7469_v7  ;;  %8724 = vst [vmem:[#allocation91_spill] sm:$0xff] %v7472_v36 }
 0xe75   :  { %2668 = vmatpush2.bf16.msra.mxu0 %v7457_v50  ;;  %2709 = vmatpush2.bf16.msra.mxu1 %v7460_v28  ;;  %v7475_v50 = vld [vmem:[#allocation7 + $0x164] ss:$16 sps:$4 sm:$0xff]   ;;  %v7478_v28 = vld [vmem:[#allocation7 + $0x16c] ss:$16 sps:$4 sm:$0xff]  }
 0xe76   :  { %2669 = vmatprep.subr.bf16.mxu0 %v7463_v46  ;;  %2710 = vmatprep.subr.bf16.mxu1 %v7466_v43  ;;  %8725 = vst [vmem:[#allocation29_spill] sm:$0xff] %v7475_v50  ;;  %8726 = vst [vmem:[#allocation31_spill] sm:$0xff] %v7478_v28  ;;  %v7481_v46 = vld [vmem:[#allocation7 + $0x160] ss:$16 sps:$4 sm:$0xff]   ;;  %v7484_v43 = vld [vmem:[#allocation7 + $0x168] ss:$16 sps:$4 sm:$0xff]  }
 0xe77   :  { %8727 = vst [vmem:[#allocation32_spill] sm:$0xff] %v7481_v46  ;;  %8728 = vst [vmem:[#allocation30_spill] sm:$0xff] %v7484_v43 }
 0xe79   :  { %2670 = vmatpush2.bf16.msra.mxu0 %v7469_v7  ;;  %2711 = vmatpush2.bf16.msra.mxu1 %v7472_v36  ;;  %v7487_v7 = vld [vmem:[#allocation7 + $0x144] ss:$16 sps:$4 sm:$0xff]   ;;  %v7490_v36 = vld [vmem:[#allocation7 + $0x14c] ss:$16 sps:$4 sm:$0xff]  }
 0xe7a   :  { %2671 = vmatprep.subr.bf16.mxu0 %v7475_v50  ;;  %2712 = vmatprep.subr.bf16.mxu1 %v7478_v28  ;;  %8729 = vst [vmem:[#allocation21_spill] sm:$0xff] %v7487_v7  ;;  %8730 = vst [vmem:[#allocation25_spill] sm:$0xff] %v7490_v36  ;;  %v7493_v50 = vld [vmem:[#allocation7 + $0x140] ss:$16 sps:$4 sm:$0xff]   ;;  %v7496_v28 = vld [vmem:[#allocation7 + $0x148] ss:$16 sps:$4 sm:$0xff]  }
 0xe7b   :  { %8731 = vst [vmem:[#allocation27_spill] sm:$0xff] %v7493_v50  ;;  %8732 = vst [vmem:[#allocation28_spill] sm:$0xff] %v7496_v28 }
 0xe7d   :  { %2672 = vmatpush2.bf16.msra.mxu0 %v7481_v46  ;;  %2713 = vmatpush2.bf16.msra.mxu1 %v7484_v43  ;;  %v7499_v46 = vld [vmem:[#allocation7 + $0x124] ss:$16 sps:$4 sm:$0xff]   ;;  %v7502_v43 = vld [vmem:[#allocation7 + $0x12c] ss:$16 sps:$4 sm:$0xff]  }
 0xe7e   :  { %2673 = vmatprep.subr.bf16.mxu0 %v7487_v7  ;;  %2714 = vmatprep.subr.bf16.mxu1 %v7490_v36  ;;  %8733 = vst [vmem:[#allocation26_spill] sm:$0xff] %v7499_v46  ;;  %8734 = vst [vmem:[#allocation53_spill] sm:$0xff] %v7502_v43  ;;  %v7505_v7 = vld [vmem:[#allocation7 + $0x120] ss:$16 sps:$4 sm:$0xff]   ;;  %v7508_v36 = vld [vmem:[#allocation7 + $0x128] ss:$16 sps:$4 sm:$0xff]  }
 0xe7f   :  { %8735 = vst [vmem:[#allocation92_spill] sm:$0xff] %v7505_v7  ;;  %8736 = vst [vmem:[#allocation93_spill] sm:$0xff] %v7508_v36 }
 0xe81   :  { %2674 = vmatpush2.bf16.msra.mxu0 %v7493_v50  ;;  %2715 = vmatpush2.bf16.msra.mxu1 %v7496_v28  ;;  %v7511_v50 = vld [vmem:[#allocation7 + $0x104] ss:$16 sps:$4 sm:$0xff]   ;;  %v7514_v28 = vld [vmem:[#allocation7 + $0x10c] ss:$16 sps:$4 sm:$0xff]  }
 0xe82   :  { %2675 = vmatprep.subr.bf16.mxu0 %v7499_v46  ;;  %2716 = vmatprep.subr.bf16.mxu1 %v7502_v43  ;;  %8737 = vst [vmem:[#allocation94_spill] sm:$0xff] %v7511_v50  ;;  %8738 = vst [vmem:[#allocation95_spill] sm:$0xff] %v7514_v28  ;;  %v7517_v46 = vld [vmem:[#allocation7 + $0x100] ss:$16 sps:$4 sm:$0xff]   ;;  %v7520_v43 = vld [vmem:[#allocation7 + $0x108] ss:$16 sps:$4 sm:$0xff]  }
 0xe83   :  { %8739 = vst [vmem:[#allocation96_spill] sm:$0xff] %v7517_v46  ;;  %8740 = vst [vmem:[#allocation97_spill] sm:$0xff] %v7520_v43 }
 0xe85   :  { %2676 = vmatpush2.bf16.msra.mxu0 %v7505_v7  ;;  %2717 = vmatpush2.bf16.msra.mxu1 %v7508_v36  ;;  %v5367_v36 = vld [vmem:[%s8344_s30 + $0xe4] ss:$16 sps:$4 sm:$0xff]  }
 0xe86   :  { %2677 = vmatprep.subr.bf16.mxu0 %v7511_v50  ;;  %2718 = vmatprep.subr.bf16.mxu1 %v7514_v28  ;;  %v5368_v50 = vld [vmem:[%s8344_s30 + $0xec] ss:$16 sps:$4 sm:$0xff]  }
 0xe89   :  { %2678 = vmatpush2.bf16.msra.mxu0 %v7517_v46  ;;  %2719 = vmatpush2.bf16.msra.mxu1 %v7520_v43 }
 0xe8a   :  { %2772 = vmatprep.subr.bf16.mxu0 %v5367_v36  ;;  %2813 = vmatprep.subr.bf16.mxu1 %v5368_v50 }
 0xeec   :  { %v2431_v7 = vpop.f32.mrf.mxu0  ;;  %v2472_v28 = vpop.f32.mrf.mxu1 }
 0xeed   :  { %v2432_v41 = vadd.f32 %v2431_v7, %v8679_v32  ;;  %v2473_v4 = vadd.f32 %v2472_v28, %v8682_v45 }
 0xeee   :  { %v2433_v38 = vpop.f32.mrf.mxu0  ;;  %v2474_v46 = vpop.f32.mrf.mxu1 }
 0xeef   :  { %v4421_v44 = vmul.f32 -1.442695, %v2432_v41  ;;  %v2434_v25 = vadd.f32 %v2433_v38, %v8680_v3  ;;  %v2475_v53 = vadd.f32 %v2474_v46, %v8681_v40  ;;  %v8742_v40 = vld [vmem:[#allocation47_spill] sm:$0xff] }
 0xef0   :  { %v2435_v43 = vpop.f32.mrf.mxu0  ;;  %v2476_v23 = vpop.f32.mrf.mxu1 }
 0xef1   :  { %5055 = vpow2.f32 %v4421_v44  ;;  %v4422_v61 = vmul.f32 -1.442695, %v2434_v25  ;;  %v4423_v1 = vmul.f32 -1.442695, %v2475_v53  ;;  %v8741_v25 = vld [vmem:[#allocation45_spill] sm:$0xff] }
 0xef2   :  { %v2436_v60 = vpop.f32.mrf.mxu0  ;;  %v2477_v36 = vpop.f32.mrf.mxu1 }
 0xef3   :  { %5057 = vpow2.f32 %v4422_v61 }
 0xef4   :  { %5059 = vpow2.f32 %v4423_v1 }
 0xefe   :  { %v5056_v50 = vpop.eup %5055 }
 0xeff   :  { %v2482_v13 = vadd.f32 1.0, %v5056_v50 }
 0xf00   :  { %v5058_v7 = vpop.eup %5057 }
 0xf01   :  { %5061 = vrcp.f32 %v2482_v13  ;;  %v2488_v41 = vadd.f32 1.0, %v5058_v7  ;;  %v5060_v44 = vpop.eup %5059 }
 0xf02   :  { %5063 = vtanh.f32 %v2473_v4  ;;  %v2495_v50 = vadd.f32 1.0, %v5060_v44 }
 0xf03   :  { %5065 = vrcp.f32 %v2488_v41 }
 0xf0c   :  { %v2556_v38 = vpop.f32.mrf.mxu0  ;;  %v2597_v23 = vpop.f32.mrf.mxu1 }
 0xf0d   :  { %v2604_v60 = vadd.f32 %v2556_v38, %v8741_v25  ;;  %v8743_v38 = vld [vmem:[#allocation48_spill] sm:$0xff] }
 0xf0e   :  { %v5062_v43 = vpop.eup %5061  ;;  %v2558_v61 = vpop.f32.mrf.mxu0 }
 0xf0f   :  { %v2599_v36 = vpop.f32.mrf.mxu1  ;;  %v5064_v46 = vpop.eup %5063  ;;  %v4424_v53 = vmul.f32 -1.442695, %v2604_v60  ;;  %v2605_v3 = vadd.f32 %v2558_v61, %v8742_v40  ;;  %v8744_v40 = vld [vmem:[#allocation46_spill] sm:$0xff] }
 0xf10   :  { %v5066_v28 = vpop.eup %5065  ;;  %v2560_v45 = vpop.f32.mrf.mxu0  ;;  %v2499_v13 = vmul.f32 %v5064_v46, %v5062_v43  ;;  %v2607_v25 = vadd.f32 %v2599_v36, %v8743_v38  ;;  %v2606_v60 = vadd.f32 %v2597_v23, %v8744_v40 }
 0xf11   :  { %v2601_v1 = vpop.f32.mrf.mxu1  ;;  %v2498_v4 = vmul.f32 %v5066_v28, %v7284_v21  ;;  %5067 = vpow2.f32 %v4424_v53  ;;  %v4425_v7 = vmul.f32 -1.442695, %v2605_v3 }
 0xf12   :  { %v2561_v41 = vpop.f32.mrf.mxu0  ;;  %v4426_v44 = vmul.f32 -1.442695, %v2607_v25 }
 0xf13   :  { %v2602_v32 = vpop.f32.mrf.mxu1  ;;  %v7536_v29 = vadd.f32 %v2499_v13, %v2498_v4  ;;  %5069 = vpow2.f32 %v4425_v7 }
 0xf14   :  { %5071 = vrcp.f32 %v2495_v50 }
 0xf15   :  { %5073 = vtanh.f32 %v7536_v29 }
 0xf16   :  { %5075 = vtanh.f32 %v2606_v60 }
 0xf17   :  { %5077 = vpow2.f32 %v4426_v44 }
 0xf1e   :  { %v5068_v45 = vpop.eup %5067 }
 0xf1f   :  { %v2611_v61 = vadd.f32 1.0, %v5068_v45 }
 0xf20   :  { %v5070_v43 = vpop.eup %5069 }
 0xf21   :  { %v5072_v21 = vpop.eup %5071  ;;  %5079 = vrcp.f32 %v2611_v61  ;;  %v2617_v3 = vadd.f32 1.0, %v5070_v43 }
 0xf22   :  { %v5074_v32 = vpop.eup %5073 }
 0xf23   :  { %5081 = vrcp.f32 %v2617_v3  ;;  %v7541_v46 = vmul.f32 %v5074_v32, %v5072_v21  ;;  %v5076_v36 = vpop.eup %5075  ;;  %v7552_v32 = vld [vmem:[%s8036_s6] ss:$0 sm:$0xff] }
 0xf24   :  { %v5078_v23 = vpop.eup %5077 }
 0xf25   :  { %v2646_v53 = vpack.c.bf16 %v7541_v46, %v7541_v46  ;;  %v2624_v13 = vadd.f32 1.0, %v5078_v23 }
 0xf27   :  { %2679 = vmatprep.mubr.bf16.mxu0 %v2646_v53  ;;  %2720 = vmatprep.mubr.bf16.mxu1 %v2646_v53  ;;  %5083 = vrcp.f32 %v2624_v13  ;;  %v5373_v13 = vld [vmem:[%s8344_s30 + $0xc4] ss:$16 sps:$4 sm:$0xff]  }
 0xf2e   :  { %v5080_v28 = vpop.eup %5079 }
 0xf2f   :  { %v2628_v50 = vmul.f32 %v5080_v28, %v5076_v36  ;;  %v7558_v36 = vld [vmem:[%s8037_s7] ss:$0 sm:$0xff] }
 0xf30   :  { %v5082_v1 = vpop.eup %5081 }
 0xf31   :  { %v2627_v4 = vmul.f32 %v5082_v1, %v7294_v14  ;;  %v5372_v1 = vld [vmem:[%s8344_s30 + $0xe8] ss:$16 sps:$4 sm:$0xff]  }
 0xf33   :  { %v7546_v7 = vadd.f32 %v2628_v50, %v2627_v4  ;;  %v5371_v50 = vld [vmem:[%s8344_s30 + $0xe0] ss:$16 sps:$4 sm:$0xff]   ;;  %v5374_v4 = vld [vmem:[%s8344_s30 + $0xcc] ss:$16 sps:$4 sm:$0xff]  }
 0xf34   :  { %v5084_v41 = vpop.eup %5083 }
 0xf35   :  { %5085 = vtanh.f32 %v7546_v7 }
 0xf42   :  { %v5086_v38 = vpop.eup %5085 }
 0xf43   :  { %v2631_v25 = vmul.f32 %v5086_v38, %v5084_v41  ;;  %v5375_v41 = vld [vmem:[%s8344_s30 + $0xc0] ss:$16 sps:$4 sm:$0xff]   ;;  %v5376_v38 = vld [vmem:[%s8344_s30 + $0xc8] ss:$16 sps:$4 sm:$0xff]  }
 0xf45   :  { %2632 = vadd.xlane.f32.xlu0 %v2631_v25 }
 0xfce   :  { %v2633_v40 = vpop.xlane.xlu0 %2632 }
 0xfcf   :  { %v2634_v60 = vmul.f32 0.0078125, %v2633_v40  ;;  %v8784_v40 = vld [vmem:[#allocation27_spill] sm:$0xff] }
 0xfd1   :  { %v2635_v44 = vsub.f32 %v2631_v25, %v2634_v60  ;;  %v8785_v60 = vld [vmem:[#allocation28_spill] sm:$0xff] }
 0xfd3   :  { %v2636_v45 = vmul.f32 %v2635_v44, %v2635_v44 }
 0xfd5   :  { %2637 = vadd.xlane.f32.xlu1 %v2636_v45  ;;  %v8787_v45 = vld [vmem:[#allocation53_spill] sm:$0xff] }
0x105e   :  { %v2638_v61 = vpop.xlane.xlu1 %2637 }
0x105f   :  { %v2639_v43 = vmul.f32 0.0078125, %v2638_v61  ;;  %v8788_v61 = vld [vmem:[#allocation92_spill] sm:$0xff] }
0x1061   :  { %v2640_v21 = vadd.f32 1e-05, %v2639_v43  ;;  %v8789_v43 = vld [vmem:[#allocation93_spill] sm:$0xff] }
0x1063   :  { %5087 = vrsqrt.f32 %v2640_v21  ;;  %v8790_v21 = vld [vmem:[#allocation94_spill] sm:$0xff] }
0x1070   :  { %v5088_v3 = vpop.eup %5087 }
0x1071   :  { %v2642_v14 = vmul.f32 %v5088_v3, %v2635_v44  ;;  %v8786_v44 = vld [vmem:[#allocation26_spill] sm:$0xff]  ;;  %v8791_v3 = vld [vmem:[#allocation95_spill] sm:$0xff] }
0x1073   :  { %v2643_v53 = vmul.f32 %v7552_v32, %v2642_v14  ;;  %v8792_v14 = vld [vmem:[#allocation96_spill] sm:$0xff] }
0x1075   :  { %v2644_v23 = vadd.f32 %v7558_v36, %v2643_v53  ;;  %v8793_v53 = vld [vmem:[#allocation97_spill] sm:$0xff] }
0x1077   :  { %v2645_v28 = vpack.c.bf16 %v2644_v23, %v2644_v23 }
0x1079   :  { %2680 = vmatmul.mubr.bf16.vlgmr.msra.gmra.mxu0 %v2645_v28  ;;  %2721 = vmatmul.mubr.bf16.vlgmr.msra.gmra.mxu1 %v2645_v28 }
0x107a   :  { %2773 = vmatpush1.bf16.msra.mxu0 %v5371_v50  ;;  %2814 = vmatpush1.bf16.msra.mxu1 %v5372_v1  ;;  %v8794_v50 = vld [vmem:[#allocation54_spill] sm:$0xff] }
0x107b   :  { %2774 = vmatprep.subr.bf16.mxu0 %v5373_v13  ;;  %2815 = vmatprep.subr.bf16.mxu1 %v5374_v4 }
0x107c   :  { %2804 = vmatprep.mubr.bf16.mxu0 %v8417_v17  ;;  %2845 = vmatprep.mubr.bf16.mxu1 %v8417_v17 }
0x107e   :  { %2775 = vmatpush1.bf16.msra.mxu0 %v5375_v41  ;;  %2816 = vmatpush1.bf16.msra.mxu1 %v5376_v38  ;;  %v8795_v38 = vld [vmem:[#allocation55_spill] sm:$0xff] }
0x107f   :  { %2776 = vmatprep.subr.bf16.mxu0 %v7068_v15  ;;  %2817 = vmatprep.subr.bf16.mxu1 %v7074_v59  ;;  %v2771_v15 = vpack.c.bf16 %v2631_v25, %v2631_v25  ;;  %v8745_v59 = vld [vmem:[#allocation63_spill] sm:$0xff]  ;;  %v8783_v25 = vld [vmem:[#allocation25_spill] sm:$0xff] }
0x1082   :  { %2777 = vmatpush1.bf16.msra.mxu0 %v7080_v2  ;;  %2818 = vmatpush1.bf16.msra.mxu1 %v7086_v8  ;;  %v8746_v2 = vld [vmem:[#allocation64_spill] sm:$0xff]  ;;  %v8747_v8 = vld [vmem:[#allocation65_spill] sm:$0xff] }
0x1083   :  { %2778 = vmatprep.subr.bf16.mxu0 %v7092_v56  ;;  %2819 = vmatprep.subr.bf16.mxu1 %v7098_v12  ;;  %v8748_v56 = vld [vmem:[#allocation66_spill] sm:$0xff]  ;;  %v8749_v12 = vld [vmem:[#allocation67_spill] sm:$0xff] }
0x1086   :  { %2779 = vmatpush1.bf16.msra.mxu0 %v7104_v20  ;;  %2820 = vmatpush1.bf16.msra.mxu1 %v7110_v31  ;;  %v8750_v20 = vld [vmem:[#allocation68_spill] sm:$0xff]  ;;  %v8751_v31 = vld [vmem:[#allocation69_spill] sm:$0xff] }
0x1087   :  { %2780 = vmatprep.subr.bf16.mxu0 %v7116_v37  ;;  %2821 = vmatprep.subr.bf16.mxu1 %v7122_v16  ;;  %v8752_v37 = vld [vmem:[#allocation70_spill] sm:$0xff]  ;;  %v8753_v16 = vld [vmem:[#allocation71_spill] sm:$0xff] }
0x108a   :  { %2781 = vmatpush1.bf16.msra.mxu0 %v7128_v57  ;;  %2822 = vmatpush1.bf16.msra.mxu1 %v7134_v54  ;;  %v8754_v57 = vld [vmem:[#allocation72_spill] sm:$0xff]  ;;  %v8755_v54 = vld [vmem:[#allocation73_spill] sm:$0xff] }
0x108b   :  { %2782 = vmatprep.subr.bf16.mxu0 %v7140_v42  ;;  %2823 = vmatprep.subr.bf16.mxu1 %v7146_v62  ;;  %v8756_v42 = vld [vmem:[#allocation74_spill] sm:$0xff]  ;;  %v8757_v62 = vld [vmem:[#allocation75_spill] sm:$0xff] }
0x108e   :  { %2783 = vmatpush1.bf16.msra.mxu0 %v7152_v55  ;;  %2824 = vmatpush1.bf16.msra.mxu1 %v7158_v26  ;;  %v8758_v55 = vld [vmem:[#allocation37_spill] sm:$0xff]  ;;  %v8759_v26 = vld [vmem:[#allocation39_spill] sm:$0xff] }
0x108f   :  { %2784 = vmatprep.subr.bf16.mxu0 %v7164_v48  ;;  %2825 = vmatprep.subr.bf16.mxu1 %v8688_v10  ;;  %v8760_v48 = vld [vmem:[#allocation40_spill] sm:$0xff]  ;;  %v8764_v10 = vld [vmem:[#allocation78_spill] sm:$0xff] }
0x1092   :  { %2785 = vmatpush1.bf16.msra.mxu0 %v8689_v63  ;;  %2826 = vmatpush1.bf16.msra.mxu1 %v8690_v0  ;;  %v8765_v63 = vld [vmem:[#allocation79_spill] sm:$0xff]  ;;  %v8766_v0 = vld [vmem:[#allocation80_spill] sm:$0xff] }
0x1093   :  { %2786 = vmatprep.subr.bf16.mxu0 %v8691_v52  ;;  %2827 = vmatprep.subr.bf16.mxu1 %v7194_v35  ;;  %v8761_v35 = vld [vmem:[#allocation38_spill] sm:$0xff]  ;;  %v8767_v52 = vld [vmem:[#allocation81_spill] sm:$0xff] }
0x1096   :  { %2787 = vmatpush1.bf16.msra.mxu0 %v7200_v5  ;;  %2828 = vmatpush1.bf16.msra.mxu1 %v7206_v22  ;;  %v8762_v5 = vld [vmem:[#allocation76_spill] sm:$0xff]  ;;  %v8763_v22 = vld [vmem:[#allocation77_spill] sm:$0xff] }
0x1097   :  { %2897 = vmatprep.subr.bf16.mxu0 %v7331_v49  ;;  %2938 = vmatprep.subr.bf16.mxu1 %v7334_v58  ;;  %v8768_v49 = vld [vmem:[#allocation82_spill] sm:$0xff]  ;;  %v8769_v58 = vld [vmem:[#allocation83_spill] sm:$0xff] }
0x1099   :  { %2805 = vmatmul.mubr.bf16.vlgmr.msra.gmra.mxu0 %v2771_v15  ;;  %2846 = vmatmul.mubr.bf16.vlgmr.msra.gmra.mxu1 %v2771_v15 }
0x109a   :  { %2898 = vmatpush1.bf16.msra.mxu0 %v7337_v9  ;;  %2939 = vmatpush1.bf16.msra.mxu1 %v7340_v51  ;;  %v8770_v9 = vld [vmem:[#allocation84_spill] sm:$0xff]  ;;  %v8771_v51 = vld [vmem:[#allocation85_spill] sm:$0xff] }
0x109b   :  { %2899 = vmatprep.subr.bf16.mxu0 %v7343_v33  ;;  %2940 = vmatprep.subr.bf16.mxu1 %v7346_v47  ;;  %v8772_v33 = vld [vmem:[#allocation86_spill] sm:$0xff]  ;;  %v8773_v47 = vld [vmem:[#allocation87_spill] sm:$0xff] }
0x109e   :  { %2900 = vmatpush1.bf16.msra.mxu0 %v7349_v30  ;;  %2941 = vmatpush1.bf16.msra.mxu1 %v7352_v34  ;;  %v8774_v30 = vld [vmem:[#allocation88_spill] sm:$0xff]  ;;  %v8775_v34 = vld [vmem:[#allocation89_spill] sm:$0xff] }
0x109f   :  { %2901 = vmatprep.subr.bf16.mxu0 %v7355_v39  ;;  %2942 = vmatprep.subr.bf16.mxu1 %v7358_v27  ;;  %v8776_v39 = vld [vmem:[#allocation90_spill] sm:$0xff]  ;;  %v8777_v27 = vld [vmem:[#allocation91_spill] sm:$0xff] }
0x10a2   :  { %2902 = vmatpush1.bf16.msra.mxu0 %v7361_v11  ;;  %2943 = vmatpush1.bf16.msra.mxu1 %v7364_v24  ;;  %v8778_v11 = vld [vmem:[#allocation29_spill] sm:$0xff]  ;;  %v8779_v24 = vld [vmem:[#allocation31_spill] sm:$0xff] }
0x10a3   :  { %2903 = vmatprep.subr.bf16.mxu0 %v7367_v19  ;;  %2944 = vmatprep.subr.bf16.mxu1 %v7370_v6  ;;  %v8780_v19 = vld [vmem:[#allocation32_spill] sm:$0xff]  ;;  %v8781_v6 = vld [vmem:[#allocation30_spill] sm:$0xff] }
0x10a6   :  { %2904 = vmatpush1.bf16.msra.mxu0 %v7373_v18  ;;  %2945 = vmatpush1.bf16.msra.mxu1 %v8745_v59  ;;  %v8782_v18 = vld [vmem:[#allocation21_spill] sm:$0xff] }
0x10a7   :  { %2905 = vmatprep.subr.bf16.mxu0 %v8746_v2  ;;  %2946 = vmatprep.subr.bf16.mxu1 %v8747_v8 }
0x10aa   :  { %2906 = vmatpush1.bf16.msra.mxu0 %v8748_v56  ;;  %2947 = vmatpush1.bf16.msra.mxu1 %v8749_v12 }
0x10ab   :  { %2907 = vmatprep.subr.bf16.mxu0 %v8750_v20  ;;  %2948 = vmatprep.subr.bf16.mxu1 %v8751_v31  ;;  %v8796_v20 = vld [vmem:[#allocation56_spill] sm:$0xff] }
0x10ae   :  { %2908 = vmatpush1.bf16.msra.mxu0 %v8752_v37  ;;  %2949 = vmatpush1.bf16.msra.mxu1 %v8753_v16 }
0x10af   :  { %2909 = vmatprep.subr.bf16.mxu0 %v8754_v57  ;;  %2950 = vmatprep.subr.bf16.mxu1 %v8755_v54  ;;  %v8797_v57 = vld [vmem:[#allocation57_spill] sm:$0xff] }
0x10b2   :  { %2910 = vmatpush1.bf16.msra.mxu0 %v8756_v42  ;;  %2951 = vmatpush1.bf16.msra.mxu1 %v8757_v62 }
0x10b3   :  { %2911 = vmatprep.subr.bf16.mxu0 %v8758_v55  ;;  %2952 = vmatprep.subr.bf16.mxu1 %v8759_v26 }
0x10b6   :  { %2912 = vmatpush1.bf16.msra.mxu0 %v8760_v48  ;;  %2953 = vmatpush1.bf16.msra.mxu1 %v8761_v35 }
0x10b7   :  { %2913 = vmatprep.subr.bf16.mxu0 %v8762_v5  ;;  %2954 = vmatprep.subr.bf16.mxu1 %v8763_v22  ;;  %v8798_v5 = vld [vmem:[#allocation49_spill] sm:$0xff] }
0x10ba   :  { %2914 = vmatpush2.bf16.msra.mxu0 %v8764_v10  ;;  %2955 = vmatpush2.bf16.msra.mxu1 %v8765_v63 }
0x10bb   :  { %2915 = vmatprep.subr.bf16.mxu0 %v8766_v0  ;;  %2956 = vmatprep.subr.bf16.mxu1 %v8767_v52 }
0x10be   :  { %2916 = vmatpush2.bf16.msra.mxu0 %v8768_v49  ;;  %2957 = vmatpush2.bf16.msra.mxu1 %v8769_v58  ;;  %v8799_v58 = vld [vmem:[#allocation51_spill] sm:$0xff] }
0x10bf   :  { %2917 = vmatprep.subr.bf16.mxu0 %v8770_v9  ;;  %2958 = vmatprep.subr.bf16.mxu1 %v8771_v51 }
0x10c2   :  { %2918 = vmatpush2.bf16.msra.mxu0 %v8772_v33  ;;  %2959 = vmatpush2.bf16.msra.mxu1 %v8773_v47 }
0x10c3   :  { %2919 = vmatprep.subr.bf16.mxu0 %v8774_v30  ;;  %2960 = vmatprep.subr.bf16.mxu1 %v8775_v34 }
0x10c6   :  { %2920 = vmatpush2.bf16.msra.mxu0 %v8776_v39  ;;  %2961 = vmatpush2.bf16.msra.mxu1 %v8777_v27 }
0x10c7   :  { %2921 = vmatprep.subr.bf16.mxu0 %v8778_v11  ;;  %2962 = vmatprep.subr.bf16.mxu1 %v8779_v24 }
0x10ca   :  { %2922 = vmatpush2.bf16.msra.mxu0 %v8780_v19  ;;  %2963 = vmatpush2.bf16.msra.mxu1 %v8781_v6  ;;  %v8800_v6 = vld [vmem:[#allocation52_spill] sm:$0xff] }
0x10cb   :  { %2923 = vmatprep.subr.bf16.mxu0 %v8782_v18  ;;  %2964 = vmatprep.subr.bf16.mxu1 %v8783_v25  ;;  %v8801_v25 = vld [vmem:[#allocation50_spill] sm:$0xff] }
0x10ce   :  { %2924 = vmatpush2.bf16.msra.mxu0 %v8784_v40  ;;  %2965 = vmatpush2.bf16.msra.mxu1 %v8785_v60 }
0x10cf   :  { %2925 = vmatprep.subr.bf16.mxu0 %v8786_v44  ;;  %2966 = vmatprep.subr.bf16.mxu1 %v8787_v45 }
0x10d2   :  { %2926 = vmatpush2.bf16.msra.mxu0 %v8788_v61  ;;  %2967 = vmatpush2.bf16.msra.mxu1 %v8789_v43 }
0x10d3   :  { %2927 = vmatprep.subr.bf16.mxu0 %v8790_v21  ;;  %2968 = vmatprep.subr.bf16.mxu1 %v8791_v3 }
0x10d6   :  { %2928 = vmatpush2.bf16.msra.mxu0 %v8792_v14  ;;  %2969 = vmatpush2.bf16.msra.mxu1 %v8793_v53 }
0x1139   :  { %v2681_v23 = vpop.f32.mrf.mxu0  ;;  %v2722_v28 = vpop.f32.mrf.mxu1 }
0x113a   :  { %v2682_v1 = vadd.f32 %v2681_v23, %v8794_v50  ;;  %v2723_v54 = vadd.f32 %v2722_v28, %v8797_v57 }
0x113b   :  { %v2683_v13 = vpop.f32.mrf.mxu0  ;;  %v2724_v4 = vpop.f32.mrf.mxu1 }
0x113c   :  { %v4427_v41 = vmul.f32 -1.442695, %v2682_v1  ;;  %v2684_v15 = vadd.f32 %v2683_v13, %v8795_v38  ;;  %v2725_v31 = vadd.f32 %v2724_v4, %v8796_v20 }
0x113d   :  { %v2685_v59 = vpop.f32.mrf.mxu0  ;;  %v2726_v2 = vpop.f32.mrf.mxu1 }
0x113e   :  { %5089 = vpow2.f32 %v4427_v41  ;;  %v4428_v8 = vmul.f32 -1.442695, %v2684_v15  ;;  %v4429_v37 = vmul.f32 -1.442695, %v2725_v31  ;;  %v8804_v31 = vld [vmem:[#allocation62_spill] sm:$0xff] }
0x113f   :  { %v2686_v56 = vpop.f32.mrf.mxu0  ;;  %v2727_v12 = vpop.f32.mrf.mxu1 }
0x1140   :  { %5091 = vpow2.f32 %v4428_v8  ;;  %v8802_v56 = vld [vmem:[#allocation58_spill] sm:$0xff]  ;;  %v8803_v12 = vld [vmem:[#allocation33_spill] sm:$0xff] }
0x1141   :  { %5093 = vpow2.f32 %v4429_v37 }
0x114b   :  { %v5090_v16 = vpop.eup %5089 }
0x114c   :  { %v2732_v42 = vadd.f32 1.0, %v5090_v16 }
0x114d   :  { %v5092_v62 = vpop.eup %5091 }
0x114e   :  { %5095 = vrcp.f32 %v2732_v42  ;;  %v2738_v55 = vadd.f32 1.0, %v5092_v62  ;;  %v5094_v35 = vpop.eup %5093 }
0x114f   :  { %5097 = vtanh.f32 %v2723_v54  ;;  %v2745_v33 = vadd.f32 1.0, %v5094_v35 }
0x1150   :  { %5099 = vrcp.f32 %v2738_v55 }
0x1159   :  { %v2806_v26 = vpop.f32.mrf.mxu0  ;;  %v2847_v48 = vpop.f32.mrf.mxu1 }
0x115a   :  { %v2854_v22 = vadd.f32 %v2806_v26, %v8798_v5  ;;  %v2856_v40 = vadd.f32 %v2847_v48, %v8801_v25  ;;  %v4813_v25 = vld [vmem:[#allocation12 + $0xa8] ss:$12 sps:$4 sm:$0xff]  }
0x115b   :  { %v5096_v10 = vpop.eup %5095  ;;  %v2808_v63 = vpop.f32.mrf.mxu0 }
0x115c   :  { %v2849_v0 = vpop.f32.mrf.mxu1  ;;  %v5098_v52 = vpop.eup %5097  ;;  %v4430_v49 = vmul.f32 -1.442695, %v2854_v22  ;;  %v2855_v9 = vadd.f32 %v2808_v63, %v8799_v58  ;;  %v8805_v22 = vld [vmem:[#allocation59_spill] sm:$0xff] }
0x115d   :  { %v5100_v51 = vpop.eup %5099  ;;  %v2810_v47 = vpop.f32.mrf.mxu0  ;;  %v2749_v34 = vmul.f32 %v5098_v52, %v5096_v10  ;;  %v2857_v18 = vadd.f32 %v2849_v0, %v8800_v6 }
0x115e   :  { %v2851_v30 = vpop.f32.mrf.mxu1  ;;  %v2748_v39 = vmul.f32 %v5100_v51, %v7536_v29  ;;  %5101 = vpow2.f32 %v4430_v49  ;;  %v4431_v27 = vmul.f32 -1.442695, %v2855_v9  ;;  %v8806_v49 = vld [vmem:[#allocation35_spill] sm:$0xff] }
0x115f   :  { %v2811_v11 = vpop.f32.mrf.mxu0  ;;  %v4432_v60 = vmul.f32 -1.442695, %v2857_v18 }
0x1160   :  { %v2852_v24 = vpop.f32.mrf.mxu1  ;;  %v7676_v19 = vadd.f32 %v2749_v34, %v2748_v39  ;;  %5103 = vpow2.f32 %v4431_v27 }
0x1161   :  { %5105 = vrcp.f32 %v2745_v33 }
0x1162   :  { %5107 = vtanh.f32 %v7676_v19 }
0x1163   :  { %5109 = vtanh.f32 %v2856_v40  ;;  %v4815_v40 = vld [vmem:[#allocation12 + $0xac] ss:$12 sps:$4 sm:$0xff]  }
0x1164   :  { %5111 = vpow2.f32 %v4432_v60  ;;  %3206 = vmatprep.subr.bf16.mxu0 %v4815_v40  ;;  %v4839_v40 = vld [vmem:[#allocation12 + $0x38] ss:$12 sps:$4 sm:$0xff]  }
0x116b   :  { %v5102_v44 = vpop.eup %5101 }
0x116c   :  { %v2861_v45 = vadd.f32 1.0, %v5102_v44 }
0x116d   :  { %v5104_v61 = vpop.eup %5103 }
0x116e   :  { %v5106_v29 = vpop.eup %5105  ;;  %5113 = vrcp.f32 %v2861_v45  ;;  %v2867_v43 = vadd.f32 1.0, %v5104_v61 }
0x116f   :  { %v5108_v21 = vpop.eup %5107 }
0x1170   :  { %5115 = vrcp.f32 %v2867_v43  ;;  %v2752_v3 = vmul.f32 %v5108_v21, %v5106_v29  ;;  %v5110_v53 = vpop.eup %5109 }
0x1171   :  { %v5112_v23 = vpop.eup %5111 }
0x1172   :  { %v2896_v14 = vpack.c.bf16 %v2752_v3, %v2752_v3  ;;  %v2874_v4 = vadd.f32 1.0, %v5112_v23 }
0x1174   :  { %2929 = vmatprep.mubr.bf16.mxu0 %v2896_v14  ;;  %2970 = vmatprep.mubr.bf16.mxu1 %v2896_v14  ;;  %5117 = vrcp.f32 %v2874_v4 }
0x117b   :  { %v5114_v28 = vpop.eup %5113 }
0x117c   :  { %v2878_v1 = vmul.f32 %v5114_v28, %v5110_v53 }
0x117d   :  { %v5116_v13 = vpop.eup %5115 }
0x117e   :  { %v2877_v41 = vmul.f32 %v5116_v13, %v7546_v7 }
0x1180   :  { %v2879_v15 = vadd.f32 %v2878_v1, %v2877_v41 }
0x1181   :  { %v5118_v59 = vpop.eup %5117 }
0x1182   :  { %5119 = vtanh.f32 %v2879_v15 }
0x118f   :  { %v5120_v2 = vpop.eup %5119 }
0x1190   :  { %v2881_v8 = vmul.f32 %v5120_v2, %v5118_v59 }
0x1192   :  { %2882 = vadd.xlane.f32.xlu0 %v2881_v8 }
0x1196   :  { %1241 = vadd.xlane.f32.xlu0 %v8802_v56 }
0x119a   :  { %1753 = vadd.xlane.f32.xlu0 %v8803_v12 }
0x119e   :  { %2253 = vadd.xlane.f32.xlu0 %v8804_v31 }
0x11a2   :  { %2753 = vadd.xlane.f32.xlu0 %v2752_v3 }
0x121b   :  { %v2883_v37 = vpop.xlane.xlu0 %2882 }
0x121c   :  { %v2884_v16 = vmul.f32 0.0078125, %v2883_v37 }
0x121e   :  { %v2885_v54 = vsub.f32 %v2881_v8, %v2884_v16 }
0x121f   :  { %v1242_v42 = vpop.xlane.xlu0 %1241 }
0x1220   :  { %v1243_v62 = vmul.f32 0.0078125, %v1242_v42  ;;  %v2886_v7 = vmul.f32 %v2885_v54, %v2885_v54 }
0x1222   :  { %v7686_v55 = vsub.f32 %v8802_v56, %v1243_v62  ;;  %2887 = vadd.xlane.f32.xlu1 %v2886_v7 }
0x1223   :  { %v1754_v26 = vpop.xlane.xlu0 %1753 }
0x1224   :  { %v1755_v48 = vmul.f32 0.0078125, %v1754_v26  ;;  %v1245_v35 = vmul.f32 %v7686_v55, %v7686_v55 }
0x1226   :  { %v7691_v5 = vsub.f32 %v8803_v12, %v1755_v48  ;;  %1503 = vadd.xlane.f32.xlu1 %v8805_v22  ;;  %1246 = vadd.xlane.f32.xlu0 %v1245_v35 }
0x1227   :  { %v2254_v10 = vpop.xlane.xlu0 %2253 }
0x1228   :  { %v2255_v63 = vmul.f32 0.0078125, %v2254_v10  ;;  %v1757_v0 = vmul.f32 %v7691_v5, %v7691_v5 }
0x122a   :  { %v7697_v52 = vsub.f32 %v8804_v31, %v2255_v63  ;;  %2003 = vadd.xlane.f32.xlu1 %v8806_v49  ;;  %1758 = vadd.xlane.f32.xlu0 %v1757_v0  ;;  %v4816_v0 = vld [vmem:[#allocation12 + $0x90] ss:$12 sps:$4 sm:$0xff]  }
0x122b   :  { %v2754_v58 = vpop.xlane.xlu0 %2753 }
0x122c   :  { %v2755_v9 = vmul.f32 0.0078125, %v2754_v58  ;;  %v2257_v51 = vmul.f32 %v7697_v52, %v7697_v52  ;;  %v4818_v58 = vld [vmem:[#allocation12 + $0x94] ss:$12 sps:$4 sm:$0xff]  }
0x122e   :  { %v7702_v33 = vsub.f32 %v2752_v3, %v2755_v9  ;;  %2503 = vadd.xlane.f32.xlu1 %v7541_v46  ;;  %2258 = vadd.xlane.f32.xlu0 %v2257_v51  ;;  %v4819_v9 = vld [vmem:[#allocation12 + $0xb0] ss:$12 sps:$4 sm:$0xff]   ;;  %v4823_v51 = vld [vmem:[#allocation12 + $0x98] ss:$12 sps:$4 sm:$0xff]  }
0x122f   :  { %4526 = vmatprep.subr.bf16.mxu1 %v4819_v9 }
0x1230   :  { %v2757_v47 = vmul.f32 %v7702_v33, %v7702_v33 }
0x1232   :  { %2758 = vadd.xlane.f32.xlu0 %v2757_v47  ;;  %v4820_v47 = vld [vmem:[#allocation12 + $0x78] ss:$12 sps:$4 sm:$0xff]  }
0x12ab   :  { %v2888_v30 = vpop.xlane.xlu1 %2887 }
0x12ac   :  { %v2889_v34 = vmul.f32 0.0078125, %v2888_v30  ;;  %v4827_v30 = vld [vmem:[#allocation12 + $0x80] ss:$12 sps:$4 sm:$0xff]  }
0x12ae   :  { %v2890_v39 = vadd.f32 1e-05, %v2889_v34  ;;  %v4824_v34 = vld [vmem:[#allocation12 + $0x60] ss:$12 sps:$4 sm:$0xff]  }
0x12af   :  { %v1504_v31 = vpop.xlane.xlu1 %1503 }
0x12b0   :  { %5121 = vrsqrt.f32 %v2890_v39  ;;  %v1505_v37 = vmul.f32 0.0078125, %v1504_v31  ;;  %v4830_v39 = vld [vmem:[#allocation12 + $0x4c] ss:$12 sps:$4 sm:$0xff]  }
0x12b2   :  { %v7718_v7 = vsub.f32 %v8805_v22, %v1505_v37 }
0x12bd   :  { %v5122_v27 = vpop.eup %5121 }
0x12be   :  { %v2892_v11 = vmul.f32 %v5122_v27, %v2885_v54  ;;  %v4831_v27 = vld [vmem:[#allocation12 + $0x68] ss:$12 sps:$4 sm:$0xff]  }
0x12c0   :  { %v2893_v24 = vmul.f32 %v7552_v32, %v2892_v11  ;;  %v4828_v11 = vld [vmem:[#allocation12 + $0x48] ss:$12 sps:$4 sm:$0xff]  }
0x12c2   :  { %v2894_v6 = vadd.f32 %v7558_v36, %v2893_v24  ;;  %v4832_v24 = vld [vmem:[#allocation12 + $0x30] ss:$12 sps:$4 sm:$0xff]  }
0x12c4   :  { %v2895_v18 = vpack.c.bf16 %v2894_v6, %v2894_v6  ;;  %v4834_v6 = vld [vmem:[#allocation12 + $0x34] ss:$12 sps:$4 sm:$0xff]  }
0x12c6   :  { %2930 = vmatmul.mubr.bf16.vlgmr.msra.gmra.mxu0 %v2895_v18  ;;  %2971 = vmatmul.mubr.bf16.vlgmr.msra.gmra.mxu1 %v2895_v18  ;;  %v4835_v18 = vld [vmem:[#allocation12 + $0x50] ss:$12 sps:$4 sm:$0xff]  }
0x12c7   :  { %3238 = vmatprep.mubr.bf16.mxu0 %v8417_v17  ;;  %3207 = vmatpush1.bf16.msra.mxu0 %v4813_v25  ;;  %v4838_v25 = vld [vmem:[#allocation12 + $0x1c] ss:$12 sps:$4 sm:$0xff]  }
0x12c8   :  { %3208 = vmatprep.subr.bf16.mxu0 %v4818_v58  ;;  %4527 = vmatpush3.bf16.msra.mxu1 %v4819_v9 }
0x12c9   :  { %4528 = vmatprep.subr.bf16.mxu1 %v4823_v51 }
0x12cb   :  { %3209 = vmatpush1.bf16.msra.mxu0 %v4816_v0 }
0x12cc   :  { %4529 = vmatpush3.bf16.msra.mxu1 %v4823_v51 }
0x12cd   :  { %4530 = vmatprep.subr.bf16.mxu1 %v4827_v30 }
0x12d0   :  { %4531 = vmatpush3.bf16.msra.mxu1 %v4827_v30 }
0x12d1   :  { %4532 = vmatprep.subr.bf16.mxu1 %v4831_v27 }
0x12d4   :  { %4533 = vmatpush3.bf16.msra.mxu1 %v4831_v27 }
0x12d5   :  { %4534 = vmatprep.subr.bf16.mxu1 %v4835_v18 }
0x12d8   :  { %4535 = vmatpush3.bf16.msra.mxu1 %v4835_v18 }
0x12d9   :  { %4536 = vmatprep.subr.bf16.mxu1 %v4839_v40 }
0x12dc   :  { %4537 = vmatpush3.bf16.msra.mxu1 %v4839_v40 }
0x1386   :  { %v2931_v60 = vpop.f32.mrf.mxu0  ;;  %v2972_v44 = vpop.f32.mrf.mxu1 }
0x1387   :  { %v2932_v45 = vadd.f32 %v2931_v60, %v8794_v50  ;;  %v2973_v13 = vadd.f32 %v2972_v44, %v8797_v57  ;;  %v2004_v57 = vpop.xlane.xlu1 %2003  ;;  %v4836_v60 = vld [vmem:[#allocation12 + $0x18] ss:$12 sps:$4 sm:$0xff]  }
0x1388   :  { %v2933_v61 = vpop.f32.mrf.mxu0  ;;  %v2974_v29 = vpop.f32.mrf.mxu1  ;;  %v2005_v42 = vmul.f32 0.0078125, %v2004_v57  ;;  %v4842_v44 = vld [vmem:[#allocation12 + $0x4] ss:$12 sps:$4 sm:$0xff]  }
0x1389   :  { %v4433_v43 = vmul.f32 -1.442695, %v2932_v45  ;;  %v2934_v32 = vadd.f32 %v2933_v61, %v8795_v38  ;;  %v2975_v23 = vadd.f32 %v2974_v29, %v8796_v20  ;;  %v4843_v45 = vld [vmem:[#allocation12 + $0x20] ss:$12 sps:$4 sm:$0xff]   ;;  %v4844_v29 = vld [vmem:[#allocation12 + $0x8] ss:$12 sps:$4 sm:$0xff]  }
0x138a   :  { %v2935_v21 = vpop.f32.mrf.mxu0  ;;  %v2976_v36 = vpop.f32.mrf.mxu1  ;;  %v7724_v35 = vsub.f32 %v8806_v49, %v2005_v42  ;;  %v4822_v49 = vld [vmem:[#allocation12 + $0x7c] ss:$12 sps:$4 sm:$0xff]   ;;  %v4840_v61 = vld [vmem:[#allocation12] ss:$12 sps:$4 sm:$0xff]   ;;  %4538 = vmatprep.subr.bf16.mxu1 %v4843_v45 }
0x138b   :  { %5123 = vpow2.f32 %v4433_v43  ;;  %v4434_v3 = vmul.f32 -1.442695, %v2934_v32  ;;  %v4435_v28 = vmul.f32 -1.442695, %v2975_v23  ;;  %v2504_v26 = vpop.xlane.xlu1 %2503  ;;  %3210 = vmatprep.subr.bf16.mxu0 %v4822_v49  ;;  %4539 = vmatpush3.bf16.msra.mxu1 %v4843_v45  ;;  %v1247_v43 = vpop.xlane.xlu0 %1246 }
0x138c   :  { %v2936_v14 = vpop.f32.mrf.mxu0  ;;  %v2977_v53 = vpop.f32.mrf.mxu1  ;;  %v2505_v48 = vmul.f32 0.0078125, %v2504_v26  ;;  %v2007_v10 = vmul.f32 %v7724_v35, %v7724_v35  ;;  %3211 = vmatpush1.bf16.msra.mxu0 %v4820_v47  ;;  %4540 = vmatprep.subr.bf16.mxu1 %v4844_v29  ;;  %v1248_v21 = vmul.f32 0.0078125, %v1247_v43 }
0x138d   :  { %5125 = vpow2.f32 %v4434_v3 }
0x138e   :  { %5127 = vpow2.f32 %v4435_v28  ;;  %v7729_v63 = vsub.f32 %v7541_v46, %v2505_v48  ;;  %v4826_v46 = vld [vmem:[#allocation12 + $0x64] ss:$12 sps:$4 sm:$0xff]   ;;  %v1249_v3 = vadd.f32 1e-05, %v1248_v21 }
0x138f   :  { %3212 = vmatprep.subr.bf16.mxu0 %v4826_v46  ;;  %4541 = vmatpush3.bf16.msra.mxu1 %v4844_v29  ;;  %v1759_v32 = vpop.xlane.xlu0 %1758 }
0x1390   :  { %v2507_v22 = vmul.f32 %v7729_v63, %v7729_v63  ;;  %3213 = vmatpush1.bf16.msra.mxu0 %v4824_v34  ;;  %v1760_v36 = vmul.f32 0.0078125, %v1759_v32 }
0x1391   :  { %3214 = vmatprep.subr.bf16.mxu0 %v4830_v39 }
0x1392   :  { %v1761_v28 = vadd.f32 1e-05, %v1760_v36 }
0x1393   :  { %v2259_v14 = vpop.xlane.xlu0 %2258 }
0x1394   :  { %3215 = vmatpush1.bf16.msra.mxu0 %v4828_v11 }
0x1395   :  { %3216 = vmatprep.subr.bf16.mxu0 %v4834_v6 }
0x1398   :  { %v5124_v1 = vpop.eup %5123  ;;  %3217 = vmatpush1.bf16.msra.mxu0 %v4832_v24 }
0x1399   :  { %v2982_v4 = vadd.f32 1.0, %v5124_v1  ;;  %3218 = vmatprep.subr.bf16.mxu0 %v4838_v25  ;;  %v2260_v1 = vmul.f32 0.0078125, %v2259_v14 }
0x139a   :  { %v5126_v50 = vpop.eup %5125 }
0x139b   :  { %5129 = vrcp.f32 %v2982_v4  ;;  %v2988_v41 = vadd.f32 1.0, %v5126_v50  ;;  %v5128_v38 = vpop.eup %5127 }
0x139c   :  { %5131 = vtanh.f32 %v2973_v13  ;;  %v2995_v8 = vadd.f32 1.0, %v5128_v38  ;;  %3219 = vmatpush1.bf16.msra.mxu0 %v4836_v60  ;;  %v2261_v38 = vadd.f32 1e-05, %v2260_v1 }
0x139d   :  { %5133 = vrcp.f32 %v2988_v41  ;;  %3220 = vmatprep.subr.bf16.mxu0 %v4842_v44 }
0x139e   :  { %5135 = vrcp.f32 %v2995_v8 }
0x13a0   :  { %3221 = vmatpush1.bf16.msra.mxu0 %v4840_v61 }
0x13a8   :  { %v5130_v15 = vpop.eup %5129 }
0x13a9   :  { %v5132_v59 = vpop.eup %5131 }
0x13aa   :  { %v5134_v2 = vpop.eup %5133  ;;  %v2999_v56 = vmul.f32 %v5132_v59, %v5130_v15 }
0x13ab   :  { %v2998_v12 = vmul.f32 %v5134_v2, %v7676_v19  ;;  %v5136_v16 = vpop.eup %5135  ;;  %v1507_v19 = vmul.f32 %v7718_v7, %v7718_v7 }
0x13ad   :  { %v3000_v20 = vadd.f32 %v2999_v56, %v2998_v12 }
0x13af   :  { %5137 = vtanh.f32 %v3000_v20 }
0x13b0   :  { %5139 = vrsqrt.f32 %v1249_v3 }
0x13b1   :  { %5141 = vrsqrt.f32 %v1761_v28 }
0x13bc   :  { %v5138_v54 = vpop.eup %5137 }
0x13bd   :  { %v7715_v62 = vmul.f32 %v5138_v54, %v5136_v16  ;;  %v5140_v31 = vpop.eup %5139  ;;  %v4392_v16 = vld [vmem:[#allocation9] ss:$0 sm:$0xff] }
0x13be   :  { %v5142_v57 = vpop.eup %5141  ;;  %v1251_v37 = vmul.f32 %v5140_v31, %v7686_v55 }
0x13bf   :  { %3003 = vadd.xlane.f32.xlu1 %v7715_v62  ;;  %v1763_v42 = vmul.f32 %v5142_v57, %v7691_v5 }
0x13c1   :  { %v1764_v0 = vmul.f32 %v4392_v16, %v1763_v42 }
0x13c3   :  { %1508 = vadd.xlane.f32.xlu1 %v1507_v19  ;;  %v4393_v19 = vld [vmem:[#allocation10] ss:$0 sm:$0xff] }
0x13c4   :  { %v1765_v30 = vadd.f32 %v4393_v19, %v1764_v0 }
0x13c7   :  { %2008 = vadd.xlane.f32.xlu1 %v2007_v10 }
0x13cb   :  { %2508 = vadd.xlane.f32.xlu1 %v2507_v22 }
0x1448   :  { %v3004_v53 = vpop.xlane.xlu1 %3003 }
0x1449   :  { %v3005_v23 = vmul.f32 0.0078125, %v3004_v53 }
0x144b   :  { %v7734_v13 = vsub.f32 %v7715_v62, %v3005_v23  ;;  %v1258_v62 = vmul.f32 %v4392_v16, %v1251_v37 }
0x144c   :  { %v1509_v4 = vpop.xlane.xlu1 %1508 }
0x144d   :  { %v1510_v50 = vmul.f32 0.0078125, %v1509_v4  ;;  %v3007_v41 = vmul.f32 %v7734_v13, %v7734_v13  ;;  %v1265_v58 = vadd.f32 %v4393_v19, %v1258_v62 }
0x144f   :  { %v1511_v15 = vadd.f32 1e-05, %v1510_v50  ;;  %3008 = vadd.xlane.f32.xlu1 %v3007_v41 }
0x1450   :  { %v2009_v59 = vpop.xlane.xlu1 %2008 }
0x1451   :  { %5143 = vrsqrt.f32 %v1511_v15  ;;  %v2010_v2 = vmul.f32 0.0078125, %v2009_v59 }
0x1452   :  { %5145 = vrsqrt.f32 %v2261_v38 }
0x1453   :  { %v2011_v8 = vadd.f32 1e-05, %v2010_v2  ;;  %v8807_v2 = vld [vmem:[#allocation23_spill] sm:$0xff] }
0x1454   :  { %v2509_v56 = vpop.xlane.xlu1 %2508 }
0x1455   :  { %5147 = vrsqrt.f32 %v2011_v8  ;;  %v2510_v12 = vmul.f32 0.0078125, %v2509_v56 }
0x1457   :  { %v2511_v20 = vadd.f32 1e-05, %v2510_v12  ;;  %v8808_v12 = vld [vmem:[#allocation24_spill] sm:$0xff] }
0x1459   :  { %5149 = vrsqrt.f32 %v2511_v20 }
0x145e   :  { %v5144_v54 = vpop.eup %5143 }
0x145f   :  { %v1513_v26 = vmul.f32 %v5144_v54, %v7718_v7  ;;  %v5146_v48 = vpop.eup %5145 }
0x1460   :  { %v2263_v51 = vmul.f32 %v5146_v48, %v7697_v52  ;;  %v2759_v52 = vpop.xlane.xlu0 %2758 }
0x1461   :  { %v1514_v10 = vmul.f32 %v4392_v16, %v1513_v26  ;;  %v2760_v6 = vmul.f32 0.0078125, %v2759_v52 }
0x1462   :  { %v5148_v22 = vpop.eup %5147  ;;  %v2264_v34 = vmul.f32 %v4392_v16, %v2263_v51 }
0x1463   :  { %v1515_v9 = vadd.f32 %v4393_v19, %v1514_v10  ;;  %v2013_v49 = vmul.f32 %v5148_v22, %v7724_v35  ;;  %v2761_v18 = vadd.f32 1e-05, %v2760_v6 }
0x1464   :  { %v2265_v11 = vadd.f32 %v4393_v19, %v2264_v34 }
0x1465   :  { %v3025_v47 = vpack.c.bf16 %v1515_v9, %v1265_v58  ;;  %v2014_v55 = vmul.f32 %v4392_v16, %v2013_v49  ;;  %5151 = vrsqrt.f32 %v2761_v18 }
0x1466   :  { %v5150_v46 = vpop.eup %5149 }
0x1467   :  { %3239 = vmatmul.mubr.bf16.vlgmr.msra.gmra.mxu0 %v3025_v47  ;;  %4542 = vmatprep.mubr.bf16.mxu1 %v3025_v47  ;;  %v2015_v5 = vadd.f32 %v4393_v19, %v2014_v55  ;;  %v2513_v7 = vmul.f32 %v5150_v46, %v7729_v63 }
0x1468   :  { %3246 = vmatprep.mubr.bf16.mxu0 %v8417_v17 }
0x1469   :  { %v3026_v39 = vpack.c.bf16 %v2015_v5, %v1765_v30  ;;  %v2514_v27 = vmul.f32 %v4392_v16, %v2513_v7 }
0x146b   :  { %4543 = vmatmul.mubr.bf16.vlgmr.msra.gmra.mxu1 %v3026_v39  ;;  %v2515_v24 = vadd.f32 %v4393_v19, %v2514_v27 }
0x146d   :  { %v3027_v35 = vpack.c.bf16 %v2515_v24, %v2265_v11 }
0x146f   :  { %3247 = vmatmul.mubr.bf16.gmra.mxu0 %v3026_v39  ;;  %4546 = vmatprep.mubr.bf16.mxu1 %v3027_v35 }
0x1470   :  { %3254 = vmatprep.mubr.bf16.mxu0 %v8417_v17 }
0x1472   :  { %v5152_v60 = vpop.eup %5151 }
0x1473   :  { %v2763_v44 = vmul.f32 %v5152_v60, %v7702_v33 }
0x1475   :  { %v2764_v61 = vmul.f32 %v4392_v16, %v2763_v44 }
0x1477   :  { %3255 = vmatmul.mubr.bf16.gmra.mxu0 %v3027_v35  ;;  %v2765_v32 = vadd.f32 %v4393_v19, %v2764_v61 }
0x1478   :  { %3262 = vmatprep.mubr.bf16.mxu0 %v8417_v17 }
0x14d8   :  { %v3009_v63 = vpop.xlane.xlu1 %3008 }
0x14d9   :  { %v3010_v25 = vmul.f32 0.0078125, %v3009_v63 }
0x14db   :  { %v3011_v40 = vadd.f32 1e-05, %v3010_v25 }
0x14dd   :  { %5153 = vrsqrt.f32 %v3011_v40 }
0x14ea   :  { %v5154_v45 = vpop.eup %5153 }
0x14eb   :  { %v3013_v29 = vmul.f32 %v5154_v45, %v7734_v13  ;;  %v7752_v13 = vld [vmem:[%s8041_s11] sm:$0x7]  ;;  %s5540_s11 = smov 64  }
0x14ec   :  { %v3066_v8 = vrot.slane %v7752_v13, %v8807_v2  ;;  %v3070_v20 = vrot.slane %v7752_v13, %v8808_v12 }
0x14ed   :  { %v3014_v43 = vmul.f32 %v4392_v16, %v3013_v29 }
0x14ef   :  { %v3015_v21 = vadd.f32 %v4393_v19, %v3014_v43 }
0x14f1   :  { %v3028_v36 = vpack.c.bf16 %v3015_v21, %v2765_v32 }
0x14f3   :  { %3263 = vmatmul.mubr.bf16.gmra.mxu0 %v3028_v36  ;;  %4547 = vmatmul.mubr.bf16.gmra.mxu1 %v3028_v36 }
0x1527   :  { %v3240_v3 = vpop.f32.mrf.mxu0 }
0x1529   :  { %v3241_v14 = vpop.f32.mrf.mxu0 }
0x152a   :  { %v3242_v37 = vadd.f32 %v3241_v14, %v3070_v20 }
0x152b   :  { %v3243_v53 = vpop.f32.mrf.mxu0 }
0x152d   :  { %v3244_v23 = vpop.f32.mrf.mxu0 }
0x152e   :  { %v3245_v16 = vadd.f32 %v3244_v23, %v3070_v20 }
0x152f   :  { %v3248_v28 = vpop.f32.mrf.mxu0 }
0x1531   :  { %v3249_v1 = vpop.f32.mrf.mxu0 }
0x1532   :  { %v3250_v26 = vadd.f32 %v3249_v1, %v3070_v20 }
0x1533   :  { %v3251_v4 = vpop.f32.mrf.mxu0 }
0x1535   :  { %v3252_v50 = vpop.f32.mrf.mxu0 }
0x1536   :  { %v3253_v22 = vadd.f32 %v3252_v50, %v3070_v20 }
0x1537   :  { %v3256_v41 = vpop.f32.mrf.mxu0 }
0x1539   :  { %v3257_v33 = vpop.f32.mrf.mxu0 }
0x153a   :  { %v3258_v48 = vadd.f32 %v3257_v33, %v3070_v20 }
0x153b   :  { %v3259_v38 = vpop.f32.mrf.mxu0 }
0x153d   :  { %v3260_v15 = vpop.f32.mrf.mxu0 }
0x153e   :  { %v3261_v51 = vadd.f32 %v3260_v15, %v3070_v20 }
0x15b3   :  { %v3264_v59 = vpop.f32.mrf.mxu0 }
0x15b5   :  { %v3265_v56 = vpop.f32.mrf.mxu0 }
0x15b6   :  { %v3266_v0 = vadd.f32 %v3265_v56, %v3070_v20 }
0x15b7   :  { %v3267_v31 = vpop.f32.mrf.mxu0 }
0x15b8   :  { %v3268_v57 = vadd.f32 %v3267_v31, %v3066_v8 }
0x15b9   :  { %v3269_v49 = vpop.f32.mrf.mxu0 }
0x15ba   :  { %v3337_v54 = vmul.f32 0.17677669, %v3268_v57  ;;  %v3270_v47 = vadd.f32 %v3269_v49, %v3070_v20 }
0x15bc   :  { %v3339_v42 = vmul.f32 %v3337_v54, %v3245_v16  ;;  %v3338_v62 = vmul.f32 %v3337_v54, %v3242_v37  ;;  %v3340_v19 = vmul.f32 %v3337_v54, %v3250_v26  ;;  %v3342_v10 = vmul.f32 %v3337_v54, %v3258_v48 }
0x15bd   :  { %v3341_v58 = vmul.f32 %v3337_v54, %v3253_v22  ;;  %v3344_v9 = vmul.f32 %v3337_v54, %v3266_v0  ;;  %v3343_v55 = vmul.f32 %v3337_v54, %v3261_v51  ;;  %v3345_v46 = vmul.f32 %v3337_v54, %v3270_v47 }
0x15be   :  { %3381 = vrot.lane.b32.xlu1 %v3339_v42, %s5539_s13  ;;  %3379 = vrot.lane.b32.xlu0 %v3338_v62, %s5539_s13  ;;  %v3347_v30 = vsel %vm3346_vm2, %v3338_v62, 0.0  ;;  %v3353_v5 = vsel %vm3346_vm2, %v3340_v19, 0.0  ;;  %v3359_v7 = vsel %vm3346_vm2, %v3342_v10, 0.0  ;;  %v3350_v39 = vsel %vm3346_vm2, %v3339_v42, 0.0 }
0x15bf   :  { %v3356_v34 = vsel %vm3346_vm2, %v3341_v58, 0.0  ;;  %v3365_v27 = vsel %vm3346_vm2, %v3344_v9, 0.0  ;;  %v3362_v11 = vsel %vm3346_vm2, %v3343_v55, 0.0  ;;  %v3368_v24 = vsel %vm3346_vm2, %v3345_v46, 0.0 }
0x15c2   :  { %3383 = vrot.lane.b32.xlu1 %v3340_v19, %s5539_s13  ;;  %3387 = vrot.lane.b32.xlu0 %v3342_v10, %s5539_s13 }
0x15c6   :  { %3385 = vrot.lane.b32.xlu1 %v3341_v58, %s5539_s13  ;;  %3391 = vrot.lane.b32.xlu0 %v3344_v9, %s5539_s13 }
0x15ca   :  { %3389 = vrot.lane.b32.xlu1 %v3343_v55, %s5539_s13  ;;  %3427 = vrot.lane.b32.xlu0 %v3338_v62, %s5540_s11 }
0x15ce   :  { %3393 = vrot.lane.b32.xlu1 %v3345_v46, %s5539_s13  ;;  %3431 = vrot.lane.b32.xlu0 %v3340_v19, %s5540_s11 }
0x15d2   :  { %3429 = vrot.lane.b32.xlu1 %v3339_v42, %s5540_s11  ;;  %3435 = vrot.lane.b32.xlu0 %v3342_v10, %s5540_s11 }
0x15d6   :  { %3433 = vrot.lane.b32.xlu1 %v3341_v58, %s5540_s11  ;;  %3439 = vrot.lane.b32.xlu0 %v3344_v9, %s5540_s11 }
0x15da   :  { %3437 = vrot.lane.b32.xlu1 %v3343_v55, %s5540_s11  ;;  %3475 = vrot.lane.b32.xlu0 %v3338_v62, %s5541_s27 }
0x15de   :  { %3441 = vrot.lane.b32.xlu1 %v3345_v46, %s5540_s11  ;;  %3479 = vrot.lane.b32.xlu0 %v3340_v19, %s5541_s27 }
0x15e2   :  { %3477 = vrot.lane.b32.xlu1 %v3339_v42, %s5541_s27  ;;  %3483 = vrot.lane.b32.xlu0 %v3342_v10, %s5541_s27 }
0x15e6   :  { %3481 = vrot.lane.b32.xlu1 %v3341_v58, %s5541_s27  ;;  %3487 = vrot.lane.b32.xlu0 %v3344_v9, %s5541_s27 }
0x15ea   :  { %3485 = vrot.lane.b32.xlu1 %v3343_v55, %s5541_s27 }
0x15ee   :  { %3489 = vrot.lane.b32.xlu1 %v3345_v46, %s5541_s27  ;;  %s5548_s27 = smov [#allocation15]  }
0x15ef   :  { %s4262_s4 = sshll.u32 %s5548_s27, 4  ;;  %s4263_s4 = int_to_ptr.vmem [resolvable:$true] %s4262_s4 }
0x15f0   :  { %s5497_s9 = scalar_lea.vmem %s4263_s4, 32  ;;  %p5502_p3 = scmp.lt.s32.totalorder %s4263_s4, %s4263_s4 }
0x15f1   :  { %p5498_p2 = scmp.ne.s32.totalorder %s4263_s4, %s5497_s9  ;;  %p5503_p4 = scmp.lt.s32.totalorder %s5497_s9, %s5497_s9 }
0x15f3   :  { %p5504_p5 = por %p5503_p4, %p5502_p3 }
0x15f5   :  { %p5505_p6 = pnand %p5504_p5, %p5498_p2 }
0x1605   :  { %3348 = vadd.xlane.f32.xlu0 %v3347_v30 }
0x1609   :  { %3354 = vadd.xlane.f32.xlu0 %v3353_v5 }
0x160d   :  { %3357 = vadd.xlane.f32.xlu0 %v3356_v34 }
0x1611   :  { %3360 = vadd.xlane.f32.xlu0 %v3359_v7 }
0x1612   :  { %3351 = vadd.xlane.f32.xlu1 %v3350_v39 }
0x1615   :  { %3366 = vadd.xlane.f32.xlu0 %v3365_v27 }
0x1616   :  { %3363 = vadd.xlane.f32.xlu1 %v3362_v11 }
0x161a   :  { %3369 = vadd.xlane.f32.xlu1 %v3368_v24 }
0x1630   :  { %v3382_v35 = vpop.permute.xlu1 %3381  ;;  %v3380_v52 = vpop.permute.xlu0 %3379 }
0x1631   :  { %v3406_v6 = vsel %vm3346_vm2, %v3382_v35, 0.0  ;;  %v3403_v18 = vsel %vm3346_vm2, %v3380_v52, 0.0 }
0x1632   :  { %3407 = vadd.xlane.f32.xlu1 %v3406_v6  ;;  %3404 = vadd.xlane.f32.xlu0 %v3403_v18 }
0x1634   :  { %v3384_v63 = vpop.permute.xlu1 %3383  ;;  %v3388_v25 = vpop.permute.xlu0 %3387 }
0x1635   :  { %v3409_v40 = vsel %vm3346_vm2, %v3384_v63, 0.0  ;;  %v3415_v61 = vsel %vm3346_vm2, %v3388_v25, 0.0 }
0x1636   :  { %3410 = vadd.xlane.f32.xlu0 %v3409_v40 }
0x1638   :  { %v3386_v60 = vpop.permute.xlu1 %3385  ;;  %v3392_v44 = vpop.permute.xlu0 %3391 }
0x1639   :  { %v3412_v45 = vsel %vm3346_vm2, %v3386_v60, 0.0  ;;  %v3421_v21 = vsel %vm3346_vm2, %v3392_v44, 0.0 }
0x163a   :  { %3413 = vadd.xlane.f32.xlu1 %v3412_v45  ;;  %3416 = vadd.xlane.f32.xlu0 %v3415_v61 }
0x163c   :  { %v3390_v29 = vpop.permute.xlu1 %3389  ;;  %v3428_v43 = vpop.permute.xlu0 %3427 }
0x163d   :  { %v3418_v32 = vsel %vm3346_vm2, %v3390_v29, 0.0  ;;  %v3451_v53 = vsel %vm3346_vm2, %v3428_v43, 0.0 }
0x163e   :  { %3419 = vadd.xlane.f32.xlu1 %v3418_v32  ;;  %3422 = vadd.xlane.f32.xlu0 %v3421_v21 }
0x1640   :  { %v3394_v36 = vpop.permute.xlu1 %3393  ;;  %v3432_v3 = vpop.permute.xlu0 %3431 }
0x1641   :  { %v3424_v14 = vsel %vm3346_vm2, %v3394_v36, 0.0  ;;  %v3457_v4 = vsel %vm3346_vm2, %v3432_v3, 0.0 }
0x1642   :  { %3425 = vadd.xlane.f32.xlu1 %v3424_v14  ;;  %3452 = vadd.xlane.f32.xlu0 %v3451_v53 }
0x1644   :  { %v3430_v23 = vpop.permute.xlu1 %3429  ;;  %v3436_v28 = vpop.permute.xlu0 %3435 }
0x1645   :  { %v3454_v1 = vsel %vm3346_vm2, %v3430_v23, 0.0  ;;  %v3463_v38 = vsel %vm3346_vm2, %v3436_v28, 0.0 }
0x1646   :  { %3455 = vadd.xlane.f32.xlu1 %v3454_v1  ;;  %3458 = vadd.xlane.f32.xlu0 %v3457_v4 }
0x1648   :  { %v3434_v50 = vpop.permute.xlu1 %3433  ;;  %v3440_v41 = vpop.permute.xlu0 %3439 }
0x1649   :  { %v3460_v33 = vsel %vm3346_vm2, %v3434_v50, 0.0  ;;  %v3469_v8 = vsel %vm3346_vm2, %v3440_v41, 0.0 }
0x164a   :  { %3461 = vadd.xlane.f32.xlu1 %v3460_v33  ;;  %3464 = vadd.xlane.f32.xlu0 %v3463_v38 }
0x164c   :  { %v3438_v15 = vpop.permute.xlu1 %3437  ;;  %v3476_v59 = vpop.permute.xlu0 %3475 }
0x164d   :  { %v3466_v2 = vsel %vm3346_vm2, %v3438_v15, 0.0  ;;  %v3499_v31 = vsel %vm3346_vm2, %v3476_v59, 0.0 }
0x164e   :  { %3467 = vadd.xlane.f32.xlu1 %v3466_v2  ;;  %3470 = vadd.xlane.f32.xlu0 %v3469_v8 }
0x1650   :  { %v3442_v56 = vpop.permute.xlu1 %3441  ;;  %v3480_v12 = vpop.permute.xlu0 %3479 }
0x1651   :  { %v3472_v20 = vsel %vm3346_vm2, %v3442_v56, 0.0  ;;  %v3505_v54 = vsel %vm3346_vm2, %v3480_v12, 0.0 }
0x1652   :  { %3473 = vadd.xlane.f32.xlu1 %v3472_v20  ;;  %3500 = vadd.xlane.f32.xlu0 %v3499_v31 }
0x1654   :  { %v3478_v57 = vpop.permute.xlu1 %3477  ;;  %v3484_v37 = vpop.permute.xlu0 %3483 }
0x1655   :  { %v3502_v16 = vsel %vm3346_vm2, %v3478_v57, 0.0  ;;  %v3511_v26 = vsel %vm3346_vm2, %v3484_v37, 0.0 }
0x1656   :  { %3503 = vadd.xlane.f32.xlu1 %v3502_v16  ;;  %3506 = vadd.xlane.f32.xlu0 %v3505_v54 }
0x1658   :  { %v3482_v42 = vpop.permute.xlu1 %3481  ;;  %v3488_v48 = vpop.permute.xlu0 %3487 }
0x1659   :  { %v3508_v62 = vsel %vm3346_vm2, %v3482_v42, 0.0  ;;  %v3517_v22 = vsel %vm3346_vm2, %v3488_v48, 0.0 }
0x165a   :  { %3509 = vadd.xlane.f32.xlu1 %v3508_v62  ;;  %3512 = vadd.xlane.f32.xlu0 %v3511_v26 }
0x165c   :  { %v3486_v19 = vpop.permute.xlu1 %3485 }
0x165d   :  { %v3514_v10 = vsel %vm3346_vm2, %v3486_v19, 0.0 }
0x165e   :  { %3515 = vadd.xlane.f32.xlu1 %v3514_v10  ;;  %3518 = vadd.xlane.f32.xlu0 %v3517_v22 }
0x1660   :  { %v3490_v0 = vpop.permute.xlu1 %3489 }
0x1661   :  { %v3520_v58 = vsel %vm3346_vm2, %v3490_v0, 0.0 }
0x1662   :  { %3521 = vadd.xlane.f32.xlu1 %v3520_v58 }
0x168e   :  { %v3349_v9 = vpop.xlane.xlu0 %3348 }
0x1692   :  { %v3355_v49 = vpop.xlane.xlu0 %3354 }
0x1696   :  { %v3358_v51 = vpop.xlane.xlu0 %3357 }
0x169a   :  { %v3361_v55 = vpop.xlane.xlu0 %3360 }
0x169b   :  { %v3352_v47 = vpop.xlane.xlu1 %3351 }
0x169e   :  { %v3367_v30 = vpop.xlane.xlu0 %3366 }
0x169f   :  { %v3364_v46 = vpop.xlane.xlu1 %3363 }
0x16a3   :  { %v3370_v5 = vpop.xlane.xlu1 %3369 }
0x16bb   :  { %v3405_v34 = vpop.xlane.xlu0 %3404  ;;  %v3408_v7 = vpop.xlane.xlu1 %3407 }
0x16bc   :  { %v3525_v36 = vsel %vm3523_vm3, %v3352_v47, %v3408_v7  ;;  %v3524_v3 = vsel %vm3523_vm3, %v3349_v9, %v3405_v34 }
0x16bf   :  { %v3411_v39 = vpop.xlane.xlu0 %3410 }
0x16c0   :  { %v3526_v14 = vsel %vm3523_vm3, %v3355_v49, %v3411_v39 }
0x16c3   :  { %v3414_v27 = vpop.xlane.xlu1 %3413  ;;  %v3417_v11 = vpop.xlane.xlu0 %3416 }
0x16c4   :  { %v3527_v53 = vsel %vm3523_vm3, %v3358_v51, %v3414_v27  ;;  %v3528_v23 = vsel %vm3523_vm3, %v3361_v55, %v3417_v11 }
0x16c7   :  { %v3420_v24 = vpop.xlane.xlu1 %3419  ;;  %v3423_v35 = vpop.xlane.xlu0 %3422 }
0x16c8   :  { %v3529_v28 = vsel %vm3523_vm3, %v3364_v46, %v3420_v24  ;;  %v3530_v1 = vsel %vm3523_vm3, %v3367_v30, %v3423_v35 }
0x16cb   :  { %v3426_v52 = vpop.xlane.xlu1 %3425  ;;  %v3453_v6 = vpop.xlane.xlu0 %3452 }
0x16cc   :  { %v3533_v12 = vsel %vm3532_vm4, %v3524_v3, %v3453_v6  ;;  %v3531_v37 = vsel %vm3523_vm3, %v3370_v5, %v3426_v52 }
0x16cf   :  { %v3456_v18 = vpop.xlane.xlu1 %3455  ;;  %v3459_v63 = vpop.xlane.xlu0 %3458 }
0x16d0   :  { %v3534_v4 = vsel %vm3532_vm4, %v3525_v36, %v3456_v18  ;;  %v3535_v20 = vsel %vm3532_vm4, %v3526_v14, %v3459_v63 }
0x16d3   :  { %v3462_v25 = vpop.xlane.xlu1 %3461  ;;  %v3465_v40 = vpop.xlane.xlu0 %3464 }
0x16d4   :  { %v3537_v50 = vsel %vm3532_vm4, %v3528_v23, %v3465_v40  ;;  %v3536_v31 = vsel %vm3532_vm4, %v3527_v53, %v3462_v25 }
0x16d7   :  { %v3468_v60 = vpop.xlane.xlu1 %3467  ;;  %v3471_v44 = vpop.xlane.xlu0 %3470 }
0x16d8   :  { %v3538_v41 = vsel %vm3532_vm4, %v3529_v28, %v3468_v60  ;;  %v3539_v33 = vsel %vm3532_vm4, %v3530_v1, %v3471_v44 }
0x16db   :  { %v3474_v45 = vpop.xlane.xlu1 %3473  ;;  %v3501_v61 = vpop.xlane.xlu0 %3500 }
0x16dc   :  { %v3542_v16 = vsel %vm3541_vm5, %v3533_v12, %v3501_v61  ;;  %v3540_v62 = vsel %vm3532_vm4, %v3531_v37, %v3474_v45 }
0x16dd   :  { %v3551_v58 = vsel %vm3550_vm6, %v3542_v16, -inf }
0x16df   :  { %v3504_v29 = vpop.xlane.xlu1 %3503  ;;  %v3507_v43 = vpop.xlane.xlu0 %3506 }
0x16e0   :  { %v3543_v59 = vsel %vm3541_vm5, %v3534_v4, %v3504_v29  ;;  %v3544_v54 = vsel %vm3541_vm5, %v3535_v20, %v3507_v43 }
0x16e1   :  { %v3552_v26 = vsel %vm3550_vm6, %v3543_v59, -inf  ;;  %v3553_v9 = vsel %vm3550_vm6, %v3544_v54, -inf }
0x16e3   :  { %v3510_v32 = vpop.xlane.xlu1 %3509  ;;  %v3513_v21 = vpop.xlane.xlu0 %3512 }
0x16e4   :  { %v3546_v2 = vsel %vm3541_vm5, %v3537_v50, %v3513_v21  ;;  %v3545_v42 = vsel %vm3541_vm5, %v3536_v31, %v3510_v32 }
0x16e5   :  { %v3555_v48 = vsel %vm3550_vm6, %v3546_v2, -inf  ;;  %v3554_v49 = vsel %vm3550_vm6, %v3545_v42, -inf }
0x16e6   :  { %v3556_v47 = vmax.f32 %v3551_v58, %v3555_v48  ;;  %v5545_v58 = vmov 0.0  }
0x16e7   :  { %v3516_v38 = vpop.xlane.xlu1 %3515  ;;  %v3519_v15 = vpop.xlane.xlu0 %3518  ;;  %4550 = vmatprep.subr.bf16.mxu0 %v5545_v58  ;;  %4570 = vmatprep.subr.bf16.mxu1 %v5545_v58 }
0x16e8   :  { %v3547_v8 = vsel %vm3541_vm5, %v3538_v41, %v3516_v38  ;;  %v3548_v56 = vsel %vm3541_vm5, %v3539_v33, %v3519_v15  ;;  %4566 = vmatprep.mubr.msk.bf16.mxu0 %vm5546_vm7, %v5545_v58  ;;  %4586 = vmatprep.mubr.msk.bf16.mxu1 %vm5546_vm7, %v5545_v58 }
0x16e9   :  { %v3557_v57 = vsel %vm3550_vm6, %v3547_v8, -inf  ;;  %v3559_v19 = vsel %vm3550_vm6, %v3548_v56, -inf }
0x16ea   :  { %v3558_v22 = vmax.f32 %v3552_v26, %v3557_v57  ;;  %v3560_v55 = vmax.f32 %v3553_v9, %v3559_v19  ;;  %v5544_v26 = vmov 2   ;;  %v4846_v9 = vld [vmem:[%s8042_s12 + $0x30] sm:$0xff]  }
0x16eb   :  { %v3522_v10 = vpop.xlane.xlu1 %3521 }
0x16ec   :  { %v3549_v0 = vsel %vm3541_vm5, %v3540_v62, %v3522_v10  ;;  %v3563_v30 = vmax.f32 %v3556_v47, %v3558_v22  ;;  %v4849_v47 = vld [vmem:[%s8042_s12 + $0x18] sm:$0xff]  }
0x16ed   :  { %v3561_v51 = vsel %vm3550_vm6, %v3549_v0, -inf }
0x16ee   :  { %v3562_v46 = vmax.f32 %v3554_v49, %v3561_v51  ;;  %v4847_v49 = vld [vmem:[%s8042_s12 + $0x28] sm:$0xff]   ;;  %v4848_v51 = vld [vmem:[%s8042_s12 + $0x20] sm:$0xff]  }
0x16f0   :  { %v3564_v5 = vmax.f32 %v3560_v55, %v3562_v46  ;;  %v4850_v55 = vld [vmem:[%s8042_s12 + $0x10] sm:$0xff]   ;;  %v4851_v46 = vld [vmem:[%s8042_s12 + $0x8] sm:$0xff]  }
0x16f2   :  { %v3565_v34 = vmax.f32 %v3563_v30, %v3564_v5  ;;  %v4852_v30 = vld [vmem:[%s8042_s12] sm:$0xff]   ;;  %v4853_v5 = vld [vmem:[%s8044_s14 + $0x38] sm:$0xff]  }
0x16f3   :  { %4571 = vmatpush3.bf16.msra.mxu1 %v4853_v5 }
0x16f4   :  { %v3566_v7 = vsub.f32 %v3542_v16, %v3565_v34  ;;  %v3567_v39 = vsub.f32 %v3543_v59, %v3565_v34  ;;  %v3568_v27 = vsub.f32 %v3544_v54, %v3565_v34  ;;  %v3569_v11 = vsub.f32 %v3545_v42, %v3565_v34  ;;  %4572 = vmatprep.subr.bf16.mxu1 %v5545_v58 }
0x16f5   :  { %v3570_v24 = vsub.f32 %v3546_v2, %v3565_v34  ;;  %v3571_v18 = vsub.f32 %v3547_v8, %v3565_v34  ;;  %v3572_v25 = vsub.f32 %v3548_v56, %v3565_v34  ;;  %v3573_v60 = vsub.f32 %v3549_v0, %v3565_v34  ;;  %v4845_v0 = vld [vmem:[%s8042_s12 + $0x38] sm:$0xff]   ;;  %v4854_v34 = vld [vmem:[%s8044_s14 + $0x30] sm:$0xff]  }
0x16f6   :  { %v3574_v35 = vmul.f32 1.442695, %v3566_v7  ;;  %v3576_v52 = vmul.f32 1.442695, %v3567_v39  ;;  %v3578_v6 = vmul.f32 1.442695, %v3568_v27  ;;  %4551 = vmatpush3.bf16.msra.mxu0 %v4845_v0  ;;  %v4544_v7 = vpop.f32.mrf.mxu1 }
0x16f7   :  { %v3580_v63 = vmul.f32 1.442695, %v3569_v11  ;;  %v3582_v40 = vmul.f32 1.442695, %v3570_v24  ;;  %v3584_v44 = vmul.f32 1.442695, %v3571_v18  ;;  %4552 = vmatprep.subr.bf16.mxu0 %v5545_v58  ;;  %4573 = vmatpush3.bf16.msra.mxu1 %v4854_v34 }
0x16f8   :  { %5155 = vpow2.f32 %v3574_v35  ;;  %v3586_v45 = vmul.f32 1.442695, %v3572_v25  ;;  %v3588_v61 = vmul.f32 1.442695, %v3573_v60  ;;  %v5542_v54 = vmov 1   ;;  %v4855_v39 = vld [vmem:[%s8044_s14 + $0x28] sm:$0xff]   ;;  %4574 = vmatprep.subr.bf16.mxu1 %v5545_v58  ;;  %v3306_v27 = vpop.f32.mrf.mxu1 }
0x16f9   :  { %5157 = vpow2.f32 %v3576_v52  ;;  %v5543_v42 = vmov 3   ;;  %v4857_v35 = vld [vmem:[%s8044_s14 + $0x18] sm:$0xff]   ;;  %v8809_v52 = vld [vmem:[#allocation22_spill] sm:$0xff] }
0x16fa   :  { %5159 = vpow2.f32 %v3578_v6  ;;  %4553 = vmatpush3.bf16.msra.mxu0 %v4846_v9  ;;  %v4545_v24 = vpop.f32.mrf.mxu1  ;;  %v3074_v6 = vrot.slane %v7752_v13, %v8809_v52  ;;  %v4859_v13 = vld [vmem:[%s8044_s14 + $0x8] sm:$0xff]  }
0x16fb   :  { %5161 = vpow2.f32 %v3580_v63  ;;  %4554 = vmatprep.subr.bf16.mxu0 %v5545_v58  ;;  %4575 = vmatpush3.bf16.msra.mxu1 %v4855_v39 }
0x16fc   :  { %5163 = vpow2.f32 %v3582_v40  ;;  %4576 = vmatprep.subr.bf16.mxu1 %v5545_v58  ;;  %v3309_v18 = vpop.f32.mrf.mxu1  ;;  %v7917_v25 = vadd.f32 %v3306_v27, %v3074_v6  ;;  %v4858_v40 = vld [vmem:[%s8044_s14 + $0x10] sm:$0xff]  }
0x16fd   :  { %5165 = vpow2.f32 %v3584_v44  ;;  %v3310_v60 = vadd.f32 %v3309_v18, %v3074_v6 }
0x16fe   :  { %5167 = vpow2.f32 %v3586_v45  ;;  %4555 = vmatpush3.bf16.msra.mxu0 %v4847_v49 }
0x16ff   :  { %5169 = vpow2.f32 %v3588_v61  ;;  %4556 = vmatprep.subr.bf16.mxu0 %v5545_v58 }
0x1702   :  { %4557 = vmatpush3.bf16.msra.mxu0 %v4848_v51 }
0x1703   :  { %4558 = vmatprep.subr.bf16.mxu0 %v5545_v58 }
0x1705   :  { %v5156_v29 = vpop.eup %5155 }
0x1706   :  { %v5158_v43 = vpop.eup %5157  ;;  %v3590_v32 = vsel %vm3550_vm6, %v5156_v29, 0.0  ;;  %4559 = vmatpush3.bf16.msra.mxu0 %v4849_v47 }
0x1707   :  { %v5160_v21 = vpop.eup %5159  ;;  %v3591_v36 = vsel %vm3550_vm6, %v5158_v43, 0.0  ;;  %4560 = vmatprep.subr.bf16.mxu0 %v5545_v58 }
0x1708   :  { %v5162_v3 = vpop.eup %5161  ;;  %v3592_v14 = vadd.f32 %v3591_v36, %v3590_v32  ;;  %v3593_v53 = vsel %vm3550_vm6, %v5160_v21, 0.0 }
0x1709   :  { %v5164_v23 = vpop.eup %5163  ;;  %v3595_v1 = vsel %vm3550_vm6, %v5162_v3, 0.0 }
0x170a   :  { %v3594_v28 = vadd.f32 %v3593_v53, %v3592_v14  ;;  %v5166_v4 = vpop.eup %5165  ;;  %v3597_v41 = vsel %vm3550_vm6, %v5164_v23, 0.0  ;;  %4561 = vmatpush3.bf16.msra.mxu0 %v4850_v55 }
0x170b   :  { %v5168_v33 = vpop.eup %5167  ;;  %v3599_v15 = vsel %vm3550_vm6, %v5166_v4, 0.0  ;;  %4562 = vmatprep.subr.bf16.mxu0 %v5545_v58 }
0x170c   :  { %v3596_v50 = vadd.f32 %v3595_v1, %v3594_v28  ;;  %v5170_v59 = vpop.eup %5169  ;;  %v3601_v8 = vsel %vm3550_vm6, %v5168_v33, 0.0 }
0x170d   :  { %v3603_v12 = vsel %vm3550_vm6, %v5170_v59, 0.0 }
0x170e   :  { %v3598_v38 = vadd.f32 %v3597_v41, %v3596_v50  ;;  %4563 = vmatpush3.bf16.msra.mxu0 %v4851_v46 }
0x170f   :  { %4564 = vmatprep.subr.bf16.mxu0 %v5545_v58 }
0x1710   :  { %v3600_v2 = vadd.f32 %v3599_v15, %v3598_v38 }
0x1712   :  { %v3602_v56 = vadd.f32 %v3601_v8, %v3600_v2  ;;  %4565 = vmatpush3.bf16.msra.mxu0 %v4852_v30  ;;  %v4548_v8 = vpop.f32.mrf.mxu1 }
0x1713   :  { %4590 = vmatprep.subr.bf16.mxu0 %v5545_v58  ;;  %v7938_v49 = vadd.f32 %v4548_v8, %v3074_v6 }
0x1714   :  { %v3604_v20 = vadd.f32 %v3603_v12, %v3602_v56  ;;  %v3322_v12 = vpop.f32.mrf.mxu1 }
0x1715   :  { %v3323_v51 = vadd.f32 %v3322_v12, %v3074_v6 }
0x1716   :  { %5171 = vrcp.f32 %v3604_v20 }
0x1723   :  { %v5172_v31 = vpop.eup %5171 }
0x1724   :  { %v3607_v57 = vmul.f32 %v5172_v31, %v5158_v43  ;;  %v3606_v37 = vmul.f32 %v5172_v31, %v5156_v29  ;;  %v7830_v16 = vmul.f32 %v5172_v31, %v5166_v4  ;;  %v3609_v62 = vmul.f32 %v5172_v31, %v5162_v3 }
0x1725   :  { %v3610_v48 = vmul.f32 %v5172_v31, %v5164_v23  ;;  %v3608_v19 = vmul.f32 %v5172_v31, %v5160_v21  ;;  %v3612_v10 = vmul.f32 %v5172_v31, %v5168_v33  ;;  %v3613_v22 = vmul.f32 %v5172_v31, %v5170_v59 }
0x1726   :  { %3621 = vperm.xlu1 %4635, %v3607_v57   ;;  %3616 = vperm.xlu0 %4634, %v3606_v37  }
0x172a   :  { %4636 = vset.pattern.permute.xlu1 %v5542_v54  ;;  %4641 = vset.pattern.permute.xlu0 %v5543_v42 }
0x172b   :  { %3678 = vperm.xlu1 %4636, %v3606_v37   ;;  %3794 = vperm.xlu0 %4641, %v3607_v57  }
0x172f   :  { %3682 = vperm.xlu1 %4636, %v3607_v57   ;;  %4644 = vset.pattern.permute.xlu0 %v5542_v54 }
0x1730   :  { %3690 = vperm.xlu0 %4644, %v3609_v62  }
0x1733   :  { %4637 = vset.pattern.permute.xlu1 %v5544_v26 }
0x1734   :  { %3734 = vperm.xlu1 %4637, %v3606_v37   ;;  %4647 = vset.pattern.permute.xlu0 %v8417_v17 }
0x1735   :  { %3636 = vperm.xlu0 %4647, %v3610_v48  }
0x1738   :  { %3738 = vperm.xlu1 %4637, %v3607_v57   ;;  %v3315_v57 = vadd.f32 %v4544_v7, %v3074_v6 }
0x1739   :  { %4650 = vset.pattern.permute.xlu0 %v5544_v26 }
0x173a   :  { %3750 = vperm.xlu0 %4650, %v3610_v48  }
0x173c   :  { %4638 = vset.pattern.permute.xlu1 %v8417_v17 }
0x173d   :  { %3626 = vperm.xlu1 %4638, %v3608_v19  }
0x173e   :  { %4653 = vset.pattern.permute.xlu0 %v5543_v42 }
0x173f   :  { %3806 = vperm.xlu0 %4653, %v3610_v48  }
0x1741   :  { %4639 = vset.pattern.permute.xlu1 %v5542_v54 }
0x1742   :  { %3686 = vperm.xlu1 %4639, %v3608_v19  }
0x1743   :  { %4656 = vset.pattern.permute.xlu0 %v5542_v54 }
0x1744   :  { %3702 = vperm.xlu0 %4656, %v3612_v10  }
0x1746   :  { %4640 = vset.pattern.permute.xlu1 %v5543_v42 }
0x1747   :  { %3790 = vperm.xlu1 %4640, %v3606_v37   ;;  %v4549_v37 = vpop.f32.mrf.mxu1 }
0x1748   :  { %4659 = vset.pattern.permute.xlu0 %v8417_v17  ;;  %v7940_v47 = vadd.f32 %v4549_v37, %v3074_v6 }
0x1749   :  { %3651 = vperm.xlu0 %4659, %v3613_v22  }
0x174b   :  { %4642 = vset.pattern.permute.xlu1 %v5544_v26 }
0x174c   :  { %3742 = vperm.xlu1 %4642, %v3608_v19  }
0x174d   :  { %4662 = vset.pattern.permute.xlu0 %v5544_v26 }
0x174e   :  { %3762 = vperm.xlu0 %4662, %v3613_v22  }
0x1750   :  { %4643 = vset.pattern.permute.xlu1 %v8417_v17 }
0x1751   :  { %3631 = vperm.xlu1 %4643, %v3609_v62  }
0x1752   :  { %4664 = vset.pattern.permute.xlu0 %v8417_v17 }
0x1755   :  { %4645 = vset.pattern.permute.xlu1 %v5543_v42 }
0x1756   :  { %3798 = vperm.xlu1 %4645, %v3608_v19   ;;  %v3325_v19 = vpop.f32.mrf.mxu1 }
0x1757   :  { %v3326_v30 = vadd.f32 %v3325_v19, %v3074_v6 }
0x175a   :  { %4646 = vset.pattern.permute.xlu1 %v5544_v26 }
0x175b   :  { %3746 = vperm.xlu1 %4646, %v3609_v62  }
0x175f   :  { %4648 = vset.pattern.permute.xlu1 %v5542_v54 }
0x1760   :  { %3694 = vperm.xlu1 %4648, %v3610_v48  }
0x1764   :  { %4649 = vset.pattern.permute.xlu1 %v5543_v42 }
0x1765   :  { %3802 = vperm.xlu1 %4649, %v3609_v62  }
0x1769   :  { %4651 = vset.pattern.permute.xlu1 %v8417_v17 }
0x176a   :  { %3641 = vperm.xlu1 %4651, %v7830_v16  }
0x176e   :  { %4652 = vset.pattern.permute.xlu1 %v5542_v54 }
0x176f   :  { %3698 = vperm.xlu1 %4652, %v7830_v16  }
0x1773   :  { %4654 = vset.pattern.permute.xlu1 %v5544_v26 }
0x1774   :  { %3754 = vperm.xlu1 %4654, %v7830_v16  }
0x1778   :  { %4655 = vset.pattern.permute.xlu1 %v8417_v17 }
0x1779   :  { %3646 = vperm.xlu1 %4655, %v3612_v10  }
0x177d   :  { %4657 = vset.pattern.permute.xlu1 %v5543_v42 }
0x177e   :  { %3810 = vperm.xlu1 %4657, %v7830_v16  }
0x1782   :  { %4658 = vset.pattern.permute.xlu1 %v5544_v26 }
0x1783   :  { %3758 = vperm.xlu1 %4658, %v3612_v10  }
0x1787   :  { %4660 = vset.pattern.permute.xlu1 %v5542_v54 }
0x1788   :  { %3706 = vperm.xlu1 %4660, %v3613_v22  }
0x178c   :  { %4661 = vset.pattern.permute.xlu1 %v5543_v42  ;;  %v3318_v42 = vadd.f32 %v4545_v24, %v3074_v6 }
0x178d   :  { %3814 = vperm.xlu1 %4661, %v3612_v10  }
0x1791   :  { %3818 = vperm.xlu1 %4661, %v3613_v22  }
0x1795   :  { %4663 = vset.pattern.permute.xlu1 %v8417_v17  ;;  %v4856_v17 = vld [vmem:[%s8044_s14 + $0x20] sm:$0xff]  }
0x1796   :  { %4577 = vmatpush3.bf16.msra.mxu1 %v4856_v17 }
0x1797   :  { %4578 = vmatprep.subr.bf16.mxu1 %v5545_v58 }
0x179a   :  { %4579 = vmatpush3.bf16.msra.mxu1 %v4857_v35 }
0x179b   :  { %4580 = vmatprep.subr.bf16.mxu1 %v5545_v58 }
0x179e   :  { %4581 = vmatpush3.bf16.msra.mxu1 %v4858_v40 }
0x179f   :  { %4582 = vmatprep.subr.bf16.mxu1 %v5545_v58 }
0x17a1   :  { %v3622_v11 = vpop.permute.xlu1 %3621  ;;  %v3617_v4 = vpop.permute.xlu0 %3616 }
0x17a2   :  { %4583 = vmatpush3.bf16.msra.mxu1 %v4859_v13  ;;  %v3655_v16 = vmul.f32 %v3622_v11, %v3310_v60  ;;  %v3654_v54 = vmul.f32 %v3617_v4, %v7917_v25 }
0x17a3   :  { %4584 = vmatprep.subr.bf16.mxu1 %v5545_v58 }
0x17a4   :  { %v3663_v10 = vsel %vm3346_vm2, %v3655_v16, 0.0  ;;  %v3662_v22 = vsel %vm3346_vm2, %v3654_v54, 0.0 }
0x17a5   :  { %v3664_v5 = vadd.f32 %v3663_v10, %v3662_v22 }
0x17a6   :  { %v3679_v63 = vpop.permute.xlu1 %3678  ;;  %v3795_v41 = vpop.permute.xlu0 %3794 }
0x17a7   :  { %v3709_v44 = vmul.f32 %v3679_v63, %v7917_v25  ;;  %v3822_v34 = vmul.f32 %v3795_v41, %v3310_v60 }
0x17a9   :  { %v3718_v29 = vsel %vm3717_vm8, %v3709_v44, 0.0  ;;  %v3831_v6 = vsel %vm3829_vm9, %v3822_v34, 0.0 }
0x17aa   :  { %v3683_v45 = vpop.permute.xlu1 %3682 }
0x17ab   :  { %v3710_v61 = vmul.f32 %v3683_v45, %v3310_v60  ;;  %v3691_v15 = vpop.permute.xlu0 %3690 }
0x17ac   :  { %v3712_v39 = vmul.f32 %v3691_v15, %v3318_v42 }
0x17ad   :  { %v3719_v43 = vsel %vm3717_vm8, %v3710_v61, 0.0 }
0x17ae   :  { %v3720_v32 = vadd.f32 %v3719_v43, %v3718_v29  ;;  %v3723_v29 = vsel %vm3717_vm8, %v3712_v39, 0.0 }
0x17af   :  { %v3735_v21 = vpop.permute.xlu1 %3734 }
0x17b0   :  { %v3637_v2 = vpop.permute.xlu0 %3636  ;;  %v3765_v11 = vmul.f32 %v3735_v21, %v7917_v25 }
0x17b1   :  { %v3658_v24 = vmul.f32 %v3637_v2, %v3323_v51 }
0x17b3   :  { %v3739_v36 = vpop.permute.xlu1 %3738 }
0x17b4   :  { %v3766_v7 = vmul.f32 %v3739_v36, %v3310_v60  ;;  %v3774_v36 = vsel %vm3773_vm10, %v3765_v11, 0.0 }
0x17b5   :  { %v3751_v20 = vpop.permute.xlu0 %3750 }
0x17b6   :  { %v3775_v60 = vsel %vm3773_vm10, %v3766_v7, 0.0  ;;  %v3769_v8 = vmul.f32 %v3751_v20, %v3323_v51 }
0x17b8   :  { %v3627_v3 = vpop.permute.xlu1 %3626 }
0x17b9   :  { %v3656_v62 = vmul.f32 %v3627_v3, %v3315_v57  ;;  %v3669_v3 = vsel %vm3346_vm2, %v3658_v24, 0.0 }
0x17ba   :  { %v3807_v48 = vpop.permute.xlu0 %3806 }
0x17bb   :  { %v3665_v55 = vsel %vm3346_vm2, %v3656_v62, 0.0  ;;  %v3825_v10 = vmul.f32 %v3807_v48, %v3323_v51 }
0x17bc   :  { %v3666_v35 = vadd.f32 %v3665_v55, %v3664_v5  ;;  %v3781_v5 = vsel %vm3773_vm10, %v3769_v8, 0.0  ;;  %v4863_v8 = vld [vmem:[%s8046_s16 + $0x8] sm:$0xff]  }
0x17bd   :  { %v3687_v14 = vpop.permute.xlu1 %3686 }
0x17be   :  { %v3711_v26 = vmul.f32 %v3687_v14, %v3315_v57 }
0x17bf   :  { %v3703_v18 = vpop.permute.xlu0 %3702 }
0x17c0   :  { %v3721_v46 = vsel %vm3717_vm8, %v3711_v26, 0.0 }
0x17c1   :  { %v3722_v52 = vadd.f32 %v3721_v46, %v3720_v32 }
0x17c2   :  { %v3791_v53 = vpop.permute.xlu1 %3790 }
0x17c3   :  { %v3821_v61 = vmul.f32 %v3791_v53, %v7917_v25 }
0x17c7   :  { %v3743_v23 = vpop.permute.xlu1 %3742 }
0x17c8   :  { %v3767_v40 = vmul.f32 %v3743_v23, %v3315_v57  ;;  %v3724_v23 = vadd.f32 %v3723_v29, %v3722_v52 }
0x17ca   :  { %v3777_v4 = vsel %vm3773_vm10, %v3767_v40, 0.0 }
0x17cc   :  { %v3632_v28 = vpop.permute.xlu1 %3631 }
0x17cd   :  { %v3657_v0 = vmul.f32 %v3632_v28, %v3318_v42  ;;  %v3776_v28 = vadd.f32 %v3775_v60, %v3774_v36 }
0x17cf   :  { %v3667_v27 = vsel %vm3346_vm2, %v3657_v0, 0.0 }
0x17d0   :  { %v3668_v13 = vadd.f32 %v3667_v27, %v3666_v35  ;;  %v3837_v35 = vsel %vm3829_vm9, %v3825_v10, 0.0  ;;  %v4866_v10 = vld [vmem:[%s8048_s18] sm:$0xff]  }
0x17d1   :  { %v3799_v1 = vpop.permute.xlu1 %3798 }
0x17d2   :  { %v3823_v14 = vmul.f32 %v3799_v1, %v3315_v57  ;;  %v3670_v2 = vadd.f32 %v3669_v3, %v3668_v13  ;;  %v3778_v57 = vadd.f32 %v3777_v4, %v3776_v28  ;;  %v4861_v4 = vld [vmem:[%s8046_s16 + $0x18] sm:$0xff]  }
0x17d4   :  { %v3833_v37 = vsel %vm3829_vm9, %v3823_v14, 0.0 }
0x17d6   :  { %v3747_v50 = vpop.permute.xlu1 %3746 }
0x17d7   :  { %v3768_v43 = vmul.f32 %v3747_v50, %v3318_v42  ;;  %v3830_v50 = vsel %vm3829_vm9, %v3821_v61, 0.0 }
0x17d8   :  { %v3832_v62 = vadd.f32 %v3831_v6, %v3830_v50 }
0x17d9   :  { %v3779_v1 = vsel %vm3773_vm10, %v3768_v43, 0.0 }
0x17db   :  { %v3695_v33 = vpop.permute.xlu1 %3694 }
0x17dc   :  { %v3713_v17 = vmul.f32 %v3695_v33, %v3323_v51  ;;  %v3652_v33 = vpop.permute.xlu0 %3651 }
0x17dd   :  { %v3661_v26 = vmul.f32 %v3652_v33, %v7940_v47 }
0x17de   :  { %v3725_v21 = vsel %vm3717_vm8, %v3713_v17, 0.0 }
0x17df   :  { %v3726_v15 = vadd.f32 %v3725_v21, %v3724_v23  ;;  %v3675_v39 = vsel %vm3346_vm2, %v3661_v26, 0.0 }
0x17e0   :  { %v7931_v38 = vpop.permute.xlu1 %3802  ;;  %v3763_v27 = vpop.permute.xlu0 %3762 }
0x17e5   :  { %v3642_v59 = vpop.permute.xlu1 %3641 }
0x17e6   :  { %v3659_v44 = vmul.f32 %v3642_v59, %v3326_v30  ;;  %v3824_v59 = vmul.f32 %v7931_v38, %v3318_v42  ;;  %v3780_v38 = vadd.f32 %v3779_v1, %v3778_v57  ;;  %v4469_v1 = vld [vmem:[%s8045_s15] ss:$0 sm:$0xff] }
0x17e8   :  { %v3671_v41 = vsel %vm3346_vm2, %v3659_v44, 0.0  ;;  %v3835_v20 = vsel %vm3829_vm9, %v3824_v59, 0.0  ;;  %v3782_v17 = vadd.f32 %v3781_v5, %v3780_v38  ;;  %v4478_v38 = vld [vmem:[%s8047_s17] ss:$0 sm:$0xff] }
0x17e9   :  { %v3672_v16 = vadd.f32 %v3671_v41, %v3670_v2  ;;  %v4862_v41 = vld [vmem:[%s8046_s16 + $0x10] sm:$0xff]   ;;  %v4484_v5 = vld [vmem:[%s8049_s19] ss:$0 sm:$0xff] }
0x17ea   :  { %v3699_v56 = vpop.permute.xlu1 %3698 }
0x17eb   :  { %v3714_v45 = vmul.f32 %v3699_v56, %v3326_v30  ;;  %v3715_v56 = vmul.f32 %v3703_v18, %v7938_v49 }
0x17ed   :  { %v3727_v25 = vsel %vm3717_vm8, %v3714_v45, 0.0  ;;  %v3729_v0 = vsel %vm3717_vm8, %v3715_v56, 0.0  ;;  %v3772_v45 = vmul.f32 %v3763_v27, %v7940_v47  ;;  %v4864_v56 = vld [vmem:[%s8046_s16] sm:$0xff]  }
0x17ee   :  { %v3728_v54 = vadd.f32 %v3727_v25, %v3726_v15  ;;  %v4460_v25 = vld [vmem:[#allocation13] ss:$0 sm:$0xff] }
0x17ef   :  { %v7933_v31 = vpop.permute.xlu1 %3754  ;;  %v3787_v21 = vsel %vm3773_vm10, %v3772_v45, 0.0 }
0x17f0   :  { %v3770_v19 = vmul.f32 %v7933_v31, %v3326_v30  ;;  %v3730_v7 = vadd.f32 %v3729_v0, %v3728_v54 }
0x17f2   :  { %v3783_v48 = vsel %vm3773_vm10, %v3770_v19, 0.0  ;;  %v4865_v19 = vld [vmem:[%s8048_s18 + $0x8] sm:$0xff]   ;;  %s5547_s18 = smov 127  }
0x17f3   :  { %v3784_v40 = vadd.f32 %v3783_v48, %v3782_v17 }
0x17f4   :  { %v3647_v9 = vpop.permute.xlu1 %3646 }
0x17f5   :  { %v3660_v32 = vmul.f32 %v3647_v9, %v7938_v49  ;;  %v3834_v9 = vadd.f32 %v3833_v37, %v3832_v62 }
0x17f7   :  { %v3673_v12 = vsel %vm3346_vm2, %v3660_v32, 0.0  ;;  %v3836_v31 = vadd.f32 %v3835_v20, %v3834_v9 }
0x17f8   :  { %v3674_v42 = vadd.f32 %v3673_v12, %v3672_v16 }
0x17f9   :  { %v3811_v63 = vpop.permute.xlu1 %3810  ;;  %v3838_v6 = vadd.f32 %v3837_v35, %v3836_v31 }
0x17fa   :  { %v3826_v34 = vmul.f32 %v3811_v63, %v3326_v30  ;;  %v3676_v11 = vadd.f32 %v3675_v39, %v3674_v42 }
0x17fc   :  { %v3839_v30 = vsel %vm3829_vm9, %v3826_v34, 0.0 }
0x17fd   :  { %v3840_v13 = vadd.f32 %v3839_v30, %v3838_v6 }
0x17fe   :  { %v3759_v53 = vpop.permute.xlu1 %3758 }
0x17ff   :  { %v3771_v55 = vmul.f32 %v3759_v53, %v7938_v49 }
0x1801   :  { %v3785_v52 = vsel %vm3773_vm10, %v3771_v55, 0.0 }
0x1802   :  { %v3786_v60 = vadd.f32 %v3785_v52, %v3784_v40 }
0x1803   :  { %v3707_v22 = vpop.permute.xlu1 %3706 }
0x1804   :  { %v3716_v46 = vmul.f32 %v3707_v22, %v7940_v47  ;;  %v3788_v36 = vadd.f32 %v3787_v21, %v3786_v60 }
0x1806   :  { %v3731_v51 = vsel %vm3717_vm8, %v3716_v46, 0.0 }
0x1807   :  { %v3732_v24 = vadd.f32 %v3731_v51, %v3730_v7 }
0x1808   :  { %v3815_v18 = vpop.permute.xlu1 %3814 }
0x1809   :  { %v3845_v63 = vsel %vm3346_vm2, %v3676_v11, %v3732_v24  ;;  %v3827_v44 = vmul.f32 %v3815_v18, %v7938_v49 }
0x180a   :  { %v3847_v49 = vsel %vm3846_vm11, %v3845_v63, %v3788_v36 }
0x180b   :  { %v3841_v61 = vsel %vm3829_vm9, %v3827_v44, 0.0 }
0x180c   :  { %v3819_v29 = vpop.permute.xlu1 %3818  ;;  %v3842_v32 = vadd.f32 %v3841_v61, %v3840_v13 }
0x180d   :  { %v3828_v43 = vmul.f32 %v3819_v29, %v7940_v47  ;;  %v4860_v47 = vld [vmem:[%s8044_s14] sm:$0xff]  }
0x180e   :  { %4585 = vmatpush3.bf16.msra.mxu1 %v4860_v47 }
0x180f   :  { %v3843_v3 = vsel %vm3829_vm9, %v3828_v43, 0.0  ;;  %4602 = vmatprep.subr.bf16.mxu1 %v5545_v58 }
0x1810   :  { %v3844_v14 = vadd.f32 %v3843_v3, %v3842_v32 }
0x1812   :  { %v3849_v23 = vsel %vm3848_vm12, %v3847_v49, %v3844_v14 }
0x1813   :  { %v3850_v28 = vpack.c.bf16 %v3849_v23, %v3849_v23 }
0x1815   :  { %4567 = vmatmul.mubr.bf16.vlgmr.msra.gmra.mxu0 %v3850_v28 }
0x1816   :  { %4598 = vmatprep.mubr.msk.bf16.mxu0 %vm5546_vm7, %v5545_v58  ;;  %4591 = vmatpush3.bf16.msra.mxu0 %v4861_v4 }
0x1817   :  { %4592 = vmatprep.subr.bf16.mxu0 %v5545_v58 }
0x181a   :  { %4593 = vmatpush3.bf16.msra.mxu0 %v4862_v41 }
0x181b   :  { %4594 = vmatprep.subr.bf16.mxu0 %v5545_v58 }
0x181e   :  { %4595 = vmatpush3.bf16.msra.mxu0 %v4863_v8 }
0x181f   :  { %4596 = vmatprep.subr.bf16.mxu0 %v5545_v58 }
0x1822   :  { %4597 = vmatpush3.bf16.msra.mxu0 %v4864_v56 }
0x18d5   :  { %v3956_v53 = vpop.f32.mrf.mxu0 }
0x18d6   :  { %v3957_v50 = vadd.f32 %v4460_v25, %v3956_v53 }
0x18d7   :  { %v4568_v33 = vpop.f32.mrf.mxu0 }
0x18d8   :  { %v3962_v15 = vpack.c.bf16 %v3957_v50, %v3957_v50 }
0x18d9   :  { %v3959_v59 = vpop.f32.mrf.mxu0 }
0x18da   :  { %4587 = vmatmul.mubr.bf16.vlgmr.msra.gmra.mxu1 %v3962_v15 }
0x18db   :  { %v4569_v2 = vpop.f32.mrf.mxu0  ;;  %4606 = vmatprep.mubr.msk.bf16.mxu1 %vm5546_vm7, %v5545_v58  ;;  %4603 = vmatpush3.bf16.msra.mxu1 %v4865_v19 }
0x18dc   :  { %4604 = vmatprep.subr.bf16.mxu1 %v5545_v58 }
0x18df   :  { %4605 = vmatpush3.bf16.msra.mxu1 %v4866_v10 }
0x199a   :  { %v4068_v12 = vpop.f32.mrf.mxu1 }
0x199b   :  { %v4069_v57 = vadd.f32 %v4469_v1, %v4068_v12 }
0x199c   :  { %v4588_v37 = vpop.f32.mrf.mxu1 }
0x199d   :  { %v4074_v16 = vmax.f32 %v4069_v57, 0.0 }
0x199e   :  { %v4071_v54 = vpop.f32.mrf.mxu1 }
0x199f   :  { %v4075_v62 = vpack.c.bf16 %v4074_v16, %v4074_v16 }
0x19a0   :  { %v4589_v26 = vpop.f32.mrf.mxu1 }
0x19a1   :  { %4599 = vmatmul.mubr.msk.bf16.vlgmr.msra.gmra.mxu0 %vm3846_vm11, %v4075_v62 }
0x1a61   :  { %v4152_v20 = vpop.f32.mrf.mxu0 }
0x1a62   :  { %v4153_v42 = vadd.f32 %v4478_v38, %v4152_v20 }
0x1a63   :  { %v4600_v22 = vpop.f32.mrf.mxu0 }
0x1a64   :  { %v4158_v0 = vmax.f32 %v4153_v42, 0.0 }
0x1a65   :  { %v4155_v9 = vpop.f32.mrf.mxu0 }
0x1a66   :  { %v4159_v55 = vpack.c.bf16 %v4158_v0, %v4158_v0 }
0x1a67   :  { %v4601_v46 = vpop.f32.mrf.mxu0 }
0x1a68   :  { %4607 = vmatmul.mubr.msk.bf16.vlgmr.msra.gmra.mxu1 %vm3346_vm2, %v4159_v55 }
0x1b28   :  { %v4220_v34 = vpop.f32.mrf.mxu1 }
0x1b29   :  { %v4221_v58 = vadd.f32 %v4484_v5, %v4220_v34 }
0x1b2a   :  { %v4608_v7 = vpop.f32.mrf.mxu1 }
0x1b2b   :  { %4227 = vrot.lane.b32.xlu1 %v4221_v58, %s5547_s18 }
0x1b2c   :  { %v4223_v39 = vpop.f32.mrf.mxu1 }
0x1b2e   :  { %v4609_v31 = vpop.f32.mrf.mxu1 }
0x1b2f   :  { %4247 = vperm.xlu1 %4663, %v4221_v58  }
0x1b9d   :  { %v4228_v48 = vpop.permute.xlu1 %4227 }
0x1b9e   :  { %v4231_v51 = vsel %vm4230_vm13, %v4228_v48, 0.0 }
0x1b9f   :  { %4232 = vadd.xlane.f32.xlu0 %v4231_v51 }
0x1baa   :  { %v4248_v63 = vpop.permute.xlu1 %4247 }
0x1c28   :  { %v4233_v27 = vpop.xlane.xlu0 %4232 }
0x1c29   :  { %v4234_v17 = vrot.slane %v4233_v27, 4 }
0x1c2b   :  { %v4235_v11 = vadd.f32 %v4234_v17, %v4233_v27 }
0x1c2d   :  { %v4236_v24 = vrot.slane %v4235_v11, 2 }
0x1c2f   :  { %v4237_v35 = vadd.f32 %v4236_v24, %v4235_v11 }
0x1c31   :  { %v4238_v52 = vrot.slane %v4237_v35, 1 }
0x1c33   :  { %v4239_v18 = vadd.f32 %v4238_v52, %v4237_v35 }
0x1c35   :  { %4610 = vpush %v4239_v18 }
0x1c66   :  { %s4611_s17 = spop %4610 }
0x1c67   :  { %s4243_s19 = smul.f32 0.16666667, %s4611_s17 }
0x1c69   :  { %v4244_v40 = vstv %s4243_s19 }
0x1c6a   :  { %v4245_v30 = vsub.f32 %v4221_v58, %v4244_v40 }
0x1c6c   :  { %v4250_v44 = vadd.f32 %v4248_v63, %v4245_v30 }
0x1c6e   :  { %4252 = vrot.lane.b32.xlu1 %v4250_v44, %s5547_s18 }
0x1ce0   :  { %v4253_v45 = vpop.permute.xlu1 %4252 }
0x1ce1   :  { %4255 = vst.msk [vmem:[#allocation15] sm:$0x3] %vm4230_vm13, %v4253_v45 }
0x1ce2   :  { %5508 = shalt.err (!%p5505_p6)
}
0x1ce3   :  { %4265 = dma.vmem_to_hbm [thread:$0]  %s4263_s4, 32, %s8050_s20, [#allocation6]  }
0x1ce4   :  { %5525 = dma.done.wait [#allocation6], 32  }
0x1ce5   :  { %5526 = vsyncadd [#allocation6], 4294967264 }
0x1ce6   :  { %4269 = vsyncpa [#allocation5], 1 }
0x1ce7   :  { %4270 = vsyncpa [#allocation8], 1 }
0x1ce8   :  { %4271 = vsyncpa [#allocation11], 1 }
0x1ce9   :  { %4272 = vsyncpa [#allocation14], 1 }
0x1cea   :  { %4273 = vsyncpa [#allocation6], 1 }

</bundles_post_ra>
